<compile_context>
chip_gen: v7x
topology: tpu7x:2x2x1
jax: 0.10.0
libtpu: 0.0.40
codegen_flags: <defaults>
</compile_context>

<pallas_src>
import functools
import math

import jax
import jax.numpy as jnp
from jax.experimental import pallas as pl
from jax.experimental.pallas import tpu as pltpu


# ----------------------------------------------------------------------------- #
# Fused Pallas kernel: one grid step == one block of B batch items
# ----------------------------------------------------------------------------- #
def _mvit_kernel(
    patches_ref, cols_ref,
    w_emb_ref, b_emb_ref, pos_ref,
    wqkv_ref, bqkv_ref, wo_ref, bo_ref,
    ln1w_ref, ln1b_ref, w1_ref, b1_ref, w2_ref, b2_ref, ln2w_ref, ln2b_ref,
    wc3_ref, bc3_ref,
    rw1_ref, rb1_ref, rw2_ref, rb2_ref, rw3_ref, rb3_ref,
    y_ref, maps_ref,
    *, B, S, HW, nheads, nlayers, nq, ln_eps, reg_eps,
):
    f32 = jnp.float32

    # ---- PatchEncoder.embedding_conv (im2col matmul) + positional encodings ----
    w_emb = w_emb_ref[...]
    mxu = w_emb.dtype                         # MXU operand dtype (f32 or bf16)
    x = (jnp.dot(patches_ref[...].astype(mxu), w_emb, preferred_element_type=f32)
         + b_emb_ref[...] + pos_ref[...])     # (B*S, E), f32
    E = x.shape[-1]
    dh = E // nheads

    def layer_norm(z, w, b):
        mu = jnp.mean(z, axis=-1, keepdims=True)
        var = jnp.mean((z - mu) ** 2, axis=-1, keepdims=True)
        return (z - mu) * jax.lax.rsqrt(var + ln_eps) * w + b

    # ---- 4 transformer encoder layers (post-norm, ReLU FFN, eval mode) ----
    for l in range(nlayers):          # static unroll; per-layer weights stacked on axis 0
        wqkv = wqkv_ref[l]            # (E, 3E)  merged in-projection, Q rows pre-scaled
        wo = wo_ref[l]                # (E, E)   original torch out_proj (transposed)
        w1 = w1_ref[l]                # (E, F)
        w2 = w2_ref[l]                # (F, E)

        # Merged QKV projection: ONE (B*S,E)@(E,3E) matmul (1/sqrt(dh) folded in).
        qkv = (jnp.dot(x.astype(mxu), wqkv, preferred_element_type=f32)
               + bqkv_ref[l])                                     # (B*S, 3E)

        # Attention: per item / per head (S=16, dh=8 -- negligible next to the FFN).
        attn_items = []
        for b in range(B):
            r = b * S
            head_outs = []
            for hd in range(nheads):
                c = hd * dh
                qh = qkv[r:r + S, c:c + dh]                       # (S, dh)
                kh = qkv[r:r + S, E + c:E + c + dh]
                vh = qkv[r:r + S, 2 * E + c:2 * E + c + dh]
                s = jax.lax.dot_general(qh, kh, (((1,), (1,)), ((), ())),
                                        preferred_element_type=f32)   # (S, S)
                s = s - jnp.max(s, axis=-1, keepdims=True)
                p = jnp.exp(s)
                p = p * pl.reciprocal(jnp.sum(p, axis=-1, keepdims=True),
                                      approx=True)
                head_outs.append(jnp.dot(p, vh, preferred_element_type=f32))
            attn_items.append(jnp.concatenate(head_outs, axis=-1))    # (S, E)
        attn = jnp.concatenate(attn_items, axis=0)                    # (B*S, E)

        # Merged output projection: ONE (B*S,E)@(E,E) matmul (no per-head reduce).
        attn = (jnp.dot(attn.astype(mxu), wo, preferred_element_type=f32)
                + bo_ref[l])

        x1 = layer_norm(x + attn, ln1w_ref[l], ln1b_ref[l])

        # FFN, batch-folded over B*S rows.
        # TODO(synk): for much larger B*S, chunk the 1024-wide up-projection and fuse
        # the down-projection per 256-lane chunk so the full intermediate never lives.
        h1 = jnp.maximum(
            jnp.dot(x1.astype(mxu), w1, preferred_element_type=f32) + b1_ref[l], 0.0)
        h2 = jnp.dot(h1.astype(mxu), w2, preferred_element_type=f32) + b2_ref[l]
        x = layer_norm(x1 + h2, ln2w_ref[l], ln2b_ref[l])

    # ---- conv3x3 (im2col matmul), batch-folded: (B*HW, Cin*9) @ (Cin*9, E) ----
    xc = (jnp.dot(cols_ref[...].astype(mxu), wc3_ref[...],
                  preferred_element_type=f32) + bc3_ref[...])          # (B*HW, E)

    # ---- PixelWiseDotProduct per item: (nq,E) x (HW,E) -> (nq, HW) lane-dense ----
    for b in range(B):
        qrows = x[b * S + 1:b * S + 1 + nq, :]                         # (nq, E)
        xcb = xc[b * HW:(b + 1) * HW, :]                               # (HW, E)
        maps_ref[b] = jax.lax.dot_general(qrows, xcb, (((1,), (1,)), ((), ())),
                                          preferred_element_type=f32)

    # ---- regressor on the B head tokens, batched into one (B, E) matmul chain ----
    head_tok = jnp.concatenate([x[b * S:b * S + 1, :] for b in range(B)], axis=0)

    def leaky(z):
        return jnp.where(z >= 0.0, z, 0.01 * z)

    h = leaky(jnp.dot(head_tok.astype(mxu), rw1_ref[...],
                      preferred_element_type=f32) + rb1_ref[...])
    h = leaky(jnp.dot(h.astype(mxu), rw2_ref[...],
                      preferred_element_type=f32) + rb2_ref[...])
    yv = jnp.dot(h.astype(mxu), rw3_ref[...], preferred_element_type=f32) + rb3_ref[...]
    yv = jnp.maximum(yv, 0.0) + reg_eps
    # Exact divide: rows must sum to 1 within f32 eps (matches torch 'linear' norm).
    D = yv.shape[-1]
    y_ref[...] = (yv / jnp.sum(yv, axis=-1, keepdims=True)).reshape(B, 1, D)


# ----------------------------------------------------------------------------- #
# Parameters: synthetic PyTorch-shaped weights, converted ONCE to kernel layout
# ----------------------------------------------------------------------------- #
def init_params(key, cfg):
    keys = iter(jax.random.split(key, 64))

    def rnd(shape, scale=0.05):
        return (scale * jax.random.normal(next(keys), shape)).astype(jnp.float32)

    E = cfg["embedding_dim"]
    Cin = cfg["in_channels"]
    P = cfg["patch_size"]
    Hh = cfg["num_heads"]
    assert E % Hh == 0
    dh = E // Hh
    F = 1024     # dim_feedforward hardcoded in the torch module
    R = 256      # regressor hidden width hardcoded in the torch module
    D = cfg["dim_out"]
    L = 4
    scale = 1.0 / math.sqrt(dh)

    # --- PyTorch-shaped synthetic weights ---
    emb_conv_w = rnd((E, Cin, P, P)); emb_conv_b = rnd((E,))
    pos = rnd((cfg["n_embeddings"], E))
    conv3_w = rnd((E, Cin, 3, 3)); conv3_b = rnd((E,))
    reg_w1 = rnd((R, E)); reg_b1 = rnd((R,))
    reg_w2 = rnd((R, R)); reg_b2 = rnd((R,))
    reg_w3 = rnd((D, R)); reg_b3 = rnd((D,))

    # --- convert to kernel layout (pre-transposed, scale-folded, layer-stacked) ---
    wqkv, bqkv, wo, bo = [], [], [], []
    ln1w, ln1b, ln2w, ln2b = [], [], [], []
    w1s, b1s, w2s, b2s = [], [], [], []
    for _ in range(L):
        in_w = rnd((3 * E, E)); in_b = rnd((3 * E,))
        out_w = rnd((E, E)); out_b = rnd((E,))
        w1 = rnd((F, E)); b1 = rnd((F,))
        w2 = rnd((E, F)); b2 = rnd((E,))
        # fold the 1/sqrt(dh) attention scale into the Q rows of the in-projection
        in_w = in_w.at[:E].multiply(scale)
        in_b = in_b.at[:E].multiply(scale)
        wqkv.append(in_w.T)                      # (E, 3E)  -> x @ wqkv == in_proj
        bqkv.append(in_b.reshape(1, 3 * E))
        wo.append(out_w.T)                       # (E, E)
        bo.append(out_b.reshape(1, E))
        ln1w.append(jnp.ones((1, E), jnp.float32)); ln1b.append(jnp.zeros((1, E), jnp.float32))
        ln2w.append(jnp.ones((1, E), jnp.float32)); ln2b.append(jnp.zeros((1, E), jnp.float32))
        w1s.append(w1.T); b1s.append(b1.reshape(1, F))
        w2s.append(w2.T); b2s.append(b2.reshape(1, E))

    return dict(
        w_emb=emb_conv_w.reshape(E, Cin * P * P).T, b_emb=emb_conv_b.reshape(1, E),
        pos=pos,
        w_c3=conv3_w.reshape(E, Cin * 9).T, b_c3=conv3_b.reshape(1, E),
        wqkv=jnp.stack(wqkv), bqkv=jnp.stack(bqkv),
        wo=jnp.stack(wo), bo=jnp.stack(bo),
        ln1_w=jnp.stack(ln1w), ln1_b=jnp.stack(ln1b),
        w1=jnp.stack(w1s), b1=jnp.stack(b1s),
        w2=jnp.stack(w2s), b2=jnp.stack(b2s),
        ln2_w=jnp.stack(ln2w), ln2_b=jnp.stack(ln2b),
        reg_w1=reg_w1.T, reg_b1=reg_b1.reshape(1, R),
        reg_w2=reg_w2.T, reg_b2=reg_b2.reshape(1, R),
        reg_w3=reg_w3.T, reg_b3=reg_b3.reshape(1, D),
    )


# ----------------------------------------------------------------------------- #
# Forward pass: layout glue in plain JAX, everything else in ONE pallas_call
# ----------------------------------------------------------------------------- #
def mvit_forward(params, x, cfg, *, compute_dtype=jnp.float32):
    N, Cin, H, W = x.shape
    P = cfg["patch_size"]
    nq = cfg["n_query_channels"]
    nheads = cfg["num_heads"]
    D = cfg["dim_out"]
    Hp, Wp = H // P, W // P
    S = Hp * Wp
    HW = H * W
    L = params["w1"].shape[0]

    # Batch block size: fill MXU rows (target ~128), but keep >= 2 grid steps when
    # N > 1 so dimension_semantics=("parallel",) can use both v7x TensorCores.
    target_rows = 128
    B = max(1, min(N, max(1, target_rows // S)))
    G = -(-N // B)
    if N > 1 and G < 2:
        B = -(-N // 2)
        G = -(-N // B)
    N_pad = G * B
    if N_pad != N:
        x_p = jnp.concatenate(
            [x, jnp.zeros((N_pad - N, Cin, H, W), x.dtype)], axis=0)
    else:
        x_p = x

    # --- im2col for the patch-embedding conv (k=P, stride=P), flattened to 2D ---
    patches = x_p.reshape(N_pad, Cin, Hp, P, Wp, P).transpose(0, 2, 4, 1, 3, 5)
    patches = patches.reshape(N_pad * S, Cin * P * P)

    # --- im2col for the 3x3 conv (stride 1, pad 1), flattened to 2D ---
    xpad = jnp.pad(x_p, ((0, 0), (0, 0), (1, 1), (1, 1)))
    cols = jnp.stack([xpad[:, :, dy:dy + H, dx:dx + W]
                      for dy in range(3) for dx in range(3)], axis=2)   # (N,Cin,9,H,W)
    cols = cols.transpose(0, 3, 4, 1, 2).reshape(N_pad * HW, Cin * 9)
    # TODO(synk): at production resolutions build this im2col inside the kernel from a
    # VMEM-resident input (9 shifted accumulations tiled over H*W) instead of
    # materializing 9x the input in HBM.

    pos_tiled = jnp.tile(params["pos"][:S, :], (B, 1))          # (B*S, E)

    def cast(w):        # optional bf16 MXU operands (v6e/v7x); f32 by default
        return w.astype(compute_dtype)

    weights = (
        cast(params["w_emb"]), params["b_emb"], pos_tiled,
        cast(params["wqkv"]), params["bqkv"], cast(params["wo"]), params["bo"],
        params["ln1_w"], params["ln1_b"], cast(params["w1"]), params["b1"],
        cast(params["w2"]), params["b2"], params["ln2_w"], params["ln2_b"],
        cast(params["w_c3"]), params["b_c3"],
        cast(params["reg_w1"]), params["reg_b1"],
        cast(params["reg_w2"]), params["reg_b2"],
        cast(params["reg_w3"]), params["reg_b3"],
    )

    def full_spec(a):   # weights: constant index_map -> loaded into VMEM once
        zeros = (0,) * a.ndim
        return pl.BlockSpec(a.shape, lambda n, _z=zeros: _z)

    in_specs = ([pl.BlockSpec((B * S, Cin * P * P), lambda n: (n, 0)),
                 pl.BlockSpec((B * HW, Cin * 9), lambda n: (n, 0))]
                + [full_spec(w) for w in weights])

    y3, maps = pl.pallas_call(
        functools.partial(_mvit_kernel, B=B, S=S, HW=HW, nheads=nheads,
                          nlayers=L, nq=nq, ln_eps=1e-5, reg_eps=0.1),
        out_shape=(jax.ShapeDtypeStruct((N_pad, 1, D), jnp.float32),
                   jax.ShapeDtypeStruct((N_pad, nq, HW), jnp.float32)),
        grid=(G,),
        in_specs=in_specs,
        out_specs=(pl.BlockSpec((B, 1, D), lambda n: (n, 0, 0)),
                   pl.BlockSpec((B, nq, HW), lambda n: (n, 0, 0))),
        compiler_params=pltpu.CompilerParams(
            dimension_semantics=("parallel",)),      # shard blocks across TCs on v7x
    )(patches, cols, *weights)

    y = y3[:N, 0, :]
    maps = maps[:N].reshape(N, nq, H, W)
    return y, maps


# ----------------------------------------------------------------------------- #
if __name__ == "__main__":
    cfg = dict(
        input_size=(16, 16),
        in_channels=4,
        n_query_channels=8,
        patch_size=4,
        dim_out=16,
        embedding_dim=32,
        num_heads=4,
    )
    cfg["n_embeddings"] = (cfg["input_size"][0] * cfg["input_size"][1]) // cfg["patch_size"] ** 2

    key = jax.random.PRNGKey(0)
    kp, kx = jax.random.split(key)
    params = init_params(kp, cfg)
    x = jax.random.normal(kx, (2, cfg["in_channels"], *cfg["input_size"]), dtype=jnp.float32)

    fwd = jax.jit(functools.partial(mvit_forward, cfg=cfg))
    y, maps = fwd(params, x)
    (y, maps) = jax.block_until_ready((y, maps))

    assert y.shape == (2, cfg["dim_out"])
    assert maps.shape == (2, cfg["n_query_channels"], 16, 16)
    assert bool(jnp.all(jnp.isfinite(y))) and bool(jnp.all(jnp.isfinite(maps)))
    # rows of y must sum to 1 after the 'linear' normalization
    assert bool(jnp.allclose(jnp.sum(y, axis=1), 1.0, atol=1e-5))
    print("KERNEL_OK")
</pallas_src>

<mosaic_0001>
module attributes {stable_mosaic.version = 11 : i64} {
  func.func @_mvit_kernel(%arg0: i32, %arg1: memref<16x64xf32, #tpu.memory_space<vmem>>, %arg2: memref<256x36xf32, #tpu.memory_space<vmem>>, %arg3: memref<64x32xf32, #tpu.memory_space<vmem>>, %arg4: memref<1x32xf32, #tpu.memory_space<vmem>>, %arg5: memref<16x32xf32, #tpu.memory_space<vmem>>, %arg6: memref<4x32x96xf32, #tpu.memory_space<vmem>>, %arg7: memref<4x1x96xf32, #tpu.memory_space<vmem>>, %arg8: memref<4x32x32xf32, #tpu.memory_space<vmem>>, %arg9: memref<4x1x32xf32, #tpu.memory_space<vmem>>, %arg10: memref<4x1x32xf32, #tpu.memory_space<vmem>>, %arg11: memref<4x1x32xf32, #tpu.memory_space<vmem>>, %arg12: memref<4x32x1024xf32, #tpu.memory_space<vmem>>, %arg13: memref<4x1x1024xf32, #tpu.memory_space<vmem>>, %arg14: memref<4x1024x32xf32, #tpu.memory_space<vmem>>, %arg15: memref<4x1x32xf32, #tpu.memory_space<vmem>>, %arg16: memref<4x1x32xf32, #tpu.memory_space<vmem>>, %arg17: memref<4x1x32xf32, #tpu.memory_space<vmem>>, %arg18: memref<36x32xf32, #tpu.memory_space<vmem>>, %arg19: memref<1x32xf32, #tpu.memory_space<vmem>>, %arg20: memref<32x256xf32, #tpu.memory_space<vmem>>, %arg21: memref<1x256xf32, #tpu.memory_space<vmem>>, %arg22: memref<256x256xf32, #tpu.memory_space<vmem>>, %arg23: memref<1x256xf32, #tpu.memory_space<vmem>>, %arg24: memref<256x16xf32, #tpu.memory_space<vmem>>, %arg25: memref<1x16xf32, #tpu.memory_space<vmem>>, %arg26: memref<1x1x16xf32, #tpu.memory_space<vmem>>, %arg27: memref<1x8x256xf32, #tpu.memory_space<vmem>>) attributes {dimension_semantics = [#tpu.dimension_semantics<parallel>], iteration_bounds = array<i64: 2>, scalar_prefetch = 0 : i64, scratch_operands = 0 : i64, tpu.core_type = #tpu.core_type<tc>, window_params = [{transform_indices = @transform_0, window_bounds = array<i64: 16, 64>}, {transform_indices = @transform_1, window_bounds = array<i64: 256, 36>}, {pipeline_mode = #tpu.pipeline_mode<synchronous>, transform_indices = @transform_2, window_bounds = array<i64: 64, 32>}, {pipeline_mode = #tpu.pipeline_mode<synchronous>, transform_indices = @transform_3, window_bounds = array<i64: 1, 32>}, {pipeline_mode = #tpu.pipeline_mode<synchronous>, transform_indices = @transform_4, window_bounds = array<i64: 16, 32>}, {pipeline_mode = #tpu.pipeline_mode<synchronous>, transform_indices = @transform_5, window_bounds = array<i64: 4, 32, 96>}, {pipeline_mode = #tpu.pipeline_mode<synchronous>, transform_indices = @transform_6, window_bounds = array<i64: 4, 1, 96>}, {pipeline_mode = #tpu.pipeline_mode<synchronous>, transform_indices = @transform_7, window_bounds = array<i64: 4, 32, 32>}, {pipeline_mode = #tpu.pipeline_mode<synchronous>, transform_indices = @transform_8, window_bounds = array<i64: 4, 1, 32>}, {pipeline_mode = #tpu.pipeline_mode<synchronous>, transform_indices = @transform_9, window_bounds = array<i64: 4, 1, 32>}, {pipeline_mode = #tpu.pipeline_mode<synchronous>, transform_indices = @transform_10, window_bounds = array<i64: 4, 1, 32>}, {pipeline_mode = #tpu.pipeline_mode<synchronous>, transform_indices = @transform_11, window_bounds = array<i64: 4, 32, 1024>}, {pipeline_mode = #tpu.pipeline_mode<synchronous>, transform_indices = @transform_12, window_bounds = array<i64: 4, 1, 1024>}, {pipeline_mode = #tpu.pipeline_mode<synchronous>, transform_indices = @transform_13, window_bounds = array<i64: 4, 1024, 32>}, {pipeline_mode = #tpu.pipeline_mode<synchronous>, transform_indices = @transform_14, window_bounds = array<i64: 4, 1, 32>}, {pipeline_mode = #tpu.pipeline_mode<synchronous>, transform_indices = @transform_15, window_bounds = array<i64: 4, 1, 32>}, {pipeline_mode = #tpu.pipeline_mode<synchronous>, transform_indices = @transform_16, window_bounds = array<i64: 4, 1, 32>}, {pipeline_mode = #tpu.pipeline_mode<synchronous>, transform_indices = @transform_17, window_bounds = array<i64: 36, 32>}, {pipeline_mode = #tpu.pipeline_mode<synchronous>, transform_indices = @transform_18, window_bounds = array<i64: 1, 32>}, {pipeline_mode = #tpu.pipeline_mode<synchronous>, transform_indices = @transform_19, window_bounds = array<i64: 32, 256>}, {pipeline_mode = #tpu.pipeline_mode<synchronous>, transform_indices = @transform_20, window_bounds = array<i64: 1, 256>}, {pipeline_mode = #tpu.pipeline_mode<synchronous>, transform_indices = @transform_21, window_bounds = array<i64: 256, 256>}, {pipeline_mode = #tpu.pipeline_mode<synchronous>, transform_indices = @transform_22, window_bounds = array<i64: 1, 256>}, {pipeline_mode = #tpu.pipeline_mode<synchronous>, transform_indices = @transform_23, window_bounds = array<i64: 256, 16>}, {pipeline_mode = #tpu.pipeline_mode<synchronous>, transform_indices = @transform_24, window_bounds = array<i64: 1, 16>}, {transform_indices = @transform_25, window_bounds = array<i64: 1, 1, 16>}, {transform_indices = @transform_26, window_bounds = array<i64: 1, 8, 256>}]} {
    %c0 = arith.constant 0 : index
    %c0_0 = arith.constant 0 : index
    %0 = vector.load %arg3[%c0, %c0_0] : memref<64x32xf32, #tpu.memory_space<vmem>>, vector<64x32xf32>
    %c0_1 = arith.constant 0 : index
    %c0_2 = arith.constant 0 : index
    %1 = vector.load %arg1[%c0_1, %c0_2] : memref<16x64xf32, #tpu.memory_space<vmem>>, vector<16x64xf32>
    %cst = arith.constant dense<0.000000e+00> : vector<16x32xf32>
    %2 = tpu.matmul %1, %0, %cst {dimension_numbers = #tpu.dot_dimension_numbers<[1], [0], [0], [1], [0, 0, 1, 1], [], []>} : vector<16x64xf32>, vector<64x32xf32>, vector<16x32xf32> -> vector<16x32xf32>
    %c0_3 = arith.constant 0 : index
    %c0_4 = arith.constant 0 : index
    %3 = vector.load %arg4[%c0_3, %c0_4] : memref<1x32xf32, #tpu.memory_space<vmem>>, vector<1x32xf32>
    %4 = vector.broadcast %3 : vector<1x32xf32> to vector<16x32xf32>
    %5 = arith.addf %2, %4 : vector<16x32xf32>
    %c0_5 = arith.constant 0 : index
    %c0_6 = arith.constant 0 : index
    %6 = vector.load %arg5[%c0_5, %c0_6] : memref<16x32xf32, #tpu.memory_space<vmem>>, vector<16x32xf32>
    %7 = arith.addf %5, %6 : vector<16x32xf32>
    %c0_7 = arith.constant 0 : index
    %c0_8 = arith.constant 0 : index
    %c0_9 = arith.constant 0 : index
    %8 = vector.load %arg6[%c0_7, %c0_8, %c0_9] : memref<4x32x96xf32, #tpu.memory_space<vmem>>, vector<1x32x96xf32>
    %9 = vector.shape_cast %8 : vector<1x32x96xf32> to vector<32x96xf32>
    %c0_10 = arith.constant 0 : index
    %c0_11 = arith.constant 0 : index
    %c0_12 = arith.constant 0 : index
    %10 = vector.load %arg8[%c0_10, %c0_11, %c0_12] : memref<4x32x32xf32, #tpu.memory_space<vmem>>, vector<1x32x32xf32>
    %11 = vector.shape_cast %10 : vector<1x32x32xf32> to vector<32x32xf32>
    %c0_13 = arith.constant 0 : index
    %c0_14 = arith.constant 0 : index
    %c0_15 = arith.constant 0 : index
    %12 = vector.load %arg12[%c0_13, %c0_14, %c0_15] : memref<4x32x1024xf32, #tpu.memory_space<vmem>>, vector<1x32x1024xf32>
    %13 = vector.shape_cast %12 : vector<1x32x1024xf32> to vector<32x1024xf32>
    %c0_16 = arith.constant 0 : index
    %c0_17 = arith.constant 0 : index
    %c0_18 = arith.constant 0 : index
    %14 = vector.load %arg14[%c0_16, %c0_17, %c0_18] : memref<4x1024x32xf32, #tpu.memory_space<vmem>>, vector<1x1024x32xf32>
    %15 = vector.shape_cast %14 : vector<1x1024x32xf32> to vector<1024x32xf32>
    %cst_19 = arith.constant dense<0.000000e+00> : vector<16x96xf32>
    %16 = tpu.matmul %7, %9, %cst_19 {dimension_numbers = #tpu.dot_dimension_numbers<[1], [0], [0], [1], [0, 0, 1, 1], [], []>} : vector<16x32xf32>, vector<32x96xf32>, vector<16x96xf32> -> vector<16x96xf32>
    %c0_20 = arith.constant 0 : index
    %c0_21 = arith.constant 0 : index
    %c0_22 = arith.constant 0 : index
    %17 = vector.load %arg7[%c0_20, %c0_21, %c0_22] : memref<4x1x96xf32, #tpu.memory_space<vmem>>, vector<1x1x96xf32>
    %18 = vector.shape_cast %17 : vector<1x1x96xf32> to vector<1x96xf32>
    %19 = vector.broadcast %18 : vector<1x96xf32> to vector<16x96xf32>
    %20 = arith.addf %16, %19 : vector<16x96xf32>
    %21 = vector.extract_strided_slice %20 {offsets = [0, 0], sizes = [16, 8], strides = [1, 1]} : vector<16x96xf32> to vector<16x8xf32>
    %22 = vector.extract_strided_slice %20 {offsets = [0, 32], sizes = [16, 8], strides = [1, 1]} : vector<16x96xf32> to vector<16x8xf32>
    %23 = vector.extract_strided_slice %20 {offsets = [0, 64], sizes = [16, 8], strides = [1, 1]} : vector<16x96xf32> to vector<16x8xf32>
    %cst_23 = arith.constant dense<0.000000e+00> : vector<16x16xf32>
    %24 = tpu.matmul %21, %22, %cst_23 {dimension_numbers = #tpu.dot_dimension_numbers<[1], [1], [0], [0], [0, 0, 1, 0], [], []>} : vector<16x8xf32>, vector<16x8xf32>, vector<16x16xf32> -> vector<16x16xf32>
    %cst_24 = arith.constant dense<0xFF800000> : vector<16xf32>
    %25 = vector.multi_reduction <maximumf>, %24, %cst_24 [1] : vector<16x16xf32> to vector<16xf32>
    %26 = vector.shape_cast %25 : vector<16xf32> to vector<16x1xf32>
    %27 = vector.broadcast %26 : vector<16x1xf32> to vector<16x16xf32>
    %28 = arith.subf %24, %27 : vector<16x16xf32>
    %29 = math.exp %28 : vector<16x16xf32>
    %cst_25 = arith.constant dense<0.000000e+00> : vector<16xf32>
    %30 = vector.multi_reduction <add>, %29, %cst_25 [1] : vector<16x16xf32> to vector<16xf32>
    %31 = vector.shape_cast %30 : vector<16xf32> to vector<16x1xf32>
    %32 = tpu.reciprocal %31 {approx = true} : vector<16x1xf32> -> vector<16x1xf32>
    %33 = vector.broadcast %32 : vector<16x1xf32> to vector<16x16xf32>
    %34 = arith.mulf %29, %33 : vector<16x16xf32>
    %cst_26 = arith.constant dense<0.000000e+00> : vector<16x8xf32>
    %35 = tpu.matmul %34, %23, %cst_26 {dimension_numbers = #tpu.dot_dimension_numbers<[1], [0], [0], [1], [0, 0, 1, 1], [], []>} : vector<16x16xf32>, vector<16x8xf32>, vector<16x8xf32> -> vector<16x8xf32>
    %36 = vector.extract_strided_slice %20 {offsets = [0, 8], sizes = [16, 8], strides = [1, 1]} : vector<16x96xf32> to vector<16x8xf32>
    %37 = vector.extract_strided_slice %20 {offsets = [0, 40], sizes = [16, 8], strides = [1, 1]} : vector<16x96xf32> to vector<16x8xf32>
    %38 = vector.extract_strided_slice %20 {offsets = [0, 72], sizes = [16, 8], strides = [1, 1]} : vector<16x96xf32> to vector<16x8xf32>
    %cst_27 = arith.constant dense<0.000000e+00> : vector<16x16xf32>
    %39 = tpu.matmul %36, %37, %cst_27 {dimension_numbers = #tpu.dot_dimension_numbers<[1], [1], [0], [0], [0, 0, 1, 0], [], []>} : vector<16x8xf32>, vector<16x8xf32>, vector<16x16xf32> -> vector<16x16xf32>
    %cst_28 = arith.constant dense<0xFF800000> : vector<16xf32>
    %40 = vector.multi_reduction <maximumf>, %39, %cst_28 [1] : vector<16x16xf32> to vector<16xf32>
    %41 = vector.shape_cast %40 : vector<16xf32> to vector<16x1xf32>
    %42 = vector.broadcast %41 : vector<16x1xf32> to vector<16x16xf32>
    %43 = arith.subf %39, %42 : vector<16x16xf32>
    %44 = math.exp %43 : vector<16x16xf32>
    %cst_29 = arith.constant dense<0.000000e+00> : vector<16xf32>
    %45 = vector.multi_reduction <add>, %44, %cst_29 [1] : vector<16x16xf32> to vector<16xf32>
    %46 = vector.shape_cast %45 : vector<16xf32> to vector<16x1xf32>
    %47 = tpu.reciprocal %46 {approx = true} : vector<16x1xf32> -> vector<16x1xf32>
    %48 = vector.broadcast %47 : vector<16x1xf32> to vector<16x16xf32>
    %49 = arith.mulf %44, %48 : vector<16x16xf32>
    %cst_30 = arith.constant dense<0.000000e+00> : vector<16x8xf32>
    %50 = tpu.matmul %49, %38, %cst_30 {dimension_numbers = #tpu.dot_dimension_numbers<[1], [0], [0], [1], [0, 0, 1, 1], [], []>} : vector<16x16xf32>, vector<16x8xf32>, vector<16x8xf32> -> vector<16x8xf32>
    %51 = vector.extract_strided_slice %20 {offsets = [0, 16], sizes = [16, 8], strides = [1, 1]} : vector<16x96xf32> to vector<16x8xf32>
    %52 = vector.extract_strided_slice %20 {offsets = [0, 48], sizes = [16, 8], strides = [1, 1]} : vector<16x96xf32> to vector<16x8xf32>
    %53 = vector.extract_strided_slice %20 {offsets = [0, 80], sizes = [16, 8], strides = [1, 1]} : vector<16x96xf32> to vector<16x8xf32>
    %cst_31 = arith.constant dense<0.000000e+00> : vector<16x16xf32>
    %54 = tpu.matmul %51, %52, %cst_31 {dimension_numbers = #tpu.dot_dimension_numbers<[1], [1], [0], [0], [0, 0, 1, 0], [], []>} : vector<16x8xf32>, vector<16x8xf32>, vector<16x16xf32> -> vector<16x16xf32>
    %cst_32 = arith.constant dense<0xFF800000> : vector<16xf32>
    %55 = vector.multi_reduction <maximumf>, %54, %cst_32 [1] : vector<16x16xf32> to vector<16xf32>
    %56 = vector.shape_cast %55 : vector<16xf32> to vector<16x1xf32>
    %57 = vector.broadcast %56 : vector<16x1xf32> to vector<16x16xf32>
    %58 = arith.subf %54, %57 : vector<16x16xf32>
    %59 = math.exp %58 : vector<16x16xf32>
    %cst_33 = arith.constant dense<0.000000e+00> : vector<16xf32>
    %60 = vector.multi_reduction <add>, %59, %cst_33 [1] : vector<16x16xf32> to vector<16xf32>
    %61 = vector.shape_cast %60 : vector<16xf32> to vector<16x1xf32>
    %62 = tpu.reciprocal %61 {approx = true} : vector<16x1xf32> -> vector<16x1xf32>
    %63 = vector.broadcast %62 : vector<16x1xf32> to vector<16x16xf32>
    %64 = arith.mulf %59, %63 : vector<16x16xf32>
    %cst_34 = arith.constant dense<0.000000e+00> : vector<16x8xf32>
    %65 = tpu.matmul %64, %53, %cst_34 {dimension_numbers = #tpu.dot_dimension_numbers<[1], [0], [0], [1], [0, 0, 1, 1], [], []>} : vector<16x16xf32>, vector<16x8xf32>, vector<16x8xf32> -> vector<16x8xf32>
    %66 = vector.extract_strided_slice %20 {offsets = [0, 24], sizes = [16, 8], strides = [1, 1]} : vector<16x96xf32> to vector<16x8xf32>
    %67 = vector.extract_strided_slice %20 {offsets = [0, 56], sizes = [16, 8], strides = [1, 1]} : vector<16x96xf32> to vector<16x8xf32>
    %68 = vector.extract_strided_slice %20 {offsets = [0, 88], sizes = [16, 8], strides = [1, 1]} : vector<16x96xf32> to vector<16x8xf32>
    %cst_35 = arith.constant dense<0.000000e+00> : vector<16x16xf32>
    %69 = tpu.matmul %66, %67, %cst_35 {dimension_numbers = #tpu.dot_dimension_numbers<[1], [1], [0], [0], [0, 0, 1, 0], [], []>} : vector<16x8xf32>, vector<16x8xf32>, vector<16x16xf32> -> vector<16x16xf32>
    %cst_36 = arith.constant dense<0xFF800000> : vector<16xf32>
    %70 = vector.multi_reduction <maximumf>, %69, %cst_36 [1] : vector<16x16xf32> to vector<16xf32>
    %71 = vector.shape_cast %70 : vector<16xf32> to vector<16x1xf32>
    %72 = vector.broadcast %71 : vector<16x1xf32> to vector<16x16xf32>
    %73 = arith.subf %69, %72 : vector<16x16xf32>
    %74 = math.exp %73 : vector<16x16xf32>
    %cst_37 = arith.constant dense<0.000000e+00> : vector<16xf32>
    %75 = vector.multi_reduction <add>, %74, %cst_37 [1] : vector<16x16xf32> to vector<16xf32>
    %76 = vector.shape_cast %75 : vector<16xf32> to vector<16x1xf32>
    %77 = tpu.reciprocal %76 {approx = true} : vector<16x1xf32> -> vector<16x1xf32>
    %78 = vector.broadcast %77 : vector<16x1xf32> to vector<16x16xf32>
    %79 = arith.mulf %74, %78 : vector<16x16xf32>
    %cst_38 = arith.constant dense<0.000000e+00> : vector<16x8xf32>
    %80 = tpu.matmul %79, %68, %cst_38 {dimension_numbers = #tpu.dot_dimension_numbers<[1], [0], [0], [1], [0, 0, 1, 1], [], []>} : vector<16x16xf32>, vector<16x8xf32>, vector<16x8xf32> -> vector<16x8xf32>
    %81 = tpu.concatenate %35, %50, %65, %80 in 1 : vector<16x8xf32>, vector<16x8xf32>, vector<16x8xf32>, vector<16x8xf32> -> vector<16x32xf32>
    %cst_39 = arith.constant dense<0.000000e+00> : vector<16x32xf32>
    %82 = tpu.matmul %81, %11, %cst_39 {dimension_numbers = #tpu.dot_dimension_numbers<[1], [0], [0], [1], [0, 0, 1, 1], [], []>} : vector<16x32xf32>, vector<32x32xf32>, vector<16x32xf32> -> vector<16x32xf32>
    %c0_40 = arith.constant 0 : index
    %c0_41 = arith.constant 0 : index
    %c0_42 = arith.constant 0 : index
    %83 = vector.load %arg9[%c0_40, %c0_41, %c0_42] : memref<4x1x32xf32, #tpu.memory_space<vmem>>, vector<1x1x32xf32>
    %84 = vector.shape_cast %83 : vector<1x1x32xf32> to vector<1x32xf32>
    %85 = vector.broadcast %84 : vector<1x32xf32> to vector<16x32xf32>
    %86 = arith.addf %82, %85 : vector<16x32xf32>
    %87 = arith.addf %7, %86 : vector<16x32xf32>
    %c0_43 = arith.constant 0 : index
    %c0_44 = arith.constant 0 : index
    %c0_45 = arith.constant 0 : index
    %88 = vector.load %arg10[%c0_43, %c0_44, %c0_45] : memref<4x1x32xf32, #tpu.memory_space<vmem>>, vector<1x1x32xf32>
    %89 = vector.shape_cast %88 : vector<1x1x32xf32> to vector<1x32xf32>
    %c0_46 = arith.constant 0 : index
    %c0_47 = arith.constant 0 : index
    %c0_48 = arith.constant 0 : index
    %90 = vector.load %arg11[%c0_46, %c0_47, %c0_48] : memref<4x1x32xf32, #tpu.memory_space<vmem>>, vector<1x1x32xf32>
    %91 = vector.shape_cast %90 : vector<1x1x32xf32> to vector<1x32xf32>
    %cst_49 = arith.constant dense<0.000000e+00> : vector<16xf32>
    %92 = vector.multi_reduction <add>, %87, %cst_49 [1] : vector<16x32xf32> to vector<16xf32>
    %93 = vector.shape_cast %92 : vector<16xf32> to vector<16x1xf32>
    %cst_50 = arith.constant 3.200000e+01 : f32
    %94 = vector.broadcast %cst_50 : f32 to vector<16x1xf32>
    %95 = arith.divf %93, %94 : vector<16x1xf32>
    %96 = vector.broadcast %95 : vector<16x1xf32> to vector<16x32xf32>
    %97 = arith.subf %87, %96 : vector<16x32xf32>
    %98 = arith.mulf %97, %97 : vector<16x32xf32>
    %cst_51 = arith.constant dense<0.000000e+00> : vector<16xf32>
    %99 = vector.multi_reduction <add>, %98, %cst_51 [1] : vector<16x32xf32> to vector<16xf32>
    %100 = vector.shape_cast %99 : vector<16xf32> to vector<16x1xf32>
    %cst_52 = arith.constant 3.200000e+01 : f32
    %101 = vector.broadcast %cst_52 : f32 to vector<16x1xf32>
    %102 = arith.divf %100, %101 : vector<16x1xf32>
    %103 = vector.broadcast %95 : vector<16x1xf32> to vector<16x32xf32>
    %104 = arith.subf %87, %103 : vector<16x32xf32>
    %cst_53 = arith.constant 9.99999974E-6 : f32
    %105 = vector.broadcast %cst_53 : f32 to vector<16x1xf32>
    %106 = arith.addf %102, %105 : vector<16x1xf32>
    %107 = math.rsqrt %106 : vector<16x1xf32>
    %108 = vector.broadcast %107 : vector<16x1xf32> to vector<16x32xf32>
    %109 = arith.mulf %104, %108 : vector<16x32xf32>
    %110 = vector.broadcast %89 : vector<1x32xf32> to vector<16x32xf32>
    %111 = arith.mulf %109, %110 : vector<16x32xf32>
    %112 = vector.broadcast %91 : vector<1x32xf32> to vector<16x32xf32>
    %113 = arith.addf %111, %112 : vector<16x32xf32>
    %cst_54 = arith.constant dense<0.000000e+00> : vector<16x1024xf32>
    %114 = tpu.matmul %113, %13, %cst_54 {dimension_numbers = #tpu.dot_dimension_numbers<[1], [0], [0], [1], [0, 0, 1, 1], [], []>} : vector<16x32xf32>, vector<32x1024xf32>, vector<16x1024xf32> -> vector<16x1024xf32>
    %c0_55 = arith.constant 0 : index
    %c0_56 = arith.constant 0 : index
    %c0_57 = arith.constant 0 : index
    %115 = vector.load %arg13[%c0_55, %c0_56, %c0_57] : memref<4x1x1024xf32, #tpu.memory_space<vmem>>, vector<1x1x1024xf32>
    %116 = vector.shape_cast %115 : vector<1x1x1024xf32> to vector<1x1024xf32>
    %117 = vector.broadcast %116 : vector<1x1024xf32> to vector<16x1024xf32>
    %118 = arith.addf %114, %117 : vector<16x1024xf32>
    %cst_58 = arith.constant 0.000000e+00 : f32
    %119 = vector.broadcast %cst_58 : f32 to vector<16x1024xf32>
    %120 = arith.maximumf %118, %119 : vector<16x1024xf32>
    %cst_59 = arith.constant dense<0.000000e+00> : vector<16x32xf32>
    %121 = tpu.matmul %120, %15, %cst_59 {dimension_numbers = #tpu.dot_dimension_numbers<[1], [0], [0], [1], [0, 0, 1, 1], [], []>} : vector<16x1024xf32>, vector<1024x32xf32>, vector<16x32xf32> -> vector<16x32xf32>
    %c0_60 = arith.constant 0 : index
    %c0_61 = arith.constant 0 : index
    %c0_62 = arith.constant 0 : index
    %122 = vector.load %arg15[%c0_60, %c0_61, %c0_62] : memref<4x1x32xf32, #tpu.memory_space<vmem>>, vector<1x1x32xf32>
    %123 = vector.shape_cast %122 : vector<1x1x32xf32> to vector<1x32xf32>
    %124 = vector.broadcast %123 : vector<1x32xf32> to vector<16x32xf32>
    %125 = arith.addf %121, %124 : vector<16x32xf32>
    %126 = arith.addf %113, %125 : vector<16x32xf32>
    %c0_63 = arith.constant 0 : index
    %c0_64 = arith.constant 0 : index
    %c0_65 = arith.constant 0 : index
    %127 = vector.load %arg16[%c0_63, %c0_64, %c0_65] : memref<4x1x32xf32, #tpu.memory_space<vmem>>, vector<1x1x32xf32>
    %128 = vector.shape_cast %127 : vector<1x1x32xf32> to vector<1x32xf32>
    %c0_66 = arith.constant 0 : index
    %c0_67 = arith.constant 0 : index
    %c0_68 = arith.constant 0 : index
    %129 = vector.load %arg17[%c0_66, %c0_67, %c0_68] : memref<4x1x32xf32, #tpu.memory_space<vmem>>, vector<1x1x32xf32>
    %130 = vector.shape_cast %129 : vector<1x1x32xf32> to vector<1x32xf32>
    %cst_69 = arith.constant dense<0.000000e+00> : vector<16xf32>
    %131 = vector.multi_reduction <add>, %126, %cst_69 [1] : vector<16x32xf32> to vector<16xf32>
    %132 = vector.shape_cast %131 : vector<16xf32> to vector<16x1xf32>
    %cst_70 = arith.constant 3.200000e+01 : f32
    %133 = vector.broadcast %cst_70 : f32 to vector<16x1xf32>
    %134 = arith.divf %132, %133 : vector<16x1xf32>
    %135 = vector.broadcast %134 : vector<16x1xf32> to vector<16x32xf32>
    %136 = arith.subf %126, %135 : vector<16x32xf32>
    %137 = arith.mulf %136, %136 : vector<16x32xf32>
    %cst_71 = arith.constant dense<0.000000e+00> : vector<16xf32>
    %138 = vector.multi_reduction <add>, %137, %cst_71 [1] : vector<16x32xf32> to vector<16xf32>
    %139 = vector.shape_cast %138 : vector<16xf32> to vector<16x1xf32>
    %cst_72 = arith.constant 3.200000e+01 : f32
    %140 = vector.broadcast %cst_72 : f32 to vector<16x1xf32>
    %141 = arith.divf %139, %140 : vector<16x1xf32>
    %142 = vector.broadcast %134 : vector<16x1xf32> to vector<16x32xf32>
    %143 = arith.subf %126, %142 : vector<16x32xf32>
    %cst_73 = arith.constant 9.99999974E-6 : f32
    %144 = vector.broadcast %cst_73 : f32 to vector<16x1xf32>
    %145 = arith.addf %141, %144 : vector<16x1xf32>
    %146 = math.rsqrt %145 : vector<16x1xf32>
    %147 = vector.broadcast %146 : vector<16x1xf32> to vector<16x32xf32>
    %148 = arith.mulf %143, %147 : vector<16x32xf32>
    %149 = vector.broadcast %128 : vector<1x32xf32> to vector<16x32xf32>
    %150 = arith.mulf %148, %149 : vector<16x32xf32>
    %151 = vector.broadcast %130 : vector<1x32xf32> to vector<16x32xf32>
    %152 = arith.addf %150, %151 : vector<16x32xf32>
    %c1 = arith.constant 1 : index
    %c0_74 = arith.constant 0 : index
    %c0_75 = arith.constant 0 : index
    %153 = vector.load %arg6[%c1, %c0_74, %c0_75] : memref<4x32x96xf32, #tpu.memory_space<vmem>>, vector<1x32x96xf32>
    %154 = vector.shape_cast %153 : vector<1x32x96xf32> to vector<32x96xf32>
    %c1_76 = arith.constant 1 : index
    %c0_77 = arith.constant 0 : index
    %c0_78 = arith.constant 0 : index
    %155 = vector.load %arg8[%c1_76, %c0_77, %c0_78] : memref<4x32x32xf32, #tpu.memory_space<vmem>>, vector<1x32x32xf32>
    %156 = vector.shape_cast %155 : vector<1x32x32xf32> to vector<32x32xf32>
    %c1_79 = arith.constant 1 : index
    %c0_80 = arith.constant 0 : index
    %c0_81 = arith.constant 0 : index
    %157 = vector.load %arg12[%c1_79, %c0_80, %c0_81] : memref<4x32x1024xf32, #tpu.memory_space<vmem>>, vector<1x32x1024xf32>
    %158 = vector.shape_cast %157 : vector<1x32x1024xf32> to vector<32x1024xf32>
    %c1_82 = arith.constant 1 : index
    %c0_83 = arith.constant 0 : index
    %c0_84 = arith.constant 0 : index
    %159 = vector.load %arg14[%c1_82, %c0_83, %c0_84] : memref<4x1024x32xf32, #tpu.memory_space<vmem>>, vector<1x1024x32xf32>
    %160 = vector.shape_cast %159 : vector<1x1024x32xf32> to vector<1024x32xf32>
    %cst_85 = arith.constant dense<0.000000e+00> : vector<16x96xf32>
    %161 = tpu.matmul %152, %154, %cst_85 {dimension_numbers = #tpu.dot_dimension_numbers<[1], [0], [0], [1], [0, 0, 1, 1], [], []>} : vector<16x32xf32>, vector<32x96xf32>, vector<16x96xf32> -> vector<16x96xf32>
    %c1_86 = arith.constant 1 : index
    %c0_87 = arith.constant 0 : index
    %c0_88 = arith.constant 0 : index
    %162 = vector.load %arg7[%c1_86, %c0_87, %c0_88] : memref<4x1x96xf32, #tpu.memory_space<vmem>>, vector<1x1x96xf32>
    %163 = vector.shape_cast %162 : vector<1x1x96xf32> to vector<1x96xf32>
    %164 = vector.broadcast %163 : vector<1x96xf32> to vector<16x96xf32>
    %165 = arith.addf %161, %164 : vector<16x96xf32>
    %166 = vector.extract_strided_slice %165 {offsets = [0, 0], sizes = [16, 8], strides = [1, 1]} : vector<16x96xf32> to vector<16x8xf32>
    %167 = vector.extract_strided_slice %165 {offsets = [0, 32], sizes = [16, 8], strides = [1, 1]} : vector<16x96xf32> to vector<16x8xf32>
    %168 = vector.extract_strided_slice %165 {offsets = [0, 64], sizes = [16, 8], strides = [1, 1]} : vector<16x96xf32> to vector<16x8xf32>
    %cst_89 = arith.constant dense<0.000000e+00> : vector<16x16xf32>
    %169 = tpu.matmul %166, %167, %cst_89 {dimension_numbers = #tpu.dot_dimension_numbers<[1], [1], [0], [0], [0, 0, 1, 0], [], []>} : vector<16x8xf32>, vector<16x8xf32>, vector<16x16xf32> -> vector<16x16xf32>
    %cst_90 = arith.constant dense<0xFF800000> : vector<16xf32>
    %170 = vector.multi_reduction <maximumf>, %169, %cst_90 [1] : vector<16x16xf32> to vector<16xf32>
    %171 = vector.shape_cast %170 : vector<16xf32> to vector<16x1xf32>
    %172 = vector.broadcast %171 : vector<16x1xf32> to vector<16x16xf32>
    %173 = arith.subf %169, %172 : vector<16x16xf32>
    %174 = math.exp %173 : vector<16x16xf32>
    %cst_91 = arith.constant dense<0.000000e+00> : vector<16xf32>
    %175 = vector.multi_reduction <add>, %174, %cst_91 [1] : vector<16x16xf32> to vector<16xf32>
    %176 = vector.shape_cast %175 : vector<16xf32> to vector<16x1xf32>
    %177 = tpu.reciprocal %176 {approx = true} : vector<16x1xf32> -> vector<16x1xf32>
    %178 = vector.broadcast %177 : vector<16x1xf32> to vector<16x16xf32>
    %179 = arith.mulf %174, %178 : vector<16x16xf32>
    %cst_92 = arith.constant dense<0.000000e+00> : vector<16x8xf32>
    %180 = tpu.matmul %179, %168, %cst_92 {dimension_numbers = #tpu.dot_dimension_numbers<[1], [0], [0], [1], [0, 0, 1, 1], [], []>} : vector<16x16xf32>, vector<16x8xf32>, vector<16x8xf32> -> vector<16x8xf32>
    %181 = vector.extract_strided_slice %165 {offsets = [0, 8], sizes = [16, 8], strides = [1, 1]} : vector<16x96xf32> to vector<16x8xf32>
    %182 = vector.extract_strided_slice %165 {offsets = [0, 40], sizes = [16, 8], strides = [1, 1]} : vector<16x96xf32> to vector<16x8xf32>
    %183 = vector.extract_strided_slice %165 {offsets = [0, 72], sizes = [16, 8], strides = [1, 1]} : vector<16x96xf32> to vector<16x8xf32>
    %cst_93 = arith.constant dense<0.000000e+00> : vector<16x16xf32>
    %184 = tpu.matmul %181, %182, %cst_93 {dimension_numbers = #tpu.dot_dimension_numbers<[1], [1], [0], [0], [0, 0, 1, 0], [], []>} : vector<16x8xf32>, vector<16x8xf32>, vector<16x16xf32> -> vector<16x16xf32>
    %cst_94 = arith.constant dense<0xFF800000> : vector<16xf32>
    %185 = vector.multi_reduction <maximumf>, %184, %cst_94 [1] : vector<16x16xf32> to vector<16xf32>
    %186 = vector.shape_cast %185 : vector<16xf32> to vector<16x1xf32>
    %187 = vector.broadcast %186 : vector<16x1xf32> to vector<16x16xf32>
    %188 = arith.subf %184, %187 : vector<16x16xf32>
    %189 = math.exp %188 : vector<16x16xf32>
    %cst_95 = arith.constant dense<0.000000e+00> : vector<16xf32>
    %190 = vector.multi_reduction <add>, %189, %cst_95 [1] : vector<16x16xf32> to vector<16xf32>
    %191 = vector.shape_cast %190 : vector<16xf32> to vector<16x1xf32>
    %192 = tpu.reciprocal %191 {approx = true} : vector<16x1xf32> -> vector<16x1xf32>
    %193 = vector.broadcast %192 : vector<16x1xf32> to vector<16x16xf32>
    %194 = arith.mulf %189, %193 : vector<16x16xf32>
    %cst_96 = arith.constant dense<0.000000e+00> : vector<16x8xf32>
    %195 = tpu.matmul %194, %183, %cst_96 {dimension_numbers = #tpu.dot_dimension_numbers<[1], [0], [0], [1], [0, 0, 1, 1], [], []>} : vector<16x16xf32>, vector<16x8xf32>, vector<16x8xf32> -> vector<16x8xf32>
    %196 = vector.extract_strided_slice %165 {offsets = [0, 16], sizes = [16, 8], strides = [1, 1]} : vector<16x96xf32> to vector<16x8xf32>
    %197 = vector.extract_strided_slice %165 {offsets = [0, 48], sizes = [16, 8], strides = [1, 1]} : vector<16x96xf32> to vector<16x8xf32>
    %198 = vector.extract_strided_slice %165 {offsets = [0, 80], sizes = [16, 8], strides = [1, 1]} : vector<16x96xf32> to vector<16x8xf32>
    %cst_97 = arith.constant dense<0.000000e+00> : vector<16x16xf32>
    %199 = tpu.matmul %196, %197, %cst_97 {dimension_numbers = #tpu.dot_dimension_numbers<[1], [1], [0], [0], [0, 0, 1, 0], [], []>} : vector<16x8xf32>, vector<16x8xf32>, vector<16x16xf32> -> vector<16x16xf32>
    %cst_98 = arith.constant dense<0xFF800000> : vector<16xf32>
    %200 = vector.multi_reduction <maximumf>, %199, %cst_98 [1] : vector<16x16xf32> to vector<16xf32>
    %201 = vector.shape_cast %200 : vector<16xf32> to vector<16x1xf32>
    %202 = vector.broadcast %201 : vector<16x1xf32> to vector<16x16xf32>
    %203 = arith.subf %199, %202 : vector<16x16xf32>
    %204 = math.exp %203 : vector<16x16xf32>
    %cst_99 = arith.constant dense<0.000000e+00> : vector<16xf32>
    %205 = vector.multi_reduction <add>, %204, %cst_99 [1] : vector<16x16xf32> to vector<16xf32>
    %206 = vector.shape_cast %205 : vector<16xf32> to vector<16x1xf32>
    %207 = tpu.reciprocal %206 {approx = true} : vector<16x1xf32> -> vector<16x1xf32>
    %208 = vector.broadcast %207 : vector<16x1xf32> to vector<16x16xf32>
    %209 = arith.mulf %204, %208 : vector<16x16xf32>
    %cst_100 = arith.constant dense<0.000000e+00> : vector<16x8xf32>
    %210 = tpu.matmul %209, %198, %cst_100 {dimension_numbers = #tpu.dot_dimension_numbers<[1], [0], [0], [1], [0, 0, 1, 1], [], []>} : vector<16x16xf32>, vector<16x8xf32>, vector<16x8xf32> -> vector<16x8xf32>
    %211 = vector.extract_strided_slice %165 {offsets = [0, 24], sizes = [16, 8], strides = [1, 1]} : vector<16x96xf32> to vector<16x8xf32>
    %212 = vector.extract_strided_slice %165 {offsets = [0, 56], sizes = [16, 8], strides = [1, 1]} : vector<16x96xf32> to vector<16x8xf32>
    %213 = vector.extract_strided_slice %165 {offsets = [0, 88], sizes = [16, 8], strides = [1, 1]} : vector<16x96xf32> to vector<16x8xf32>
    %cst_101 = arith.constant dense<0.000000e+00> : vector<16x16xf32>
    %214 = tpu.matmul %211, %212, %cst_101 {dimension_numbers = #tpu.dot_dimension_numbers<[1], [1], [0], [0], [0, 0, 1, 0], [], []>} : vector<16x8xf32>, vector<16x8xf32>, vector<16x16xf32> -> vector<16x16xf32>
    %cst_102 = arith.constant dense<0xFF800000> : vector<16xf32>
    %215 = vector.multi_reduction <maximumf>, %214, %cst_102 [1] : vector<16x16xf32> to vector<16xf32>
    %216 = vector.shape_cast %215 : vector<16xf32> to vector<16x1xf32>
    %217 = vector.broadcast %216 : vector<16x1xf32> to vector<16x16xf32>
    %218 = arith.subf %214, %217 : vector<16x16xf32>
    %219 = math.exp %218 : vector<16x16xf32>
    %cst_103 = arith.constant dense<0.000000e+00> : vector<16xf32>
    %220 = vector.multi_reduction <add>, %219, %cst_103 [1] : vector<16x16xf32> to vector<16xf32>
    %221 = vector.shape_cast %220 : vector<16xf32> to vector<16x1xf32>
    %222 = tpu.reciprocal %221 {approx = true} : vector<16x1xf32> -> vector<16x1xf32>
    %223 = vector.broadcast %222 : vector<16x1xf32> to vector<16x16xf32>
    %224 = arith.mulf %219, %223 : vector<16x16xf32>
    %cst_104 = arith.constant dense<0.000000e+00> : vector<16x8xf32>
    %225 = tpu.matmul %224, %213, %cst_104 {dimension_numbers = #tpu.dot_dimension_numbers<[1], [0], [0], [1], [0, 0, 1, 1], [], []>} : vector<16x16xf32>, vector<16x8xf32>, vector<16x8xf32> -> vector<16x8xf32>
    %226 = tpu.concatenate %180, %195, %210, %225 in 1 : vector<16x8xf32>, vector<16x8xf32>, vector<16x8xf32>, vector<16x8xf32> -> vector<16x32xf32>
    %cst_105 = arith.constant dense<0.000000e+00> : vector<16x32xf32>
    %227 = tpu.matmul %226, %156, %cst_105 {dimension_numbers = #tpu.dot_dimension_numbers<[1], [0], [0], [1], [0, 0, 1, 1], [], []>} : vector<16x32xf32>, vector<32x32xf32>, vector<16x32xf32> -> vector<16x32xf32>
    %c1_106 = arith.constant 1 : index
    %c0_107 = arith.constant 0 : index
    %c0_108 = arith.constant 0 : index
    %228 = vector.load %arg9[%c1_106, %c0_107, %c0_108] : memref<4x1x32xf32, #tpu.memory_space<vmem>>, vector<1x1x32xf32>
    %229 = vector.shape_cast %228 : vector<1x1x32xf32> to vector<1x32xf32>
    %230 = vector.broadcast %229 : vector<1x32xf32> to vector<16x32xf32>
    %231 = arith.addf %227, %230 : vector<16x32xf32>
    %232 = arith.addf %152, %231 : vector<16x32xf32>
    %c1_109 = arith.constant 1 : index
    %c0_110 = arith.constant 0 : index
    %c0_111 = arith.constant 0 : index
    %233 = vector.load %arg10[%c1_109, %c0_110, %c0_111] : memref<4x1x32xf32, #tpu.memory_space<vmem>>, vector<1x1x32xf32>
    %234 = vector.shape_cast %233 : vector<1x1x32xf32> to vector<1x32xf32>
    %c1_112 = arith.constant 1 : index
    %c0_113 = arith.constant 0 : index
    %c0_114 = arith.constant 0 : index
    %235 = vector.load %arg11[%c1_112, %c0_113, %c0_114] : memref<4x1x32xf32, #tpu.memory_space<vmem>>, vector<1x1x32xf32>
    %236 = vector.shape_cast %235 : vector<1x1x32xf32> to vector<1x32xf32>
    %cst_115 = arith.constant dense<0.000000e+00> : vector<16xf32>
    %237 = vector.multi_reduction <add>, %232, %cst_115 [1] : vector<16x32xf32> to vector<16xf32>
    %238 = vector.shape_cast %237 : vector<16xf32> to vector<16x1xf32>
    %cst_116 = arith.constant 3.200000e+01 : f32
    %239 = vector.broadcast %cst_116 : f32 to vector<16x1xf32>
    %240 = arith.divf %238, %239 : vector<16x1xf32>
    %241 = vector.broadcast %240 : vector<16x1xf32> to vector<16x32xf32>
    %242 = arith.subf %232, %241 : vector<16x32xf32>
    %243 = arith.mulf %242, %242 : vector<16x32xf32>
    %cst_117 = arith.constant dense<0.000000e+00> : vector<16xf32>
    %244 = vector.multi_reduction <add>, %243, %cst_117 [1] : vector<16x32xf32> to vector<16xf32>
    %245 = vector.shape_cast %244 : vector<16xf32> to vector<16x1xf32>
    %cst_118 = arith.constant 3.200000e+01 : f32
    %246 = vector.broadcast %cst_118 : f32 to vector<16x1xf32>
    %247 = arith.divf %245, %246 : vector<16x1xf32>
    %248 = vector.broadcast %240 : vector<16x1xf32> to vector<16x32xf32>
    %249 = arith.subf %232, %248 : vector<16x32xf32>
    %cst_119 = arith.constant 9.99999974E-6 : f32
    %250 = vector.broadcast %cst_119 : f32 to vector<16x1xf32>
    %251 = arith.addf %247, %250 : vector<16x1xf32>
    %252 = math.rsqrt %251 : vector<16x1xf32>
    %253 = vector.broadcast %252 : vector<16x1xf32> to vector<16x32xf32>
    %254 = arith.mulf %249, %253 : vector<16x32xf32>
    %255 = vector.broadcast %234 : vector<1x32xf32> to vector<16x32xf32>
    %256 = arith.mulf %254, %255 : vector<16x32xf32>
    %257 = vector.broadcast %236 : vector<1x32xf32> to vector<16x32xf32>
    %258 = arith.addf %256, %257 : vector<16x32xf32>
    %cst_120 = arith.constant dense<0.000000e+00> : vector<16x1024xf32>
    %259 = tpu.matmul %258, %158, %cst_120 {dimension_numbers = #tpu.dot_dimension_numbers<[1], [0], [0], [1], [0, 0, 1, 1], [], []>} : vector<16x32xf32>, vector<32x1024xf32>, vector<16x1024xf32> -> vector<16x1024xf32>
    %c1_121 = arith.constant 1 : index
    %c0_122 = arith.constant 0 : index
    %c0_123 = arith.constant 0 : index
    %260 = vector.load %arg13[%c1_121, %c0_122, %c0_123] : memref<4x1x1024xf32, #tpu.memory_space<vmem>>, vector<1x1x1024xf32>
    %261 = vector.shape_cast %260 : vector<1x1x1024xf32> to vector<1x1024xf32>
    %262 = vector.broadcast %261 : vector<1x1024xf32> to vector<16x1024xf32>
    %263 = arith.addf %259, %262 : vector<16x1024xf32>
    %cst_124 = arith.constant 0.000000e+00 : f32
    %264 = vector.broadcast %cst_124 : f32 to vector<16x1024xf32>
    %265 = arith.maximumf %263, %264 : vector<16x1024xf32>
    %cst_125 = arith.constant dense<0.000000e+00> : vector<16x32xf32>
    %266 = tpu.matmul %265, %160, %cst_125 {dimension_numbers = #tpu.dot_dimension_numbers<[1], [0], [0], [1], [0, 0, 1, 1], [], []>} : vector<16x1024xf32>, vector<1024x32xf32>, vector<16x32xf32> -> vector<16x32xf32>
    %c1_126 = arith.constant 1 : index
    %c0_127 = arith.constant 0 : index
    %c0_128 = arith.constant 0 : index
    %267 = vector.load %arg15[%c1_126, %c0_127, %c0_128] : memref<4x1x32xf32, #tpu.memory_space<vmem>>, vector<1x1x32xf32>
    %268 = vector.shape_cast %267 : vector<1x1x32xf32> to vector<1x32xf32>
    %269 = vector.broadcast %268 : vector<1x32xf32> to vector<16x32xf32>
    %270 = arith.addf %266, %269 : vector<16x32xf32>
    %271 = arith.addf %258, %270 : vector<16x32xf32>
    %c1_129 = arith.constant 1 : index
    %c0_130 = arith.constant 0 : index
    %c0_131 = arith.constant 0 : index
    %272 = vector.load %arg16[%c1_129, %c0_130, %c0_131] : memref<4x1x32xf32, #tpu.memory_space<vmem>>, vector<1x1x32xf32>
    %273 = vector.shape_cast %272 : vector<1x1x32xf32> to vector<1x32xf32>
    %c1_132 = arith.constant 1 : index
    %c0_133 = arith.constant 0 : index
    %c0_134 = arith.constant 0 : index
    %274 = vector.load %arg17[%c1_132, %c0_133, %c0_134] : memref<4x1x32xf32, #tpu.memory_space<vmem>>, vector<1x1x32xf32>
    %275 = vector.shape_cast %274 : vector<1x1x32xf32> to vector<1x32xf32>
    %cst_135 = arith.constant dense<0.000000e+00> : vector<16xf32>
    %276 = vector.multi_reduction <add>, %271, %cst_135 [1] : vector<16x32xf32> to vector<16xf32>
    %277 = vector.shape_cast %276 : vector<16xf32> to vector<16x1xf32>
    %cst_136 = arith.constant 3.200000e+01 : f32
    %278 = vector.broadcast %cst_136 : f32 to vector<16x1xf32>
    %279 = arith.divf %277, %278 : vector<16x1xf32>
    %280 = vector.broadcast %279 : vector<16x1xf32> to vector<16x32xf32>
    %281 = arith.subf %271, %280 : vector<16x32xf32>
    %282 = arith.mulf %281, %281 : vector<16x32xf32>
    %cst_137 = arith.constant dense<0.000000e+00> : vector<16xf32>
    %283 = vector.multi_reduction <add>, %282, %cst_137 [1] : vector<16x32xf32> to vector<16xf32>
    %284 = vector.shape_cast %283 : vector<16xf32> to vector<16x1xf32>
    %cst_138 = arith.constant 3.200000e+01 : f32
    %285 = vector.broadcast %cst_138 : f32 to vector<16x1xf32>
    %286 = arith.divf %284, %285 : vector<16x1xf32>
    %287 = vector.broadcast %279 : vector<16x1xf32> to vector<16x32xf32>
    %288 = arith.subf %271, %287 : vector<16x32xf32>
    %cst_139 = arith.constant 9.99999974E-6 : f32
    %289 = vector.broadcast %cst_139 : f32 to vector<16x1xf32>
    %290 = arith.addf %286, %289 : vector<16x1xf32>
    %291 = math.rsqrt %290 : vector<16x1xf32>
    %292 = vector.broadcast %291 : vector<16x1xf32> to vector<16x32xf32>
    %293 = arith.mulf %288, %292 : vector<16x32xf32>
    %294 = vector.broadcast %273 : vector<1x32xf32> to vector<16x32xf32>
    %295 = arith.mulf %293, %294 : vector<16x32xf32>
    %296 = vector.broadcast %275 : vector<1x32xf32> to vector<16x32xf32>
    %297 = arith.addf %295, %296 : vector<16x32xf32>
    %c2 = arith.constant 2 : index
    %c0_140 = arith.constant 0 : index
    %c0_141 = arith.constant 0 : index
    %298 = vector.load %arg6[%c2, %c0_140, %c0_141] : memref<4x32x96xf32, #tpu.memory_space<vmem>>, vector<1x32x96xf32>
    %299 = vector.shape_cast %298 : vector<1x32x96xf32> to vector<32x96xf32>
    %c2_142 = arith.constant 2 : index
    %c0_143 = arith.constant 0 : index
    %c0_144 = arith.constant 0 : index
    %300 = vector.load %arg8[%c2_142, %c0_143, %c0_144] : memref<4x32x32xf32, #tpu.memory_space<vmem>>, vector<1x32x32xf32>
    %301 = vector.shape_cast %300 : vector<1x32x32xf32> to vector<32x32xf32>
    %c2_145 = arith.constant 2 : index
    %c0_146 = arith.constant 0 : index
    %c0_147 = arith.constant 0 : index
    %302 = vector.load %arg12[%c2_145, %c0_146, %c0_147] : memref<4x32x1024xf32, #tpu.memory_space<vmem>>, vector<1x32x1024xf32>
    %303 = vector.shape_cast %302 : vector<1x32x1024xf32> to vector<32x1024xf32>
    %c2_148 = arith.constant 2 : index
    %c0_149 = arith.constant 0 : index
    %c0_150 = arith.constant 0 : index
    %304 = vector.load %arg14[%c2_148, %c0_149, %c0_150] : memref<4x1024x32xf32, #tpu.memory_space<vmem>>, vector<1x1024x32xf32>
    %305 = vector.shape_cast %304 : vector<1x1024x32xf32> to vector<1024x32xf32>
    %cst_151 = arith.constant dense<0.000000e+00> : vector<16x96xf32>
    %306 = tpu.matmul %297, %299, %cst_151 {dimension_numbers = #tpu.dot_dimension_numbers<[1], [0], [0], [1], [0, 0, 1, 1], [], []>} : vector<16x32xf32>, vector<32x96xf32>, vector<16x96xf32> -> vector<16x96xf32>
    %c2_152 = arith.constant 2 : index
    %c0_153 = arith.constant 0 : index
    %c0_154 = arith.constant 0 : index
    %307 = vector.load %arg7[%c2_152, %c0_153, %c0_154] : memref<4x1x96xf32, #tpu.memory_space<vmem>>, vector<1x1x96xf32>
    %308 = vector.shape_cast %307 : vector<1x1x96xf32> to vector<1x96xf32>
    %309 = vector.broadcast %308 : vector<1x96xf32> to vector<16x96xf32>
    %310 = arith.addf %306, %309 : vector<16x96xf32>
    %311 = vector.extract_strided_slice %310 {offsets = [0, 0], sizes = [16, 8], strides = [1, 1]} : vector<16x96xf32> to vector<16x8xf32>
    %312 = vector.extract_strided_slice %310 {offsets = [0, 32], sizes = [16, 8], strides = [1, 1]} : vector<16x96xf32> to vector<16x8xf32>
    %313 = vector.extract_strided_slice %310 {offsets = [0, 64], sizes = [16, 8], strides = [1, 1]} : vector<16x96xf32> to vector<16x8xf32>
    %cst_155 = arith.constant dense<0.000000e+00> : vector<16x16xf32>
    %314 = tpu.matmul %311, %312, %cst_155 {dimension_numbers = #tpu.dot_dimension_numbers<[1], [1], [0], [0], [0, 0, 1, 0], [], []>} : vector<16x8xf32>, vector<16x8xf32>, vector<16x16xf32> -> vector<16x16xf32>
    %cst_156 = arith.constant dense<0xFF800000> : vector<16xf32>
    %315 = vector.multi_reduction <maximumf>, %314, %cst_156 [1] : vector<16x16xf32> to vector<16xf32>
    %316 = vector.shape_cast %315 : vector<16xf32> to vector<16x1xf32>
    %317 = vector.broadcast %316 : vector<16x1xf32> to vector<16x16xf32>
    %318 = arith.subf %314, %317 : vector<16x16xf32>
    %319 = math.exp %318 : vector<16x16xf32>
    %cst_157 = arith.constant dense<0.000000e+00> : vector<16xf32>
    %320 = vector.multi_reduction <add>, %319, %cst_157 [1] : vector<16x16xf32> to vector<16xf32>
    %321 = vector.shape_cast %320 : vector<16xf32> to vector<16x1xf32>
    %322 = tpu.reciprocal %321 {approx = true} : vector<16x1xf32> -> vector<16x1xf32>
    %323 = vector.broadcast %322 : vector<16x1xf32> to vector<16x16xf32>
    %324 = arith.mulf %319, %323 : vector<16x16xf32>
    %cst_158 = arith.constant dense<0.000000e+00> : vector<16x8xf32>
    %325 = tpu.matmul %324, %313, %cst_158 {dimension_numbers = #tpu.dot_dimension_numbers<[1], [0], [0], [1], [0, 0, 1, 1], [], []>} : vector<16x16xf32>, vector<16x8xf32>, vector<16x8xf32> -> vector<16x8xf32>
    %326 = vector.extract_strided_slice %310 {offsets = [0, 8], sizes = [16, 8], strides = [1, 1]} : vector<16x96xf32> to vector<16x8xf32>
    %327 = vector.extract_strided_slice %310 {offsets = [0, 40], sizes = [16, 8], strides = [1, 1]} : vector<16x96xf32> to vector<16x8xf32>
    %328 = vector.extract_strided_slice %310 {offsets = [0, 72], sizes = [16, 8], strides = [1, 1]} : vector<16x96xf32> to vector<16x8xf32>
    %cst_159 = arith.constant dense<0.000000e+00> : vector<16x16xf32>
    %329 = tpu.matmul %326, %327, %cst_159 {dimension_numbers = #tpu.dot_dimension_numbers<[1], [1], [0], [0], [0, 0, 1, 0], [], []>} : vector<16x8xf32>, vector<16x8xf32>, vector<16x16xf32> -> vector<16x16xf32>
    %cst_160 = arith.constant dense<0xFF800000> : vector<16xf32>
    %330 = vector.multi_reduction <maximumf>, %329, %cst_160 [1] : vector<16x16xf32> to vector<16xf32>
    %331 = vector.shape_cast %330 : vector<16xf32> to vector<16x1xf32>
    %332 = vector.broadcast %331 : vector<16x1xf32> to vector<16x16xf32>
    %333 = arith.subf %329, %332 : vector<16x16xf32>
    %334 = math.exp %333 : vector<16x16xf32>
    %cst_161 = arith.constant dense<0.000000e+00> : vector<16xf32>
    %335 = vector.multi_reduction <add>, %334, %cst_161 [1] : vector<16x16xf32> to vector<16xf32>
    %336 = vector.shape_cast %335 : vector<16xf32> to vector<16x1xf32>
    %337 = tpu.reciprocal %336 {approx = true} : vector<16x1xf32> -> vector<16x1xf32>
    %338 = vector.broadcast %337 : vector<16x1xf32> to vector<16x16xf32>
    %339 = arith.mulf %334, %338 : vector<16x16xf32>
    %cst_162 = arith.constant dense<0.000000e+00> : vector<16x8xf32>
    %340 = tpu.matmul %339, %328, %cst_162 {dimension_numbers = #tpu.dot_dimension_numbers<[1], [0], [0], [1], [0, 0, 1, 1], [], []>} : vector<16x16xf32>, vector<16x8xf32>, vector<16x8xf32> -> vector<16x8xf32>
    %341 = vector.extract_strided_slice %310 {offsets = [0, 16], sizes = [16, 8], strides = [1, 1]} : vector<16x96xf32> to vector<16x8xf32>
    %342 = vector.extract_strided_slice %310 {offsets = [0, 48], sizes = [16, 8], strides = [1, 1]} : vector<16x96xf32> to vector<16x8xf32>
    %343 = vector.extract_strided_slice %310 {offsets = [0, 80], sizes = [16, 8], strides = [1, 1]} : vector<16x96xf32> to vector<16x8xf32>
    %cst_163 = arith.constant dense<0.000000e+00> : vector<16x16xf32>
    %344 = tpu.matmul %341, %342, %cst_163 {dimension_numbers = #tpu.dot_dimension_numbers<[1], [1], [0], [0], [0, 0, 1, 0], [], []>} : vector<16x8xf32>, vector<16x8xf32>, vector<16x16xf32> -> vector<16x16xf32>
    %cst_164 = arith.constant dense<0xFF800000> : vector<16xf32>
    %345 = vector.multi_reduction <maximumf>, %344, %cst_164 [1] : vector<16x16xf32> to vector<16xf32>
    %346 = vector.shape_cast %345 : vector<16xf32> to vector<16x1xf32>
    %347 = vector.broadcast %346 : vector<16x1xf32> to vector<16x16xf32>
    %348 = arith.subf %344, %347 : vector<16x16xf32>
    %349 = math.exp %348 : vector<16x16xf32>
    %cst_165 = arith.constant dense<0.000000e+00> : vector<16xf32>
    %350 = vector.multi_reduction <add>, %349, %cst_165 [1] : vector<16x16xf32> to vector<16xf32>
    %351 = vector.shape_cast %350 : vector<16xf32> to vector<16x1xf32>
    %352 = tpu.reciprocal %351 {approx = true} : vector<16x1xf32> -> vector<16x1xf32>
    %353 = vector.broadcast %352 : vector<16x1xf32> to vector<16x16xf32>
    %354 = arith.mulf %349, %353 : vector<16x16xf32>
    %cst_166 = arith.constant dense<0.000000e+00> : vector<16x8xf32>
    %355 = tpu.matmul %354, %343, %cst_166 {dimension_numbers = #tpu.dot_dimension_numbers<[1], [0], [0], [1], [0, 0, 1, 1], [], []>} : vector<16x16xf32>, vector<16x8xf32>, vector<16x8xf32> -> vector<16x8xf32>
    %356 = vector.extract_strided_slice %310 {offsets = [0, 24], sizes = [16, 8], strides = [1, 1]} : vector<16x96xf32> to vector<16x8xf32>
    %357 = vector.extract_strided_slice %310 {offsets = [0, 56], sizes = [16, 8], strides = [1, 1]} : vector<16x96xf32> to vector<16x8xf32>
    %358 = vector.extract_strided_slice %310 {offsets = [0, 88], sizes = [16, 8], strides = [1, 1]} : vector<16x96xf32> to vector<16x8xf32>
    %cst_167 = arith.constant dense<0.000000e+00> : vector<16x16xf32>
    %359 = tpu.matmul %356, %357, %cst_167 {dimension_numbers = #tpu.dot_dimension_numbers<[1], [1], [0], [0], [0, 0, 1, 0], [], []>} : vector<16x8xf32>, vector<16x8xf32>, vector<16x16xf32> -> vector<16x16xf32>
    %cst_168 = arith.constant dense<0xFF800000> : vector<16xf32>
    %360 = vector.multi_reduction <maximumf>, %359, %cst_168 [1] : vector<16x16xf32> to vector<16xf32>
    %361 = vector.shape_cast %360 : vector<16xf32> to vector<16x1xf32>
    %362 = vector.broadcast %361 : vector<16x1xf32> to vector<16x16xf32>
    %363 = arith.subf %359, %362 : vector<16x16xf32>
    %364 = math.exp %363 : vector<16x16xf32>
    %cst_169 = arith.constant dense<0.000000e+00> : vector<16xf32>
    %365 = vector.multi_reduction <add>, %364, %cst_169 [1] : vector<16x16xf32> to vector<16xf32>
    %366 = vector.shape_cast %365 : vector<16xf32> to vector<16x1xf32>
    %367 = tpu.reciprocal %366 {approx = true} : vector<16x1xf32> -> vector<16x1xf32>
    %368 = vector.broadcast %367 : vector<16x1xf32> to vector<16x16xf32>
    %369 = arith.mulf %364, %368 : vector<16x16xf32>
    %cst_170 = arith.constant dense<0.000000e+00> : vector<16x8xf32>
    %370 = tpu.matmul %369, %358, %cst_170 {dimension_numbers = #tpu.dot_dimension_numbers<[1], [0], [0], [1], [0, 0, 1, 1], [], []>} : vector<16x16xf32>, vector<16x8xf32>, vector<16x8xf32> -> vector<16x8xf32>
    %371 = tpu.concatenate %325, %340, %355, %370 in 1 : vector<16x8xf32>, vector<16x8xf32>, vector<16x8xf32>, vector<16x8xf32> -> vector<16x32xf32>
    %cst_171 = arith.constant dense<0.000000e+00> : vector<16x32xf32>
    %372 = tpu.matmul %371, %301, %cst_171 {dimension_numbers = #tpu.dot_dimension_numbers<[1], [0], [0], [1], [0, 0, 1, 1], [], []>} : vector<16x32xf32>, vector<32x32xf32>, vector<16x32xf32> -> vector<16x32xf32>
    %c2_172 = arith.constant 2 : index
    %c0_173 = arith.constant 0 : index
    %c0_174 = arith.constant 0 : index
    %373 = vector.load %arg9[%c2_172, %c0_173, %c0_174] : memref<4x1x32xf32, #tpu.memory_space<vmem>>, vector<1x1x32xf32>
    %374 = vector.shape_cast %373 : vector<1x1x32xf32> to vector<1x32xf32>
    %375 = vector.broadcast %374 : vector<1x32xf32> to vector<16x32xf32>
    %376 = arith.addf %372, %375 : vector<16x32xf32>
    %377 = arith.addf %297, %376 : vector<16x32xf32>
    %c2_175 = arith.constant 2 : index
    %c0_176 = arith.constant 0 : index
    %c0_177 = arith.constant 0 : index
    %378 = vector.load %arg10[%c2_175, %c0_176, %c0_177] : memref<4x1x32xf32, #tpu.memory_space<vmem>>, vector<1x1x32xf32>
    %379 = vector.shape_cast %378 : vector<1x1x32xf32> to vector<1x32xf32>
    %c2_178 = arith.constant 2 : index
    %c0_179 = arith.constant 0 : index
    %c0_180 = arith.constant 0 : index
    %380 = vector.load %arg11[%c2_178, %c0_179, %c0_180] : memref<4x1x32xf32, #tpu.memory_space<vmem>>, vector<1x1x32xf32>
    %381 = vector.shape_cast %380 : vector<1x1x32xf32> to vector<1x32xf32>
    %cst_181 = arith.constant dense<0.000000e+00> : vector<16xf32>
    %382 = vector.multi_reduction <add>, %377, %cst_181 [1] : vector<16x32xf32> to vector<16xf32>
    %383 = vector.shape_cast %382 : vector<16xf32> to vector<16x1xf32>
    %cst_182 = arith.constant 3.200000e+01 : f32
    %384 = vector.broadcast %cst_182 : f32 to vector<16x1xf32>
    %385 = arith.divf %383, %384 : vector<16x1xf32>
    %386 = vector.broadcast %385 : vector<16x1xf32> to vector<16x32xf32>
    %387 = arith.subf %377, %386 : vector<16x32xf32>
    %388 = arith.mulf %387, %387 : vector<16x32xf32>
    %cst_183 = arith.constant dense<0.000000e+00> : vector<16xf32>
    %389 = vector.multi_reduction <add>, %388, %cst_183 [1] : vector<16x32xf32> to vector<16xf32>
    %390 = vector.shape_cast %389 : vector<16xf32> to vector<16x1xf32>
    %cst_184 = arith.constant 3.200000e+01 : f32
    %391 = vector.broadcast %cst_184 : f32 to vector<16x1xf32>
    %392 = arith.divf %390, %391 : vector<16x1xf32>
    %393 = vector.broadcast %385 : vector<16x1xf32> to vector<16x32xf32>
    %394 = arith.subf %377, %393 : vector<16x32xf32>
    %cst_185 = arith.constant 9.99999974E-6 : f32
    %395 = vector.broadcast %cst_185 : f32 to vector<16x1xf32>
    %396 = arith.addf %392, %395 : vector<16x1xf32>
    %397 = math.rsqrt %396 : vector<16x1xf32>
    %398 = vector.broadcast %397 : vector<16x1xf32> to vector<16x32xf32>
    %399 = arith.mulf %394, %398 : vector<16x32xf32>
    %400 = vector.broadcast %379 : vector<1x32xf32> to vector<16x32xf32>
    %401 = arith.mulf %399, %400 : vector<16x32xf32>
    %402 = vector.broadcast %381 : vector<1x32xf32> to vector<16x32xf32>
    %403 = arith.addf %401, %402 : vector<16x32xf32>
    %cst_186 = arith.constant dense<0.000000e+00> : vector<16x1024xf32>
    %404 = tpu.matmul %403, %303, %cst_186 {dimension_numbers = #tpu.dot_dimension_numbers<[1], [0], [0], [1], [0, 0, 1, 1], [], []>} : vector<16x32xf32>, vector<32x1024xf32>, vector<16x1024xf32> -> vector<16x1024xf32>
    %c2_187 = arith.constant 2 : index
    %c0_188 = arith.constant 0 : index
    %c0_189 = arith.constant 0 : index
    %405 = vector.load %arg13[%c2_187, %c0_188, %c0_189] : memref<4x1x1024xf32, #tpu.memory_space<vmem>>, vector<1x1x1024xf32>
    %406 = vector.shape_cast %405 : vector<1x1x1024xf32> to vector<1x1024xf32>
    %407 = vector.broadcast %406 : vector<1x1024xf32> to vector<16x1024xf32>
    %408 = arith.addf %404, %407 : vector<16x1024xf32>
    %cst_190 = arith.constant 0.000000e+00 : f32
    %409 = vector.broadcast %cst_190 : f32 to vector<16x1024xf32>
    %410 = arith.maximumf %408, %409 : vector<16x1024xf32>
    %cst_191 = arith.constant dense<0.000000e+00> : vector<16x32xf32>
    %411 = tpu.matmul %410, %305, %cst_191 {dimension_numbers = #tpu.dot_dimension_numbers<[1], [0], [0], [1], [0, 0, 1, 1], [], []>} : vector<16x1024xf32>, vector<1024x32xf32>, vector<16x32xf32> -> vector<16x32xf32>
    %c2_192 = arith.constant 2 : index
    %c0_193 = arith.constant 0 : index
    %c0_194 = arith.constant 0 : index
    %412 = vector.load %arg15[%c2_192, %c0_193, %c0_194] : memref<4x1x32xf32, #tpu.memory_space<vmem>>, vector<1x1x32xf32>
    %413 = vector.shape_cast %412 : vector<1x1x32xf32> to vector<1x32xf32>
    %414 = vector.broadcast %413 : vector<1x32xf32> to vector<16x32xf32>
    %415 = arith.addf %411, %414 : vector<16x32xf32>
    %416 = arith.addf %403, %415 : vector<16x32xf32>
    %c2_195 = arith.constant 2 : index
    %c0_196 = arith.constant 0 : index
    %c0_197 = arith.constant 0 : index
    %417 = vector.load %arg16[%c2_195, %c0_196, %c0_197] : memref<4x1x32xf32, #tpu.memory_space<vmem>>, vector<1x1x32xf32>
    %418 = vector.shape_cast %417 : vector<1x1x32xf32> to vector<1x32xf32>
    %c2_198 = arith.constant 2 : index
    %c0_199 = arith.constant 0 : index
    %c0_200 = arith.constant 0 : index
    %419 = vector.load %arg17[%c2_198, %c0_199, %c0_200] : memref<4x1x32xf32, #tpu.memory_space<vmem>>, vector<1x1x32xf32>
    %420 = vector.shape_cast %419 : vector<1x1x32xf32> to vector<1x32xf32>
    %cst_201 = arith.constant dense<0.000000e+00> : vector<16xf32>
    %421 = vector.multi_reduction <add>, %416, %cst_201 [1] : vector<16x32xf32> to vector<16xf32>
    %422 = vector.shape_cast %421 : vector<16xf32> to vector<16x1xf32>
    %cst_202 = arith.constant 3.200000e+01 : f32
    %423 = vector.broadcast %cst_202 : f32 to vector<16x1xf32>
    %424 = arith.divf %422, %423 : vector<16x1xf32>
    %425 = vector.broadcast %424 : vector<16x1xf32> to vector<16x32xf32>
    %426 = arith.subf %416, %425 : vector<16x32xf32>
    %427 = arith.mulf %426, %426 : vector<16x32xf32>
    %cst_203 = arith.constant dense<0.000000e+00> : vector<16xf32>
    %428 = vector.multi_reduction <add>, %427, %cst_203 [1] : vector<16x32xf32> to vector<16xf32>
    %429 = vector.shape_cast %428 : vector<16xf32> to vector<16x1xf32>
    %cst_204 = arith.constant 3.200000e+01 : f32
    %430 = vector.broadcast %cst_204 : f32 to vector<16x1xf32>
    %431 = arith.divf %429, %430 : vector<16x1xf32>
    %432 = vector.broadcast %424 : vector<16x1xf32> to vector<16x32xf32>
    %433 = arith.subf %416, %432 : vector<16x32xf32>
    %cst_205 = arith.constant 9.99999974E-6 : f32
    %434 = vector.broadcast %cst_205 : f32 to vector<16x1xf32>
    %435 = arith.addf %431, %434 : vector<16x1xf32>
    %436 = math.rsqrt %435 : vector<16x1xf32>
    %437 = vector.broadcast %436 : vector<16x1xf32> to vector<16x32xf32>
    %438 = arith.mulf %433, %437 : vector<16x32xf32>
    %439 = vector.broadcast %418 : vector<1x32xf32> to vector<16x32xf32>
    %440 = arith.mulf %438, %439 : vector<16x32xf32>
    %441 = vector.broadcast %420 : vector<1x32xf32> to vector<16x32xf32>
    %442 = arith.addf %440, %441 : vector<16x32xf32>
    %c3 = arith.constant 3 : index
    %c0_206 = arith.constant 0 : index
    %c0_207 = arith.constant 0 : index
    %443 = vector.load %arg6[%c3, %c0_206, %c0_207] : memref<4x32x96xf32, #tpu.memory_space<vmem>>, vector<1x32x96xf32>
    %444 = vector.shape_cast %443 : vector<1x32x96xf32> to vector<32x96xf32>
    %c3_208 = arith.constant 3 : index
    %c0_209 = arith.constant 0 : index
    %c0_210 = arith.constant 0 : index
    %445 = vector.load %arg8[%c3_208, %c0_209, %c0_210] : memref<4x32x32xf32, #tpu.memory_space<vmem>>, vector<1x32x32xf32>
    %446 = vector.shape_cast %445 : vector<1x32x32xf32> to vector<32x32xf32>
    %c3_211 = arith.constant 3 : index
    %c0_212 = arith.constant 0 : index
    %c0_213 = arith.constant 0 : index
    %447 = vector.load %arg12[%c3_211, %c0_212, %c0_213] : memref<4x32x1024xf32, #tpu.memory_space<vmem>>, vector<1x32x1024xf32>
    %448 = vector.shape_cast %447 : vector<1x32x1024xf32> to vector<32x1024xf32>
    %c3_214 = arith.constant 3 : index
    %c0_215 = arith.constant 0 : index
    %c0_216 = arith.constant 0 : index
    %449 = vector.load %arg14[%c3_214, %c0_215, %c0_216] : memref<4x1024x32xf32, #tpu.memory_space<vmem>>, vector<1x1024x32xf32>
    %450 = vector.shape_cast %449 : vector<1x1024x32xf32> to vector<1024x32xf32>
    %cst_217 = arith.constant dense<0.000000e+00> : vector<16x96xf32>
    %451 = tpu.matmul %442, %444, %cst_217 {dimension_numbers = #tpu.dot_dimension_numbers<[1], [0], [0], [1], [0, 0, 1, 1], [], []>} : vector<16x32xf32>, vector<32x96xf32>, vector<16x96xf32> -> vector<16x96xf32>
    %c3_218 = arith.constant 3 : index
    %c0_219 = arith.constant 0 : index
    %c0_220 = arith.constant 0 : index
    %452 = vector.load %arg7[%c3_218, %c0_219, %c0_220] : memref<4x1x96xf32, #tpu.memory_space<vmem>>, vector<1x1x96xf32>
    %453 = vector.shape_cast %452 : vector<1x1x96xf32> to vector<1x96xf32>
    %454 = vector.broadcast %453 : vector<1x96xf32> to vector<16x96xf32>
    %455 = arith.addf %451, %454 : vector<16x96xf32>
    %456 = vector.extract_strided_slice %455 {offsets = [0, 0], sizes = [16, 8], strides = [1, 1]} : vector<16x96xf32> to vector<16x8xf32>
    %457 = vector.extract_strided_slice %455 {offsets = [0, 32], sizes = [16, 8], strides = [1, 1]} : vector<16x96xf32> to vector<16x8xf32>
    %458 = vector.extract_strided_slice %455 {offsets = [0, 64], sizes = [16, 8], strides = [1, 1]} : vector<16x96xf32> to vector<16x8xf32>
    %cst_221 = arith.constant dense<0.000000e+00> : vector<16x16xf32>
    %459 = tpu.matmul %456, %457, %cst_221 {dimension_numbers = #tpu.dot_dimension_numbers<[1], [1], [0], [0], [0, 0, 1, 0], [], []>} : vector<16x8xf32>, vector<16x8xf32>, vector<16x16xf32> -> vector<16x16xf32>
    %cst_222 = arith.constant dense<0xFF800000> : vector<16xf32>
    %460 = vector.multi_reduction <maximumf>, %459, %cst_222 [1] : vector<16x16xf32> to vector<16xf32>
    %461 = vector.shape_cast %460 : vector<16xf32> to vector<16x1xf32>
    %462 = vector.broadcast %461 : vector<16x1xf32> to vector<16x16xf32>
    %463 = arith.subf %459, %462 : vector<16x16xf32>
    %464 = math.exp %463 : vector<16x16xf32>
    %cst_223 = arith.constant dense<0.000000e+00> : vector<16xf32>
    %465 = vector.multi_reduction <add>, %464, %cst_223 [1] : vector<16x16xf32> to vector<16xf32>
    %466 = vector.shape_cast %465 : vector<16xf32> to vector<16x1xf32>
    %467 = tpu.reciprocal %466 {approx = true} : vector<16x1xf32> -> vector<16x1xf32>
    %468 = vector.broadcast %467 : vector<16x1xf32> to vector<16x16xf32>
    %469 = arith.mulf %464, %468 : vector<16x16xf32>
    %cst_224 = arith.constant dense<0.000000e+00> : vector<16x8xf32>
    %470 = tpu.matmul %469, %458, %cst_224 {dimension_numbers = #tpu.dot_dimension_numbers<[1], [0], [0], [1], [0, 0, 1, 1], [], []>} : vector<16x16xf32>, vector<16x8xf32>, vector<16x8xf32> -> vector<16x8xf32>
    %471 = vector.extract_strided_slice %455 {offsets = [0, 8], sizes = [16, 8], strides = [1, 1]} : vector<16x96xf32> to vector<16x8xf32>
    %472 = vector.extract_strided_slice %455 {offsets = [0, 40], sizes = [16, 8], strides = [1, 1]} : vector<16x96xf32> to vector<16x8xf32>
    %473 = vector.extract_strided_slice %455 {offsets = [0, 72], sizes = [16, 8], strides = [1, 1]} : vector<16x96xf32> to vector<16x8xf32>
    %cst_225 = arith.constant dense<0.000000e+00> : vector<16x16xf32>
    %474 = tpu.matmul %471, %472, %cst_225 {dimension_numbers = #tpu.dot_dimension_numbers<[1], [1], [0], [0], [0, 0, 1, 0], [], []>} : vector<16x8xf32>, vector<16x8xf32>, vector<16x16xf32> -> vector<16x16xf32>
    %cst_226 = arith.constant dense<0xFF800000> : vector<16xf32>
    %475 = vector.multi_reduction <maximumf>, %474, %cst_226 [1] : vector<16x16xf32> to vector<16xf32>
    %476 = vector.shape_cast %475 : vector<16xf32> to vector<16x1xf32>
    %477 = vector.broadcast %476 : vector<16x1xf32> to vector<16x16xf32>
    %478 = arith.subf %474, %477 : vector<16x16xf32>
    %479 = math.exp %478 : vector<16x16xf32>
    %cst_227 = arith.constant dense<0.000000e+00> : vector<16xf32>
    %480 = vector.multi_reduction <add>, %479, %cst_227 [1] : vector<16x16xf32> to vector<16xf32>
    %481 = vector.shape_cast %480 : vector<16xf32> to vector<16x1xf32>
    %482 = tpu.reciprocal %481 {approx = true} : vector<16x1xf32> -> vector<16x1xf32>
    %483 = vector.broadcast %482 : vector<16x1xf32> to vector<16x16xf32>
    %484 = arith.mulf %479, %483 : vector<16x16xf32>
    %cst_228 = arith.constant dense<0.000000e+00> : vector<16x8xf32>
    %485 = tpu.matmul %484, %473, %cst_228 {dimension_numbers = #tpu.dot_dimension_numbers<[1], [0], [0], [1], [0, 0, 1, 1], [], []>} : vector<16x16xf32>, vector<16x8xf32>, vector<16x8xf32> -> vector<16x8xf32>
    %486 = vector.extract_strided_slice %455 {offsets = [0, 16], sizes = [16, 8], strides = [1, 1]} : vector<16x96xf32> to vector<16x8xf32>
    %487 = vector.extract_strided_slice %455 {offsets = [0, 48], sizes = [16, 8], strides = [1, 1]} : vector<16x96xf32> to vector<16x8xf32>
    %488 = vector.extract_strided_slice %455 {offsets = [0, 80], sizes = [16, 8], strides = [1, 1]} : vector<16x96xf32> to vector<16x8xf32>
    %cst_229 = arith.constant dense<0.000000e+00> : vector<16x16xf32>
    %489 = tpu.matmul %486, %487, %cst_229 {dimension_numbers = #tpu.dot_dimension_numbers<[1], [1], [0], [0], [0, 0, 1, 0], [], []>} : vector<16x8xf32>, vector<16x8xf32>, vector<16x16xf32> -> vector<16x16xf32>
    %cst_230 = arith.constant dense<0xFF800000> : vector<16xf32>
    %490 = vector.multi_reduction <maximumf>, %489, %cst_230 [1] : vector<16x16xf32> to vector<16xf32>
    %491 = vector.shape_cast %490 : vector<16xf32> to vector<16x1xf32>
    %492 = vector.broadcast %491 : vector<16x1xf32> to vector<16x16xf32>
    %493 = arith.subf %489, %492 : vector<16x16xf32>
    %494 = math.exp %493 : vector<16x16xf32>
    %cst_231 = arith.constant dense<0.000000e+00> : vector<16xf32>
    %495 = vector.multi_reduction <add>, %494, %cst_231 [1] : vector<16x16xf32> to vector<16xf32>
    %496 = vector.shape_cast %495 : vector<16xf32> to vector<16x1xf32>
    %497 = tpu.reciprocal %496 {approx = true} : vector<16x1xf32> -> vector<16x1xf32>
    %498 = vector.broadcast %497 : vector<16x1xf32> to vector<16x16xf32>
    %499 = arith.mulf %494, %498 : vector<16x16xf32>
    %cst_232 = arith.constant dense<0.000000e+00> : vector<16x8xf32>
    %500 = tpu.matmul %499, %488, %cst_232 {dimension_numbers = #tpu.dot_dimension_numbers<[1], [0], [0], [1], [0, 0, 1, 1], [], []>} : vector<16x16xf32>, vector<16x8xf32>, vector<16x8xf32> -> vector<16x8xf32>
    %501 = vector.extract_strided_slice %455 {offsets = [0, 24], sizes = [16, 8], strides = [1, 1]} : vector<16x96xf32> to vector<16x8xf32>
    %502 = vector.extract_strided_slice %455 {offsets = [0, 56], sizes = [16, 8], strides = [1, 1]} : vector<16x96xf32> to vector<16x8xf32>
    %503 = vector.extract_strided_slice %455 {offsets = [0, 88], sizes = [16, 8], strides = [1, 1]} : vector<16x96xf32> to vector<16x8xf32>
    %cst_233 = arith.constant dense<0.000000e+00> : vector<16x16xf32>
    %504 = tpu.matmul %501, %502, %cst_233 {dimension_numbers = #tpu.dot_dimension_numbers<[1], [1], [0], [0], [0, 0, 1, 0], [], []>} : vector<16x8xf32>, vector<16x8xf32>, vector<16x16xf32> -> vector<16x16xf32>
    %cst_234 = arith.constant dense<0xFF800000> : vector<16xf32>
    %505 = vector.multi_reduction <maximumf>, %504, %cst_234 [1] : vector<16x16xf32> to vector<16xf32>
    %506 = vector.shape_cast %505 : vector<16xf32> to vector<16x1xf32>
    %507 = vector.broadcast %506 : vector<16x1xf32> to vector<16x16xf32>
    %508 = arith.subf %504, %507 : vector<16x16xf32>
    %509 = math.exp %508 : vector<16x16xf32>
    %cst_235 = arith.constant dense<0.000000e+00> : vector<16xf32>
    %510 = vector.multi_reduction <add>, %509, %cst_235 [1] : vector<16x16xf32> to vector<16xf32>
    %511 = vector.shape_cast %510 : vector<16xf32> to vector<16x1xf32>
    %512 = tpu.reciprocal %511 {approx = true} : vector<16x1xf32> -> vector<16x1xf32>
    %513 = vector.broadcast %512 : vector<16x1xf32> to vector<16x16xf32>
    %514 = arith.mulf %509, %513 : vector<16x16xf32>
    %cst_236 = arith.constant dense<0.000000e+00> : vector<16x8xf32>
    %515 = tpu.matmul %514, %503, %cst_236 {dimension_numbers = #tpu.dot_dimension_numbers<[1], [0], [0], [1], [0, 0, 1, 1], [], []>} : vector<16x16xf32>, vector<16x8xf32>, vector<16x8xf32> -> vector<16x8xf32>
    %516 = tpu.concatenate %470, %485, %500, %515 in 1 : vector<16x8xf32>, vector<16x8xf32>, vector<16x8xf32>, vector<16x8xf32> -> vector<16x32xf32>
    %cst_237 = arith.constant dense<0.000000e+00> : vector<16x32xf32>
    %517 = tpu.matmul %516, %446, %cst_237 {dimension_numbers = #tpu.dot_dimension_numbers<[1], [0], [0], [1], [0, 0, 1, 1], [], []>} : vector<16x32xf32>, vector<32x32xf32>, vector<16x32xf32> -> vector<16x32xf32>
    %c3_238 = arith.constant 3 : index
    %c0_239 = arith.constant 0 : index
    %c0_240 = arith.constant 0 : index
    %518 = vector.load %arg9[%c3_238, %c0_239, %c0_240] : memref<4x1x32xf32, #tpu.memory_space<vmem>>, vector<1x1x32xf32>
    %519 = vector.shape_cast %518 : vector<1x1x32xf32> to vector<1x32xf32>
    %520 = vector.broadcast %519 : vector<1x32xf32> to vector<16x32xf32>
    %521 = arith.addf %517, %520 : vector<16x32xf32>
    %522 = arith.addf %442, %521 : vector<16x32xf32>
    %c3_241 = arith.constant 3 : index
    %c0_242 = arith.constant 0 : index
    %c0_243 = arith.constant 0 : index
    %523 = vector.load %arg10[%c3_241, %c0_242, %c0_243] : memref<4x1x32xf32, #tpu.memory_space<vmem>>, vector<1x1x32xf32>
    %524 = vector.shape_cast %523 : vector<1x1x32xf32> to vector<1x32xf32>
    %c3_244 = arith.constant 3 : index
    %c0_245 = arith.constant 0 : index
    %c0_246 = arith.constant 0 : index
    %525 = vector.load %arg11[%c3_244, %c0_245, %c0_246] : memref<4x1x32xf32, #tpu.memory_space<vmem>>, vector<1x1x32xf32>
    %526 = vector.shape_cast %525 : vector<1x1x32xf32> to vector<1x32xf32>
    %cst_247 = arith.constant dense<0.000000e+00> : vector<16xf32>
    %527 = vector.multi_reduction <add>, %522, %cst_247 [1] : vector<16x32xf32> to vector<16xf32>
    %528 = vector.shape_cast %527 : vector<16xf32> to vector<16x1xf32>
    %cst_248 = arith.constant 3.200000e+01 : f32
    %529 = vector.broadcast %cst_248 : f32 to vector<16x1xf32>
    %530 = arith.divf %528, %529 : vector<16x1xf32>
    %531 = vector.broadcast %530 : vector<16x1xf32> to vector<16x32xf32>
    %532 = arith.subf %522, %531 : vector<16x32xf32>
    %533 = arith.mulf %532, %532 : vector<16x32xf32>
    %cst_249 = arith.constant dense<0.000000e+00> : vector<16xf32>
    %534 = vector.multi_reduction <add>, %533, %cst_249 [1] : vector<16x32xf32> to vector<16xf32>
    %535 = vector.shape_cast %534 : vector<16xf32> to vector<16x1xf32>
    %cst_250 = arith.constant 3.200000e+01 : f32
    %536 = vector.broadcast %cst_250 : f32 to vector<16x1xf32>
    %537 = arith.divf %535, %536 : vector<16x1xf32>
    %538 = vector.broadcast %530 : vector<16x1xf32> to vector<16x32xf32>
    %539 = arith.subf %522, %538 : vector<16x32xf32>
    %cst_251 = arith.constant 9.99999974E-6 : f32
    %540 = vector.broadcast %cst_251 : f32 to vector<16x1xf32>
    %541 = arith.addf %537, %540 : vector<16x1xf32>
    %542 = math.rsqrt %541 : vector<16x1xf32>
    %543 = vector.broadcast %542 : vector<16x1xf32> to vector<16x32xf32>
    %544 = arith.mulf %539, %543 : vector<16x32xf32>
    %545 = vector.broadcast %524 : vector<1x32xf32> to vector<16x32xf32>
    %546 = arith.mulf %544, %545 : vector<16x32xf32>
    %547 = vector.broadcast %526 : vector<1x32xf32> to vector<16x32xf32>
    %548 = arith.addf %546, %547 : vector<16x32xf32>
    %cst_252 = arith.constant dense<0.000000e+00> : vector<16x1024xf32>
    %549 = tpu.matmul %548, %448, %cst_252 {dimension_numbers = #tpu.dot_dimension_numbers<[1], [0], [0], [1], [0, 0, 1, 1], [], []>} : vector<16x32xf32>, vector<32x1024xf32>, vector<16x1024xf32> -> vector<16x1024xf32>
    %c3_253 = arith.constant 3 : index
    %c0_254 = arith.constant 0 : index
    %c0_255 = arith.constant 0 : index
    %550 = vector.load %arg13[%c3_253, %c0_254, %c0_255] : memref<4x1x1024xf32, #tpu.memory_space<vmem>>, vector<1x1x1024xf32>
    %551 = vector.shape_cast %550 : vector<1x1x1024xf32> to vector<1x1024xf32>
    %552 = vector.broadcast %551 : vector<1x1024xf32> to vector<16x1024xf32>
    %553 = arith.addf %549, %552 : vector<16x1024xf32>
    %cst_256 = arith.constant 0.000000e+00 : f32
    %554 = vector.broadcast %cst_256 : f32 to vector<16x1024xf32>
    %555 = arith.maximumf %553, %554 : vector<16x1024xf32>
    %cst_257 = arith.constant dense<0.000000e+00> : vector<16x32xf32>
    %556 = tpu.matmul %555, %450, %cst_257 {dimension_numbers = #tpu.dot_dimension_numbers<[1], [0], [0], [1], [0, 0, 1, 1], [], []>} : vector<16x1024xf32>, vector<1024x32xf32>, vector<16x32xf32> -> vector<16x32xf32>
    %c3_258 = arith.constant 3 : index
    %c0_259 = arith.constant 0 : index
    %c0_260 = arith.constant 0 : index
    %557 = vector.load %arg15[%c3_258, %c0_259, %c0_260] : memref<4x1x32xf32, #tpu.memory_space<vmem>>, vector<1x1x32xf32>
    %558 = vector.shape_cast %557 : vector<1x1x32xf32> to vector<1x32xf32>
    %559 = vector.broadcast %558 : vector<1x32xf32> to vector<16x32xf32>
    %560 = arith.addf %556, %559 : vector<16x32xf32>
    %561 = arith.addf %548, %560 : vector<16x32xf32>
    %c3_261 = arith.constant 3 : index
    %c0_262 = arith.constant 0 : index
    %c0_263 = arith.constant 0 : index
    %562 = vector.load %arg16[%c3_261, %c0_262, %c0_263] : memref<4x1x32xf32, #tpu.memory_space<vmem>>, vector<1x1x32xf32>
    %563 = vector.shape_cast %562 : vector<1x1x32xf32> to vector<1x32xf32>
    %c3_264 = arith.constant 3 : index
    %c0_265 = arith.constant 0 : index
    %c0_266 = arith.constant 0 : index
    %564 = vector.load %arg17[%c3_264, %c0_265, %c0_266] : memref<4x1x32xf32, #tpu.memory_space<vmem>>, vector<1x1x32xf32>
    %565 = vector.shape_cast %564 : vector<1x1x32xf32> to vector<1x32xf32>
    %cst_267 = arith.constant dense<0.000000e+00> : vector<16xf32>
    %566 = vector.multi_reduction <add>, %561, %cst_267 [1] : vector<16x32xf32> to vector<16xf32>
    %567 = vector.shape_cast %566 : vector<16xf32> to vector<16x1xf32>
    %cst_268 = arith.constant 3.200000e+01 : f32
    %568 = vector.broadcast %cst_268 : f32 to vector<16x1xf32>
    %569 = arith.divf %567, %568 : vector<16x1xf32>
    %570 = vector.broadcast %569 : vector<16x1xf32> to vector<16x32xf32>
    %571 = arith.subf %561, %570 : vector<16x32xf32>
    %572 = arith.mulf %571, %571 : vector<16x32xf32>
    %cst_269 = arith.constant dense<0.000000e+00> : vector<16xf32>
    %573 = vector.multi_reduction <add>, %572, %cst_269 [1] : vector<16x32xf32> to vector<16xf32>
    %574 = vector.shape_cast %573 : vector<16xf32> to vector<16x1xf32>
    %cst_270 = arith.constant 3.200000e+01 : f32
    %575 = vector.broadcast %cst_270 : f32 to vector<16x1xf32>
    %576 = arith.divf %574, %575 : vector<16x1xf32>
    %577 = vector.broadcast %569 : vector<16x1xf32> to vector<16x32xf32>
    %578 = arith.subf %561, %577 : vector<16x32xf32>
    %cst_271 = arith.constant 9.99999974E-6 : f32
    %579 = vector.broadcast %cst_271 : f32 to vector<16x1xf32>
    %580 = arith.addf %576, %579 : vector<16x1xf32>
    %581 = math.rsqrt %580 : vector<16x1xf32>
    %582 = vector.broadcast %581 : vector<16x1xf32> to vector<16x32xf32>
    %583 = arith.mulf %578, %582 : vector<16x32xf32>
    %584 = vector.broadcast %563 : vector<1x32xf32> to vector<16x32xf32>
    %585 = arith.mulf %583, %584 : vector<16x32xf32>
    %586 = vector.broadcast %565 : vector<1x32xf32> to vector<16x32xf32>
    %587 = arith.addf %585, %586 : vector<16x32xf32>
    %c0_272 = arith.constant 0 : index
    %c0_273 = arith.constant 0 : index
    %588 = vector.load %arg2[%c0_272, %c0_273] : memref<256x36xf32, #tpu.memory_space<vmem>>, vector<256x36xf32>
    %c0_274 = arith.constant 0 : index
    %c0_275 = arith.constant 0 : index
    %589 = vector.load %arg18[%c0_274, %c0_275] : memref<36x32xf32, #tpu.memory_space<vmem>>, vector<36x32xf32>
    %cst_276 = arith.constant dense<0.000000e+00> : vector<256x32xf32>
    %590 = tpu.matmul %588, %589, %cst_276 {dimension_numbers = #tpu.dot_dimension_numbers<[1], [0], [0], [1], [0, 0, 1, 1], [], []>} : vector<256x36xf32>, vector<36x32xf32>, vector<256x32xf32> -> vector<256x32xf32>
    %c0_277 = arith.constant 0 : index
    %c0_278 = arith.constant 0 : index
    %591 = vector.load %arg19[%c0_277, %c0_278] : memref<1x32xf32, #tpu.memory_space<vmem>>, vector<1x32xf32>
    %592 = vector.broadcast %591 : vector<1x32xf32> to vector<256x32xf32>
    %593 = arith.addf %590, %592 : vector<256x32xf32>
    %594 = vector.extract_strided_slice %587 {offsets = [1, 0], sizes = [8, 32], strides = [1, 1]} : vector<16x32xf32> to vector<8x32xf32>
    %cst_279 = arith.constant dense<0.000000e+00> : vector<8x256xf32>
    %595 = tpu.matmul %594, %593, %cst_279 {dimension_numbers = #tpu.dot_dimension_numbers<[1], [1], [0], [0], [0, 0, 1, 0], [], []>} : vector<8x32xf32>, vector<256x32xf32>, vector<8x256xf32> -> vector<8x256xf32>
    %c0_280 = arith.constant 0 : index
    %c0_281 = arith.constant 0 : index
    %c0_282 = arith.constant 0 : index
    %596 = vector.load %arg27[%c0_280, %c0_281, %c0_282] : memref<1x8x256xf32, #tpu.memory_space<vmem>>, vector<1x8x256xf32>
    %597 = vector.shape_cast %596 : vector<1x8x256xf32> to vector<8x256xf32>
    %598 = vector.shape_cast %595 : vector<8x256xf32> to vector<1x8x256xf32>
    tpu.vector_store %arg27[%c0_280, %c0_281, %c0_282], %598 {strides = array<i32>} : memref<1x8x256xf32, #tpu.memory_space<vmem>>, vector<1x8x256xf32>,
    %599 = vector.extract_strided_slice %587 {offsets = [0, 0], sizes = [1, 32], strides = [1, 1]} : vector<16x32xf32> to vector<1x32xf32>
    %c0_283 = arith.constant 0 : index
    %c0_284 = arith.constant 0 : index
    %600 = vector.load %arg20[%c0_283, %c0_284] : memref<32x256xf32, #tpu.memory_space<vmem>>, vector<32x256xf32>
    %cst_285 = arith.constant dense<0.000000e+00> : vector<1x256xf32>
    %601 = tpu.matmul %599, %600, %cst_285 {dimension_numbers = #tpu.dot_dimension_numbers<[1], [0], [0], [1], [0, 0, 1, 1], [], []>} : vector<1x32xf32>, vector<32x256xf32>, vector<1x256xf32> -> vector<1x256xf32>
    %c0_286 = arith.constant 0 : index
    %c0_287 = arith.constant 0 : index
    %602 = vector.load %arg21[%c0_286, %c0_287] : memref<1x256xf32, #tpu.memory_space<vmem>>, vector<1x256xf32>
    %603 = arith.addf %601, %602 : vector<1x256xf32>
    %cst_288 = arith.constant 0.000000e+00 : f32
    %604 = vector.broadcast %cst_288 : f32 to vector<1x256xf32>
    %605 = arith.cmpf oge, %603, %604 : vector<1x256xf32>
    %cst_289 = arith.constant 0.00999999977 : f32
    %606 = vector.broadcast %cst_289 : f32 to vector<1x256xf32>
    %607 = arith.mulf %606, %603 : vector<1x256xf32>
    %608 = arith.select %605, %603, %607 : vector<1x256xi1>, vector<1x256xf32>
    %c0_290 = arith.constant 0 : index
    %c0_291 = arith.constant 0 : index
    %609 = vector.load %arg22[%c0_290, %c0_291] : memref<256x256xf32, #tpu.memory_space<vmem>>, vector<256x256xf32>
    %cst_292 = arith.constant dense<0.000000e+00> : vector<1x256xf32>
    %610 = tpu.matmul %608, %609, %cst_292 {dimension_numbers = #tpu.dot_dimension_numbers<[1], [0], [0], [1], [0, 0, 1, 1], [], []>} : vector<1x256xf32>, vector<256x256xf32>, vector<1x256xf32> -> vector<1x256xf32>
    %c0_293 = arith.constant 0 : index
    %c0_294 = arith.constant 0 : index
    %611 = vector.load %arg23[%c0_293, %c0_294] : memref<1x256xf32, #tpu.memory_space<vmem>>, vector<1x256xf32>
    %612 = arith.addf %610, %611 : vector<1x256xf32>
    %cst_295 = arith.constant 0.000000e+00 : f32
    %613 = vector.broadcast %cst_295 : f32 to vector<1x256xf32>
    %614 = arith.cmpf oge, %612, %613 : vector<1x256xf32>
    %cst_296 = arith.constant 0.00999999977 : f32
    %615 = vector.broadcast %cst_296 : f32 to vector<1x256xf32>
    %616 = arith.mulf %615, %612 : vector<1x256xf32>
    %617 = arith.select %614, %612, %616 : vector<1x256xi1>, vector<1x256xf32>
    %c0_297 = arith.constant 0 : index
    %c0_298 = arith.constant 0 : index
    %618 = vector.load %arg24[%c0_297, %c0_298] : memref<256x16xf32, #tpu.memory_space<vmem>>, vector<256x16xf32>
    %cst_299 = arith.constant dense<0.000000e+00> : vector<1x16xf32>
    %619 = tpu.matmul %617, %618, %cst_299 {dimension_numbers = #tpu.dot_dimension_numbers<[1], [0], [0], [1], [0, 0, 1, 1], [], []>} : vector<1x256xf32>, vector<256x16xf32>, vector<1x16xf32> -> vector<1x16xf32>
    %c0_300 = arith.constant 0 : index
    %c0_301 = arith.constant 0 : index
    %620 = vector.load %arg25[%c0_300, %c0_301] : memref<1x16xf32, #tpu.memory_space<vmem>>, vector<1x16xf32>
    %621 = arith.addf %619, %620 : vector<1x16xf32>
    %cst_302 = arith.constant 0.000000e+00 : f32
    %622 = vector.broadcast %cst_302 : f32 to vector<1x16xf32>
    %623 = arith.maximumf %621, %622 : vector<1x16xf32>
    %cst_303 = arith.constant 1.000000e-01 : f32
    %624 = vector.broadcast %cst_303 : f32 to vector<1x16xf32>
    %625 = arith.addf %623, %624 : vector<1x16xf32>
    %cst_304 = arith.constant dense<0.000000e+00> : vector<1xf32>
    %626 = vector.multi_reduction <add>, %625, %cst_304 [1] : vector<1x16xf32> to vector<1xf32>
    %627 = vector.shape_cast %626 : vector<1xf32> to vector<1x1xf32>
    %628 = vector.broadcast %627 : vector<1x1xf32> to vector<1x16xf32>
    %629 = arith.divf %625, %628 : vector<1x16xf32>
    %630 = vector.shape_cast %629 : vector<1x16xf32> to vector<1x1x16xf32>
    %c0_305 = arith.constant 0 : index
    %c0_306 = arith.constant 0 : index
    %c0_307 = arith.constant 0 : index
    %631 = vector.load %arg26[%c0_305, %c0_306, %c0_307] : memref<1x1x16xf32, #tpu.memory_space<vmem>>, vector<1x1x16xf32>
    tpu.vector_store %arg26[%c0_305, %c0_306, %c0_307], %630 {strides = array<i32>} : memref<1x1x16xf32, #tpu.memory_space<vmem>>, vector<1x1x16xf32>,
    return
  }
  func.func @transform_0(%arg0: i32) -> (i32, i32) {
    %c0_i32 = arith.constant 0 : i32
    %c0_i32_0 = arith.constant 0 : i32
    return %arg0, %c0_i32 : i32, i32
  }
  func.func @transform_1(%arg0: i32) -> (i32, i32) {
    %c0_i32 = arith.constant 0 : i32
    %c0_i32_0 = arith.constant 0 : i32
    return %arg0, %c0_i32 : i32, i32
  }
  func.func @transform_2(%arg0: i32) -> (i32, i32) {
    %c0_i32 = arith.constant 0 : i32
    %c0_i32_0 = arith.constant 0 : i32
    %c0_i32_1 = arith.constant 0 : i32
    return %c0_i32, %c0_i32_0 : i32, i32
  }
  func.func @transform_3(%arg0: i32) -> (i32, i32) {
    %c0_i32 = arith.constant 0 : i32
    %c0_i32_0 = arith.constant 0 : i32
    %c0_i32_1 = arith.constant 0 : i32
    return %c0_i32, %c0_i32_0 : i32, i32
  }
  func.func @transform_4(%arg0: i32) -> (i32, i32) {
    %c0_i32 = arith.constant 0 : i32
    %c0_i32_0 = arith.constant 0 : i32
    %c0_i32_1 = arith.constant 0 : i32
    return %c0_i32, %c0_i32_0 : i32, i32
  }
  func.func @transform_5(%arg0: i32) -> (i32, i32, i32) {
    %c0_i32 = arith.constant 0 : i32
    %c0_i32_0 = arith.constant 0 : i32
    %c0_i32_1 = arith.constant 0 : i32
    %c0_i32_2 = arith.constant 0 : i32
    return %c0_i32, %c0_i32_0, %c0_i32_1 : i32, i32, i32
  }
  func.func @transform_6(%arg0: i32) -> (i32, i32, i32) {
    %c0_i32 = arith.constant 0 : i32
    %c0_i32_0 = arith.constant 0 : i32
    %c0_i32_1 = arith.constant 0 : i32
    %c0_i32_2 = arith.constant 0 : i32
    return %c0_i32, %c0_i32_0, %c0_i32_1 : i32, i32, i32
  }
  func.func @transform_7(%arg0: i32) -> (i32, i32, i32) {
    %c0_i32 = arith.constant 0 : i32
    %c0_i32_0 = arith.constant 0 : i32
    %c0_i32_1 = arith.constant 0 : i32
    %c0_i32_2 = arith.constant 0 : i32
    return %c0_i32, %c0_i32_0, %c0_i32_1 : i32, i32, i32
  }
  func.func @transform_8(%arg0: i32) -> (i32, i32, i32) {
    %c0_i32 = arith.constant 0 : i32
    %c0_i32_0 = arith.constant 0 : i32
    %c0_i32_1 = arith.constant 0 : i32
    %c0_i32_2 = arith.constant 0 : i32
    return %c0_i32, %c0_i32_0, %c0_i32_1 : i32, i32, i32
  }
  func.func @transform_9(%arg0: i32) -> (i32, i32, i32) {
    %c0_i32 = arith.constant 0 : i32
    %c0_i32_0 = arith.constant 0 : i32
    %c0_i32_1 = arith.constant 0 : i32
    %c0_i32_2 = arith.constant 0 : i32
    return %c0_i32, %c0_i32_0, %c0_i32_1 : i32, i32, i32
  }
  func.func @transform_10(%arg0: i32) -> (i32, i32, i32) {
    %c0_i32 = arith.constant 0 : i32
    %c0_i32_0 = arith.constant 0 : i32
    %c0_i32_1 = arith.constant 0 : i32
    %c0_i32_2 = arith.constant 0 : i32
    return %c0_i32, %c0_i32_0, %c0_i32_1 : i32, i32, i32
  }
  func.func @transform_11(%arg0: i32) -> (i32, i32, i32) {
    %c0_i32 = arith.constant 0 : i32
    %c0_i32_0 = arith.constant 0 : i32
    %c0_i32_1 = arith.constant 0 : i32
    %c0_i32_2 = arith.constant 0 : i32
    return %c0_i32, %c0_i32_0, %c0_i32_1 : i32, i32, i32
  }
  func.func @transform_12(%arg0: i32) -> (i32, i32, i32) {
    %c0_i32 = arith.constant 0 : i32
    %c0_i32_0 = arith.constant 0 : i32
    %c0_i32_1 = arith.constant 0 : i32
    %c0_i32_2 = arith.constant 0 : i32
    return %c0_i32, %c0_i32_0, %c0_i32_1 : i32, i32, i32
  }
  func.func @transform_13(%arg0: i32) -> (i32, i32, i32) {
    %c0_i32 = arith.constant 0 : i32
    %c0_i32_0 = arith.constant 0 : i32
    %c0_i32_1 = arith.constant 0 : i32
    %c0_i32_2 = arith.constant 0 : i32
    return %c0_i32, %c0_i32_0, %c0_i32_1 : i32, i32, i32
  }
  func.func @transform_14(%arg0: i32) -> (i32, i32, i32) {
    %c0_i32 = arith.constant 0 : i32
    %c0_i32_0 = arith.constant 0 : i32
    %c0_i32_1 = arith.constant 0 : i32
    %c0_i32_2 = arith.constant 0 : i32
    return %c0_i32, %c0_i32_0, %c0_i32_1 : i32, i32, i32
  }
  func.func @transform_15(%arg0: i32) -> (i32, i32, i32) {
    %c0_i32 = arith.constant 0 : i32
    %c0_i32_0 = arith.constant 0 : i32
    %c0_i32_1 = arith.constant 0 : i32
    %c0_i32_2 = arith.constant 0 : i32
    return %c0_i32, %c0_i32_0, %c0_i32_1 : i32, i32, i32
  }
  func.func @transform_16(%arg0: i32) -> (i32, i32, i32) {
    %c0_i32 = arith.constant 0 : i32
    %c0_i32_0 = arith.constant 0 : i32
    %c0_i32_1 = arith.constant 0 : i32
    %c0_i32_2 = arith.constant 0 : i32
    return %c0_i32, %c0_i32_0, %c0_i32_1 : i32, i32, i32
  }
  func.func @transform_17(%arg0: i32) -> (i32, i32) {
    %c0_i32 = arith.constant 0 : i32
    %c0_i32_0 = arith.constant 0 : i32
    %c0_i32_1 = arith.constant 0 : i32
    return %c0_i32, %c0_i32_0 : i32, i32
  }
  func.func @transform_18(%arg0: i32) -> (i32, i32) {
    %c0_i32 = arith.constant 0 : i32
    %c0_i32_0 = arith.constant 0 : i32
    %c0_i32_1 = arith.constant 0 : i32
    return %c0_i32, %c0_i32_0 : i32, i32
  }
  func.func @transform_19(%arg0: i32) -> (i32, i32) {
    %c0_i32 = arith.constant 0 : i32
    %c0_i32_0 = arith.constant 0 : i32
    %c0_i32_1 = arith.constant 0 : i32
    return %c0_i32, %c0_i32_0 : i32, i32
  }
  func.func @transform_20(%arg0: i32) -> (i32, i32) {
    %c0_i32 = arith.constant 0 : i32
    %c0_i32_0 = arith.constant 0 : i32
    %c0_i32_1 = arith.constant 0 : i32
    return %c0_i32, %c0_i32_0 : i32, i32
  }
  func.func @transform_21(%arg0: i32) -> (i32, i32) {
    %c0_i32 = arith.constant 0 : i32
    %c0_i32_0 = arith.constant 0 : i32
    %c0_i32_1 = arith.constant 0 : i32
    return %c0_i32, %c0_i32_0 : i32, i32
  }
  func.func @transform_22(%arg0: i32) -> (i32, i32) {
    %c0_i32 = arith.constant 0 : i32
    %c0_i32_0 = arith.constant 0 : i32
    %c0_i32_1 = arith.constant 0 : i32
    return %c0_i32, %c0_i32_0 : i32, i32
  }
  func.func @transform_23(%arg0: i32) -> (i32, i32) {
    %c0_i32 = arith.constant 0 : i32
    %c0_i32_0 = arith.constant 0 : i32
    %c0_i32_1 = arith.constant 0 : i32
    return %c0_i32, %c0_i32_0 : i32, i32
  }
  func.func @transform_24(%arg0: i32) -> (i32, i32) {
    %c0_i32 = arith.constant 0 : i32
    %c0_i32_0 = arith.constant 0 : i32
    %c0_i32_1 = arith.constant 0 : i32
    return %c0_i32, %c0_i32_0 : i32, i32
  }
  func.func @transform_25(%arg0: i32) -> (i32, i32, i32) {
    %c0_i32 = arith.constant 0 : i32
    %c0_i32_0 = arith.constant 0 : i32
    %c0_i32_1 = arith.constant 0 : i32
    return %arg0, %c0_i32, %c0_i32_0 : i32, i32, i32
  }
  func.func @transform_26(%arg0: i32) -> (i32, i32, i32) {
    %c0_i32 = arith.constant 0 : i32
    %c0_i32_0 = arith.constant 0 : i32
    %c0_i32_1 = arith.constant 0 : i32
    return %arg0, %c0_i32, %c0_i32_0 : i32, i32, i32
  }
}

</mosaic_0001>

<bundles_post_ra>
// kernel: mvit_forward.1
= control target key start
LH: loop header
LB: loop body
LE: loop exit
PB: predicated region body
PF: predicated region fallthrough
CT: control target
= control target key end

     0   :  { %s17117_s0 = inlined_call_operand.vmem [shape: f32[32,64], index: 0, kind: input, shape index: {}]   ;;  %s17118_s1 = inlined_call_operand.vmem [shape: f32[512,36], index: 1, kind: input, shape index: {}]   ;;  %s17119_s2 = inlined_call_operand.vmem [shape: f32[64,32], index: 2, kind: input, shape index: {}]   ;;  %s17120_s3 = inlined_call_operand.vmem [shape: f32[1,32], index: 3, kind: input, shape index: {}]   ;;  %s17121_s4 = inlined_call_operand.vmem [shape: f32[16,32], index: 4, kind: input, shape index: {}]   ;;  %s17122_s5 = inlined_call_operand.vmem [shape: f32[4,32,96], index: 5, kind: input, shape index: {}]   ;;  %s17123_s6 = inlined_call_operand.vmem [shape: f32[4,1,96], index: 6, kind: input, shape index: {}]   ;;  %s17124_s7 = inlined_call_operand.vmem [shape: f32[4,32,32], index: 7, kind: input, shape index: {}]   ;;  %s17125_s8 = inlined_call_operand.vmem [shape: f32[4,1,32], index: 8, kind: input, shape index: {}]   ;;  %s17126_s9 = inlined_call_operand.vmem [shape: f32[4,1,32], index: 9, kind: input, shape index: {}]   ;;  %s17127_s10 = inlined_call_operand.vmem [shape: f32[4,1,32], index: 10, kind: input, shape index: {}]   ;;  %s17128_s11 = inlined_call_operand.vmem [shape: f32[4,32,1024], index: 11, kind: input, shape index: {}]   ;;  %s17129_s12 = inlined_call_operand.vmem [shape: f32[4,1,1024], index: 12, kind: input, shape index: {}]   ;;  %s17130_s13 = inlined_call_operand.vmem [shape: f32[4,1024,32], index: 13, kind: input, shape index: {}]   ;;  %s17131_s14 = inlined_call_operand.vmem [shape: f32[4,1,32], index: 14, kind: input, shape index: {}]   ;;  %s17132_s15 = inlined_call_operand.vmem [shape: f32[4,1,32], index: 15, kind: input, shape index: {}]   ;;  %s17133_s16 = inlined_call_operand.vmem [shape: f32[4,1,32], index: 16, kind: input, shape index: {}]   ;;  %s17134_s17 = inlined_call_operand.vmem [shape: f32[36,32], index: 17, kind: input, shape index: {}]   ;;  %s17135_s18 = inlined_call_operand.vmem [shape: f32[1,32], index: 18, kind: input, shape index: {}]   ;;  %s17136_s19 = inlined_call_operand.vmem [shape: f32[32,256], index: 19, kind: input, shape index: {}]   ;;  %s17137_s20 = inlined_call_operand.vmem [shape: f32[1,256], index: 20, kind: input, shape index: {}]   ;;  %s17138_s21 = inlined_call_operand.vmem [shape: f32[256,256], index: 21, kind: input, shape index: {}]   ;;  %s17139_s22 = inlined_call_operand.vmem [shape: f32[1,256], index: 22, kind: input, shape index: {}]   ;;  %s17140_s23 = inlined_call_operand.vmem [shape: f32[256,16], index: 23, kind: input, shape index: {}]   ;;  %s17141_s24 = inlined_call_operand.vmem [shape: f32[1,16], index: 24, kind: input, shape index: {}]   ;;  %s17142_s25 = inlined_call_operand.hbm [shape: f32[2,1,16], index: 25, kind: output, shape index: {0}]   ;;  %s17143_s26 = inlined_call_operand.vmem [shape: f32[2,8,256], index: 26, kind: output, shape index: {1}]  }
   0x1   :  { %17208 = sst [smem:[#allocation14_spill]] %s17117_s0 }
   0x2   :  { %17209 = sst [smem:[#allocation15_spill]] %s17118_s1 }
   0x3   :  { %17210 = sst [smem:[#allocation16_spill]] %s17119_s2 }
   0x4   :  { %17211 = sst [smem:[#allocation17_spill]] %s17120_s3 }
   0x5   :  { %17212 = sst [smem:[#allocation18_spill]] %s17121_s4 }
   0x6   :  { %17213 = sst [smem:[#allocation19_spill]] %s17122_s5 }
   0x7   :  { %17214 = sst [smem:[#allocation20_spill]] %s17123_s6 }
   0x8   :  { %17215 = sst [smem:[#allocation21_spill]] %s17124_s7 }
   0x9   :  { %17216 = sst [smem:[#allocation22_spill]] %s17125_s8 }
   0xa   :  { %17217 = sst [smem:[#allocation23_spill]] %s17126_s9 }
   0xb   :  { %17218 = sst [smem:[#allocation24_spill]] %s17127_s10 }
   0xc   :  { %17219 = sst [smem:[#allocation25_spill]] %s17134_s17 }
   0xd   :  { %17220 = sst [smem:[#allocation26_spill]] %s17135_s18 }
   0xe   :  { %17221 = sst [smem:[#allocation27_spill]] %s17136_s19 }
   0xf   :  { %17222 = sst [smem:[#allocation28_spill]] %s17137_s20 }
  0x10   :  { %17223 = sst [smem:[#allocation29_spill]] %s17138_s21 }
  0x11   :  { %17224 = sst [smem:[#allocation30_spill]] %s17139_s22 }
  0x12   :  { %17225 = sst [smem:[#allocation31_spill]] %s17140_s23 }
  0x13   :  { %17226 = sst [smem:[#allocation32_spill]] %s17141_s24 }
  0x14   :  { %17227 = sst [smem:[#allocation33_spill]] %s17142_s25 }
  0x15   :  { %17228 = sst [smem:[#allocation34_spill]] %s17143_s26 }
  0x16   :  { %32 = vsyncpa [#allocation3], 0 }
  0x17   :  { %34 = vsyncpa [#allocation3 + $0x1], 0  ;;  %s13471_s27 = smov 0   ;;  %s13473_s3 = smov 0  }
  0x18   :  { %s13475_s7 = smov 0   ;;  %s13477_s28 = smov 0  }
  0x19 LB: > { %17229 = sst [smem:[#allocation5_spill]] %s13306_s27  ;;  %s13492_s8 = sadd.s32 4294967295, %s13318_s28   ;;  %s13318_s28 = sphi %s13477_s28, %s17304_s28   ;;  %s13314_s7 = sphi %s13475_s7, %s17307_s7   ;;  %s13310_s3 = sphi %s13473_s3, %s17306_s3   ;;  %s13306_s27 = sphi %s13471_s27, %s17305_s27  }
  0x1a   : > { %17230 = sst [smem:[#allocation6_spill]] %s13310_s3  ;;  %s9766_s4 = sadd.s32 4294967294, %s13318_s28  }
  0x1b   : > { %17231 = sst [smem:[#allocation7_spill]] %s13314_s7  ;;  %s13496_s29 = sadd.s32 1, %s13318_s28  }
  0x1c   : > { %17232 = sst [smem:[#allocation8_spill]] %s13318_s28  ;;  %s582_s0 = sadd.s32 1, %s13314_s7 }
  0x1d   : > { %17233 = sst [smem:[#allocation9_spill]] %s13492_s8  ;;  %s579_s9 = ssub.s32 %s13318_s28, %s13496_s29 }
  0x1e   : > { %17234 = sst [smem:[#allocation10_spill]] %s13496_s29  ;;  %p592_p0 = scmp.ne.s32.totalorder %s13314_s7, %s13310_s3 }
  0x1f   : > { %p580_p1 = scmp.eq.s32.totalorder %s579_s9, 0  ;;  %p593_p2 = scmp.eq.s32.totalorder %s13492_s8, 1 }
  0x20   : > { %p598_p3 = scmp.ne.s32.totalorder %s13310_s3, %s13306_s27  ;;  %p599_p4 = scmp.eq.s32.totalorder %s9766_s4, 1 }
  0x21   : > { %s13507_s30 = scalar_select %p580_p1, %s13314_s7, %s582_s0  }
  0x22   : > { %p13509_p5 = por %p593_p2, %p592_p0  ;;  %p13513_p6 = por %p599_p4, %p598_p3 }
  0x23   : > { %17235 = sst [smem:[#allocation11_spill]] %s13507_s30  ;;  %p9769_p7 = scmp.ge.s32.totalorder %s13318_s28, 1 }
  0x24   : > { %s17236_s2 = scalar_select %p13509_p5, 1, 0 }
  0x25   : > { %s17238_s5 = scalar_select %p13513_p6, 1, 0 }
  0x26   : > { %17237 = sst [smem:[#allocation12_spill]] %s17236_s2  ;;  %p730_p8 = scmp.lt.s32.totalorder %s13318_s28, 3 }
  0x27   : > { %17239 = sst [smem:[#allocation13_spill]] %s17238_s5 }
  0x28   : > { %p731_p9 = pnand %p9769_p7, %p730_p8 }
  0x29   : > { %s17240_s1 = sld [smem:[#allocation16_spill]] (!%p731_p9)  ;;  %s9770_s7 = sshll.u32 (!%p731_p9), %s13492_s8, 1  ;;  %vm843_vm0 = vcmask (!%p731_p9), 523264   ;;  %vm1104_vm1 = vcmask (!%p731_p9), 261120   ;;  %vm1192_vm2 = vcmask (!%p731_p9), 64512   ;;  %vm1276_vm4 = vcmask (!%p731_p9), 130048  }
  0x2a   : > { %734 = sbr.rel (%p731_p9) target bundleno = 17193 (0x4329), region = 120  ;;  %p810_p10 = scmp.lt.s32.totalorder (!%p731_p9), %s9770_s7, 3  ;;  %vm13593_vm3 = vmpackc.low (!%p731_p9), %vm1192_vm2, %vm1192_vm2  ;;  %vm2014_vm5 = vcmask (!%p731_p9), 195584   ;;  %vm8786_vm6 = vcmask (!%p731_p9), 293888   ;;  %vm8883_vm7 = vcmask (!%p731_p9), 1043456   ;;  %vm9114_vm9 = vcmask (!%p731_p9), 1046528  }
  0x2b   : > { %s17241_s30 = sld [smem:[#allocation19_spill]] (!%p731_p9)  ;;  %s17242_s0 = sld [smem:[#allocation14_spill]] (!%p731_p9)  ;;  %vm16663_vm8 = vmpackc.low (!%p731_p9), %vm1104_vm1, %vm1104_vm1  ;;  %vm9646_vm14 = vcmask (!%p731_p9), 122880  }
  0x2c   : > { %s17243_s28 = sld [smem:[#allocation17_spill]] (!%p731_p9)  ;;  %s17244_s6 = sld [smem:[#allocation18_spill]] (!%p731_p9) }
  0x2d   : > { %s17245_s9 = sld [smem:[#allocation20_spill]] (!%p731_p9)  ;;  %s17181_s29 = smov (!%p731_p9), 96  }
  0x2e   : > { %s17175_s5 = smov (!%p731_p9), 88   ;;  %s17169_s10 = smov (!%p731_p9), 112  }
  0x2f   : > { %v826_v0 = vld [vmem:[%s17240_s1] sm:$0xff] (!%p731_p9)  ;;  %v827_v1 = vld [vmem:[%s17240_s1 + $0x8] sm:$0xff] (!%p731_p9)  ;;  %v828_v2 = vld [vmem:[%s17240_s1 + $0x10] sm:$0xff] (!%p731_p9)  ;;  %s17161_s4 = smov (!%p731_p9), 48   ;;  %s17167_s25 = smov (!%p731_p9), 72  }
  0x30   : > { %v11840_v3 = vpack.c.bf16 (!%p731_p9), %v827_v1, %v826_v0  ;;  %v829_v4 = vld [vmem:[%s17240_s1 + $0x18] sm:$0xff] (!%p731_p9)  ;;  %v830_v6 = vld [vmem:[%s17240_s1 + $0x20] sm:$0xff] (!%p731_p9)  ;;  %v831_v7 = vld [vmem:[%s17240_s1 + $0x28] sm:$0xff] (!%p731_p9)  ;;  %s17256_s3 = smov (!%p731_p9), 80   ;;  %s17258_s22 = smov (!%p731_p9), 112  }
  0x31   : > { %v11844_v5 = vpack.c.bf16 %v829_v4, %v828_v2  ;;  %v929_v8 = vld [vmem:[%s17241_s30] sm:$0xff]  ;;  %s17309_s7 = smov (!%p810_p10, %s9770_s7), 3  ;;  %v930_v9 = vld [vmem:[%s17241_s30 + $0x8] sm:$0xff]  ;;  %v11848_v11 = vpack.c.bf16 %v831_v7, %v830_v6  ;;  %v832_v12 = vld [vmem:[%s17240_s1 + $0x30] sm:$0xff]  ;;  %s17259_s24 = smov 72  }
  0x32   : > { %11841 = vmatprep.subr.bf16.mxu0 %v11840_v3  ;;  %v11856_v10 = vpack.c.bf16 %v930_v9, %v929_v8  ;;  %s9771_s27 = sshll.u32 %s17309_s7, 3  ;;  %v833_v13 = vld [vmem:[%s17240_s1 + $0x38] sm:$0xff]  ;;  %v931_v17 = vld [vmem:[%s17241_s30 + $0x10] sm:$0xff]  ;;  %v9776_v20 = vld [vmem:[%s17243_s28] ss:$0 sm:$0xff]  ;;  %s17177_s28 = smov 120  }
  0x33   : > { %11843 = vmatpush3.bf16.msra.mxu0 %v11840_v3  ;;  %s813_s2 = scalar_lea.vmem %s17242_s0, %s9771_s27  ;;  %v11852_v15 = vpack.c.bf16 %v833_v13, %v832_v12  ;;  %v932_v18 = vld [vmem:[%s17241_s30 + $0x18] sm:$0xff]  ;;  %v925_v24 = vld [vmem:[%s17244_s6] sm:$0xff]  ;;  %v926_v25 = vld [vmem:[%s17244_s6 + $0x8] sm:$0xff]  ;;  %s17179_s27 = smov 64  }
  0x34   : > { %11845 = vmatprep.subr.bf16.mxu0 %v11844_v5  ;;  %11857 = vmatprep.subr.bf16.mxu1 %v11856_v10  ;;  %v834_v14 = vld [vmem:[%s813_s2] sm:$0xff]  ;;  %v835_v16 = vld [vmem:[%s813_s2 + $0x8] sm:$0xff]  ;;  %v11860_v19 = vpack.c.bf16 %v932_v18, %v931_v17  ;;  %s17173_s2 = smov 80   ;;  %s17163_s0 = smov 104  }
  0x35   : > { %11859 = vmatpush3.bf16.msra.mxu1 %v11856_v10  ;;  %11467 = vmatprep.mubr.msk.f32.mxu0 %vm843_vm0, %v834_v14  ;;  %v9779_v29 = vld [vmem:[%s17245_s9] ss:$0 sm:$0xff]  ;;  %s17171_s7 = smov 56   ;;  %s17255_s1 = smov 88  }
  0x36   : > { %11861 = vmatprep.subr.bf16.mxu1 %v11860_v19  ;;  %s17257_s6 = smov 56   ;;  %s17263_s20 = smov 40  }
  0x37   : > { %11847 = vmatpush3.bf16.msra.mxu0 %v11844_v5  ;;  %s17264_s26 = smov 16   ;;  %s17265_s21 = smov 24  }
  0x38   : > { %11849 = vmatprep.subr.bf16.mxu0 %v11848_v11  ;;  %s17269_s18 = sld [smem:[#allocation21_spill]]  ;;  %s17281_s17 = sld [smem:[#allocation9_spill]] }
  0x39   : > { %11863 = vmatpush3.bf16.msra.mxu1 %v11860_v19  ;;  %s17283_s8 = sld [smem:[#allocation25_spill]]  ;;  %s17285_s23 = sld [smem:[#allocation26_spill]] }
  0x3b   : > { %11851 = vmatpush3.bf16.msra.mxu0 %v11848_v11 }
  0x3c   : > { %11853 = vmatprep.subr.bf16.mxu0 %v11852_v15 }
  0x3e   : > { %p821_p12 = scmp.lt.s32.totalorder %s17281_s17, 1 }
  0x3f   : > { %11855 = vmatpush3.bf16.msra.mxu0 %v11852_v15 }
  0x42   : > { %11468 = vmatmul.mubr.msk.f32.vlgmr.msra.gmra.mrb[0].mxu0 %vm843_vm0, %v835_v16 }
 0x115   : > { %v11469_v21 = vpop.f32.mrb[0].mxu0 }
 0x116   : > { %v922_v22 = vadd.f32 %v11469_v21, %v9776_v20  ;;  %v916_v23 = vpop.f32.mrb[1].mxu0 }
 0x117   : > { %v917_v26 = vadd.f32 %v9776_v20, %v916_v23 }
 0x118   : > { %v13570_v28 = vadd.f32 %v926_v25, %v922_v22 }
 0x119   : > { %v13568_v27 = vadd.f32 %v925_v24, %v917_v26 }
 0x11b   : > { %11478 = vmatprep.mubr.msk.f32.mxu1 %vm1104_vm1, %v13568_v27 }
 0x11c   : > { %11479 = vmatmul.mubr.msk.f32.vlgmr.msra.gmra.mrb[0].mxu1 %vm1104_vm1, %v13570_v28 }
 0x1ef   : > { %v11480_v30 = vpop.f32.mrb[0].mxu1 }
 0x1f0   : > { %v13579_v31 = vadd.f32 %v11480_v30, %v9779_v29  ;;  %v1177_v32 = vpop.f32.mrb[1].mxu1 }
 0x1f1   : > { %v13581_v33 = vadd.f32 %v9779_v29, %v1177_v32 }
 0x1f3   : > { %11485 = vmatprep.mubr.msk.f32.mxu1 %vm1192_vm2, %v13581_v33  ;;  %v13587_v34 = vpack.i.bf16 %v13579_v31, %v13581_v33 }
 0x1f5   : > { %12935 = vrot.lane.b32.xlu0 %v13587_v34, %s17181_s29  ;;  %s17254_s29 = smov 120  }
 0x267   : > { %v12936_v35 = vpop.permute.xlu0 %12935 }
 0x268   : > { %v12938_v36 = vunpack.i.h.bf16 %v12936_v35  ;;  %v12937_v37 = vunpack.i.l.bf16 %v12936_v35 }
 0x26a   : > { %v11864_v39 = vpack.c.bf16 %v12938_v36, %v12937_v37 }
 0x26c   : > { %11866 = vmatprep.subr.msk.bf16.mxu1 %vm13593_vm3, %v11864_v39 }
 0x26d   : > { %11869 = vmatpush3.bf16.xpose.msk.msra.mxu1 %vm13593_vm3, %v11864_v39 }
 0x274   : > { %11486 = vmatmul.mubr.msk.f32.vlgmr.msra.gmra.mrb[2].mxu1 %vm1192_vm2, %v13579_v31 }
 0x347   : > { %v11487_v40 = vpop.f32.mrb[2].mxu1 }
 0x348   : > { %v1267_v41 = vpop.f32.mrb[3].mxu1  ;;  %v1280_v42 = vsel %vm1276_vm4, %v11487_v40, -inf }
 0x349   : > { %1281 = vmax.xlane.f32.xlu1 %v1280_v42  ;;  %v1277_v43 = vsel %vm1276_vm4, %v1267_v41, -inf }
 0x34a   : > { %1278 = vmax.xlane.f32.xlu0 %v1277_v43 }
 0x35a   : > { %12940 = vrot.lane.b32.xlu1 %v13587_v34, %s17179_s27  ;;  %s17260_s27 = smov 104  }
 0x35e   : > { %12945 = vrot.lane.b32.xlu1 %v13587_v34, %s17175_s5  ;;  %s17249_s5 = sld [smem:[#allocation22_spill]] }
 0x360   : > { %1386 = vrot.lane.b32.xlu0 %v13581_v33, %s17177_s28 }
 0x362   : > { %12950 = vrot.lane.b32.xlu1 %v13587_v34, %s17173_s2  ;;  %s17183_s2 = smov 24  }
 0x3d6   : > { %v1282_v44 = vpop.xlane.xlu1 %1281 }
 0x3d7   : > { %v1284_v45 = vsub.f32 %v11487_v40, %v1282_v44  ;;  %v1279_v46 = vpop.xlane.xlu0 %1278 }
 0x3d8   : > { %v1283_v47 = vsub.f32 %v1267_v41, %v1279_v46 }
 0x3d9   : > { %v1287_v48 = vmul.f32 1.442695, %v1284_v45 }
 0x3da   : > { %v1285_v49 = vmul.f32 1.442695, %v1283_v47  ;;  %v12941_v50 = vpop.permute.xlu1 %12940 }
 0x3db   : > { %13094 = vpow2.f32 %v1287_v48  ;;  %v12943_v51 = vunpack.i.h.bf16 %v12941_v50  ;;  %v12942_v52 = vunpack.i.l.bf16 %v12941_v50  ;;  %v1387_v7 = vpop.permute.xlu0 %1386 }
 0x3dc   : > { %13096 = vpow2.f32 %v1285_v49 }
 0x3dd   : > { %v11870_v53 = vpack.c.bf16 %v12943_v51, %v12942_v52 }
 0x3de   : > { %v12946_v54 = vpop.permute.xlu1 %12945 }
 0x3df   : > { %v12948_v55 = vunpack.i.h.bf16 %v12946_v54  ;;  %v12947_v56 = vunpack.i.l.bf16 %v12946_v54  ;;  %11871 = vmatprep.subr.bf16.mxu1 %v11870_v53 }
 0x3e0   : > { %11873 = vmatpush3.bf16.msra.mxu1 %v11870_v53 }
 0x3e1   : > { %v11874_v57 = vpack.c.bf16 %v12948_v55, %v12947_v56 }
 0x3e2   : > { %v12951_v62 = vpop.permute.xlu1 %12950 }
 0x3e3   : > { %11876 = vmatprep.subr.msk.bf16.mxu1 %vm13593_vm3, %v11874_v57  ;;  %v12953_v3 = vunpack.i.h.bf16 %v12951_v62  ;;  %v12952_v4 = vunpack.i.l.bf16 %v12951_v62 }
 0x3e5   : > { %v13095_v58 = vpop.eup %13094  ;;  %v11884_v8 = vpack.c.bf16 %v12953_v3, %v12952_v4 }
 0x3e6   : > { %v1292_v59 = vsel %vm1276_vm4, %v13095_v58, 0.0  ;;  %v13097_v60 = vpop.eup %13096 }
 0x3e7   : > { %1293 = vadd.xlane.f32.xlu1 %v1292_v59  ;;  %v1289_v61 = vsel %vm1276_vm4, %v13097_v60, 0.0 }
 0x3eb   : > { %1290 = vadd.xlane.f32.xlu1 %v1289_v61 }
 0x3fc   : > { %1388 = vrot.lane.b32.xlu1 %v13579_v31, %s17177_s28  ;;  %s17261_s28 = smov 48  }
 0x400   : > { %1586 = vrot.lane.b32.xlu1 %v13581_v33, %s17169_s10 }
 0x404   : > { %1588 = vrot.lane.b32.xlu1 %v13579_v31, %s17169_s10  ;;  %s17248_s10 = sld [smem:[#allocation21_spill]] }
 0x474   : > { %v1294_v63 = vpop.xlane.xlu1 %1293 }
 0x475   : > { %13098 = vrcp.f32 %v1294_v63 }
 0x478   : > { %v1291_v0 = vpop.xlane.xlu1 %1290 }
 0x479   : > { %13100 = vrcp.f32 %v1291_v0 }
 0x47c   : > { %v1389_v9 = vpop.permute.xlu1 %1388 }
 0x47f   : > { %v13099_v1 = vpop.eup %13098 }
 0x480   : > { %v1298_v6 = vmul.f32 %v13099_v1, %v13095_v58  ;;  %v1587_v10 = vpop.permute.xlu1 %1586 }
 0x483   : > { %v13101_v2 = vpop.eup %13100 }
 0x484   : > { %v1297_v5 = vmul.f32 %v13101_v2, %v13097_v60  ;;  %v1589_v11 = vpop.permute.xlu1 %1588 }
 0x486   : > { %11492 = vmatprep.mubr.msk.f32.mxu1 %vm1276_vm4, %v1297_v5 }
 0x487   : > { %11493 = vmatmul.mubr.msk.f32.vlgmr.msra.gmra.mrb[4].mxu1 %vm1276_vm4, %v1298_v6 }
 0x488   : > { %11879 = vmatpush3.bf16.xpose.msk.msra.mxu1 %vm13593_vm3, %v11874_v57  ;;  %11499 = vmatprep.mubr.msk.f32.mxu1 %vm1192_vm2, %v1387_v7 }
 0x489   : > { %11886 = vmatprep.subr.msk.bf16.mxu1 %vm13593_vm3, %v11884_v8 }
 0x48f   : > { %11500 = vmatmul.mubr.msk.f32.vlgmr.msra.gmra.mrb[6].mxu1 %vm1192_vm2, %v1389_v9 }
 0x490   : > { %11889 = vmatpush3.bf16.xpose.msk.msra.mxu1 %vm13593_vm3, %v11884_v8  ;;  %11513 = vmatprep.mubr.msk.f32.mxu1 %vm1192_vm2, %v1587_v10 }
 0x497   : > { %11514 = vmatmul.mubr.msk.f32.vlgmr.msra.gmra.mrb[8].mxu1 %vm1192_vm2, %v1589_v11 }
 0x55a   : > { %v13635_v12 = vpop.f32.mrb[4].mxu1 }
 0x55b   : > { %v13637_v13 = vpop.f32.mrb[5].mxu1 }
 0x562   : > { %v13639_v14 = vpop.f32.mrb[6].mxu1 }
 0x563   : > { %v1468_v15 = vpop.f32.mrb[7].mxu1  ;;  %v1480_v40 = vsel %vm1276_vm4, %v13639_v14, -inf }
 0x564   : > { %v1477_v39 = vsel %vm1276_vm4, %v1468_v15, -inf }
 0x56a   : > { %v11515_v16 = vpop.f32.mrb[8].mxu1 }
 0x56b   : > { %v1668_v17 = vpop.f32.mrb[9].mxu1  ;;  %v1680_v18 = vsel %vm1276_vm4, %v11515_v16, -inf }
 0x56c   : > { %1681 = vmax.xlane.f32.xlu0 %v1680_v18  ;;  %v1677_v19 = vsel %vm1276_vm4, %v1668_v17, -inf }
 0x56d   : > { %1678 = vmax.xlane.f32.xlu1 %v1677_v19 }
 0x57e   : > { %12955 = vrot.lane.b32.xlu1 %v13587_v34, %s17161_s4  ;;  %s17165_s4 = smov 40  }
 0x582   : > { %1786 = vrot.lane.b32.xlu1 %v13581_v33, %s17163_s0 }
 0x5f9   : > { %v1682_v20 = vpop.xlane.xlu0 %1681 }
 0x5fa   : > { %v1684_v21 = vsub.f32 %v11515_v16, %v1682_v20  ;;  %v1679_v22 = vpop.xlane.xlu1 %1678 }
 0x5fb   : > { %v1683_v23 = vsub.f32 %v1668_v17, %v1679_v22 }
 0x5fc   : > { %v1687_v24 = vmul.f32 1.442695, %v1684_v21 }
 0x5fd   : > { %v1685_v25 = vmul.f32 1.442695, %v1683_v23 }
 0x5fe   : > { %13102 = vpow2.f32 %v1687_v24  ;;  %v12956_v26 = vpop.permute.xlu1 %12955 }
 0x5ff   : > { %13104 = vpow2.f32 %v1685_v25  ;;  %v12958_v29 = vunpack.i.h.bf16 %v12956_v26  ;;  %v12957_v30 = vunpack.i.l.bf16 %v12956_v26 }
 0x601   : > { %v11890_v32 = vpack.c.bf16 %v12958_v29, %v12957_v30 }
 0x602   : > { %v1787_v41 = vpop.permute.xlu1 %1786 }
 0x603   : > { %11891 = vmatprep.subr.bf16.mxu1 %v11890_v32 }
 0x604   : > { %11893 = vmatpush3.bf16.msra.mxu1 %v11890_v32 }
 0x608   : > { %v13103_v35 = vpop.eup %13102 }
 0x609   : > { %v13105_v36 = vpop.eup %13104  ;;  %v1692_v37 = vsel %vm1276_vm4, %v13103_v35, 0.0 }
 0x60a   : > { %1693 = vadd.xlane.f32.xlu0 %v1692_v37  ;;  %v1689_v33 = vsel %vm1276_vm4, %v13105_v36, 0.0 }
 0x60b   : > { %1690 = vadd.xlane.f32.xlu1 %v1689_v33 }
 0x61c   : > { %1788 = vrot.lane.b32.xlu1 %v13579_v31, %s17163_s0  ;;  %s17185_s0 = smov 16  }
 0x620   : > { %12960 = vrot.lane.b32.xlu0 %v13587_v34, %s17167_s25  ;;  %s17262_s25 = smov 8  }
 0x63f   : > { %1478 = vmax.xlane.f32.xlu0 %v1477_v39 }
 0x640   : > { %1481 = vmax.xlane.f32.xlu1 %v1480_v40  ;;  %v933_v40 = vld [vmem:[%s17248_s10] sm:$0xff] }
 0x697   : > { %v1694_v42 = vpop.xlane.xlu0 %1693 }
 0x698   : > { %13106 = vrcp.f32 %v1694_v42  ;;  %v1691_v43 = vpop.xlane.xlu1 %1690 }
 0x699   : > { %13108 = vrcp.f32 %v1691_v43  ;;  %v935_v43 = vld [vmem:[%s17248_s10 + $0x10] sm:$0xff] }
 0x69b   : > { %v12961_v44 = vpop.permute.xlu0 %12960 }
 0x69c   : > { %v12963_v45 = vunpack.i.h.bf16 %v12961_v44  ;;  %v12962_v46 = vunpack.i.l.bf16 %v12961_v44  ;;  %v1789_v51 = vpop.permute.xlu1 %1788  ;;  %v936_v44 = vld [vmem:[%s17248_s10 + $0x18] sm:$0xff] }
 0x69e   : > { %v11894_v31 = vpack.c.bf16 %v12963_v45, %v12962_v46  ;;  %v11908_v45 = vpack.c.bf16 %v936_v44, %v935_v43  ;;  %v950_v43 = vld [vmem:[%s17128_s11 + $0x68] sm:$0xff]  ;;  %v13334_v44 = vmov 0.0  }
 0x6a0   : > { %11896 = vmatprep.subr.msk.bf16.mxu1 %vm13593_vm3, %v11894_v31 }
 0x6a2   : > { %v13107_v47 = vpop.eup %13106 }
 0x6a3   : > { %v13109_v48 = vpop.eup %13108  ;;  %v1698_v50 = vmul.f32 %v13107_v47, %v13103_v35 }
 0x6a4   : > { %v1697_v49 = vmul.f32 %v13109_v48, %v13105_v36 }
 0x6a6   : > { %11520 = vmatprep.mubr.msk.f32.mxu1 %vm1276_vm4, %v1697_v49 }
 0x6a7   : > { %11521 = vmatmul.mubr.msk.f32.vlgmr.msra.gmra.mrb[10].mxu1 %vm1276_vm4, %v1698_v50 }
 0x6a8   : > { %11899 = vmatpush3.bf16.xpose.msk.msra.mxu1 %vm13593_vm3, %v11894_v31  ;;  %11527 = vmatprep.mubr.msk.f32.mxu1 %vm1192_vm2, %v1787_v41  ;;  %v934_v41 = vld [vmem:[%s17248_s10 + $0x8] sm:$0xff] }
 0x6a9   : > { %v11904_v42 = vpack.c.bf16 %v934_v41, %v933_v40  ;;  %v963_v40 = vld [vmem:[%s17128_s11 + $0xd0] sm:$0xff] }
 0x6af   : > { %11528 = vmatmul.mubr.msk.f32.vlgmr.msra.gmra.mrb[12].mxu1 %vm1192_vm2, %v1789_v51 }
 0x6b0   : > { %2264 = vmatprep.mubr.f32.mxu1 %v13334_v44 }
 0x6cc   : > { %v1479_v52 = vpop.xlane.xlu0 %1478 }
 0x6cd   : > { %v1483_v53 = vsub.f32 %v1468_v15, %v1479_v52  ;;  %v1482_v57 = vpop.xlane.xlu1 %1481 }
 0x6ce   : > { %v1484_v61 = vsub.f32 %v13639_v14, %v1482_v57 }
 0x6cf   : > { %v1485_v54 = vmul.f32 1.442695, %v1483_v53 }
 0x6d0   : > { %v1487_v63 = vmul.f32 1.442695, %v1484_v61 }
 0x6d1   : > { %13110 = vpow2.f32 %v1485_v54 }
 0x6db   : > { %v13111_v55 = vpop.eup %13110 }
 0x6dc   : > { %v1489_v56 = vsel %vm1276_vm4, %v13111_v55, 0.0 }
 0x6dd   : > { %1490 = vadd.xlane.f32.xlu1 %v1489_v56 }
 0x76a   : > { %v1491_v58 = vpop.xlane.xlu1 %1490 }
 0x76b   : > { %13112 = vrcp.f32 %v1491_v58 }
 0x76c   : > { %13114 = vpow2.f32 %v1487_v63 }
 0x775   : > { %v13113_v59 = vpop.eup %13112 }
 0x776   : > { %v1497_v60 = vmul.f32 %v13113_v59, %v13111_v55  ;;  %v13115_v5 = vpop.eup %13114 }
 0x777   : > { %v1492_v6 = vsel %vm1276_vm4, %v13115_v5, 0.0 }
 0x778   : > { %11506 = vmatprep.mubr.msk.f32.mxu0 %vm1276_vm4, %v1497_v60 }
 0x77a   : > { %v13667_v62 = vpop.f32.mrb[10].mxu1 }
 0x77b   : > { %v1777_v0 = vpop.f32.mrb[11].mxu1 }
 0x782   : > { %v11529_v1 = vpop.f32.mrb[12].mxu1 }
 0x783   : > { %v1868_v2 = vpop.f32.mrb[13].mxu1  ;;  %v1880_v4 = vsel %vm1276_vm4, %v11529_v1, -inf }
 0x784   : > { %v1877_v3 = vsel %vm1276_vm4, %v1868_v2, -inf }
 0x785   : > { %1878 = vmax.xlane.f32.xlu0 %v1877_v3 }
 0x789   : > { %1881 = vmax.xlane.f32.xlu0 %v1880_v4 }
 0x78d   : > { %1493 = vadd.xlane.f32.xlu0 %v1492_v6 }
 0x812   : > { %v1879_v7 = vpop.xlane.xlu0 %1878 }
 0x813   : > { %v1883_v8 = vsub.f32 %v1868_v2, %v1879_v7 }
 0x815   : > { %v1885_v9 = vmul.f32 1.442695, %v1883_v8 }
 0x816   : > { %v1882_v10 = vpop.xlane.xlu0 %1881 }
 0x817   : > { %13116 = vpow2.f32 %v1885_v9  ;;  %v1884_v11 = vsub.f32 %v11529_v1, %v1882_v10 }
 0x819   : > { %v1887_v14 = vmul.f32 1.442695, %v1884_v11 }
 0x81a   : > { %v1494_v19 = vpop.xlane.xlu0 %1493 }
 0x81b   : > { %13118 = vpow2.f32 %v1887_v14  ;;  %v938_v14 = vld [vmem:[%s17128_s11 + $0x8] sm:$0xff] }
 0x81c   : > { %13120 = vrcp.f32 %v1494_v19  ;;  %v937_v19 = vld [vmem:[%s17128_s11] sm:$0xff] }
 0x821   : > { %v13117_v15 = vpop.eup %13116 }
 0x822   : > { %v1889_v16 = vsel %vm1276_vm4, %v13117_v15, 0.0 }
 0x823   : > { %1890 = vadd.xlane.f32.xlu1 %v1889_v16  ;;  %v940_v16 = vld [vmem:[%s17128_s11 + $0x18] sm:$0xff] }
 0x825   : > { %v13119_v17 = vpop.eup %13118 }
 0x826   : > { %v1892_v18 = vsel %vm1276_vm4, %v13119_v17, 0.0  ;;  %v13121_v26 = vpop.eup %13120 }
 0x827   : > { %1893 = vadd.xlane.f32.xlu0 %v1892_v18  ;;  %v1498_v35 = vmul.f32 %v13121_v26, %v13115_v5  ;;  %v948_v18 = vld [vmem:[%s17128_s11 + $0x58] sm:$0xff]  ;;  %v954_v26 = vld [vmem:[%s17128_s11 + $0x88] sm:$0xff] }
 0x834   : > { %12965 = vrot.lane.b32.xlu1 %v13587_v34, %s17171_s7  ;;  %s17252_s7 = smov 96  }
 0x83d   : > { %12970 = vrot.lane.b32.xlu0 %v13587_v34, %s17165_s4  ;;  %s17187_s4 = smov 8  }
 0x841   : > { %1996 = vrot.lane.b32.xlu0 %v1777_v0, %s17185_s0 }
 0x8b0   : > { %v1891_v20 = vpop.xlane.xlu1 %1890 }
 0x8b1   : > { %13122 = vrcp.f32 %v1891_v20  ;;  %v945_v20 = vld [vmem:[%s17128_s11 + $0x40] sm:$0xff] }
 0x8b4   : > { %v12966_v21 = vpop.permute.xlu1 %12965  ;;  %v1894_v22 = vpop.xlane.xlu0 %1893 }
 0x8b5   : > { %v12968_v23 = vunpack.i.h.bf16 %v12966_v21  ;;  %v12967_v24 = vunpack.i.l.bf16 %v12966_v21  ;;  %13124 = vrcp.f32 %v1894_v22  ;;  %v11920_v21 = vpack.c.bf16 %v948_v18, %v940_v16  ;;  %v1050_v16 = vld [vmem:[%s17130_s13 + $0x288] sm:$0xff] }
 0x8b6   : > { %v11914_v22 = vpack.c.bf16 %v945_v20, %v937_v19  ;;  %v969_v20 = vld [vmem:[%s17130_s13] sm:$0xff] }
 0x8b7   : > { %v11880_v25 = vpack.c.bf16 %v12968_v23, %v12967_v24  ;;  %v939_v23 = vld [vmem:[%s17128_s11 + $0x10] sm:$0xff] }
 0x8b8   : > { %v12971_v29 = vpop.permute.xlu0 %12970  ;;  %v947_v24 = vld [vmem:[%s17128_s11 + $0x50] sm:$0xff] }
 0x8b9   : > { %v12973_v30 = vunpack.i.h.bf16 %v12971_v29  ;;  %v12972_v32 = vunpack.i.l.bf16 %v12971_v29  ;;  %11881 = vmatprep.subr.bf16.mxu0 %v11880_v25  ;;  %v962_v29 = vld [vmem:[%s17128_s11 + $0xc8] sm:$0xff] }
 0x8ba   : > { %11883 = vmatpush3.bf16.msra.mxu0 %v11880_v25  ;;  %v11922_v25 = vpack.c.bf16 %v947_v24, %v939_v23  ;;  %v987_v23 = vld [vmem:[%s17130_s13 + $0x90] sm:$0xff] }
 0x8bb   : > { %v13123_v34 = vpop.eup %13122  ;;  %v11900_v36 = vpack.c.bf16 %v12973_v30, %v12972_v32  ;;  %v956_v30 = vld [vmem:[%s17128_s11 + $0x98] sm:$0xff]  ;;  %v11916_v32 = vpack.c.bf16 %v962_v29, %v954_v26  ;;  %v1034_v26 = vld [vmem:[%s17130_s13 + $0x208] sm:$0xff] }
 0x8bc   : > { %v1897_v37 = vmul.f32 %v13123_v34, %v13117_v15  ;;  %v1997_v50 = vpop.permute.xlu0 %1996  ;;  %v946_v15 = vld [vmem:[%s17128_s11 + $0x48] sm:$0xff]  ;;  %v964_v34 = vld [vmem:[%s17128_s11 + $0xd8] sm:$0xff] }
 0x8bd   : > { %11507 = vmatmul.mubr.msk.f32.vlgmr.msra.gmra.mrb[2].mxu0 %vm1276_vm4, %v1498_v35  ;;  %11901 = vmatprep.subr.bf16.mxu0 %v11900_v36  ;;  %v953_v35 = vld [vmem:[%s17128_s11 + $0x80] sm:$0xff]  ;;  %v988_v29 = vld [vmem:[%s17130_s13 + $0x98] sm:$0xff] }
 0x8be   : > { %11903 = vmatpush3.bf16.msra.mxu0 %v11900_v36  ;;  %11534 = vmatprep.mubr.msk.f32.mxu0 %vm1276_vm4, %v1897_v37  ;;  %v961_v36 = vld [vmem:[%s17128_s11 + $0xc0] sm:$0xff]  ;;  %v11924_v37 = vpack.c.bf16 %v964_v34, %v956_v30  ;;  %v1051_v30 = vld [vmem:[%s17130_s13 + $0x290] sm:$0xff] }
 0x8bf   : > { %v13125_v33 = vpop.eup %13124  ;;  %11905 = vmatprep.subr.bf16.mxu0 %v11904_v42 }
 0x8c0   : > { %v1898_v39 = vmul.f32 %v13125_v33, %v13119_v17  ;;  %v11912_v17 = vpack.c.bf16 %v946_v15, %v938_v14  ;;  %v11918_v33 = vpack.c.bf16 %v961_v36, %v953_v35  ;;  %v986_v14 = vld [vmem:[%s17130_s13 + $0x88] sm:$0xff]  ;;  %v1049_v15 = vld [vmem:[%s17130_s13 + $0x280] sm:$0xff]  ;;  %v971_v35 = vld [vmem:[%s17130_s13 + $0x10] sm:$0xff] }
 0x8c1   : > { %v12008_v24 = vpack.c.bf16 %v1050_v16, %v1049_v15  ;;  %v972_v36 = vld [vmem:[%s17130_s13 + $0x18] sm:$0xff]  ;;  %v979_v15 = vld [vmem:[%s17130_s13 + $0x50] sm:$0xff] }
 0x8c2   : > { %11535 = vmatmul.mubr.msk.f32.vlgmr.msra.gmra.mrb[4].mxu0 %vm1276_vm4, %v1898_v39  ;;  %11913 = vmatprep.subr.bf16.mxu1 %v11912_v17  ;;  %v955_v39 = vld [vmem:[%s17128_s11 + $0x90] sm:$0xff]  ;;  %v980_v16 = vld [vmem:[%s17130_s13 + $0x58] sm:$0xff] }
 0x8c3   : > { %11907 = vmatpush3.bf16.msra.mxu0 %v11904_v42  ;;  %11915 = vmatpush1.bf16.msra.mxu1 %v11914_v22  ;;  %v11926_v41 = vpack.c.bf16 %v963_v40, %v955_v39  ;;  %v942_v42 = vld [vmem:[%s17128_s11 + $0x28] sm:$0xff]  ;;  %v989_v39 = vld [vmem:[%s17130_s13 + $0xa0] sm:$0xff] }
 0x8c4   : > { %11909 = vmatprep.subr.bf16.mxu0 %v11908_v45  ;;  %11917 = vmatprep.subr.bf16.mxu1 %v11916_v32  ;;  %v1052_v32 = vld [vmem:[%s17130_s13 + $0x298] sm:$0xff] }
 0x8c5   : > { %v12012_v40 = vpack.c.bf16 %v1052_v32, %v1051_v30  ;;  %v999_v30 = vld [vmem:[%s17130_s13 + $0xf0] sm:$0xff]  ;;  %v1000_v32 = vld [vmem:[%s17130_s13 + $0xf8] sm:$0xff] }
 0x8c7   : > { %11911 = vmatpush3.bf16.msra.mxu0 %v11908_v45  ;;  %11919 = vmatpush1.bf16.msra.mxu1 %v11918_v33  ;;  %v11928_v45 = vpack.c.bf16 %v950_v43, %v942_v42  ;;  %v11948_v33 = vpack.c.bf16 %v988_v29, %v987_v23  ;;  %v1036_v42 = vld [vmem:[%s17130_s13 + $0x218] sm:$0xff]  ;;  %v990_v43 = vld [vmem:[%s17130_s13 + $0xa8] sm:$0xff] }
 0x8c8   : > { %11921 = vmatprep.subr.bf16.mxu0 %v11920_v21  ;;  %v970_v21 = vld [vmem:[%s17130_s13 + $0x8] sm:$0xff] }
 0x8c9   : > { %11929 = vmatprep.subr.bf16.mxu1 %v11928_v45  ;;  %v11946_v34 = vpack.c.bf16 %v970_v21, %v969_v20  ;;  %v1053_v45 = vld [vmem:[%s17130_s13 + $0x2a0] sm:$0xff]  ;;  %v11966_v20 = vpack.c.bf16 %v980_v16, %v979_v15  ;;  %v982_v23 = vld [vmem:[%s17130_s13 + $0x68] sm:$0xff] }
 0x990   : > { %v11508_v46 = vpop.f32.mrb[2].mxu0 }
 0x991   : > { %v1577_v31 = vpop.f32.mrb[3].mxu0 }
 0x992   : > { %1988 = vrot.lane.b32.xlu1 %v1577_v31, %s17187_s4  ;;  %v952_v31 = vld [vmem:[%s17128_s11 + $0x78] sm:$0xff] }
 0x995   : > { %v11536_v47 = vpop.f32.mrb[4].mxu0 }
 0x996   : > { %1990 = vrot.lane.b32.xlu1 %v11508_v46, %s17187_s4  ;;  %v1977_v48 = vpop.f32.mrb[5].mxu0  ;;  %v944_v46 = vld [vmem:[%s17128_s11 + $0x38] sm:$0xff]  ;;  %s17250_s4 = sld [smem:[#allocation23_spill]] }
 0x997   : > { %2004 = vrot.lane.b32.xlu0 %v1977_v48, %s17183_s2 }
 0x99a   : > { %1998 = vrot.lane.b32.xlu1 %v13667_v62, %s17185_s0  ;;  %s17251_s0 = sld [smem:[#allocation24_spill]] }
 0x99e   : > { %2006 = vrot.lane.b32.xlu1 %v11536_v47, %s17183_s2  ;;  %v11936_v47 = vpack.c.bf16 %v952_v31, %v944_v46  ;;  %v1054_v46 = vld [vmem:[%s17130_s13 + $0x2a8] sm:$0xff]  ;;  %v11950_v31 = vpack.c.bf16 %v972_v36, %v971_v35  ;;  %v983_v35 = vld [vmem:[%s17130_s13 + $0x70] sm:$0xff]  ;;  %v984_v36 = vld [vmem:[%s17130_s13 + $0x78] sm:$0xff]  ;;  %s17253_s2 = smov 64  }
 0xa04   : > { %v1989_v49 = vpop.permute.xlu1 %1988 }
 0xa05   : > { %v2010_v51 = vsel %vm1192_vm2, %v13637_v13, %v1989_v49  ;;  %v9806_v13 = vld [vmem:[%s17249_s5] ss:$0 sm:$0xff] }
 0xa06   : > { %v2012_v53 = vsel %vm1276_vm4, %v2010_v51, %v1997_v50 }
 0xa08   : > { %v1991_v52 = vpop.permute.xlu1 %1990 }
 0xa09   : > { %v2005_v54 = vpop.permute.xlu0 %2004  ;;  %v2011_v57 = vsel %vm1192_vm2, %v13635_v12, %v1991_v52 }
 0xa0a   : > { %v2015_v55 = vsel %vm2014_vm5, %v2012_v53, %v2005_v54 }
 0xa0b   : > { %11545 = vmatprep.mubr.msk.f32.mxu0 %vm1104_vm1, %v2015_v55  ;;  %v9809_v55 = vld [vmem:[%s17250_s4] ss:$0 sm:$0xff] }
 0xa0c   : > { %v1999_v56 = vpop.permute.xlu1 %1998 }
 0xa0d   : > { %v2013_v58 = vsel %vm1276_vm4, %v2011_v57, %v1999_v56  ;;  %v941_v56 = vld [vmem:[%s17128_s11 + $0x20] sm:$0xff] }
 0xa10   : > { %v2007_v59 = vpop.permute.xlu1 %2006 }
 0xa11   : > { %v2016_v60 = vsel %vm2014_vm5, %v2013_v58, %v2007_v59  ;;  %v949_v58 = vld [vmem:[%s17128_s11 + $0x60] sm:$0xff]  ;;  %v943_v59 = vld [vmem:[%s17128_s11 + $0x30] sm:$0xff] }
 0xa12   : > { %11546 = vmatmul.mubr.msk.f32.vlgmr.msra.gmra.mrb[6].mxu0 %vm1104_vm1, %v2016_v60  ;;  %v951_v60 = vld [vmem:[%s17128_s11 + $0x70] sm:$0xff] }
 0xa13   : > { %11923 = vmatpush1.bf16.msra.mxu0 %v11922_v25  ;;  %2341 = vmatprep.mubr.f32.mxu0 %v13334_v44  ;;  %v1033_v25 = vld [vmem:[%s17130_s13 + $0x200] sm:$0xff] }
 0xa14   : > { %11925 = vmatprep.subr.bf16.mxu0 %v11924_v37  ;;  %v12010_v37 = vpack.c.bf16 %v1034_v26, %v1033_v25  ;;  %v1041_v25 = vld [vmem:[%s17130_s13 + $0x240] sm:$0xff]  ;;  %v1042_v26 = vld [vmem:[%s17130_s13 + $0x248] sm:$0xff] }
 0xa15   : > { %v12026_v29 = vpack.c.bf16 %v1042_v26, %v1041_v25  ;;  %v1003_v26 = vld [vmem:[%s17130_s13 + $0x110] sm:$0xff] }
 0xa17   : > { %11927 = vmatpush1.bf16.msra.mxu0 %v11926_v41  ;;  %v1035_v41 = vld [vmem:[%s17130_s13 + $0x210] sm:$0xff] }
 0xa18   : > { %11937 = vmatprep.subr.bf16.mxu0 %v11936_v47  ;;  %v973_v47 = vld [vmem:[%s17130_s13 + $0x20] sm:$0xff] }
 0xae5   : > { %v11547_v61 = vpop.f32.mrb[6].mxu0 }
 0xae6   : > { %v2102_v62 = vadd.f32 %v11547_v61, %v9806_v13  ;;  %v2096_v63 = vpop.f32.mrb[7].mxu0  ;;  %v958_v61 = vld [vmem:[%s17128_s11 + $0xa8] sm:$0xff] }
 0xae7   : > { %v2097_v0 = vadd.f32 %v9806_v13, %v2096_v63  ;;  %v9810_v13 = vld [vmem:[%s17251_s0] ss:$0 sm:$0xff]  ;;  %v966_v63 = vld [vmem:[%s17128_s11 + $0xe8] sm:$0xff] }
 0xae8   : > { %v2106_v1 = vadd.f32 %v2102_v62, %v13570_v28 }
 0xae9   : > { %v2105_v2 = vadd.f32 %v2097_v0, %v13568_v27  ;;  %v960_v0 = vld [vmem:[%s17128_s11 + $0xb8] sm:$0xff] }
 0xaea   : > { %v2112_v12 = vsel %vm1104_vm1, %v2106_v1, 0.0 }
 0xaeb   : > { %2113 = vadd.xlane.f32.xlu1 %v2112_v12  ;;  %v2109_v3 = vsel %vm1104_vm1, %v2105_v2, 0.0  ;;  %v11930_v12 = vpack.c.bf16 %v949_v58, %v941_v56  ;;  %v1055_v56 = vld [vmem:[%s17130_s13 + $0x2b0] sm:$0xff] }
 0xaec   : > { %2110 = vadd.xlane.f32.xlu0 %v2109_v3  ;;  %v11938_v3 = vpack.c.bf16 %v951_v60, %v943_v59  ;;  %v975_v59 = vld [vmem:[%s17130_s13 + $0x30] sm:$0xff]  ;;  %v976_v60 = vld [vmem:[%s17130_s13 + $0x38] sm:$0xff] }
 0xb78   : > { %v2114_v4 = vpop.xlane.xlu1 %2113 }
 0xb79   : > { %v2117_v5 = vmul.f32 0.03125, %v2114_v4  ;;  %v2111_v6 = vpop.xlane.xlu0 %2110  ;;  %v957_v4 = vld [vmem:[%s17128_s11 + $0xa0] sm:$0xff] }
 0xb7a   : > { %v2116_v7 = vmul.f32 0.03125, %v2111_v6 }
 0xb7b   : > { %v13717_v8 = vsub.f32 %v2106_v1, %v2117_v5  ;;  %v968_v1 = vld [vmem:[%s17128_s11 + $0xf8] sm:$0xff] }
 0xb7c   : > { %v2118_v9 = vsub.f32 %v2105_v2, %v2116_v7  ;;  %v965_v7 = vld [vmem:[%s17128_s11 + $0xe0] sm:$0xff] }
 0xb7d   : > { %v2121_v28 = vmul.f32 %v13717_v8, %v13717_v8  ;;  %v11934_v17 = vpack.c.bf16 %v965_v7, %v957_v4  ;;  %v11958_v4 = vpack.c.bf16 %v976_v60, %v975_v59  ;;  %v2154_v59 = vlaneseq }
 0xb7e   : > { %v2120_v10 = vmul.f32 %v2118_v9, %v2118_v9 }
 0xb7f   : > { %v2125_v27 = vsel %vm1104_vm1, %v2121_v28, 0.0  ;;  %v11940_v28 = vpack.c.bf16 %v968_v1, %v960_v0  ;;  %v1039_v0 = vld [vmem:[%s17130_s13 + $0x230] sm:$0xff]  ;;  %v1040_v1 = vld [vmem:[%s17130_s13 + $0x238] sm:$0xff]  ;;  %v14052_v60 = vshrl.u32 %v2154_v59, 7 }
 0xb80   : > { %v2122_v11 = vsel %vm1104_vm1, %v2120_v10, 0.0  ;;  %v967_v10 = vld [vmem:[%s17128_s11 + $0xf0] sm:$0xff] }
 0xb81   : > { %2123 = vadd.xlane.f32.xlu0 %v2122_v11  ;;  %v11932_v11 = vpack.c.bf16 %v966_v63, %v958_v61 }
 0xb85   : > { %2126 = vadd.xlane.f32.xlu0 %v2125_v27 }
 0xc0e   : > { %v2124_v48 = vpop.xlane.xlu0 %2123 }
 0xc0f   : > { %v2128_v49 = vmul.f32 0.03125, %v2124_v48  ;;  %v974_v48 = vld [vmem:[%s17130_s13 + $0x28] sm:$0xff] }
 0xc10   : > { %v11954_v58 = vpack.c.bf16 %v974_v48, %v973_v47  ;;  %v1061_v47 = vld [vmem:[%s17130_s13 + $0x2e0] sm:$0xff]  ;;  %v1062_v48 = vld [vmem:[%s17130_s13 + $0x2e8] sm:$0xff] }
 0xc11   : > { %v2130_v50 = vadd.f32 1e-05, %v2128_v49  ;;  %v12014_v49 = vpack.c.bf16 %v1036_v42, %v1035_v41  ;;  %v1044_v41 = vld [vmem:[%s17130_s13 + $0x258] sm:$0xff] }
 0xc12   : > { %v2127_v51 = vpop.xlane.xlu0 %2126 }
 0xc13   : > { %13126 = vrsqrt.f32 %v2130_v50  ;;  %v2129_v52 = vmul.f32 0.03125, %v2127_v51  ;;  %v11952_v50 = vpack.c.bf16 %v990_v43, %v989_v39  ;;  %v991_v51 = vld [vmem:[%s17130_s13 + $0xb0] sm:$0xff]  ;;  %v1060_v39 = vld [vmem:[%s17130_s13 + $0x2d8] sm:$0xff] }
 0xc15   : > { %v2131_v53 = vadd.f32 1e-05, %v2129_v52  ;;  %v12016_v52 = vpack.c.bf16 %v1054_v46, %v1053_v45  ;;  %v1017_v45 = vld [vmem:[%s17130_s13 + $0x180] sm:$0xff]  ;;  %v1018_v46 = vld [vmem:[%s17130_s13 + $0x188] sm:$0xff] }
 0xc17   : > { %13128 = vrsqrt.f32 %v2131_v53  ;;  %v1037_v53 = vld [vmem:[%s17130_s13 + $0x220] sm:$0xff] }
 0xc1d   : > { %v13127_v54 = vpop.eup %13126 }
 0xc1e   : > { %v2134_v57 = vmul.f32 %v13127_v54, %v2118_v9  ;;  %v959_v9 = vld [vmem:[%s17128_s11 + $0xb0] sm:$0xff]  ;;  %v1038_v54 = vld [vmem:[%s17130_s13 + $0x228] sm:$0xff] }
 0xc1f   : > { %v11942_v18 = vpack.c.bf16 %v967_v10, %v959_v9  ;;  %v977_v9 = vld [vmem:[%s17130_s13 + $0x40] sm:$0xff]  ;;  %v978_v10 = vld [vmem:[%s17130_s13 + $0x48] sm:$0xff] }
 0xc20   : > { %v2142_v62 = vmul.f32 %v9809_v55, %v2134_v57  ;;  %v1056_v57 = vld [vmem:[%s17130_s13 + $0x2b8] sm:$0xff] }
 0xc21   : > { %v13129_v2 = vpop.eup %13128  ;;  %v12020_v63 = vpack.c.bf16 %v1056_v57, %v1055_v56  ;;  %v1048_v56 = vld [vmem:[%s17130_s13 + $0x278] sm:$0xff] }
 0xc22   : > { %v2135_v5 = vmul.f32 %v13129_v2, %v13717_v8  ;;  %v13819_v6 = vadd.f32 %v9810_v13, %v2142_v62  ;;  %v985_v8 = vld [vmem:[%s17130_s13 + $0x80] sm:$0xff]  ;;  %v994_v2 = vld [vmem:[%s17130_s13 + $0xc8] sm:$0xff] }
 0xc23   : > { %v11944_v22 = vpack.c.bf16 %v986_v14, %v985_v8  ;;  %v993_v62 = vld [vmem:[%s17130_s13 + $0xc0] sm:$0xff]  ;;  %v996_v8 = vld [vmem:[%s17130_s13 + $0xd8] sm:$0xff] }
 0xc24   : > { %9811 = vmatmul.mubr.msk.f32.vlgmr.msra.gmra.mrb[14].mxu1 %vm1104_vm1, %v13819_v6  ;;  %9813 = vmatmul.mubr.msk.f32.vlgmr.msra.gmra.mrb[8].mxu0 %vm1104_vm1, %v13819_v6  ;;  %v2143_v27 = vmul.f32 %v9809_v55, %v2135_v5  ;;  %v992_v55 = vld [vmem:[%s17130_s13 + $0xb8] sm:$0xff]  ;;  %v12022_v5 = vpack.c.bf16 %v1040_v1, %v1039_v0  ;;  %v11960_v7 = vpack.c.bf16 %v994_v2, %v993_v62  ;;  %v14063_v62 = vsub.s32 1, %v14052_v60 }
 0xc25   : > { %11931 = vmatpush1.bf16.msra.mxu1 %v11930_v12  ;;  %11939 = vmatpush1.bf16.msra.mxu0 %v11938_v3  ;;  %v11956_v61 = vpack.c.bf16 %v992_v55, %v991_v51  ;;  %v1057_v12 = vld [vmem:[%s17130_s13 + $0x2c0] sm:$0xff]  ;;  %v1058_v3 = vld [vmem:[%s17130_s13 + $0x2c8] sm:$0xff]  ;;  %v12032_v51 = vpack.c.bf16 %v1062_v48, %v1061_v47  ;;  %v1047_v55 = vld [vmem:[%s17130_s13 + $0x270] sm:$0xff]  ;;  %v14070_v1 = vsub.s32 3, %v14052_v60 }
 0xc26   : > { %2270 = vmatprep.mubr.f32.mxu1 %v13334_v44  ;;  %2347 = vmatprep.mubr.f32.mxu0 %v13334_v44  ;;  %v13848_v19 = vadd.f32 %v9810_v13, %v2143_v27  ;;  %v12018_v13 = vpack.c.bf16 %v1038_v54, %v1037_v53  ;;  %v11962_v27 = vpack.c.bf16 %v978_v10, %v977_v9  ;;  %v1063_v53 = vld [vmem:[%s17130_s13 + $0x2f0] sm:$0xff]  ;;  %v1064_v54 = vld [vmem:[%s17130_s13 + $0x2f8] sm:$0xff]  ;;  %v1002_v9 = vld [vmem:[%s17130_s13 + $0x108] sm:$0xff]  ;;  %v14081_v10 = vsub.s32 4, %v14052_v60 }
 0xc27   : > { %11933 = vmatprep.subr.bf16.mxu1 %v11932_v11  ;;  %11941 = vmatprep.subr.bf16.mxu0 %v11940_v28  ;;  %v12024_v11 = vpack.c.bf16 %v1058_v3, %v1057_v12  ;;  %v995_v28 = vld [vmem:[%s17130_s13 + $0xd0] sm:$0xff]  ;;  %v12036_v57 = vpack.c.bf16 %v1064_v54, %v1063_v53  ;;  %v1006_v47 = vld [vmem:[%s17130_s13 + $0x128] sm:$0xff] }
 0xc28   : > { %9812 = vmatmul.mubr.msk.f32.gmra.mrb[16].mxu1 %vm1104_vm1, %v13848_v19  ;;  %9814 = vmatmul.mubr.msk.f32.gmra.mrb[10].mxu0 %vm1104_vm1, %v13848_v19  ;;  %v11964_v14 = vpack.c.bf16 %v996_v8, %v995_v28  ;;  %v14088_v8 = vsub.s32 5, %v14052_v60 }
 0xc29   : > { %11935 = vmatpush1.bf16.msra.mxu1 %v11934_v17  ;;  %11943 = vmatpush1.bf16.msra.mxu0 %v11942_v18  ;;  %v997_v17 = vld [vmem:[%s17130_s13 + $0xe0] sm:$0xff]  ;;  %v998_v18 = vld [vmem:[%s17130_s13 + $0xe8] sm:$0xff] }
 0xc2a   : > { %2418 = vmatprep.mubr.f32.mxu1 %v13334_v44  ;;  %2495 = vmatprep.mubr.f32.mxu0 %v13334_v44  ;;  %v11968_v21 = vpack.c.bf16 %v998_v18, %v997_v17 }
 0xc2b   : > { %11945 = vmatprep.subr.bf16.mxu0 %v11944_v22  ;;  %12009 = vmatprep.subr.bf16.mxu1 %v12008_v24  ;;  %v981_v22 = vld [vmem:[%s17130_s13 + $0x60] sm:$0xff] }
 0xc2c   : > { %9815 = vmatmul.mubr.msk.f32.vlgmr.msra.gmra.mrb[18].mxu1 %vm1104_vm1, %v13819_v6  ;;  %9817 = vmatmul.mubr.msk.f32.vlgmr.msra.gmra.mrb[12].mxu0 %vm1104_vm1, %v13819_v6  ;;  %v11970_v24 = vpack.c.bf16 %v982_v23, %v981_v22 }
 0xc2d   : > { %2424 = vmatprep.mubr.f32.mxu1 %v13334_v44  ;;  %2501 = vmatprep.mubr.f32.mxu0 %v13334_v44 }
 0xc2e   : > { %11947 = vmatpush3.bf16.msra.mxu0 %v11946_v34  ;;  %12011 = vmatpush3.bf16.msra.mxu1 %v12010_v37  ;;  %v11972_v34 = vpack.c.bf16 %v1000_v32, %v999_v30  ;;  %v1059_v37 = vld [vmem:[%s17130_s13 + $0x2d0] sm:$0xff] }
 0xc2f   : > { %11949 = vmatprep.subr.bf16.mxu0 %v11948_v33  ;;  %12013 = vmatprep.subr.bf16.mxu1 %v12012_v40  ;;  %v11974_v33 = vpack.c.bf16 %v984_v36, %v983_v35  ;;  %v1043_v40 = vld [vmem:[%s17130_s13 + $0x250] sm:$0xff]  ;;  %v12028_v42 = vpack.c.bf16 %v1060_v39, %v1059_v37  ;;  %v1021_v35 = vld [vmem:[%s17130_s13 + $0x1a0] sm:$0xff]  ;;  %v1022_v36 = vld [vmem:[%s17130_s13 + $0x1a8] sm:$0xff] }
 0xc30   : > { %9816 = vmatmul.mubr.msk.f32.gmra.mrb[20].mxu1 %vm1104_vm1, %v13848_v19  ;;  %9818 = vmatmul.mubr.msk.f32.gmra.mrb[14].mxu0 %vm1104_vm1, %v13848_v19  ;;  %v12030_v43 = vpack.c.bf16 %v1044_v41, %v1043_v40 }
 0xc32   : > { %11951 = vmatpush3.bf16.msra.mxu0 %v11950_v31  ;;  %12015 = vmatpush3.bf16.msra.mxu1 %v12014_v49  ;;  %v11976_v31 = vpack.c.bf16 %v1018_v46, %v1017_v45  ;;  %v1045_v49 = vld [vmem:[%s17130_s13 + $0x260] sm:$0xff]  ;;  %v11984_v46 = vpack.c.bf16 %v1022_v36, %v1021_v35  ;;  %v1014_v35 = vld [vmem:[%s17130_s13 + $0x168] sm:$0xff]  ;;  %v1031_v36 = vld [vmem:[%s17130_s13 + $0x1f0] sm:$0xff] }
 0xc33   : > { %11953 = vmatprep.subr.bf16.mxu0 %v11952_v50  ;;  %12017 = vmatprep.subr.bf16.mxu1 %v12016_v52  ;;  %v1046_v50 = vld [vmem:[%s17130_s13 + $0x268] sm:$0xff] }
 0xc34   : > { %v12034_v52 = vpack.c.bf16 %v1046_v50, %v1045_v49  ;;  %v1023_v50 = vld [vmem:[%s17130_s13 + $0x1b0] sm:$0xff] }
 0xc36   : > { %11955 = vmatpush3.bf16.msra.mxu0 %v11954_v58  ;;  %12019 = vmatpush3.bf16.msra.mxu1 %v12018_v13  ;;  %v12038_v58 = vpack.c.bf16 %v1048_v56, %v1047_v55  ;;  %v14055_v13 = vsub.s32 0, %v14052_v60 }
 0xc37   : > { %11957 = vmatprep.subr.bf16.mxu0 %v11956_v61  ;;  %12021 = vmatprep.subr.bf16.mxu1 %v12020_v63  ;;  %v14060_v61 = vld [vmem:[%s17129_s12] sm:$0xff] }
 0xc38   : > { %v2157_v63 = vrot.slane %v14060_v61, %v14055_v13  ;;  %v2161_v0 = vrot.slane %v14060_v61, %v14063_v62  ;;  %v14085_v28 = vrot.slane %v14060_v61, %v14070_v1 }
 0xc3a   : > { %11959 = vmatpush3.bf16.msra.mxu0 %v11958_v4  ;;  %12023 = vmatpush3.bf16.msra.mxu1 %v12022_v5 }
 0xc3b   : > { %11961 = vmatprep.subr.bf16.mxu0 %v11960_v7  ;;  %12025 = vmatprep.subr.bf16.mxu1 %v12024_v11  ;;  %v1001_v7 = vld [vmem:[%s17130_s13 + $0x100] sm:$0xff] }
 0xc3c   : > { %v11978_v18 = vpack.c.bf16 %v1002_v9, %v1001_v7 }
 0xc3e   : > { %11963 = vmatpush3.bf16.msra.mxu0 %v11962_v27  ;;  %12027 = vmatpush3.bf16.msra.mxu1 %v12026_v29  ;;  %v1019_v27 = vld [vmem:[%s17130_s13 + $0x190] sm:$0xff]  ;;  %v1004_v29 = vld [vmem:[%s17130_s13 + $0x118] sm:$0xff] }
 0xc3f   : > { %11965 = vmatprep.subr.bf16.mxu0 %v11964_v14  ;;  %12029 = vmatprep.subr.bf16.mxu1 %v12028_v42  ;;  %v1020_v14 = vld [vmem:[%s17130_s13 + $0x198] sm:$0xff]  ;;  %v11982_v40 = vpack.c.bf16 %v1004_v29, %v1003_v26  ;;  %v1030_v26 = vld [vmem:[%s17130_s13 + $0x1e8] sm:$0xff] }
 0xc40   : > { %v11980_v25 = vpack.c.bf16 %v1020_v14, %v1019_v27  ;;  %v1009_v14 = vld [vmem:[%s17130_s13 + $0x140] sm:$0xff] }
 0xc42   : > { %11967 = vmatpush3.bf16.msra.mxu0 %v11966_v20  ;;  %12031 = vmatpush3.bf16.msra.mxu1 %v12030_v43 }
 0xc43   : > { %11969 = vmatprep.subr.bf16.mxu0 %v11968_v21  ;;  %12033 = vmatprep.subr.bf16.mxu1 %v12032_v51  ;;  %v1024_v51 = vld [vmem:[%s17130_s13 + $0x1b8] sm:$0xff] }
 0xc46   : > { %11971 = vmatpush3.bf16.msra.mxu0 %v11970_v24  ;;  %12035 = vmatpush3.bf16.msra.mxu1 %v12034_v52  ;;  %v2173_v24 = vrot.slane %v14060_v61, %v14081_v10 }
 0xc47   : > { %11973 = vmatprep.subr.bf16.mxu0 %v11972_v34  ;;  %12037 = vmatprep.subr.bf16.mxu1 %v12036_v57  ;;  %v2177_v34 = vrot.slane %v14060_v61, %v14088_v8 }
 0xc4a   : > { %11975 = vmatpush3.bf16.msra.mxu0 %v11974_v33  ;;  %12039 = vmatpush3.bf16.msra.mxu1 %v12038_v58 }
 0xc4b   : > { %11977 = vmatprep.subr.bf16.mxu0 %v11976_v31  ;;  %v1005_v31 = vld [vmem:[%s17130_s13 + $0x120] sm:$0xff] }
 0xc4c   : > { %v11986_v55 = vpack.c.bf16 %v1006_v47, %v1005_v31  ;;  %v1081_v31 = vld [vmem:[%s17130_s13 + $0x380] sm:$0xff]  ;;  %v1082_v47 = vld [vmem:[%s17130_s13 + $0x388] sm:$0xff] }
 0xcf7   : > { %v2266_v2 = vpop.f32.mrb[14].mxu1  ;;  %v14072_v12 = vpop.f32.mrb[8].mxu0 }
 0xcf8   : > { %v2267_v3 = vadd.f32 %v2266_v2, %v2157_v63  ;;  %v2268_v4 = vpop.f32.mrb[15].mxu1  ;;  %v2345_v5 = vpop.f32.mrb[9].mxu0  ;;  %v1008_v2 = vld [vmem:[%s17130_s13 + $0x138] sm:$0xff] }
 0xcf9   : > { %v2269_v11 = vadd.f32 %v2268_v4, %v2161_v0  ;;  %v2346_v30 = vadd.f32 %v2345_v5, %v14085_v28  ;;  %v1025_v4 = vld [vmem:[%s17130_s13 + $0x1c0] sm:$0xff]  ;;  %v1026_v5 = vld [vmem:[%s17130_s13 + $0x1c8] sm:$0xff] }
 0xcfa   : > { %v2508_v20 = vmax.f32 %v2267_v3, 0.0  ;;  %v11992_v27 = vpack.c.bf16 %v1026_v5, %v1025_v4  ;;  %v1085_v4 = vld [vmem:[%s17130_s13 + $0x3a0] sm:$0xff] }
 0xcfb   : > { %v2509_v15 = vmax.f32 %v2269_v11, 0.0  ;;  %v2272_v16 = vpop.f32.mrb[16].mxu1  ;;  %v14096_v17 = vpop.f32.mrb[10].mxu0  ;;  %v2511_v48 = vmax.f32 %v2346_v30, 0.0  ;;  %v14174_v30 = vsub.s32 2, %v14052_v60 }
 0xcfc   : > { %v2273_v21 = vadd.f32 %v2272_v16, %v2157_v63  ;;  %v2274_v22 = vpop.f32.mrb[17].mxu1  ;;  %v14098_v23 = vpop.f32.mrb[11].mxu0  ;;  %v11988_v63 = vpack.c.bf16 %v1024_v51, %v1023_v50  ;;  %v1027_v16 = vld [vmem:[%s17130_s13 + $0x1d0] sm:$0xff]  ;;  %v12040_v50 = vpack.c.bf16 %v1082_v47, %v1081_v31  ;;  %v1065_v51 = vld [vmem:[%s17130_s13 + $0x300] sm:$0xff]  ;;  %v14288_v31 = vsub.s32 6, %v14052_v60 }
 0xcfd   : > { %v2275_v32 = vadd.f32 %v2274_v22, %v2161_v0  ;;  %2595 = vmatprep.mubr.f32.mxu0 %v2509_v15  ;;  %v1007_v0 = vld [vmem:[%s17130_s13 + $0x130] sm:$0xff]  ;;  %v1010_v15 = vld [vmem:[%s17130_s13 + $0x148] sm:$0xff] }
 0xcfe   : > { %2596 = vmatmul.mubr.f32.vlgmr.msra.gmra.mrb[16].mxu0 %v2508_v20  ;;  %v2516_v41 = vmax.f32 %v2273_v21, 0.0  ;;  %v11990_v9 = vpack.c.bf16 %v1008_v2, %v1007_v0  ;;  %v11994_v20 = vpack.c.bf16 %v1010_v15, %v1009_v14  ;;  %v1011_v22 = vld [vmem:[%s17130_s13 + $0x150] sm:$0xff]  ;;  %v1088_v15 = vld [vmem:[%s17130_s13 + $0x3b8] sm:$0xff] }
 0xcff   : > { %v2517_v37 = vmax.f32 %v2275_v32, 0.0  ;;  %11979 = vmatpush3.bf16.msra.mxu0 %v11978_v18  ;;  %v2420_v33 = vpop.f32.mrb[18].mxu1  ;;  %v14117_v39 = vpop.f32.mrb[12].mxu0  ;;  %v1028_v18 = vld [vmem:[%s17130_s13 + $0x1d8] sm:$0xff]  ;;  %v1087_v14 = vld [vmem:[%s17130_s13 + $0x3b0] sm:$0xff] }
 0xd00   : > { %v2421_v42 = vadd.f32 %v2420_v33, %v2173_v24  ;;  %v2422_v43 = vpop.f32.mrb[19].mxu1  ;;  %v14119_v45 = vpop.f32.mrb[13].mxu0  ;;  %11981 = vmatprep.subr.bf16.mxu0 %v11980_v25  ;;  %v11996_v21 = vpack.c.bf16 %v1028_v18, %v1027_v16  ;;  %v1029_v25 = vld [vmem:[%s17130_s13 + $0x1e0] sm:$0xff]  ;;  %v12052_v18 = vpack.c.bf16 %v1088_v15, %v1087_v14 }
 0xd01   : > { %v2423_v49 = vadd.f32 %v2422_v43, %v2177_v34  ;;  %2600 = vmatprep.mubr.f32.mxu0 %v2517_v37  ;;  %v12000_v32 = vpack.c.bf16 %v1030_v26, %v1029_v25  ;;  %v1032_v37 = vld [vmem:[%s17130_s13 + $0x1f8] sm:$0xff] }
 0xd02   : > { %2601 = vmatmul.mubr.f32.gmra.mrb[18].mxu0 %v2516_v41  ;;  %v2512_v56 = vmax.f32 %v2421_v42, 0.0  ;;  %v12004_v41 = vpack.c.bf16 %v1032_v37, %v1031_v36  ;;  %v1015_v42 = vld [vmem:[%s17130_s13 + $0x170] sm:$0xff]  ;;  %v1016_v43 = vld [vmem:[%s17130_s13 + $0x178] sm:$0xff] }
 0xd03   : > { %v2513_v52 = vmax.f32 %v2423_v49, 0.0  ;;  %11983 = vmatpush3.bf16.msra.mxu0 %v11982_v40  ;;  %v2426_v53 = vpop.f32.mrb[20].mxu1  ;;  %v14133_v54 = vpop.f32.mrb[14].mxu0  ;;  %2670 = vmatprep.mubr.f32.mxu0 %v2511_v48  ;;  %v2165_v40 = vrot.slane %v14060_v61, %v14174_v30  ;;  %v12006_v48 = vpack.c.bf16 %v1016_v43, %v1015_v42  ;;  %v1094_v42 = vld [vmem:[%s17130_s13 + $0x3e8] sm:$0xff] }
 0xd04   : > { %v2427_v57 = vadd.f32 %v2426_v53, %v2173_v24  ;;  %v2428_v58 = vpop.f32.mrb[21].mxu1  ;;  %v14135_v59 = vpop.f32.mrb[15].mxu0  ;;  %11985 = vmatprep.subr.bf16.mxu0 %v11984_v46  ;;  %v1012_v24 = vld [vmem:[%s17130_s13 + $0x158] sm:$0xff]  ;;  %v14197_v46 = vsub.s32 7, %v14052_v60  ;;  %v2352_v53 = vadd.f32 %v14098_v23, %v14085_v28  ;;  %v1067_v28 = vld [vmem:[%s17130_s13 + $0x310] sm:$0xff] }
 0xd05   : > { %v2429_v3 = vadd.f32 %v2428_v58, %v2177_v34  ;;  %2745 = vmatprep.mubr.f32.mxu1 %v2513_v52  ;;  %v11998_v29 = vpack.c.bf16 %v1012_v24, %v1011_v22  ;;  %v1013_v34 = vld [vmem:[%s17130_s13 + $0x160] sm:$0xff]  ;;  %v2344_v49 = vadd.f32 %v14072_v12, %v2165_v40  ;;  %v1066_v52 = vld [vmem:[%s17130_s13 + $0x308] sm:$0xff]  ;;  %v1083_v12 = vld [vmem:[%s17130_s13 + $0x390] sm:$0xff] }
 0xd06   : > { %2746 = vmatmul.mubr.f32.vlgmr.msra.gmra.mrb[22].mxu1 %v2512_v56  ;;  %v2520_v11 = vmax.f32 %v2427_v57, 0.0  ;;  %v12002_v33 = vpack.c.bf16 %v1014_v35, %v1013_v34  ;;  %v1084_v56 = vld [vmem:[%s17130_s13 + $0x398] sm:$0xff]  ;;  %v12042_v57 = vpack.c.bf16 %v1066_v52, %v1065_v51  ;;  %v2519_v2 = vmax.f32 %v2352_v53, 0.0  ;;  %v1089_v22 = vld [vmem:[%s17130_s13 + $0x3c0] sm:$0xff]  ;;  %v1090_v24 = vld [vmem:[%s17130_s13 + $0x3c8] sm:$0xff] }
 0xd07   : > { %v2521_v7 = vmax.f32 %v2429_v3, 0.0  ;;  %11987 = vmatpush3.bf16.msra.mxu0 %v11986_v55  ;;  %v14216_v55 = vrot.slane %v14060_v61, %v14197_v46  ;;  %v2510_v58 = vmax.f32 %v2344_v49, 0.0  ;;  %v12044_v0 = vpack.c.bf16 %v1084_v56, %v1083_v12  ;;  %v1068_v23 = vld [vmem:[%s17130_s13 + $0x318] sm:$0xff]  ;;  %v1091_v34 = vld [vmem:[%s17130_s13 + $0x3d0] sm:$0xff]  ;;  %v1078_v49 = vld [vmem:[%s17130_s13 + $0x368] sm:$0xff] }
 0xd08   : > { %11989 = vmatprep.subr.bf16.mxu0 %v11988_v63  ;;  %v2350_v63 = vadd.f32 %v14096_v17, %v2165_v40  ;;  %v1086_v17 = vld [vmem:[%s17130_s13 + $0x3a8] sm:$0xff]  ;;  %v12046_v5 = vpack.c.bf16 %v1068_v23, %v1067_v28  ;;  %v12056_v26 = vpack.c.bf16 %v1090_v24, %v1089_v22  ;;  %v1092_v35 = vld [vmem:[%s17130_s13 + $0x3d8] sm:$0xff]  ;;  %v2181_v52 = vrot.slane %v14060_v61, %v14288_v31  ;;  %v1079_v12 = vld [vmem:[%s17130_s13 + $0x370] sm:$0xff] }
 0xd09   : > { %2750 = vmatprep.mubr.f32.mxu1 %v2521_v7  ;;  %v2500_v3 = vadd.f32 %v14119_v45, %v14216_v55  ;;  %v1070_v45 = vld [vmem:[%s17130_s13 + $0x328] sm:$0xff]  ;;  %v12060_v37 = vpack.c.bf16 %v1092_v35, %v1091_v34  ;;  %v1076_v40 = vld [vmem:[%s17130_s13 + $0x358] sm:$0xff] }
 0xd0a   : > { %2751 = vmatmul.mubr.f32.gmra.mrb[24].mxu1 %v2520_v11  ;;  %v2518_v7 = vmax.f32 %v2350_v63, 0.0  ;;  %v1069_v11 = vld [vmem:[%s17130_s13 + $0x320] sm:$0xff]  ;;  %v1096_v51 = vld [vmem:[%s17130_s13 + $0x3f8] sm:$0xff]  ;;  %v2506_v63 = vadd.f32 %v14135_v59, %v14216_v55 }
 0xd0b   : > { %11991 = vmatpush3.bf16.msra.mxu0 %v11990_v9  ;;  %v12048_v9 = vpack.c.bf16 %v1086_v17, %v1085_v4  ;;  %v12050_v16 = vpack.c.bf16 %v1070_v45, %v1069_v11  ;;  %v1080_v56 = vld [vmem:[%s17130_s13 + $0x378] sm:$0xff] }
 0xd0c   : > { %11993 = vmatprep.subr.bf16.mxu0 %v11992_v27  ;;  %v2515_v27 = vmax.f32 %v2500_v3, 0.0  ;;  %v2523_v28 = vmax.f32 %v2506_v63, 0.0  ;;  %v9824_v63 = vld [vmem:[%s17241_s30 + $0x30] sm:$0xff] }
 0xd0f   : > { %11995 = vmatpush3.bf16.msra.mxu0 %v11994_v20  ;;  %v1071_v20 = vld [vmem:[%s17130_s13 + $0x330] sm:$0xff] }
 0xd10   : > { %11997 = vmatprep.subr.bf16.mxu0 %v11996_v21  ;;  %v1072_v21 = vld [vmem:[%s17130_s13 + $0x338] sm:$0xff] }
 0xd11   : > { %v12054_v25 = vpack.c.bf16 %v1072_v21, %v1071_v20 }
 0xd13   : > { %11999 = vmatpush3.bf16.msra.mxu0 %v11998_v29  ;;  %v1073_v29 = vld [vmem:[%s17130_s13 + $0x340] sm:$0xff] }
 0xd14   : > { %12001 = vmatprep.subr.bf16.mxu0 %v12000_v32  ;;  %v1074_v32 = vld [vmem:[%s17130_s13 + $0x348] sm:$0xff] }
 0xd15   : > { %v12058_v36 = vpack.c.bf16 %v1074_v32, %v1073_v29 }
 0xd17   : > { %12003 = vmatpush3.bf16.msra.mxu0 %v12002_v33  ;;  %v1075_v33 = vld [vmem:[%s17130_s13 + $0x350] sm:$0xff] }
 0xd18   : > { %12005 = vmatprep.subr.bf16.mxu0 %v12004_v41  ;;  %v1093_v41 = vld [vmem:[%s17130_s13 + $0x3e0] sm:$0xff]  ;;  %v12062_v43 = vpack.c.bf16 %v1076_v40, %v1075_v33 }
 0xd19   : > { %v12064_v47 = vpack.c.bf16 %v1094_v42, %v1093_v41 }
 0xd1b   : > { %12007 = vmatpush3.bf16.msra.mxu0 %v12006_v48  ;;  %v1077_v48 = vld [vmem:[%s17130_s13 + $0x360] sm:$0xff] }
 0xd1c   : > { %12041 = vmatprep.subr.bf16.mxu0 %v12040_v50  ;;  %v1095_v50 = vld [vmem:[%s17130_s13 + $0x3f0] sm:$0xff]  ;;  %v12066_v60 = vpack.c.bf16 %v1078_v49, %v1077_v48 }
 0xd1d   : > { %v12068_v53 = vpack.c.bf16 %v1096_v51, %v1095_v50 }
 0xd1e   : > { %2671 = vmatmul.mubr.f32.vlgmr.msra.gmra.mrb[20].mxu0 %v2510_v58  ;;  %v2498_v58 = vadd.f32 %v14117_v39, %v2181_v52 }
 0xd1f   : > { %2675 = vmatprep.mubr.f32.mxu0 %v2519_v2  ;;  %12043 = vmatpush3.bf16.msra.mxu0 %v12042_v57  ;;  %v12070_v57 = vpack.c.bf16 %v1080_v56, %v1079_v12 }
 0xd20   : > { %12045 = vmatprep.subr.bf16.mxu0 %v12044_v0  ;;  %v2514_v61 = vmax.f32 %v2498_v58, 0.0  ;;  %v2504_v0 = vadd.f32 %v14133_v54, %v2181_v52  ;;  %v9819_v54 = vld [vmem:[%s17131_s14] ss:$0 sm:$0xff]  ;;  %v9823_v58 = vld [vmem:[%s17241_s30 + $0x28] sm:$0xff] }
 0xd22   : > { %2676 = vmatmul.mubr.f32.gmra.mrb[22].mxu0 %v2518_v7  ;;  %v2522_v23 = vmax.f32 %v2504_v0, 0.0  ;;  %v9825_v0 = vld [vmem:[%s17241_s30 + $0x38] sm:$0xff] }
 0xd23   : > { %12047 = vmatpush3.bf16.msra.mxu0 %v12046_v5  ;;  %2820 = vmatprep.mubr.f32.mxu0 %v2515_v27 }
 0xd24   : > { %12049 = vmatprep.subr.bf16.mxu0 %v12048_v9 }
 0xd27   : > { %12051 = vmatpush3.bf16.msra.mxu0 %v12050_v16 }
 0xd28   : > { %12053 = vmatprep.subr.bf16.mxu0 %v12052_v18 }
 0xd2b   : > { %12055 = vmatpush3.bf16.msra.mxu0 %v12054_v25 }
 0xd2c   : > { %12057 = vmatprep.subr.bf16.mxu0 %v12056_v26 }
 0xd2f   : > { %12059 = vmatpush3.bf16.msra.mxu0 %v12058_v36 }
 0xd30   : > { %12061 = vmatprep.subr.bf16.mxu0 %v12060_v37 }
 0xd33   : > { %12063 = vmatpush3.bf16.msra.mxu0 %v12062_v43 }
 0xd34   : > { %12065 = vmatprep.subr.bf16.mxu0 %v12064_v47 }
 0xd37   : > { %12067 = vmatpush3.bf16.msra.mxu0 %v12066_v60 }
 0xd38   : > { %12069 = vmatprep.subr.bf16.mxu0 %v12068_v53 }
 0xd3b   : > { %12071 = vmatpush3.bf16.msra.mxu0 %v12070_v57 }
 0xd3e   : > { %2821 = vmatmul.mubr.f32.vlgmr.msra.gmra.mrb[24].mxu0 %v2514_v61 }
 0xd3f   : > { %2825 = vmatprep.mubr.f32.mxu0 %v2523_v28  ;;  %v12076_v28 = vpack.c.bf16 %v9825_v0, %v9824_v63 }
 0xd42   : > { %2826 = vmatmul.mubr.f32.gmra.mrb[26].mxu0 %v2522_v23 }
 0xdd1   : > { %v10637_v2 = vpop.f32.mrb[16].mxu0 }
 0xdd2   : > { %v10638_v3 = vpop.f32.mrb[17].mxu0 }
 0xdd3   : > { %v10639_v4 = vadd.f32 %v10638_v3, %v10637_v2 }
 0xdd5   : > { %v10640_v17 = vpop.f32.mrb[18].mxu0  ;;  %v2598_v15 = vadd.f32 %v10639_v4, %v9819_v54 }
 0xdd6   : > { %v10641_v5 = vpop.f32.mrb[19].mxu0 }
 0xdd7   : > { %v10642_v7 = vadd.f32 %v10641_v5, %v10640_v17 }
 0xdd9   : > { %v10713_v39 = vpop.f32.mrb[22].mxu1  ;;  %v2603_v22 = vadd.f32 %v10642_v7, %v9819_v54 }
 0xdda   : > { %v10714_v9 = vpop.f32.mrb[23].mxu1 }
 0xddb   : > { %v10715_v11 = vadd.f32 %v10714_v9, %v10713_v39  ;;  %v9820_v39 = vld [vmem:[%s17132_s15] ss:$0 sm:$0xff] }
 0xddd   : > { %v10716_v45 = vpop.f32.mrb[24].mxu1 }
 0xdde   : > { %v10717_v59 = vpop.f32.mrb[25].mxu1 }
 0xddf   : > { %v10718_v55 = vadd.f32 %v10717_v59, %v10716_v45 }
 0xdf1   : > { %v10675_v27 = vpop.f32.mrb[20].mxu0 }
 0xdf2   : > { %v10676_v14 = vpop.f32.mrb[21].mxu0 }
 0xdf3   : > { %v10677_v16 = vadd.f32 %v10676_v14, %v10675_v27 }
 0xdf5   : > { %v2673_v18 = vadd.f32 %v10677_v16, %v2598_v15  ;;  %v10678_v20 = vpop.f32.mrb[22].mxu0  ;;  %v9991_v15 = vld [vmem:[%s17245_s9 + $0x1] ss:$0 sm:$0xff] }
 0xdf6   : > { %v10679_v21 = vpop.f32.mrb[23].mxu0 }
 0xdf7   : > { %v10680_v24 = vadd.f32 %v10679_v21, %v10678_v20  ;;  %v2748_v25 = vadd.f32 %v10715_v11, %v2673_v18  ;;  %v9821_v11 = vld [vmem:[%s17133_s16] ss:$0 sm:$0xff] }
 0xdf9   : > { %v2678_v26 = vadd.f32 %v10680_v24, %v2603_v22 }
 0xdfb   : > { %v2753_v29 = vadd.f32 %v10718_v55, %v2678_v26 }
 0xe11   : > { %v10751_v32 = vpop.f32.mrb[24].mxu0 }
 0xe12   : > { %v10752_v34 = vpop.f32.mrb[25].mxu0 }
 0xe13   : > { %v10753_v35 = vadd.f32 %v10752_v34, %v10751_v32 }
 0xe15   : > { %v2823_v36 = vadd.f32 %v10753_v35, %v2748_v25  ;;  %v10754_v37 = vpop.f32.mrb[26].mxu0 }
 0xe16   : > { %v10755_v33 = vpop.f32.mrb[27].mxu0 }
 0xe17   : > { %v10756_v40 = vadd.f32 %v10755_v33, %v10754_v37  ;;  %v2831_v41 = vadd.f32 %v2823_v36, %v13819_v6 }
 0xe19   : > { %v2828_v42 = vadd.f32 %v10756_v40, %v2753_v29  ;;  %v2835_v43 = vsel %vm1104_vm1, %v2831_v41, 0.0 }
 0xe1a   : > { %2836 = vadd.xlane.f32.xlu1 %v2835_v43 }
 0xe1b   : > { %v2832_v47 = vadd.f32 %v2828_v42, %v13848_v19  ;;  %v9822_v19 = vld [vmem:[%s17241_s30 + $0x20] sm:$0xff] }
 0xe1c   : > { %v12072_v61 = vpack.c.bf16 %v9823_v58, %v9822_v19 }
 0xe1d   : > { %v2838_v48 = vsel %vm1104_vm1, %v2832_v47, 0.0 }
 0xe1e   : > { %2839 = vadd.xlane.f32.xlu0 %v2838_v48  ;;  %12073 = vmatprep.subr.bf16.mxu1 %v12072_v61 }
 0xe1f   : > { %12075 = vmatpush3.bf16.msra.mxu1 %v12072_v61 }
 0xe20   : > { %12077 = vmatprep.subr.bf16.mxu1 %v12076_v28 }
 0xe23   : > { %12079 = vmatpush3.bf16.msra.mxu1 %v12076_v28 }
 0xea7   : > { %v2837_v49 = vpop.xlane.xlu1 %2836 }
 0xea8   : > { %v2841_v50 = vmul.f32 0.03125, %v2837_v49 }
 0xeaa   : > { %v2843_v51 = vsub.f32 %v2831_v41, %v2841_v50 }
 0xeab   : > { %v2840_v60 = vpop.xlane.xlu0 %2839 }
 0xeac   : > { %v2842_v52 = vmul.f32 0.03125, %v2840_v60  ;;  %v2845_v53 = vmul.f32 %v2843_v51, %v2843_v51 }
 0xeae   : > { %v2844_v12 = vsub.f32 %v2832_v47, %v2842_v52  ;;  %v2847_v56 = vsel %vm1104_vm1, %v2845_v53, 0.0 }
 0xeaf   : > { %2848 = vadd.xlane.f32.xlu1 %v2847_v56 }
 0xeb0   : > { %v2846_v6 = vmul.f32 %v2844_v12, %v2844_v12 }
 0xeb2   : > { %v2850_v57 = vsel %vm1104_vm1, %v2846_v6, 0.0 }
 0xeb3   : > { %2851 = vadd.xlane.f32.xlu0 %v2850_v57 }
 0xf3c   : > { %v2849_v23 = vpop.xlane.xlu1 %2848 }
 0xf3d   : > { %v2853_v2 = vmul.f32 0.03125, %v2849_v23 }
 0xf3f   : > { %v2855_v3 = vadd.f32 1e-05, %v2853_v2 }
 0xf40   : > { %v2852_v4 = vpop.xlane.xlu0 %2851 }
 0xf41   : > { %13130 = vrsqrt.f32 %v2855_v3  ;;  %v2854_v17 = vmul.f32 0.03125, %v2852_v4 }
 0xf43   : > { %v2856_v5 = vadd.f32 1e-05, %v2854_v17 }
 0xf45   : > { %13132 = vrsqrt.f32 %v2856_v5 }
 0xf4b   : > { %v13131_v7 = vpop.eup %13130 }
 0xf4c   : > { %v2859_v9 = vmul.f32 %v13131_v7, %v2843_v51 }
 0xf4e   : > { %v2867_v45 = vmul.f32 %v9820_v39, %v2859_v9 }
 0xf4f   : > { %v13133_v59 = vpop.eup %13132 }
 0xf50   : > { %v2860_v55 = vmul.f32 %v13133_v59, %v2844_v12  ;;  %v14341_v54 = vadd.f32 %v9821_v11, %v2867_v45 }
 0xf52   : > { %v2868_v27 = vmul.f32 %v9820_v39, %v2860_v55  ;;  %11556 = vmatprep.mubr.msk.f32.mxu1 %vm1104_vm1, %v14341_v54 }
 0xf54   : > { %v14345_v14 = vadd.f32 %v9821_v11, %v2868_v27 }
 0xf56   : > { %11557 = vmatmul.mubr.msk.f32.vlgmr.msra.gmra.mrb[26].mxu1 %vm1104_vm1, %v14345_v14 }
0x1029   : > { %v11558_v16 = vpop.f32.mrb[26].mxu1 }
0x102a   : > { %v14352_v18 = vadd.f32 %v11558_v16, %v9991_v15  ;;  %v3129_v20 = vpop.f32.mrb[27].mxu1 }
0x102b   : > { %v14354_v21 = vadd.f32 %v9991_v15, %v3129_v20 }
0x102d   : > { %11563 = vmatprep.mubr.msk.f32.mxu0 %vm1192_vm2, %v14354_v21  ;;  %v14360_v22 = vpack.i.bf16 %v14352_v18, %v14354_v21 }
0x102f   : > { %12975 = vrot.lane.b32.xlu1 %v14360_v22, %s17252_s7 }
0x1033   : > { %12980 = vrot.lane.b32.xlu1 %v14360_v22, %s17253_s2 }
0x1037   : > { %3336 = vrot.lane.b32.xlu1 %v14354_v21, %s17254_s29 }
0x103b   : > { %3338 = vrot.lane.b32.xlu1 %v14352_v18, %s17254_s29 }
0x10a1   : > { %v12976_v24 = vpop.permute.xlu1 %12975 }
0x10a2   : > { %v12978_v25 = vunpack.i.h.bf16 %v12976_v24  ;;  %v12977_v26 = vunpack.i.l.bf16 %v12976_v24 }
0x10a4   : > { %v12080_v29 = vpack.c.bf16 %v12978_v25, %v12977_v26 }
0x10a5   : > { %v12981_v32 = vpop.permute.xlu1 %12980 }
0x10a6   : > { %v12983_v34 = vunpack.i.h.bf16 %v12981_v32  ;;  %v12982_v35 = vunpack.i.l.bf16 %v12981_v32  ;;  %12082 = vmatprep.subr.msk.bf16.mxu0 %vm13593_vm3, %v12080_v29 }
0x10a7   : > { %12085 = vmatpush3.bf16.xpose.msk.msra.mxu0 %vm13593_vm3, %v12080_v29 }
0x10a8   : > { %v12086_v36 = vpack.c.bf16 %v12983_v34, %v12982_v35 }
0x10a9   : > { %v3337_v23 = vpop.permute.xlu1 %3336 }
0x10aa   : > { %12087 = vmatprep.subr.bf16.mxu1 %v12086_v36 }
0x10ab   : > { %12089 = vmatpush3.bf16.msra.mxu1 %v12086_v36 }
0x10ad   : > { %v3339_v2 = vpop.permute.xlu1 %3338 }
0x10ae   : > { %11564 = vmatmul.mubr.msk.f32.vlgmr.msra.gmra.mrb[28].mxu0 %vm1192_vm2, %v14352_v18 }
0x1181   : > { %v11565_v37 = vpop.f32.mrb[28].mxu0 }
0x1182   : > { %v3218_v33 = vpop.f32.mrb[29].mxu0  ;;  %v3230_v41 = vsel %vm1276_vm4, %v11565_v37, -inf }
0x1183   : > { %v3227_v40 = vsel %vm1276_vm4, %v3218_v33, -inf }
0x1184   : > { %3228 = vmax.xlane.f32.xlu0 %v3227_v40 }
0x1188   : > { %3231 = vmax.xlane.f32.xlu0 %v3230_v41 }
0x1211   : > { %v3229_v42 = vpop.xlane.xlu0 %3228 }
0x1212   : > { %v3233_v43 = vsub.f32 %v3218_v33, %v3229_v42 }
0x1214   : > { %v3235_v49 = vmul.f32 1.442695, %v3233_v43 }
0x1215   : > { %v3232_v47 = vpop.xlane.xlu0 %3231 }
0x1216   : > { %v3234_v48 = vsub.f32 %v11565_v37, %v3232_v47 }
0x1218   : > { %v3237_v50 = vmul.f32 1.442695, %v3234_v48 }
0x121a   : > { %13134 = vpow2.f32 %v3237_v50 }
0x121b   : > { %13136 = vpow2.f32 %v3235_v49 }
0x1224   : > { %v13135_v51 = vpop.eup %13134 }
0x1225   : > { %v3242_v60 = vsel %vm1276_vm4, %v13135_v51, 0.0  ;;  %v13137_v52 = vpop.eup %13136 }
0x1226   : > { %3243 = vadd.xlane.f32.xlu0 %v3242_v60  ;;  %v3239_v53 = vsel %vm1276_vm4, %v13137_v52, 0.0 }
0x122a   : > { %3240 = vadd.xlane.f32.xlu0 %v3239_v53 }
0x1240   : > { %12985 = vrot.lane.b32.xlu0 %v14360_v22, %s17255_s1 }
0x12b3   : > { %v3244_v12 = vpop.xlane.xlu0 %3243 }
0x12b4   : > { %13138 = vrcp.f32 %v3244_v12 }
0x12b7   : > { %v3241_v56 = vpop.xlane.xlu0 %3240 }
0x12b8   : > { %13140 = vrcp.f32 %v3241_v56 }
0x12bb   : > { %v12986_v6 = vpop.permute.xlu0 %12985 }
0x12bc   : > { %v12988_v57 = vunpack.i.h.bf16 %v12986_v6  ;;  %v12987_v19 = vunpack.i.l.bf16 %v12986_v6 }
0x12be   : > { %v12090_v58 = vpack.c.bf16 %v12988_v57, %v12987_v19  ;;  %v13139_v63 = vpop.eup %13138 }
0x12bf   : > { %v3248_v28 = vmul.f32 %v13139_v63, %v13135_v51 }
0x12c0   : > { %12092 = vmatprep.subr.msk.bf16.mxu1 %vm13593_vm3, %v12090_v58 }
0x12c2   : > { %v13141_v61 = vpop.eup %13140 }
0x12c3   : > { %v3247_v0 = vmul.f32 %v13141_v61, %v13137_v52 }
0x12c5   : > { %11570 = vmatprep.mubr.msk.f32.mxu1 %vm1276_vm4, %v3247_v0 }
0x12c6   : > { %11571 = vmatmul.mubr.msk.f32.vlgmr.msra.gmra.mrb[28].mxu1 %vm1276_vm4, %v3248_v28 }
0x12c7   : > { %12095 = vmatpush3.bf16.xpose.msk.msra.mxu1 %vm13593_vm3, %v12090_v58  ;;  %11577 = vmatprep.mubr.msk.f32.mxu1 %vm1192_vm2, %v3337_v23 }
0x12ce   : > { %11578 = vmatmul.mubr.msk.f32.vlgmr.msra.gmra.mrb[30].mxu1 %vm1192_vm2, %v3339_v2 }
0x1399   : > { %v14390_v3 = vpop.f32.mrb[28].mxu1 }
0x139a   : > { %v14392_v4 = vpop.f32.mrb[29].mxu1 }
0x13a1   : > { %v11579_v17 = vpop.f32.mrb[30].mxu1 }
0x13a2   : > { %v3418_v5 = vpop.f32.mrb[31].mxu1  ;;  %v3430_v7 = vsel %vm1276_vm4, %v11579_v17, -inf }
0x13a3   : > { %3431 = vmax.xlane.f32.xlu0 %v3430_v7  ;;  %v3427_v39 = vsel %vm1276_vm4, %v3418_v5, -inf }
0x13a4   : > { %3428 = vmax.xlane.f32.xlu1 %v3427_v39 }
0x13b5   : > { %12995 = vrot.lane.b32.xlu1 %v14360_v22, %s17256_s3 }
0x13b9   : > { %12990 = vrot.lane.b32.xlu0 %v14360_v22, %s17257_s6 }
0x13bd   : > { %3538 = vrot.lane.b32.xlu0 %v14352_v18, %s17258_s22 }
0x1430   : > { %v3432_v9 = vpop.xlane.xlu0 %3431 }
0x1431   : > { %v3434_v11 = vsub.f32 %v11579_v17, %v3432_v9  ;;  %v3429_v45 = vpop.xlane.xlu1 %3428 }
0x1432   : > { %v3433_v59 = vsub.f32 %v3418_v5, %v3429_v45 }
0x1433   : > { %v3437_v55 = vmul.f32 1.442695, %v3434_v11 }
0x1434   : > { %v3435_v27 = vmul.f32 1.442695, %v3433_v59  ;;  %v12991_v15 = vpop.permute.xlu0 %12990 }
0x1435   : > { %13142 = vpow2.f32 %v3437_v55  ;;  %v12993_v16 = vunpack.i.h.bf16 %v12991_v15  ;;  %v12992_v20 = vunpack.i.l.bf16 %v12991_v15  ;;  %v12996_v24 = vpop.permute.xlu1 %12995 }
0x1436   : > { %v12998_v25 = vunpack.i.h.bf16 %v12996_v24  ;;  %v12997_v26 = vunpack.i.l.bf16 %v12996_v24  ;;  %13144 = vpow2.f32 %v3435_v27 }
0x1437   : > { %v12096_v29 = vpack.c.bf16 %v12993_v16, %v12992_v20 }
0x1438   : > { %v12100_v32 = vpack.c.bf16 %v12998_v25, %v12997_v26  ;;  %v3539_v49 = vpop.permute.xlu0 %3538 }
0x1439   : > { %12097 = vmatprep.subr.bf16.mxu0 %v12096_v29 }
0x143a   : > { %12099 = vmatpush3.bf16.msra.mxu0 %v12096_v29 }
0x143b   : > { %12102 = vmatprep.subr.msk.bf16.mxu0 %vm13593_vm3, %v12100_v32 }
0x143f   : > { %v13143_v34 = vpop.eup %13142 }
0x1440   : > { %v3442_v35 = vsel %vm1276_vm4, %v13143_v34, 0.0  ;;  %v13145_v36 = vpop.eup %13144 }
0x1441   : > { %3443 = vadd.xlane.f32.xlu1 %v3442_v35  ;;  %v3439_v37 = vsel %vm1276_vm4, %v13145_v36, 0.0 }
0x1445   : > { %3440 = vadd.xlane.f32.xlu1 %v3439_v37 }
0x1456   : > { %3536 = vrot.lane.b32.xlu1 %v14354_v21, %s17258_s22 }
0x14ce   : > { %v3444_v33 = vpop.xlane.xlu1 %3443 }
0x14cf   : > { %13146 = vrcp.f32 %v3444_v33 }
0x14d2   : > { %v3441_v40 = vpop.xlane.xlu1 %3440 }
0x14d3   : > { %13148 = vrcp.f32 %v3441_v40 }
0x14d6   : > { %v3537_v48 = vpop.permute.xlu1 %3536 }
0x14d9   : > { %v13147_v41 = vpop.eup %13146 }
0x14da   : > { %v3448_v47 = vmul.f32 %v13147_v41, %v13143_v34 }
0x14dd   : > { %v13149_v42 = vpop.eup %13148 }
0x14de   : > { %v3447_v43 = vmul.f32 %v13149_v42, %v13145_v36 }
0x14e0   : > { %11584 = vmatprep.mubr.msk.f32.mxu0 %vm1276_vm4, %v3447_v43 }
0x14e1   : > { %11585 = vmatmul.mubr.msk.f32.vlgmr.msra.gmra.mrb[30].mxu0 %vm1276_vm4, %v3448_v47 }
0x14e2   : > { %12105 = vmatpush3.bf16.xpose.msk.msra.mxu0 %vm13593_vm3, %v12100_v32  ;;  %11591 = vmatprep.mubr.msk.f32.mxu0 %vm1192_vm2, %v3537_v48 }
0x14e9   : > { %11592 = vmatmul.mubr.msk.f32.vlgmr.msra.gmra.mrb[32].mxu0 %vm1192_vm2, %v3539_v49 }
0x15b4   : > { %v14414_v50 = vpop.f32.mrb[30].mxu0 }
0x15b5   : > { %v14416_v51 = vpop.f32.mrb[31].mxu0 }
0x15bc   : > { %v11593_v60 = vpop.f32.mrb[32].mxu0 }
0x15bd   : > { %v3618_v52 = vpop.f32.mrb[33].mxu0  ;;  %v3630_v53 = vsel %vm1276_vm4, %v11593_v60, -inf }
0x15be   : > { %3631 = vmax.xlane.f32.xlu0 %v3630_v53  ;;  %v3627_v12 = vsel %vm1276_vm4, %v3618_v52, -inf }
0x15bf   : > { %3628 = vmax.xlane.f32.xlu1 %v3627_v12 }
0x164b   : > { %v3632_v56 = vpop.xlane.xlu0 %3631 }
0x164c   : > { %v3634_v6 = vsub.f32 %v11593_v60, %v3632_v56  ;;  %v3629_v57 = vpop.xlane.xlu1 %3628 }
0x164d   : > { %v3633_v19 = vsub.f32 %v3618_v52, %v3629_v57 }
0x164e   : > { %v3637_v58 = vmul.f32 1.442695, %v3634_v6 }
0x164f   : > { %v3635_v63 = vmul.f32 1.442695, %v3633_v19  ;;  %v9827_v19 = vld [vmem:[%s17248_s10 + $0x28] sm:$0xff] }
0x1650   : > { %13150 = vpow2.f32 %v3637_v58  ;;  %v9828_v58 = vld [vmem:[%s17248_s10 + $0x30] sm:$0xff] }
0x1651   : > { %13152 = vpow2.f32 %v3635_v63 }
0x165a   : > { %v13151_v61 = vpop.eup %13150 }
0x165b   : > { %v13153_v0 = vpop.eup %13152  ;;  %v3642_v28 = vsel %vm1276_vm4, %v13151_v61, 0.0 }
0x165c   : > { %3643 = vadd.xlane.f32.xlu1 %v3642_v28  ;;  %v3639_v23 = vsel %vm1276_vm4, %v13153_v0, 0.0 }
0x165d   : > { %3640 = vadd.xlane.f32.xlu0 %v3639_v23 }
0x166d   : > { %13005 = vrot.lane.b32.xlu1 %v14360_v22, %s17259_s24 }
0x1671   : > { %3736 = vrot.lane.b32.xlu1 %v14354_v21, %s17260_s27 }
0x1673   : > { %13000 = vrot.lane.b32.xlu0 %v14360_v22, %s17261_s28 }
0x1677   : > { %3738 = vrot.lane.b32.xlu0 %v14352_v18, %s17260_s27 }
0x16e9   : > { %v3644_v2 = vpop.xlane.xlu1 %3643 }
0x16ea   : > { %13154 = vrcp.f32 %v3644_v2  ;;  %v3641_v17 = vpop.xlane.xlu0 %3640 }
0x16eb   : > { %13156 = vrcp.f32 %v3641_v17 }
0x16ed   : > { %v13006_v5 = vpop.permute.xlu1 %13005 }
0x16ee   : > { %v13001_v7 = vpop.permute.xlu0 %13000  ;;  %v13008_v39 = vunpack.i.h.bf16 %v13006_v5  ;;  %v13007_v9 = vunpack.i.l.bf16 %v13006_v5 }
0x16ef   : > { %v13003_v11 = vunpack.i.h.bf16 %v13001_v7  ;;  %v13002_v45 = vunpack.i.l.bf16 %v13001_v7 }
0x16f0   : > { %v12110_v55 = vpack.c.bf16 %v13008_v39, %v13007_v9 }
0x16f1   : > { %v12106_v59 = vpack.c.bf16 %v13003_v11, %v13002_v45  ;;  %v3737_v16 = vpop.permute.xlu1 %3736 }
0x16f2   : > { %v3739_v20 = vpop.permute.xlu0 %3738 }
0x16f3   : > { %12107 = vmatprep.subr.bf16.mxu1 %v12106_v59 }
0x16f4   : > { %v13155_v21 = vpop.eup %13154  ;;  %12109 = vmatpush3.bf16.msra.mxu1 %v12106_v59 }
0x16f5   : > { %v13157_v27 = vpop.eup %13156  ;;  %12112 = vmatprep.subr.msk.bf16.mxu1 %vm13593_vm3, %v12110_v55  ;;  %v3648_v15 = vmul.f32 %v13155_v21, %v13151_v61  ;;  %v9829_v61 = vld [vmem:[%s17248_s10 + $0x38] sm:$0xff] }
0x16f6   : > { %v3647_v18 = vmul.f32 %v13157_v27, %v13153_v0  ;;  %v12124_v0 = vpack.c.bf16 %v9829_v61, %v9828_v58  ;;  %v9846_v58 = vld [vmem:[%s17128_s11 + $0x180] sm:$0xff] }
0x16f8   : > { %11598 = vmatprep.mubr.msk.f32.mxu1 %vm1276_vm4, %v3647_v18 }
0x16f9   : > { %11599 = vmatmul.mubr.msk.f32.vlgmr.msra.gmra.mrb[32].mxu1 %vm1276_vm4, %v3648_v15 }
0x16fa   : > { %11605 = vmatprep.mubr.msk.f32.mxu1 %vm1192_vm2, %v3737_v16 }
0x16fd   : > { %12115 = vmatpush3.bf16.xpose.msk.msra.mxu1 %vm13593_vm3, %v12110_v55 }
0x1704   : > { %11606 = vmatmul.mubr.msk.f32.vlgmr.msra.gmra.mrb[34].mxu1 %vm1192_vm2, %v3739_v20 }
0x1705   : > { %4216 = vmatprep.mubr.f32.mxu1 %v13334_v44 }
0x17cc   : > { %v11600_v24 = vpop.f32.mrb[32].mxu1 }
0x17cd   : > { %v3727_v25 = vpop.f32.mrb[33].mxu1 }
0x17d7   : > { %v11607_v26 = vpop.f32.mrb[34].mxu1 }
0x17d8   : > { %v3818_v29 = vpop.f32.mrb[35].mxu1  ;;  %v3830_v32 = vsel %vm1276_vm4, %v11607_v26, -inf }
0x17d9   : > { %3831 = vmax.xlane.f32.xlu0 %v3830_v32  ;;  %v3827_v34 = vsel %vm1276_vm4, %v3818_v29, -inf }
0x17da   : > { %3828 = vmax.xlane.f32.xlu1 %v3827_v34 }
0x1866   : > { %v3832_v35 = vpop.xlane.xlu0 %3831 }
0x1867   : > { %v3834_v36 = vsub.f32 %v11607_v26, %v3832_v35  ;;  %v3829_v37 = vpop.xlane.xlu1 %3828 }
0x1868   : > { %v3833_v33 = vsub.f32 %v3818_v29, %v3829_v37 }
0x1869   : > { %v3837_v40 = vmul.f32 1.442695, %v3834_v36 }
0x186a   : > { %v3835_v41 = vmul.f32 1.442695, %v3833_v33 }
0x186b   : > { %13158 = vpow2.f32 %v3837_v40 }
0x186c   : > { %13160 = vpow2.f32 %v3835_v41  ;;  %v9831_v41 = vld [vmem:[%s17128_s11 + $0x108] sm:$0xff] }
0x1875   : > { %v13159_v42 = vpop.eup %13158 }
0x1876   : > { %v13161_v43 = vpop.eup %13160  ;;  %v3842_v47 = vsel %vm1276_vm4, %v13159_v42, 0.0 }
0x1877   : > { %3843 = vadd.xlane.f32.xlu1 %v3842_v47  ;;  %v3839_v48 = vsel %vm1276_vm4, %v13161_v43, 0.0 }
0x1878   : > { %3840 = vadd.xlane.f32.xlu0 %v3839_v48  ;;  %v9841_v48 = vld [vmem:[%s17128_s11 + $0x158] sm:$0xff] }
0x1888   : > { %3938 = vrot.lane.b32.xlu1 %v14416_v51, %s17262_s25 }
0x188c   : > { %3940 = vrot.lane.b32.xlu1 %v14414_v50, %s17262_s25  ;;  %s17268_s25 = smov 16  }
0x188e   : > { %13010 = vrot.lane.b32.xlu0 %v14360_v22, %s17263_s20  ;;  %v9826_v22 = vld [vmem:[%s17248_s10 + $0x20] sm:$0xff]  ;;  %s17266_s10 = smov 8   ;;  %s17271_s20 = sld [smem:[#allocation22_spill]] }
0x188f   : > { %v12120_v63 = vpack.c.bf16 %v9827_v19, %v9826_v22  ;;  %v9857_v19 = vld [vmem:[%s17128_s11 + $0x1d8] sm:$0xff] }
0x1890   : > { %3948 = vrot.lane.b32.xlu1 %v11600_v24, %s17264_s26 }
0x1892   : > { %3946 = vrot.lane.b32.xlu0 %v3727_v25, %s17264_s26 }
0x1904   : > { %v3844_v49 = vpop.xlane.xlu1 %3843 }
0x1905   : > { %13162 = vrcp.f32 %v3844_v49  ;;  %v3841_v60 = vpop.xlane.xlu0 %3840  ;;  %v9830_v49 = vld [vmem:[%s17128_s11 + $0x100] sm:$0xff] }
0x1906   : > { %13164 = vrcp.f32 %v3841_v60  ;;  %v9838_v60 = vld [vmem:[%s17128_s11 + $0x140] sm:$0xff] }
0x1908   : > { %v3939_v2 = vpop.permute.xlu1 %3938 }
0x1909   : > { %v13011_v52 = vpop.permute.xlu0 %13010  ;;  %v3960_v39 = vsel %vm1192_vm2, %v14392_v4, %v3939_v2  ;;  %v10019_v4 = vld [vmem:[%s17249_s5 + $0x1] ss:$0 sm:$0xff]  ;;  %s17267_s5 = smov 40  }
0x190a   : > { %v13013_v53 = vunpack.i.h.bf16 %v13011_v52  ;;  %v13012_v12 = vunpack.i.l.bf16 %v13011_v52 }
0x190c   : > { %v12116_v56 = vpack.c.bf16 %v13013_v53, %v13012_v12  ;;  %v3941_v17 = vpop.permute.xlu1 %3940  ;;  %v12130_v53 = vpack.c.bf16 %v9838_v60, %v9830_v49  ;;  %v9832_v12 = vld [vmem:[%s17128_s11 + $0x110] sm:$0xff] }
0x190d   : > { %v3947_v7 = vpop.permute.xlu0 %3946  ;;  %v3961_v11 = vsel %vm1192_vm2, %v14390_v3, %v3941_v17  ;;  %v9835_v17 = vld [vmem:[%s17128_s11 + $0x128] sm:$0xff] }
0x190e   : > { %12117 = vmatprep.subr.bf16.mxu0 %v12116_v56  ;;  %v3962_v45 = vsel %vm1276_vm4, %v3960_v39, %v3947_v7  ;;  %v9837_v39 = vld [vmem:[%s17128_s11 + $0x138] sm:$0xff] }
0x190f   : > { %v13163_v51 = vpop.eup %13162  ;;  %12119 = vmatpush3.bf16.msra.mxu0 %v12116_v56  ;;  %v9840_v56 = vld [vmem:[%s17128_s11 + $0x150] sm:$0xff] }
0x1910   : > { %v13165_v6 = vpop.eup %13164  ;;  %v3848_v57 = vmul.f32 %v13163_v51, %v13159_v42  ;;  %12121 = vmatprep.subr.bf16.mxu0 %v12120_v63  ;;  %v3949_v5 = vpop.permute.xlu1 %3948  ;;  %v9839_v42 = vld [vmem:[%s17128_s11 + $0x148] sm:$0xff]  ;;  %v12138_v51 = vpack.c.bf16 %v9840_v56, %v9832_v12  ;;  %v9910_v12 = vld [vmem:[%s17130_s13 + $0x580] sm:$0xff] }
0x1911   : > { %v3847_v50 = vmul.f32 %v13165_v6, %v13161_v43  ;;  %v3963_v55 = vsel %vm1276_vm4, %v3961_v11, %v3949_v5  ;;  %v9833_v43 = vld [vmem:[%s17128_s11 + $0x118] sm:$0xff]  ;;  %v12128_v47 = vpack.c.bf16 %v9839_v42, %v9831_v41  ;;  %v9847_v6 = vld [vmem:[%s17128_s11 + $0x188] sm:$0xff] }
0x1912   : > { %v12136_v52 = vpack.c.bf16 %v9841_v48, %v9833_v43  ;;  %v9843_v5 = vld [vmem:[%s17128_s11 + $0x168] sm:$0xff]  ;;  %v9858_v43 = vld [vmem:[%s17128_s11 + $0x1e0] sm:$0xff]  ;;  %v9860_v48 = vld [vmem:[%s17128_s11 + $0x1f0] sm:$0xff] }
0x1913   : > { %11612 = vmatprep.mubr.msk.f32.mxu0 %vm1276_vm4, %v3847_v50  ;;  %12129 = vmatprep.subr.bf16.mxu1 %v12128_v47  ;;  %v9855_v50 = vld [vmem:[%s17128_s11 + $0x1c8] sm:$0xff]  ;;  %v12144_v7 = vpack.c.bf16 %v9843_v5, %v9835_v17  ;;  %v9852_v47 = vld [vmem:[%s17128_s11 + $0x1b0] sm:$0xff] }
0x1914   : > { %11613 = vmatmul.mubr.msk.f32.vlgmr.msra.gmra.mrb[34].mxu0 %vm1276_vm4, %v3848_v57  ;;  %12131 = vmatpush1.bf16.msra.mxu1 %v12130_v53  ;;  %v9849_v57 = vld [vmem:[%s17128_s11 + $0x198] sm:$0xff]  ;;  %v12132_v22 = vpack.c.bf16 %v9855_v50, %v9847_v6  ;;  %v9879_v53 = vld [vmem:[%s17130_s13 + $0x488] sm:$0xff]  ;;  %v12158_v6 = vpack.c.bf16 %v9860_v48, %v9852_v47  ;;  %v9886_v48 = vld [vmem:[%s17130_s13 + $0x4c0] sm:$0xff] }
0x1915   : > { %12123 = vmatpush3.bf16.msra.mxu0 %v12120_v63  ;;  %v9854_v63 = vld [vmem:[%s17128_s11 + $0x1c0] sm:$0xff]  ;;  %v12140_v61 = vpack.c.bf16 %v9857_v19, %v9849_v57  ;;  %v9911_v56 = vld [vmem:[%s17130_s13 + $0x588] sm:$0xff]  ;;  %v9901_v47 = vld [vmem:[%s17130_s13 + $0x538] sm:$0xff] }
0x1916   : > { %12125 = vmatprep.subr.bf16.mxu0 %v12124_v0  ;;  %12133 = vmatprep.subr.bf16.mxu1 %v12132_v22  ;;  %v9862_v57 = vld [vmem:[%s17130_s13 + $0x400] sm:$0xff]  ;;  %v9863_v22 = vld [vmem:[%s17130_s13 + $0x408] sm:$0xff] }
0x1917   : > { %v12162_v17 = vpack.c.bf16 %v9863_v22, %v9862_v57  ;;  %v9902_v57 = vld [vmem:[%s17130_s13 + $0x540] sm:$0xff]  ;;  %v9903_v22 = vld [vmem:[%s17130_s13 + $0x548] sm:$0xff] }
0x1919   : > { %12127 = vmatpush3.bf16.msra.mxu0 %v12124_v0  ;;  %v12134_v0 = vpack.c.bf16 %v9854_v63, %v9846_v58  ;;  %v12192_v58 = vpack.c.bf16 %v9911_v56, %v9910_v12  ;;  %v9894_v63 = vld [vmem:[%s17130_s13 + $0x500] sm:$0xff]  ;;  %v9871_v56 = vld [vmem:[%s17130_s13 + $0x448] sm:$0xff] }
0x191a   : > { %12137 = vmatprep.subr.bf16.mxu0 %v12136_v52  ;;  %v9870_v12 = vld [vmem:[%s17130_s13 + $0x440] sm:$0xff] }
0x191b   : > { %12135 = vmatpush1.bf16.msra.mxu1 %v12134_v0  ;;  %v9880_v0 = vld [vmem:[%s17130_s13 + $0x490] sm:$0xff] }
0x191c   : > { %12145 = vmatprep.subr.bf16.mxu1 %v12144_v7  ;;  %v9864_v7 = vld [vmem:[%s17130_s13 + $0x410] sm:$0xff] }
0x19e7   : > { %v11614_v28 = vpop.f32.mrb[34].mxu0 }
0x19e8   : > { %3956 = vrot.lane.b32.xlu1 %v11614_v28, %s17265_s21  ;;  %v3927_v23 = vpop.f32.mrb[35].mxu0  ;;  %v9848_v28 = vld [vmem:[%s17128_s11 + $0x190] sm:$0xff] }
0x19e9   : > { %3954 = vrot.lane.b32.xlu0 %v3927_v23, %s17265_s21  ;;  %v9856_v23 = vld [vmem:[%s17128_s11 + $0x1d0] sm:$0xff]  ;;  %s17270_s21 = smov 24  }
0x19ea   : > { %v12142_v2 = vpack.c.bf16 %v9856_v23, %v9848_v28  ;;  %v9881_v28 = vld [vmem:[%s17130_s13 + $0x498] sm:$0xff]  ;;  %v9912_v23 = vld [vmem:[%s17130_s13 + $0x590] sm:$0xff] }
0x1a5a   : > { %v3957_v9 = vpop.permute.xlu1 %3956 }
0x1a5b   : > { %v3955_v59 = vpop.permute.xlu0 %3954  ;;  %v3965_v27 = vsel %vm2014_vm5, %v3963_v55, %v3957_v9  ;;  %v9845_v9 = vld [vmem:[%s17128_s11 + $0x178] sm:$0xff] }
0x1a5c   : > { %v3964_v21 = vsel %vm2014_vm5, %v3962_v45, %v3955_v59  ;;  %v12152_v11 = vpack.c.bf16 %v9845_v9, %v9837_v39  ;;  %v9865_v39 = vld [vmem:[%s17130_s13 + $0x418] sm:$0xff]  ;;  %v12164_v9 = vpack.c.bf16 %v9881_v28, %v9880_v0  ;;  %v12178_v0 = vpack.c.bf16 %v9871_v56, %v9870_v12 }
0x1a5d   : > { %11623 = vmatprep.mubr.msk.f32.mxu0 %vm1104_vm1, %v3964_v21  ;;  %v12210_v28 = vpack.c.bf16 %v9903_v22, %v9902_v57  ;;  %v9927_v57 = vld [vmem:[%s17130_s13 + $0x608] sm:$0xff] }
0x1a5e   : > { %11624 = vmatmul.mubr.msk.f32.vlgmr.msra.gmra.mrb[36].mxu0 %vm1104_vm1, %v3965_v27 }
0x1a5f   : > { %4293 = vmatprep.mubr.f32.mxu0 %v13334_v44  ;;  %12139 = vmatpush1.bf16.msra.mxu0 %v12138_v51 }
0x1a60   : > { %12141 = vmatprep.subr.bf16.mxu0 %v12140_v61  ;;  %v9895_v61 = vld [vmem:[%s17130_s13 + $0x508] sm:$0xff] }
0x1a61   : > { %v12194_v5 = vpack.c.bf16 %v9895_v61, %v9894_v63  ;;  %v9920_v63 = vld [vmem:[%s17130_s13 + $0x5d0] sm:$0xff]  ;;  %v9921_v61 = vld [vmem:[%s17130_s13 + $0x5d8] sm:$0xff] }
0x1a63   : > { %12143 = vmatpush1.bf16.msra.mxu0 %v12142_v2  ;;  %v9913_v2 = vld [vmem:[%s17130_s13 + $0x598] sm:$0xff] }
0x1a64   : > { %12153 = vmatprep.subr.bf16.mxu0 %v12152_v11  ;;  %v12196_v11 = vpack.c.bf16 %v9913_v2, %v9912_v23  ;;  %v9872_v23 = vld [vmem:[%s17130_s13 + $0x450] sm:$0xff]  ;;  %v9873_v2 = vld [vmem:[%s17130_s13 + $0x458] sm:$0xff] }
0x1b31   : > { %v11625_v3 = vpop.f32.mrb[36].mxu0 }
0x1b32   : > { %v4052_v18 = vadd.f32 %v11625_v3, %v10019_v4  ;;  %v4046_v15 = vpop.f32.mrb[37].mxu0 }
0x1b33   : > { %v4047_v16 = vadd.f32 %v10019_v4, %v4046_v15  ;;  %v9834_v15 = vld [vmem:[%s17128_s11 + $0x120] sm:$0xff] }
0x1b34   : > { %v4056_v20 = vadd.f32 %v4052_v18, %v14345_v14  ;;  %v10024_v18 = vld [vmem:[%s17250_s4 + $0x1] ss:$0 sm:$0xff] }
0x1b35   : > { %v4055_v24 = vadd.f32 %v4047_v16, %v14341_v54 }
0x1b36   : > { %v4064_v25 = vsel %vm1104_vm1, %v4056_v20, 0.0 }
0x1b37   : > { %4065 = vadd.xlane.f32.xlu1 %v4064_v25  ;;  %v4061_v26 = vsel %vm1104_vm1, %v4055_v24, 0.0  ;;  %v9844_v25 = vld [vmem:[%s17128_s11 + $0x170] sm:$0xff] }
0x1b38   : > { %4062 = vadd.xlane.f32.xlu0 %v4061_v26  ;;  %v10025_v26 = vld [vmem:[%s17251_s0 + $0x1] ss:$0 sm:$0xff]  ;;  %s9772_s0 = sshll.u32 %s17281_s17, 5 }
0x1b39   : > { %p16502_p11 = scmp.lt.s32.totalorder %s9772_s0, 63 }
0x1b3b   : > { %s17311_s0 = smov (!%p16502_p11, %s9772_s0), 63 }
0x1bc4   : > { %v4066_v29 = vpop.xlane.xlu1 %4065 }
0x1bc5   : > { %v4068_v32 = vmul.f32 0.03125, %v4066_v29  ;;  %v4063_v34 = vpop.xlane.xlu0 %4062  ;;  %v9851_v29 = vld [vmem:[%s17128_s11 + $0x1a8] sm:$0xff] }
0x1bc6   : > { %v4067_v35 = vmul.f32 0.03125, %v4063_v34  ;;  %v9859_v34 = vld [vmem:[%s17128_s11 + $0x1e8] sm:$0xff] }
0x1bc7   : > { %v14485_v36 = vsub.f32 %v4056_v20, %v4068_v32  ;;  %v9842_v20 = vld [vmem:[%s17128_s11 + $0x160] sm:$0xff]  ;;  %v12148_v49 = vpack.c.bf16 %v9859_v34, %v9851_v29  ;;  %v9884_v29 = vld [vmem:[%s17130_s13 + $0x4b0] sm:$0xff] }
0x1bc8   : > { %v4069_v37 = vsub.f32 %v4055_v24, %v4067_v35  ;;  %v9836_v24 = vld [vmem:[%s17128_s11 + $0x130] sm:$0xff]  ;;  %v9853_v35 = vld [vmem:[%s17128_s11 + $0x1b8] sm:$0xff] }
0x1bc9   : > { %v4072_v14 = vmul.f32 %v14485_v36, %v14485_v36  ;;  %v9916_v34 = vld [vmem:[%s17130_s13 + $0x5b0] sm:$0xff] }
0x1bca   : > { %v4071_v33 = vmul.f32 %v4069_v37, %v4069_v37 }
0x1bcb   : > { %v4076_v54 = vsel %vm1104_vm1, %v4072_v14, 0.0  ;;  %v12154_v14 = vpack.c.bf16 %v9844_v25, %v9836_v24  ;;  %v9898_v25 = vld [vmem:[%s17130_s13 + $0x520] sm:$0xff] }
0x1bcc   : > { %v4073_v40 = vsel %vm1104_vm1, %v4071_v33, 0.0 }
0x1bcd   : > { %4074 = vadd.xlane.f32.xlu0 %v4073_v40  ;;  %v12146_v40 = vpack.c.bf16 %v9842_v20, %v9834_v15  ;;  %v9866_v15 = vld [vmem:[%s17130_s13 + $0x420] sm:$0xff] }
0x1bd1   : > { %4077 = vadd.xlane.f32.xlu0 %v4076_v54  ;;  %v9850_v54 = vld [vmem:[%s17128_s11 + $0x1a0] sm:$0xff] }
0x1bd2   : > { %v12150_v51 = vpack.c.bf16 %v9858_v43, %v9850_v54  ;;  %v9900_v43 = vld [vmem:[%s17130_s13 + $0x530] sm:$0xff] }
0x1c5a   : > { %v4075_v45 = vpop.xlane.xlu0 %4074 }
0x1c5b   : > { %v4079_v59 = vmul.f32 0.03125, %v4075_v45  ;;  %v9896_v45 = vld [vmem:[%s17130_s13 + $0x510] sm:$0xff] }
0x1c5d   : > { %v4081_v55 = vadd.f32 1e-05, %v4079_v59  ;;  %v9897_v59 = vld [vmem:[%s17130_s13 + $0x518] sm:$0xff] }
0x1c5e   : > { %v4078_v21 = vpop.xlane.xlu0 %4077 }
0x1c5f   : > { %13166 = vrsqrt.f32 %v4081_v55  ;;  %v4080_v27 = vmul.f32 0.03125, %v4078_v21  ;;  %v9882_v55 = vld [vmem:[%s17130_s13 + $0x4a0] sm:$0xff]  ;;  %v9883_v21 = vld [vmem:[%s17130_s13 + $0x4a8] sm:$0xff] }
0x1c60   : > { %v12168_v20 = vpack.c.bf16 %v9883_v21, %v9882_v55  ;;  %v12182_v55 = vpack.c.bf16 %v9873_v2, %v9872_v23 }
0x1c61   : > { %v4082_v4 = vadd.f32 1e-05, %v4080_v27  ;;  %v9914_v27 = vld [vmem:[%s17130_s13 + $0x5a0] sm:$0xff] }
0x1c63   : > { %13168 = vrsqrt.f32 %v4082_v4  ;;  %v9915_v4 = vld [vmem:[%s17130_s13 + $0x5a8] sm:$0xff] }
0x1c64   : > { %v12200_v24 = vpack.c.bf16 %v9915_v4, %v9914_v27  ;;  %v9874_v27 = vld [vmem:[%s17130_s13 + $0x460] sm:$0xff] }
0x1c69   : > { %v13167_v3 = vpop.eup %13166 }
0x1c6a   : > { %v4085_v16 = vmul.f32 %v13167_v3, %v4069_v37  ;;  %v9861_v37 = vld [vmem:[%s17128_s11 + $0x1f8] sm:$0xff]  ;;  %v12166_v3 = vpack.c.bf16 %v9865_v39, %v9864_v7  ;;  %v9904_v7 = vld [vmem:[%s17130_s13 + $0x550] sm:$0xff] }
0x1c6b   : > { %v12156_v60 = vpack.c.bf16 %v9861_v37, %v9853_v35  ;;  %v9917_v35 = vld [vmem:[%s17130_s13 + $0x5b8] sm:$0xff] }
0x1c6c   : > { %v4093_v32 = vmul.f32 %v10024_v18, %v4085_v16  ;;  %v9867_v16 = vld [vmem:[%s17130_s13 + $0x428] sm:$0xff]  ;;  %v9905_v39 = vld [vmem:[%s17130_s13 + $0x558] sm:$0xff] }
0x1c6d   : > { %v13169_v33 = vpop.eup %13168  ;;  %v12170_v37 = vpack.c.bf16 %v9867_v16, %v9866_v15  ;;  %v12214_v21 = vpack.c.bf16 %v9905_v39, %v9904_v7  ;;  %v9906_v15 = vld [vmem:[%s17130_s13 + $0x560] sm:$0xff]  ;;  %v9907_v16 = vld [vmem:[%s17130_s13 + $0x568] sm:$0xff]  ;;  %v9977_v7 = vld [vmem:[%s17130_s13 + $0x798] sm:$0xff] }
0x1c6e   : > { %v4086_v41 = vmul.f32 %v13169_v33, %v14485_v36  ;;  %v14585_v42 = vadd.f32 %v10025_v26, %v4093_v32  ;;  %v9878_v36 = vld [vmem:[%s17130_s13 + $0x480] sm:$0xff]  ;;  %v9885_v32 = vld [vmem:[%s17130_s13 + $0x4b8] sm:$0xff] }
0x1c6f   : > { %v12160_v19 = vpack.c.bf16 %v9879_v53, %v9878_v36  ;;  %v12172_v54 = vpack.c.bf16 %v9885_v32, %v9884_v29  ;;  %v9919_v36 = vld [vmem:[%s17130_s13 + $0x5c8] sm:$0xff]  ;;  %v12206_v53 = vpack.c.bf16 %v9901_v47, %v9900_v43  ;;  %v9924_v29 = vld [vmem:[%s17130_s13 + $0x5f0] sm:$0xff]  ;;  %v9942_v43 = vld [vmem:[%s17130_s13 + $0x680] sm:$0xff] }
0x1c70   : > { %10027 = vmatmul.mubr.msk.f32.vlgmr.msra.gmra.mrb[36].mxu1 %vm1104_vm1, %v14585_v42  ;;  %10029 = vmatmul.mubr.msk.f32.vlgmr.msra.gmra.mrb[38].mxu0 %vm1104_vm1, %v14585_v42  ;;  %v4094_v52 = vmul.f32 %v10024_v18, %v4086_v41  ;;  %v12198_v18 = vpack.c.bf16 %v9897_v59, %v9896_v45  ;;  %v12204_v41 = vpack.c.bf16 %v9917_v35, %v9916_v34  ;;  %v9922_v45 = vld [vmem:[%s17130_s13 + $0x5e0] sm:$0xff]  ;;  %v9923_v59 = vld [vmem:[%s17130_s13 + $0x5e8] sm:$0xff]  ;;  %v9925_v34 = vld [vmem:[%s17130_s13 + $0x5f8] sm:$0xff] }
0x1c71   : > { %12147 = vmatpush1.bf16.msra.mxu1 %v12146_v40  ;;  %12155 = vmatpush1.bf16.msra.mxu0 %v12154_v14  ;;  %v9868_v40 = vld [vmem:[%s17130_s13 + $0x430] sm:$0xff]  ;;  %v9869_v14 = vld [vmem:[%s17130_s13 + $0x438] sm:$0xff]  ;;  %v9943_v47 = vld [vmem:[%s17130_s13 + $0x688] sm:$0xff] }
0x1c72   : > { %4222 = vmatprep.mubr.f32.mxu1 %v13334_v44  ;;  %4299 = vmatprep.mubr.f32.mxu0 %v13334_v44  ;;  %v14614_v50 = vadd.f32 %v10025_v26, %v4094_v52  ;;  %v9899_v26 = vld [vmem:[%s17130_s13 + $0x528] sm:$0xff]  ;;  %v12174_v52 = vpack.c.bf16 %v9869_v14, %v9868_v40  ;;  %v9876_v35 = vld [vmem:[%s17130_s13 + $0x470] sm:$0xff] }
0x1c73   : > { %12149 = vmatprep.subr.bf16.mxu1 %v12148_v49  ;;  %12157 = vmatprep.subr.bf16.mxu0 %v12156_v60  ;;  %v12202_v33 = vpack.c.bf16 %v9899_v26, %v9898_v25  ;;  %v9887_v49 = vld [vmem:[%s17130_s13 + $0x4c8] sm:$0xff]  ;;  %v9918_v60 = vld [vmem:[%s17130_s13 + $0x5c0] sm:$0xff]  ;;  %v9892_v25 = vld [vmem:[%s17130_s13 + $0x4f0] sm:$0xff] }
0x1c74   : > { %10028 = vmatmul.mubr.msk.f32.gmra.mrb[38].mxu1 %vm1104_vm1, %v14614_v50  ;;  %10030 = vmatmul.mubr.msk.f32.gmra.mrb[40].mxu0 %vm1104_vm1, %v14614_v50  ;;  %v9893_v26 = vld [vmem:[%s17130_s13 + $0x4f8] sm:$0xff]  ;;  %v9908_v14 = vld [vmem:[%s17130_s13 + $0x570] sm:$0xff] }
0x1c75   : > { %12151 = vmatpush1.bf16.msra.mxu1 %v12150_v51  ;;  %12159 = vmatpush1.bf16.msra.mxu0 %v12158_v6  ;;  %v12176_v51 = vpack.c.bf16 %v9887_v49, %v9886_v48  ;;  %v12208_v6 = vpack.c.bf16 %v9919_v36, %v9918_v60  ;;  %v12188_v32 = vpack.c.bf16 %v9893_v26, %v9892_v25  ;;  %v9974_v48 = vld [vmem:[%s17130_s13 + $0x780] sm:$0xff]  ;;  %v9975_v60 = vld [vmem:[%s17130_s13 + $0x788] sm:$0xff] }
0x1c76   : > { %4370 = vmatprep.mubr.f32.mxu1 %v13334_v44  ;;  %4447 = vmatprep.mubr.f32.mxu0 %v13334_v44  ;;  %v12224_v49 = vpack.c.bf16 %v9943_v47, %v9942_v43  ;;  %v12256_v36 = vpack.c.bf16 %v9975_v60, %v9974_v48  ;;  %v9979_v43 = vld [vmem:[%s17130_s13 + $0x7a8] sm:$0xff]  ;;  %v9930_v47 = vld [vmem:[%s17130_s13 + $0x620] sm:$0xff] }
0x1c77   : > { %12161 = vmatprep.subr.bf16.mxu1 %v12160_v19  ;;  %12193 = vmatprep.subr.bf16.mxu0 %v12192_v58  ;;  %v9888_v19 = vld [vmem:[%s17130_s13 + $0x4d0] sm:$0xff]  ;;  %v9889_v58 = vld [vmem:[%s17130_s13 + $0x4d8] sm:$0xff] }
0x1c78   : > { %10031 = vmatmul.mubr.msk.f32.vlgmr.msra.gmra.mrb[40].mxu1 %vm1104_vm1, %v14585_v42  ;;  %10033 = vmatmul.mubr.msk.f32.vlgmr.msra.gmra.mrb[42].mxu0 %vm1104_vm1, %v14585_v42 }
0x1c79   : > { %4376 = vmatprep.mubr.f32.mxu1 %v13334_v44  ;;  %4453 = vmatprep.mubr.f32.mxu0 %v13334_v44 }
0x1c7a   : > { %12163 = vmatpush3.bf16.msra.mxu1 %v12162_v17  ;;  %12195 = vmatpush3.bf16.msra.mxu0 %v12194_v5  ;;  %v12180_v17 = vpack.c.bf16 %v9889_v58, %v9888_v19  ;;  %v12212_v5 = vpack.c.bf16 %v9921_v61, %v9920_v63  ;;  %v9958_v58 = vld [vmem:[%s17130_s13 + $0x700] sm:$0xff]  ;;  %v9959_v63 = vld [vmem:[%s17130_s13 + $0x708] sm:$0xff]  ;;  %v9944_v61 = vld [vmem:[%s17130_s13 + $0x690] sm:$0xff] }
0x1c7b   : > { %12165 = vmatprep.subr.bf16.mxu1 %v12164_v9  ;;  %12197 = vmatprep.subr.bf16.mxu0 %v12196_v11  ;;  %v9890_v9 = vld [vmem:[%s17130_s13 + $0x4e0] sm:$0xff]  ;;  %v9891_v11 = vld [vmem:[%s17130_s13 + $0x4e8] sm:$0xff] }
0x1c7c   : > { %10032 = vmatmul.mubr.msk.f32.gmra.mrb[42].mxu1 %vm1104_vm1, %v14614_v50  ;;  %10034 = vmatmul.mubr.msk.f32.gmra.mrb[44].mxu0 %vm1104_vm1, %v14614_v50  ;;  %v12184_v4 = vpack.c.bf16 %v9891_v11, %v9890_v9 }
0x1c7e   : > { %12167 = vmatpush3.bf16.msra.mxu1 %v12166_v3  ;;  %12199 = vmatpush3.bf16.msra.mxu0 %v12198_v18  ;;  %v12216_v3 = vpack.c.bf16 %v9923_v59, %v9922_v45  ;;  %v9875_v18 = vld [vmem:[%s17130_s13 + $0x468] sm:$0xff]  ;;  %v12258_v45 = vpack.c.bf16 %v9959_v63, %v9958_v58 }
0x1c7f   : > { %12169 = vmatprep.subr.bf16.mxu1 %v12168_v20  ;;  %12201 = vmatprep.subr.bf16.mxu0 %v12200_v24  ;;  %v12186_v20 = vpack.c.bf16 %v9875_v18, %v9874_v27  ;;  %v12218_v24 = vpack.c.bf16 %v9907_v16, %v9906_v15  ;;  %v9929_v16 = vld [vmem:[%s17130_s13 + $0x618] sm:$0xff] }
0x1c82   : > { %12171 = vmatpush3.bf16.msra.mxu1 %v12170_v37  ;;  %12203 = vmatpush3.bf16.msra.mxu0 %v12202_v33  ;;  %v9877_v37 = vld [vmem:[%s17130_s13 + $0x478] sm:$0xff]  ;;  %v12220_v33 = vpack.c.bf16 %v9925_v34, %v9924_v29 }
0x1c83   : > { %12173 = vmatprep.subr.bf16.mxu1 %v12172_v54  ;;  %12205 = vmatprep.subr.bf16.mxu0 %v12204_v41  ;;  %v12190_v40 = vpack.c.bf16 %v9877_v37, %v9876_v35  ;;  %v9909_v54 = vld [vmem:[%s17130_s13 + $0x578] sm:$0xff]  ;;  %v9946_v37 = vld [vmem:[%s17130_s13 + $0x6a0] sm:$0xff] }
0x1c84   : > { %v12222_v41 = vpack.c.bf16 %v9909_v54, %v9908_v14  ;;  %v9961_v35 = vld [vmem:[%s17130_s13 + $0x718] sm:$0xff]  ;;  %v9947_v54 = vld [vmem:[%s17130_s13 + $0x6a8] sm:$0xff] }
0x1c85   : > { %v12232_v58 = vpack.c.bf16 %v9947_v54, %v9946_v37  ;;  %v9935_v37 = vld [vmem:[%s17130_s13 + $0x648] sm:$0xff]  ;;  %v9966_v54 = vld [vmem:[%s17130_s13 + $0x740] sm:$0xff] }
0x1c86   : > { %12175 = vmatpush3.bf16.msra.mxu1 %v12174_v52  ;;  %12207 = vmatpush3.bf16.msra.mxu0 %v12206_v53  ;;  %v14827_v52 = vld [vmem:[%s17129_s12 + $0x8] sm:$0xff] }
0x1c87   : > { %12177 = vmatprep.subr.bf16.mxu1 %v12176_v51  ;;  %12209 = vmatprep.subr.bf16.mxu0 %v12208_v6  ;;  %v4109_v53 = vrot.slane %v14827_v52, %v14055_v13  ;;  %v4117_v12 = vrot.slane %v14827_v52, %v14174_v30  ;;  %v4113_v56 = vrot.slane %v14827_v52, %v14063_v62  ;;  %v9926_v6 = vld [vmem:[%s17130_s13 + $0x600] sm:$0xff] }
0x1c88   : > { %v4121_v51 = vrot.slane %v14827_v52, %v14070_v1  ;;  %v12226_v11 = vpack.c.bf16 %v9927_v57, %v9926_v6  ;;  %v14863_v59 = vrot.slane %v14827_v52, %v14088_v8  ;;  %v14882_v14 = vrot.slane %v14827_v52, %v14197_v46 }
0x1c8a   : > { %12179 = vmatpush3.bf16.msra.mxu1 %v12178_v0  ;;  %12211 = vmatpush3.bf16.msra.mxu0 %v12210_v28 }
0x1c8b   : > { %12181 = vmatprep.subr.bf16.mxu1 %v12180_v17  ;;  %12213 = vmatprep.subr.bf16.mxu0 %v12212_v5  ;;  %v9945_v17 = vld [vmem:[%s17130_s13 + $0x698] sm:$0xff]  ;;  %v9976_v5 = vld [vmem:[%s17130_s13 + $0x790] sm:$0xff] }
0x1c8c   : > { %v12228_v18 = vpack.c.bf16 %v9945_v17, %v9944_v61  ;;  %v12260_v15 = vpack.c.bf16 %v9977_v7, %v9976_v5  ;;  %v9963_v61 = vld [vmem:[%s17130_s13 + $0x728] sm:$0xff]  ;;  %v9980_v17 = vld [vmem:[%s17130_s13 + $0x7b0] sm:$0xff]  ;;  %v9981_v5 = vld [vmem:[%s17130_s13 + $0x7b8] sm:$0xff] }
0x1c8e   : > { %12183 = vmatpush3.bf16.msra.mxu1 %v12182_v55  ;;  %12215 = vmatpush3.bf16.msra.mxu0 %v12214_v21  ;;  %v9928_v55 = vld [vmem:[%s17130_s13 + $0x610] sm:$0xff] }
0x1c8f   : > { %12185 = vmatprep.subr.bf16.mxu1 %v12184_v4  ;;  %12217 = vmatprep.subr.bf16.mxu0 %v12216_v3 }
0x1c92   : > { %12187 = vmatpush3.bf16.msra.mxu1 %v12186_v20  ;;  %12219 = vmatpush3.bf16.msra.mxu0 %v12218_v24  ;;  %v9960_v20 = vld [vmem:[%s17130_s13 + $0x710] sm:$0xff] }
0x1c93   : > { %12189 = vmatprep.subr.bf16.mxu1 %v12188_v32  ;;  %12221 = vmatprep.subr.bf16.mxu0 %v12220_v33 }
0x1c96   : > { %12191 = vmatpush3.bf16.msra.mxu1 %v12190_v40  ;;  %12223 = vmatpush3.bf16.msra.mxu0 %v12222_v41  ;;  %v9978_v41 = vld [vmem:[%s17130_s13 + $0x7a0] sm:$0xff] }
0x1c97   : > { %12225 = vmatprep.subr.bf16.mxu1 %v12224_v49  ;;  %12257 = vmatprep.subr.bf16.mxu0 %v12256_v36  ;;  %v12264_v63 = vpack.c.bf16 %v9979_v43, %v9978_v41  ;;  %v9967_v41 = vld [vmem:[%s17130_s13 + $0x748] sm:$0xff]  ;;  %v9952_v43 = vld [vmem:[%s17130_s13 + $0x6d0] sm:$0xff] }
0x1d43   : > { %v4218_v22 = vpop.f32.mrb[36].mxu1  ;;  %v4295_v19 = vpop.f32.mrb[38].mxu0 }
0x1d44   : > { %v4219_v0 = vadd.f32 %v4218_v22, %v4109_v53  ;;  %v4296_v28 = vadd.f32 %v4295_v19, %v4117_v12  ;;  %v4220_v23 = vpop.f32.mrb[37].mxu1  ;;  %v4297_v2 = vpop.f32.mrb[39].mxu0 }
0x1d45   : > { %v4221_v39 = vadd.f32 %v4220_v23, %v4113_v56  ;;  %v4298_v9 = vadd.f32 %v4297_v2, %v4121_v51  ;;  %v9949_v2 = vld [vmem:[%s17130_s13 + $0x6b8] sm:$0xff] }
0x1d46   : > { %v4460_v24 = vmax.f32 %v4219_v0, 0.0  ;;  %v4462_v25 = vmax.f32 %v4296_v28, 0.0  ;;  %v9948_v0 = vld [vmem:[%s17130_s13 + $0x6b0] sm:$0xff] }
0x1d47   : > { %v4461_v21 = vmax.f32 %v4221_v39, 0.0  ;;  %v4463_v27 = vmax.f32 %v4298_v9, 0.0  ;;  %v4224_v4 = vpop.f32.mrb[38].mxu1  ;;  %v4301_v3 = vpop.f32.mrb[40].mxu0 }
0x1d48   : > { %v4225_v26 = vadd.f32 %v4224_v4, %v4109_v53  ;;  %v4302_v29 = vadd.f32 %v4301_v3, %v4117_v12  ;;  %v4226_v32 = vpop.f32.mrb[39].mxu1  ;;  %v4303_v34 = vpop.f32.mrb[41].mxu0  ;;  %v12230_v53 = vpack.c.bf16 %v9929_v16, %v9928_v55  ;;  %v12262_v12 = vpack.c.bf16 %v9961_v35, %v9960_v20  ;;  %v9964_v16 = vld [vmem:[%s17130_s13 + $0x730] sm:$0xff]  ;;  %v9965_v20 = vld [vmem:[%s17130_s13 + $0x738] sm:$0xff]  ;;  %v9934_v35 = vld [vmem:[%s17130_s13 + $0x640] sm:$0xff] }
0x1d49   : > { %v4227_v33 = vadd.f32 %v4226_v32, %v4113_v56  ;;  %v4304_v40 = vadd.f32 %v4303_v34, %v4121_v51  ;;  %4548 = vmatprep.mubr.f32.mxu1 %v4461_v21  ;;  %4623 = vmatprep.mubr.f32.mxu0 %v4463_v27  ;;  %v9931_v56 = vld [vmem:[%s17130_s13 + $0x628] sm:$0xff]  ;;  %v9962_v51 = vld [vmem:[%s17130_s13 + $0x720] sm:$0xff]  ;;  %v9932_v21 = vld [vmem:[%s17130_s13 + $0x630] sm:$0xff]  ;;  %v12270_v34 = vpack.c.bf16 %v9965_v20, %v9964_v16 }
0x1d4a   : > { %4549 = vmatmul.mubr.f32.vlgmr.msra.gmra.mrb[44].mxu1 %v4460_v24  ;;  %4624 = vmatmul.mubr.f32.vlgmr.msra.gmra.mrb[46].mxu0 %v4462_v25  ;;  %v4468_v6 = vmax.f32 %v4225_v26, 0.0  ;;  %v4470_v57 = vmax.f32 %v4302_v29, 0.0  ;;  %v12266_v55 = vpack.c.bf16 %v9963_v61, %v9962_v51  ;;  %v9933_v27 = vld [vmem:[%s17130_s13 + $0x638] sm:$0xff]  ;;  %v9950_v24 = vld [vmem:[%s17130_s13 + $0x6c0] sm:$0xff]  ;;  %v9951_v25 = vld [vmem:[%s17130_s13 + $0x6c8] sm:$0xff] }
0x1d4b   : > { %v4469_v48 = vmax.f32 %v4227_v33, 0.0  ;;  %v4471_v49 = vmax.f32 %v4304_v40, 0.0  ;;  %12227 = vmatpush3.bf16.msra.mxu1 %v12226_v11  ;;  %12259 = vmatpush3.bf16.msra.mxu0 %v12258_v45  ;;  %v14896_v60 = vpop.f32.mrb[40].mxu1  ;;  %v14898_v36 = vpop.f32.mrb[42].mxu0  ;;  %v12234_v45 = vpack.c.bf16 %v9931_v56, %v9930_v47  ;;  %v9982_v26 = vld [vmem:[%s17130_s13 + $0x7c0] sm:$0xff]  ;;  %v9983_v29 = vld [vmem:[%s17130_s13 + $0x7c8] sm:$0xff]  ;;  %v12238_v32 = vpack.c.bf16 %v9933_v27, %v9932_v21 }
0x1d4c   : > { %v4374_v22 = vpop.f32.mrb[41].mxu1  ;;  %v4451_v19 = vpop.f32.mrb[43].mxu0  ;;  %12229 = vmatprep.subr.bf16.mxu1 %v12228_v18  ;;  %12261 = vmatprep.subr.bf16.mxu0 %v12260_v15  ;;  %v12236_v18 = vpack.c.bf16 %v9949_v2, %v9948_v0  ;;  %v12268_v15 = vpack.c.bf16 %v9981_v5, %v9980_v17  ;;  %v12240_v33 = vpack.c.bf16 %v9951_v25, %v9950_v24  ;;  %v9953_v47 = vld [vmem:[%s17130_s13 + $0x6d8] sm:$0xff]  ;;  %v9936_v56 = vld [vmem:[%s17130_s13 + $0x650] sm:$0xff]  ;;  %v9986_v61 = vld [vmem:[%s17130_s13 + $0x7e0] sm:$0xff] }
0x1d4d   : > { %v4375_v28 = vadd.f32 %v4374_v22, %v14863_v59  ;;  %v4452_v23 = vadd.f32 %v4451_v19, %v14882_v14  ;;  %4553 = vmatprep.mubr.f32.mxu1 %v4469_v48  ;;  %4628 = vmatprep.mubr.f32.mxu0 %v4471_v49  ;;  %v12272_v40 = vpack.c.bf16 %v9983_v29, %v9982_v26  ;;  %v9984_v48 = vld [vmem:[%s17130_s13 + $0x7d0] sm:$0xff]  ;;  %v9985_v49 = vld [vmem:[%s17130_s13 + $0x7d8] sm:$0xff]  ;;  %v9987_v0 = vld [vmem:[%s17130_s13 + $0x7e8] sm:$0xff] }
0x1d4e   : > { %4554 = vmatmul.mubr.f32.gmra.mrb[46].mxu1 %v4468_v6  ;;  %4629 = vmatmul.mubr.f32.gmra.mrb[48].mxu0 %v4470_v57  ;;  %v9937_v51 = vld [vmem:[%s17130_s13 + $0x658] sm:$0xff]  ;;  %v12244_v6 = vpack.c.bf16 %v9953_v47, %v9952_v43  ;;  %v12276_v57 = vpack.c.bf16 %v9985_v49, %v9984_v48  ;;  %v9968_v22 = vld [vmem:[%s17130_s13 + $0x750] sm:$0xff]  ;;  %v9938_v2 = vld [vmem:[%s17130_s13 + $0x660] sm:$0xff]  ;;  %v4133_v25 = vrot.slane %v14827_v52, %v14288_v31 }
0x1d4f   : > { %v4465_v7 = vmax.f32 %v4375_v28, 0.0  ;;  %v4467_v39 = vmax.f32 %v4452_v23, 0.0  ;;  %12231 = vmatpush3.bf16.msra.mxu1 %v12230_v53  ;;  %12263 = vmatpush3.bf16.msra.mxu0 %v12262_v12  ;;  %v14923_v9 = vpop.f32.mrb[42].mxu1  ;;  %v14925_v11 = vpop.f32.mrb[44].mxu0  ;;  %v12242_v53 = vpack.c.bf16 %v9935_v37, %v9934_v35  ;;  %v12274_v12 = vpack.c.bf16 %v9967_v41, %v9966_v54  ;;  %v9969_v19 = vld [vmem:[%s17130_s13 + $0x758] sm:$0xff]  ;;  %v9939_v17 = vld [vmem:[%s17130_s13 + $0x668] sm:$0xff] }
0x1d50   : > { %v14933_v4 = vpop.f32.mrb[43].mxu1  ;;  %v14935_v3 = vpop.f32.mrb[45].mxu0  ;;  %12233 = vmatprep.subr.bf16.mxu1 %v12232_v58  ;;  %12265 = vmatprep.subr.bf16.mxu0 %v12264_v63  ;;  %v9954_v58 = vld [vmem:[%s17130_s13 + $0x6e0] sm:$0xff]  ;;  %v9955_v63 = vld [vmem:[%s17130_s13 + $0x6e8] sm:$0xff]  ;;  %v12246_v28 = vpack.c.bf16 %v9937_v51, %v9936_v56  ;;  %v12278_v23 = vpack.c.bf16 %v9969_v19, %v9968_v22  ;;  %v9957_v21 = vld [vmem:[%s17130_s13 + $0x6f8] sm:$0xff]  ;;  %v12250_v16 = vpack.c.bf16 %v9939_v17, %v9938_v2 }
0x1d51   : > { %4698 = vmatprep.mubr.f32.mxu1 %v4465_v7  ;;  %4773 = vmatprep.mubr.f32.mxu0 %v4467_v39  ;;  %v12248_v5 = vpack.c.bf16 %v9955_v63, %v9954_v58  ;;  %v12280_v7 = vpack.c.bf16 %v9987_v0, %v9986_v61  ;;  %v9970_v39 = vld [vmem:[%s17130_s13 + $0x760] sm:$0xff]  ;;  %v9988_v27 = vld [vmem:[%s17130_s13 + $0x7f0] sm:$0xff]  ;;  %v9973_v35 = vld [vmem:[%s17130_s13 + $0x778] sm:$0xff]  ;;  %v4381_v54 = vadd.f32 %v14933_v4, %v14863_v59 }
0x1d52   : > { %v9940_v24 = vld [vmem:[%s17130_s13 + $0x670] sm:$0xff]  ;;  %v4458_v41 = vadd.f32 %v14935_v3, %v14882_v14  ;;  %v4456_v49 = vadd.f32 %v14925_v11, %v4133_v25  ;;  %v10036_v4 = vld [vmem:[%s17131_s14 + $0x1] ss:$0 sm:$0xff] }
0x1d53   : > { %12235 = vmatpush3.bf16.msra.mxu1 %v12234_v45  ;;  %12267 = vmatpush3.bf16.msra.mxu0 %v12266_v55  ;;  %v9971_v45 = vld [vmem:[%s17130_s13 + $0x768] sm:$0xff]  ;;  %v9956_v55 = vld [vmem:[%s17130_s13 + $0x6f0] sm:$0xff] }
0x1d54   : > { %12237 = vmatprep.subr.bf16.mxu1 %v12236_v18  ;;  %12269 = vmatprep.subr.bf16.mxu0 %v12268_v15  ;;  %v9989_v18 = vld [vmem:[%s17130_s13 + $0x7f8] sm:$0xff]  ;;  %v4125_v15 = vrot.slane %v14827_v52, %v14081_v10  ;;  %v12282_v20 = vpack.c.bf16 %v9971_v45, %v9970_v39  ;;  %v12252_v26 = vpack.c.bf16 %v9957_v21, %v9956_v55 }
0x1d55   : > { %v12284_v29 = vpack.c.bf16 %v9989_v18, %v9988_v27 }
0x1d56   : > { %v4379_v48 = vadd.f32 %v14923_v9, %v4125_v15 }
0x1d57   : > { %12239 = vmatpush3.bf16.msra.mxu1 %v12238_v32  ;;  %12271 = vmatpush3.bf16.msra.mxu0 %v12270_v34  ;;  %v9941_v32 = vld [vmem:[%s17130_s13 + $0x678] sm:$0xff]  ;;  %v9972_v34 = vld [vmem:[%s17130_s13 + $0x770] sm:$0xff] }
0x1d58   : > { %12241 = vmatprep.subr.bf16.mxu1 %v12240_v33  ;;  %12273 = vmatprep.subr.bf16.mxu0 %v12272_v40  ;;  %v12254_v37 = vpack.c.bf16 %v9941_v32, %v9940_v24  ;;  %v12286_v52 = vpack.c.bf16 %v9973_v35, %v9972_v34  ;;  %v4373_v33 = vadd.f32 %v14896_v60, %v4125_v15  ;;  %v4475_v60 = vmax.f32 %v4458_v41, 0.0 }
0x1d59   : > { %v4450_v40 = vadd.f32 %v14898_v36, %v4133_v25  ;;  %v4472_v36 = vmax.f32 %v4379_v48, 0.0  ;;  %v10042_v48 = vld [vmem:[%s17241_s30 + $0x48] sm:$0xff] }
0x1d5a   : > { %v4464_v43 = vmax.f32 %v4373_v33, 0.0 }
0x1d5b   : > { %12243 = vmatpush3.bf16.msra.mxu1 %v12242_v53  ;;  %12275 = vmatpush3.bf16.msra.mxu0 %v12274_v12  ;;  %v4466_v47 = vmax.f32 %v4450_v40, 0.0  ;;  %v4473_v53 = vmax.f32 %v4381_v54, 0.0  ;;  %v4474_v12 = vmax.f32 %v4456_v49, 0.0 }
0x1d5c   : > { %12245 = vmatprep.subr.bf16.mxu1 %v12244_v6  ;;  %12277 = vmatprep.subr.bf16.mxu0 %v12276_v57 }
0x1d5f   : > { %12247 = vmatpush3.bf16.msra.mxu1 %v12246_v28  ;;  %12279 = vmatpush3.bf16.msra.mxu0 %v12278_v23 }
0x1d60   : > { %12249 = vmatprep.subr.bf16.mxu1 %v12248_v5  ;;  %12281 = vmatprep.subr.bf16.mxu0 %v12280_v7 }
0x1d63   : > { %12251 = vmatpush3.bf16.msra.mxu1 %v12250_v16  ;;  %12283 = vmatpush3.bf16.msra.mxu0 %v12282_v20 }
0x1d64   : > { %12253 = vmatprep.subr.bf16.mxu1 %v12252_v26  ;;  %12285 = vmatprep.subr.bf16.mxu0 %v12284_v29 }
0x1d67   : > { %12255 = vmatpush3.bf16.msra.mxu1 %v12254_v37  ;;  %12287 = vmatpush3.bf16.msra.mxu0 %v12286_v52 }
0x1d6a   : > { %4699 = vmatmul.mubr.f32.vlgmr.msra.gmra.mrb[48].mxu1 %v4464_v43  ;;  %4774 = vmatmul.mubr.f32.vlgmr.msra.gmra.mrb[50].mxu0 %v4466_v47 }
0x1d6b   : > { %4703 = vmatprep.mubr.f32.mxu1 %v4473_v53  ;;  %4778 = vmatprep.mubr.f32.mxu0 %v4475_v60  ;;  %v10043_v53 = vld [vmem:[%s17241_s30 + $0x50] sm:$0xff]  ;;  %v10044_v60 = vld [vmem:[%s17241_s30 + $0x58] sm:$0xff] }
0x1d6e   : > { %4704 = vmatmul.mubr.f32.gmra.mrb[50].mxu1 %v4472_v36  ;;  %4779 = vmatmul.mubr.f32.gmra.mrb[52].mxu0 %v4474_v12  ;;  %v12292_v36 = vpack.c.bf16 %v10044_v60, %v10043_v53 }
0x1e1d   : > { %v10833_v59 = vpop.f32.mrb[44].mxu1  ;;  %v10871_v14 = vpop.f32.mrb[46].mxu0 }
0x1e1e   : > { %v10834_v3 = vpop.f32.mrb[45].mxu1  ;;  %v10872_v9 = vpop.f32.mrb[47].mxu0 }
0x1e1f   : > { %v10835_v56 = vadd.f32 %v10834_v3, %v10833_v59  ;;  %v10873_v11 = vadd.f32 %v10872_v9, %v10871_v14 }
0x1e21   : > { %v4551_v51 = vadd.f32 %v10835_v56, %v10036_v4  ;;  %v10836_v6 = vpop.f32.mrb[46].mxu1  ;;  %v10874_v57 = vpop.f32.mrb[48].mxu0 }
0x1e22   : > { %v10837_v22 = vpop.f32.mrb[47].mxu1  ;;  %v10875_v19 = vpop.f32.mrb[49].mxu0 }
0x1e23   : > { %v4626_v58 = vadd.f32 %v10873_v11, %v4551_v51  ;;  %v10838_v63 = vadd.f32 %v10837_v22, %v10836_v6  ;;  %v10876_v61 = vadd.f32 %v10875_v19, %v10874_v57  ;;  %v10039_v11 = vld [vmem:[%s17132_s15 + $0x1] ss:$0 sm:$0xff] }
0x1e24   : > { %v10040_v6 = vld [vmem:[%s17133_s16 + $0x1] ss:$0 sm:$0xff] }
0x1e25   : > { %v4556_v0 = vadd.f32 %v10838_v63, %v10036_v4 }
0x1e27   : > { %v4631_v28 = vadd.f32 %v10876_v61, %v4556_v0  ;;  %v10210_v0 = vld [vmem:[%s17245_s9 + $0x2] ss:$0 sm:$0xff] }
0x1e3d   : > { %v10909_v23 = vpop.f32.mrb[48].mxu1  ;;  %v10947_v2 = vpop.f32.mrb[50].mxu0 }
0x1e3e   : > { %v10910_v17 = vpop.f32.mrb[49].mxu1  ;;  %v10948_v5 = vpop.f32.mrb[51].mxu0 }
0x1e3f   : > { %v10911_v7 = vadd.f32 %v10910_v17, %v10909_v23  ;;  %v10949_v39 = vadd.f32 %v10948_v5, %v10947_v2 }
0x1e41   : > { %v4701_v45 = vadd.f32 %v10911_v7, %v4626_v58  ;;  %v10912_v55 = vpop.f32.mrb[50].mxu1  ;;  %v10950_v21 = vpop.f32.mrb[52].mxu0 }
0x1e42   : > { %v10913_v27 = vpop.f32.mrb[51].mxu1  ;;  %v10951_v18 = vpop.f32.mrb[53].mxu0 }
0x1e43   : > { %v4776_v15 = vadd.f32 %v10949_v39, %v4701_v45  ;;  %v10914_v16 = vadd.f32 %v10913_v27, %v10912_v55  ;;  %v10952_v20 = vadd.f32 %v10951_v18, %v10950_v21 }
0x1e45   : > { %v4706_v24 = vadd.f32 %v10914_v16, %v4631_v28  ;;  %v4784_v25 = vadd.f32 %v4776_v15, %v14585_v42 }
0x1e47   : > { %v4781_v26 = vadd.f32 %v10952_v20, %v4706_v24  ;;  %v4790_v29 = vsel %vm1104_vm1, %v4784_v25, 0.0 }
0x1e48   : > { %4791 = vadd.xlane.f32.xlu1 %v4790_v29 }
0x1e49   : > { %v4785_v32 = vadd.f32 %v4781_v26, %v14614_v50  ;;  %v10041_v50 = vld [vmem:[%s17241_s30 + $0x40] sm:$0xff] }
0x1e4a   : > { %v12288_v49 = vpack.c.bf16 %v10042_v48, %v10041_v50 }
0x1e4b   : > { %v4793_v34 = vsel %vm1104_vm1, %v4785_v32, 0.0 }
0x1e4c   : > { %4794 = vadd.xlane.f32.xlu0 %v4793_v34  ;;  %12289 = vmatprep.subr.bf16.mxu1 %v12288_v49 }
0x1e4d   : > { %12291 = vmatpush3.bf16.msra.mxu1 %v12288_v49 }
0x1e4e   : > { %12293 = vmatprep.subr.bf16.mxu1 %v12292_v36 }
0x1e51   : > { %12295 = vmatpush3.bf16.msra.mxu1 %v12292_v36 }
0x1ed5   : > { %v4792_v35 = vpop.xlane.xlu1 %4791 }
0x1ed6   : > { %v4796_v37 = vmul.f32 0.03125, %v4792_v35 }
0x1ed8   : > { %v4798_v52 = vsub.f32 %v4784_v25, %v4796_v37 }
0x1ed9   : > { %v4795_v33 = vpop.xlane.xlu0 %4794 }
0x1eda   : > { %v4797_v40 = vmul.f32 0.03125, %v4795_v33  ;;  %v4800_v54 = vmul.f32 %v4798_v52, %v4798_v52 }
0x1edc   : > { %v4799_v41 = vsub.f32 %v4785_v32, %v4797_v40  ;;  %v4802_v43 = vsel %vm1104_vm1, %v4800_v54, 0.0 }
0x1edd   : > { %4803 = vadd.xlane.f32.xlu1 %v4802_v43 }
0x1ede   : > { %v4801_v42 = vmul.f32 %v4799_v41, %v4799_v41 }
0x1ee0   : > { %v4805_v47 = vsel %vm1104_vm1, %v4801_v42, 0.0 }
0x1ee1   : > { %4806 = vadd.xlane.f32.xlu0 %v4805_v47 }
0x1f6a   : > { %v4804_v12 = vpop.xlane.xlu1 %4803 }
0x1f6b   : > { %v4808_v59 = vmul.f32 0.03125, %v4804_v12 }
0x1f6d   : > { %v4810_v14 = vadd.f32 1e-05, %v4808_v59 }
0x1f6e   : > { %v4807_v4 = vpop.xlane.xlu0 %4806 }
0x1f6f   : > { %13170 = vrsqrt.f32 %v4810_v14  ;;  %v4809_v3 = vmul.f32 0.03125, %v4807_v4 }
0x1f71   : > { %v4811_v9 = vadd.f32 1e-05, %v4809_v3 }
0x1f73   : > { %13172 = vrsqrt.f32 %v4811_v9 }
0x1f79   : > { %v13171_v56 = vpop.eup %13170 }
0x1f7a   : > { %v4814_v51 = vmul.f32 %v13171_v56, %v4798_v52 }
0x1f7c   : > { %v4822_v57 = vmul.f32 %v10039_v11, %v4814_v51 }
0x1f7d   : > { %v13173_v22 = vpop.eup %13172 }
0x1f7e   : > { %v4815_v19 = vmul.f32 %v13173_v22, %v4799_v41  ;;  %v15078_v58 = vadd.f32 %v10040_v6, %v4822_v57 }
0x1f80   : > { %v4823_v63 = vmul.f32 %v10039_v11, %v4815_v19  ;;  %11634 = vmatprep.mubr.msk.f32.mxu1 %vm1104_vm1, %v15078_v58 }
0x1f82   : > { %v15082_v61 = vadd.f32 %v10040_v6, %v4823_v63 }
0x1f84   : > { %11635 = vmatmul.mubr.msk.f32.vlgmr.msra.gmra.mrb[52].mxu1 %vm1104_vm1, %v15082_v61 }
0x2057   : > { %v11636_v28 = vpop.f32.mrb[52].mxu1 }
0x2058   : > { %v15089_v23 = vadd.f32 %v11636_v28, %v10210_v0  ;;  %v5084_v2 = vpop.f32.mrb[53].mxu1 }
0x2059   : > { %v15091_v17 = vadd.f32 %v10210_v0, %v5084_v2 }
0x205b   : > { %11641 = vmatprep.mubr.msk.f32.mxu0 %vm1192_vm2, %v15091_v17  ;;  %v15097_v5 = vpack.i.bf16 %v15089_v23, %v15091_v17 }
0x205d   : > { %13015 = vrot.lane.b32.xlu1 %v15097_v5, %s17252_s7 }
0x2061   : > { %13020 = vrot.lane.b32.xlu1 %v15097_v5, %s17253_s2 }
0x2065   : > { %5291 = vrot.lane.b32.xlu1 %v15091_v17, %s17254_s29 }
0x2069   : > { %5293 = vrot.lane.b32.xlu1 %v15089_v23, %s17254_s29 }
0x20cf   : > { %v13016_v7 = vpop.permute.xlu1 %13015 }
0x20d0   : > { %v13018_v39 = vunpack.i.h.bf16 %v13016_v7  ;;  %v13017_v45 = vunpack.i.l.bf16 %v13016_v7 }
0x20d2   : > { %v12296_v55 = vpack.c.bf16 %v13018_v39, %v13017_v45 }
0x20d3   : > { %v13021_v21 = vpop.permute.xlu1 %13020 }
0x20d4   : > { %v13023_v27 = vunpack.i.h.bf16 %v13021_v21  ;;  %v13022_v18 = vunpack.i.l.bf16 %v13021_v21  ;;  %12298 = vmatprep.subr.msk.bf16.mxu0 %vm13593_vm3, %v12296_v55 }
0x20d5   : > { %12301 = vmatpush3.bf16.xpose.msk.msra.mxu0 %vm13593_vm3, %v12296_v55 }
0x20d6   : > { %v12302_v15 = vpack.c.bf16 %v13023_v27, %v13022_v18 }
0x20d7   : > { %v5292_v12 = vpop.permute.xlu1 %5291 }
0x20d8   : > { %12303 = vmatprep.subr.bf16.mxu1 %v12302_v15 }
0x20d9   : > { %12305 = vmatpush3.bf16.msra.mxu1 %v12302_v15 }
0x20db   : > { %v5294_v59 = vpop.permute.xlu1 %5293 }
0x20dc   : > { %11642 = vmatmul.mubr.msk.f32.vlgmr.msra.gmra.mrb[54].mxu0 %vm1192_vm2, %v15089_v23 }
0x21af   : > { %v11643_v16 = vpop.f32.mrb[54].mxu0 }
0x21b0   : > { %v5173_v20 = vpop.f32.mrb[55].mxu0  ;;  %v5185_v25 = vsel %vm1276_vm4, %v11643_v16, -inf }
0x21b1   : > { %v5182_v24 = vsel %vm1276_vm4, %v5173_v20, -inf }
0x21b2   : > { %5183 = vmax.xlane.f32.xlu0 %v5182_v24 }
0x21b6   : > { %5186 = vmax.xlane.f32.xlu0 %v5185_v25 }
0x223f   : > { %v5184_v26 = vpop.xlane.xlu0 %5183 }
0x2240   : > { %v5188_v29 = vsub.f32 %v5173_v20, %v5184_v26 }
0x2242   : > { %v5190_v35 = vmul.f32 1.442695, %v5188_v29 }
0x2243   : > { %v5187_v32 = vpop.xlane.xlu0 %5186 }
0x2244   : > { %v5189_v34 = vsub.f32 %v11643_v16, %v5187_v32 }
0x2246   : > { %v5192_v37 = vmul.f32 1.442695, %v5189_v34 }
0x2248   : > { %13174 = vpow2.f32 %v5192_v37 }
0x2249   : > { %13176 = vpow2.f32 %v5190_v35 }
0x2252   : > { %v13175_v52 = vpop.eup %13174 }
0x2253   : > { %v5197_v33 = vsel %vm1276_vm4, %v13175_v52, 0.0  ;;  %v13177_v40 = vpop.eup %13176 }
0x2254   : > { %5198 = vadd.xlane.f32.xlu0 %v5197_v33  ;;  %v5194_v54 = vsel %vm1276_vm4, %v13177_v40, 0.0 }
0x2258   : > { %5195 = vadd.xlane.f32.xlu0 %v5194_v54 }
0x226e   : > { %13025 = vrot.lane.b32.xlu0 %v15097_v5, %s17255_s1 }
0x22e1   : > { %v5199_v41 = vpop.xlane.xlu0 %5198 }
0x22e2   : > { %13178 = vrcp.f32 %v5199_v41 }
0x22e5   : > { %v5196_v43 = vpop.xlane.xlu0 %5195 }
0x22e6   : > { %13180 = vrcp.f32 %v5196_v43 }
0x22e9   : > { %v13026_v42 = vpop.permute.xlu0 %13025 }
0x22ea   : > { %v13028_v47 = vunpack.i.h.bf16 %v13026_v42  ;;  %v13027_v50 = vunpack.i.l.bf16 %v13026_v42 }
0x22ec   : > { %v12306_v48 = vpack.c.bf16 %v13028_v47, %v13027_v50  ;;  %v13179_v49 = vpop.eup %13178 }
0x22ed   : > { %v5203_v36 = vmul.f32 %v13179_v49, %v13175_v52 }
0x22ee   : > { %12308 = vmatprep.subr.msk.bf16.mxu1 %vm13593_vm3, %v12306_v48 }
0x22f0   : > { %v13181_v53 = vpop.eup %13180 }
0x22f1   : > { %v5202_v60 = vmul.f32 %v13181_v53, %v13177_v40 }
0x22f3   : > { %11648 = vmatprep.mubr.msk.f32.mxu1 %vm1276_vm4, %v5202_v60 }
0x22f4   : > { %11649 = vmatmul.mubr.msk.f32.vlgmr.msra.gmra.mrb[54].mxu1 %vm1276_vm4, %v5203_v36 }
0x22f5   : > { %12311 = vmatpush3.bf16.xpose.msk.msra.mxu1 %vm13593_vm3, %v12306_v48  ;;  %11655 = vmatprep.mubr.msk.f32.mxu1 %vm1192_vm2, %v5292_v12 }
0x22fc   : > { %11656 = vmatmul.mubr.msk.f32.vlgmr.msra.gmra.mrb[56].mxu1 %vm1192_vm2, %v5294_v59 }
0x23c7   : > { %v15127_v14 = vpop.f32.mrb[54].mxu1 }
0x23c8   : > { %v15129_v4 = vpop.f32.mrb[55].mxu1 }
0x23cf   : > { %v11657_v3 = vpop.f32.mrb[56].mxu1 }
0x23d0   : > { %v5373_v9 = vpop.f32.mrb[57].mxu1  ;;  %v5385_v56 = vsel %vm1276_vm4, %v11657_v3, -inf }
0x23d1   : > { %5386 = vmax.xlane.f32.xlu0 %v5385_v56  ;;  %v5382_v11 = vsel %vm1276_vm4, %v5373_v9, -inf }
0x23d2   : > { %5383 = vmax.xlane.f32.xlu1 %v5382_v11 }
0x23e3   : > { %13035 = vrot.lane.b32.xlu1 %v15097_v5, %s17256_s3 }
0x23e7   : > { %13030 = vrot.lane.b32.xlu0 %v15097_v5, %s17257_s6 }
0x23eb   : > { %5493 = vrot.lane.b32.xlu0 %v15089_v23, %s17258_s22 }
0x245e   : > { %v5387_v51 = vpop.xlane.xlu0 %5386 }
0x245f   : > { %v5389_v6 = vsub.f32 %v11657_v3, %v5387_v51  ;;  %v5384_v57 = vpop.xlane.xlu1 %5383 }
0x2460   : > { %v5388_v22 = vsub.f32 %v5373_v9, %v5384_v57 }
0x2461   : > { %v5392_v19 = vmul.f32 1.442695, %v5389_v6 }
0x2462   : > { %v5390_v63 = vmul.f32 1.442695, %v5388_v22  ;;  %v13031_v0 = vpop.permute.xlu0 %13030 }
0x2463   : > { %13182 = vpow2.f32 %v5392_v19  ;;  %v13033_v28 = vunpack.i.h.bf16 %v13031_v0  ;;  %v13032_v2 = vunpack.i.l.bf16 %v13031_v0  ;;  %v13036_v7 = vpop.permute.xlu1 %13035 }
0x2464   : > { %v13038_v39 = vunpack.i.h.bf16 %v13036_v7  ;;  %v13037_v45 = vunpack.i.l.bf16 %v13036_v7  ;;  %13184 = vpow2.f32 %v5390_v63 }
0x2465   : > { %v12312_v55 = vpack.c.bf16 %v13033_v28, %v13032_v2 }
0x2466   : > { %v12316_v21 = vpack.c.bf16 %v13038_v39, %v13037_v45  ;;  %v5494_v35 = vpop.permute.xlu0 %5493 }
0x2467   : > { %12313 = vmatprep.subr.bf16.mxu0 %v12312_v55 }
0x2468   : > { %12315 = vmatpush3.bf16.msra.mxu0 %v12312_v55 }
0x2469   : > { %12318 = vmatprep.subr.msk.bf16.mxu0 %vm13593_vm3, %v12316_v21 }
0x246d   : > { %v13183_v27 = vpop.eup %13182 }
0x246e   : > { %v5397_v18 = vsel %vm1276_vm4, %v13183_v27, 0.0  ;;  %v13185_v15 = vpop.eup %13184 }
0x246f   : > { %5398 = vadd.xlane.f32.xlu1 %v5397_v18  ;;  %v5394_v16 = vsel %vm1276_vm4, %v13185_v15, 0.0 }
0x2473   : > { %5395 = vadd.xlane.f32.xlu1 %v5394_v16 }
0x2484   : > { %5491 = vrot.lane.b32.xlu1 %v15091_v17, %s17258_s22 }
0x24fc   : > { %v5399_v20 = vpop.xlane.xlu1 %5398 }
0x24fd   : > { %13186 = vrcp.f32 %v5399_v20 }
0x2500   : > { %v5396_v24 = vpop.xlane.xlu1 %5395 }
0x2501   : > { %13188 = vrcp.f32 %v5396_v24 }
0x2504   : > { %v5492_v34 = vpop.permute.xlu1 %5491 }
0x2507   : > { %v13187_v25 = vpop.eup %13186 }
0x2508   : > { %v5403_v32 = vmul.f32 %v13187_v25, %v13183_v27 }
0x250b   : > { %v13189_v26 = vpop.eup %13188 }
0x250c   : > { %v5402_v29 = vmul.f32 %v13189_v26, %v13185_v15 }
0x250e   : > { %11662 = vmatprep.mubr.msk.f32.mxu0 %vm1276_vm4, %v5402_v29 }
0x250f   : > { %11663 = vmatmul.mubr.msk.f32.vlgmr.msra.gmra.mrb[56].mxu0 %vm1276_vm4, %v5403_v32 }
0x2510   : > { %12321 = vmatpush3.bf16.xpose.msk.msra.mxu0 %vm13593_vm3, %v12316_v21  ;;  %11669 = vmatprep.mubr.msk.f32.mxu0 %vm1192_vm2, %v5492_v34 }
0x2517   : > { %11670 = vmatmul.mubr.msk.f32.vlgmr.msra.gmra.mrb[58].mxu0 %vm1192_vm2, %v5494_v35 }
0x25e2   : > { %v15151_v37 = vpop.f32.mrb[56].mxu0 }
0x25e3   : > { %v15153_v52 = vpop.f32.mrb[57].mxu0 }
0x25ea   : > { %v11671_v33 = vpop.f32.mrb[58].mxu0 }
0x25eb   : > { %v5573_v40 = vpop.f32.mrb[59].mxu0  ;;  %v5585_v54 = vsel %vm1276_vm4, %v11671_v33, -inf }
0x25ec   : > { %5586 = vmax.xlane.f32.xlu0 %v5585_v54  ;;  %v5582_v41 = vsel %vm1276_vm4, %v5573_v40, -inf }
0x25ed   : > { %5583 = vmax.xlane.f32.xlu1 %v5582_v41 }
0x2679   : > { %v5587_v43 = vpop.xlane.xlu0 %5586 }
0x267a   : > { %v5589_v42 = vsub.f32 %v11671_v33, %v5587_v43  ;;  %v5584_v47 = vpop.xlane.xlu1 %5583 }
0x267b   : > { %v5588_v50 = vsub.f32 %v5573_v40, %v5584_v47 }
0x267c   : > { %v5592_v48 = vmul.f32 1.442695, %v5589_v42 }
0x267d   : > { %v5590_v49 = vmul.f32 1.442695, %v5588_v50  ;;  %v10046_v50 = vld [vmem:[%s17269_s18 + $0x48] sm:$0xff] }
0x267e   : > { %13190 = vpow2.f32 %v5592_v48  ;;  %v10047_v48 = vld [vmem:[%s17269_s18 + $0x50] sm:$0xff] }
0x267f   : > { %13192 = vpow2.f32 %v5590_v49 }
0x2688   : > { %v13191_v53 = vpop.eup %13190 }
0x2689   : > { %v13193_v60 = vpop.eup %13192  ;;  %v5597_v36 = vsel %vm1276_vm4, %v13191_v53, 0.0 }
0x268a   : > { %5598 = vadd.xlane.f32.xlu1 %v5597_v36  ;;  %v5594_v12 = vsel %vm1276_vm4, %v13193_v60, 0.0 }
0x268b   : > { %5595 = vadd.xlane.f32.xlu0 %v5594_v12 }
0x269b   : > { %13045 = vrot.lane.b32.xlu1 %v15097_v5, %s17259_s24 }
0x269f   : > { %5691 = vrot.lane.b32.xlu1 %v15091_v17, %s17260_s27 }
0x26a1   : > { %13040 = vrot.lane.b32.xlu0 %v15097_v5, %s17261_s28 }
0x26a5   : > { %5693 = vrot.lane.b32.xlu0 %v15089_v23, %s17260_s27 }
0x2717   : > { %v5599_v59 = vpop.xlane.xlu1 %5598 }
0x2718   : > { %13194 = vrcp.f32 %v5599_v59  ;;  %v5596_v3 = vpop.xlane.xlu0 %5595 }
0x2719   : > { %13196 = vrcp.f32 %v5596_v3 }
0x271b   : > { %v13046_v9 = vpop.permute.xlu1 %13045 }
0x271c   : > { %v13041_v56 = vpop.permute.xlu0 %13040  ;;  %v13048_v11 = vunpack.i.h.bf16 %v13046_v9  ;;  %v13047_v51 = vunpack.i.l.bf16 %v13046_v9 }
0x271d   : > { %v13043_v6 = vunpack.i.h.bf16 %v13041_v56  ;;  %v13042_v57 = vunpack.i.l.bf16 %v13041_v56 }
0x271e   : > { %v12326_v19 = vpack.c.bf16 %v13048_v11, %v13047_v51 }
0x271f   : > { %v12322_v22 = vpack.c.bf16 %v13043_v6, %v13042_v57  ;;  %v5692_v28 = vpop.permute.xlu1 %5691 }
0x2720   : > { %v5694_v2 = vpop.permute.xlu0 %5693 }
0x2721   : > { %12323 = vmatprep.subr.bf16.mxu1 %v12322_v22 }
0x2722   : > { %v13195_v17 = vpop.eup %13194  ;;  %12325 = vmatpush3.bf16.msra.mxu1 %v12322_v22 }
0x2723   : > { %v13197_v63 = vpop.eup %13196  ;;  %12328 = vmatprep.subr.msk.bf16.mxu1 %vm13593_vm3, %v12326_v19  ;;  %v5603_v0 = vmul.f32 %v13195_v17, %v13191_v53  ;;  %v10048_v53 = vld [vmem:[%s17269_s18 + $0x58] sm:$0xff] }
0x2724   : > { %v5602_v23 = vmul.f32 %v13197_v63, %v13193_v60  ;;  %v12340_v60 = vpack.c.bf16 %v10048_v53, %v10047_v48  ;;  %v10065_v48 = vld [vmem:[%s17128_s11 + $0x280] sm:$0xff] }
0x2726   : > { %11676 = vmatprep.mubr.msk.f32.mxu1 %vm1276_vm4, %v5602_v23 }
0x2727   : > { %11677 = vmatmul.mubr.msk.f32.vlgmr.msra.gmra.mrb[58].mxu1 %vm1276_vm4, %v5603_v0 }
0x2728   : > { %11683 = vmatprep.mubr.msk.f32.mxu1 %vm1192_vm2, %v5692_v28 }
0x272b   : > { %12331 = vmatpush3.bf16.xpose.msk.msra.mxu1 %vm13593_vm3, %v12326_v19 }
0x2732   : > { %11684 = vmatmul.mubr.msk.f32.vlgmr.msra.gmra.mrb[60].mxu1 %vm1192_vm2, %v5694_v2 }
0x2733   : > { %6171 = vmatprep.mubr.f32.mxu1 %v13334_v44 }
0x27fa   : > { %v11678_v7 = vpop.f32.mrb[58].mxu1 }
0x27fb   : > { %v5682_v39 = vpop.f32.mrb[59].mxu1 }
0x2805   : > { %v11685_v45 = vpop.f32.mrb[60].mxu1 }
0x2806   : > { %v5773_v55 = vpop.f32.mrb[61].mxu1  ;;  %v5785_v21 = vsel %vm1276_vm4, %v11685_v45, -inf }
0x2807   : > { %5786 = vmax.xlane.f32.xlu0 %v5785_v21  ;;  %v5782_v27 = vsel %vm1276_vm4, %v5773_v55, -inf }
0x2808   : > { %5783 = vmax.xlane.f32.xlu1 %v5782_v27 }
0x2894   : > { %v5787_v18 = vpop.xlane.xlu0 %5786 }
0x2895   : > { %v5789_v15 = vsub.f32 %v11685_v45, %v5787_v18  ;;  %v5784_v16 = vpop.xlane.xlu1 %5783 }
0x2896   : > { %v5788_v20 = vsub.f32 %v5773_v55, %v5784_v16 }
0x2897   : > { %v5792_v24 = vmul.f32 1.442695, %v5789_v15 }
0x2898   : > { %v5790_v25 = vmul.f32 1.442695, %v5788_v20 }
0x2899   : > { %13198 = vpow2.f32 %v5792_v24 }
0x289a   : > { %13200 = vpow2.f32 %v5790_v25  ;;  %v10050_v25 = vld [vmem:[%s17128_s11 + $0x208] sm:$0xff] }
0x28a3   : > { %v13199_v26 = vpop.eup %13198 }
0x28a4   : > { %v13201_v29 = vpop.eup %13200  ;;  %v5797_v32 = vsel %vm1276_vm4, %v13199_v26, 0.0 }
0x28a5   : > { %5798 = vadd.xlane.f32.xlu1 %v5797_v32  ;;  %v5794_v34 = vsel %vm1276_vm4, %v13201_v29, 0.0 }
0x28a6   : > { %5795 = vadd.xlane.f32.xlu0 %v5794_v34  ;;  %v10060_v34 = vld [vmem:[%s17128_s11 + $0x258] sm:$0xff] }
0x28b6   : > { %5893 = vrot.lane.b32.xlu1 %v15153_v52, %s17266_s10 }
0x28ba   : > { %5895 = vrot.lane.b32.xlu1 %v15151_v37, %s17266_s10 }
0x28bc   : > { %13050 = vrot.lane.b32.xlu0 %v15097_v5, %s17267_s5  ;;  %v10045_v5 = vld [vmem:[%s17269_s18 + $0x40] sm:$0xff]  ;;  %s17277_s18 = smov 24   ;;  %s17279_s5 = sld [smem:[#allocation23_spill]] }
0x28bd   : > { %v12336_v49 = vpack.c.bf16 %v10046_v50, %v10045_v5  ;;  %v10076_v50 = vld [vmem:[%s17128_s11 + $0x2d8] sm:$0xff] }
0x28be   : > { %5903 = vrot.lane.b32.xlu1 %v11678_v7, %s17268_s25 }
0x28c0   : > { %5901 = vrot.lane.b32.xlu0 %v5682_v39, %s17268_s25 }
0x2932   : > { %v5799_v35 = vpop.xlane.xlu1 %5798 }
0x2933   : > { %13202 = vrcp.f32 %v5799_v35  ;;  %v5796_v33 = vpop.xlane.xlu0 %5795  ;;  %v10049_v35 = vld [vmem:[%s17128_s11 + $0x200] sm:$0xff] }
0x2934   : > { %13204 = vrcp.f32 %v5796_v33  ;;  %v10057_v33 = vld [vmem:[%s17128_s11 + $0x240] sm:$0xff] }
0x2936   : > { %v5894_v59 = vpop.permute.xlu1 %5893 }
0x2937   : > { %v13051_v40 = vpop.permute.xlu0 %13050  ;;  %v5915_v11 = vsel %vm1192_vm2, %v15129_v4, %v5894_v59  ;;  %v10238_v4 = vld [vmem:[%s17271_s20 + $0x2] ss:$0 sm:$0xff]  ;;  %s17278_s20 = sld [smem:[#allocation22_spill]] }
0x2938   : > { %v13053_v54 = vunpack.i.h.bf16 %v13051_v40  ;;  %v13052_v41 = vunpack.i.l.bf16 %v13051_v40 }
0x293a   : > { %v12332_v43 = vpack.c.bf16 %v13053_v54, %v13052_v41  ;;  %v5896_v3 = vpop.permute.xlu1 %5895  ;;  %v12346_v54 = vpack.c.bf16 %v10057_v33, %v10049_v35  ;;  %v10051_v41 = vld [vmem:[%s17128_s11 + $0x210] sm:$0xff] }
0x293b   : > { %v5902_v56 = vpop.permute.xlu0 %5901  ;;  %v5916_v6 = vsel %vm1192_vm2, %v15127_v14, %v5896_v3  ;;  %v10054_v3 = vld [vmem:[%s17128_s11 + $0x228] sm:$0xff] }
0x293c   : > { %12333 = vmatprep.subr.bf16.mxu0 %v12332_v43  ;;  %v5917_v57 = vsel %vm1276_vm4, %v5915_v11, %v5902_v56  ;;  %v10056_v11 = vld [vmem:[%s17128_s11 + $0x238] sm:$0xff] }
0x293d   : > { %v13203_v52 = vpop.eup %13202  ;;  %12335 = vmatpush3.bf16.msra.mxu0 %v12332_v43  ;;  %v10059_v43 = vld [vmem:[%s17128_s11 + $0x250] sm:$0xff] }
0x293e   : > { %v13205_v42 = vpop.eup %13204  ;;  %v5803_v47 = vmul.f32 %v13203_v52, %v13199_v26  ;;  %12337 = vmatprep.subr.bf16.mxu0 %v12336_v49  ;;  %v5904_v9 = vpop.permute.xlu1 %5903  ;;  %v10058_v26 = vld [vmem:[%s17128_s11 + $0x248] sm:$0xff]  ;;  %v12354_v52 = vpack.c.bf16 %v10059_v43, %v10051_v41  ;;  %v10129_v41 = vld [vmem:[%s17130_s13 + $0x980] sm:$0xff] }
0x293f   : > { %v5802_v37 = vmul.f32 %v13205_v42, %v13201_v29  ;;  %v5918_v19 = vsel %vm1276_vm4, %v5916_v6, %v5904_v9  ;;  %v10052_v29 = vld [vmem:[%s17128_s11 + $0x218] sm:$0xff]  ;;  %v12344_v32 = vpack.c.bf16 %v10058_v26, %v10050_v25  ;;  %v10066_v42 = vld [vmem:[%s17128_s11 + $0x288] sm:$0xff] }
0x2940   : > { %v12352_v40 = vpack.c.bf16 %v10060_v34, %v10052_v29  ;;  %v10062_v9 = vld [vmem:[%s17128_s11 + $0x268] sm:$0xff]  ;;  %v10077_v29 = vld [vmem:[%s17128_s11 + $0x2e0] sm:$0xff]  ;;  %v10079_v34 = vld [vmem:[%s17128_s11 + $0x2f0] sm:$0xff] }
0x2941   : > { %11690 = vmatprep.mubr.msk.f32.mxu0 %vm1276_vm4, %v5802_v37  ;;  %12345 = vmatprep.subr.bf16.mxu1 %v12344_v32  ;;  %v10074_v37 = vld [vmem:[%s17128_s11 + $0x2c8] sm:$0xff]  ;;  %v12360_v56 = vpack.c.bf16 %v10062_v9, %v10054_v3  ;;  %v10071_v32 = vld [vmem:[%s17128_s11 + $0x2b0] sm:$0xff] }
0x2942   : > { %11691 = vmatmul.mubr.msk.f32.vlgmr.msra.gmra.mrb[60].mxu0 %vm1276_vm4, %v5803_v47  ;;  %12347 = vmatpush1.bf16.msra.mxu1 %v12346_v54  ;;  %v10068_v47 = vld [vmem:[%s17128_s11 + $0x298] sm:$0xff]  ;;  %v12348_v5 = vpack.c.bf16 %v10074_v37, %v10066_v42  ;;  %v10098_v54 = vld [vmem:[%s17130_s13 + $0x888] sm:$0xff]  ;;  %v12374_v42 = vpack.c.bf16 %v10079_v34, %v10071_v32  ;;  %v10105_v34 = vld [vmem:[%s17130_s13 + $0x8c0] sm:$0xff] }
0x2943   : > { %12339 = vmatpush3.bf16.msra.mxu0 %v12336_v49  ;;  %v10073_v49 = vld [vmem:[%s17128_s11 + $0x2c0] sm:$0xff]  ;;  %v12356_v53 = vpack.c.bf16 %v10076_v50, %v10068_v47  ;;  %v10130_v43 = vld [vmem:[%s17130_s13 + $0x988] sm:$0xff]  ;;  %v10120_v32 = vld [vmem:[%s17130_s13 + $0x938] sm:$0xff] }
0x2944   : > { %12341 = vmatprep.subr.bf16.mxu0 %v12340_v60  ;;  %12349 = vmatprep.subr.bf16.mxu1 %v12348_v5  ;;  %v10081_v47 = vld [vmem:[%s17130_s13 + $0x800] sm:$0xff]  ;;  %v10082_v5 = vld [vmem:[%s17130_s13 + $0x808] sm:$0xff] }
0x2945   : > { %v12378_v3 = vpack.c.bf16 %v10082_v5, %v10081_v47  ;;  %v10121_v47 = vld [vmem:[%s17130_s13 + $0x940] sm:$0xff]  ;;  %v10122_v5 = vld [vmem:[%s17130_s13 + $0x948] sm:$0xff] }
0x2947   : > { %12343 = vmatpush3.bf16.msra.mxu0 %v12340_v60  ;;  %v12350_v60 = vpack.c.bf16 %v10073_v49, %v10065_v48  ;;  %v12408_v48 = vpack.c.bf16 %v10130_v43, %v10129_v41  ;;  %v10113_v49 = vld [vmem:[%s17130_s13 + $0x900] sm:$0xff]  ;;  %v10090_v43 = vld [vmem:[%s17130_s13 + $0x848] sm:$0xff] }
0x2948   : > { %12353 = vmatprep.subr.bf16.mxu0 %v12352_v40  ;;  %v10089_v41 = vld [vmem:[%s17130_s13 + $0x840] sm:$0xff] }
0x2949   : > { %12351 = vmatpush1.bf16.msra.mxu1 %v12350_v60  ;;  %v10099_v60 = vld [vmem:[%s17130_s13 + $0x890] sm:$0xff] }
0x294a   : > { %12361 = vmatprep.subr.bf16.mxu1 %v12360_v56  ;;  %v10083_v56 = vld [vmem:[%s17130_s13 + $0x810] sm:$0xff] }
0x2a15   : > { %v11692_v36 = vpop.f32.mrb[60].mxu0 }
0x2a16   : > { %5911 = vrot.lane.b32.xlu1 %v11692_v36, %s17270_s21  ;;  %v5882_v12 = vpop.f32.mrb[61].mxu0  ;;  %v10067_v36 = vld [vmem:[%s17128_s11 + $0x290] sm:$0xff] }
0x2a17   : > { %5909 = vrot.lane.b32.xlu0 %v5882_v12, %s17270_s21  ;;  %v10075_v12 = vld [vmem:[%s17128_s11 + $0x2d0] sm:$0xff]  ;;  %s17272_s21 = sld [smem:[#allocation24_spill]] }
0x2a18   : > { %v12358_v59 = vpack.c.bf16 %v10075_v12, %v10067_v36  ;;  %v10100_v36 = vld [vmem:[%s17130_s13 + $0x898] sm:$0xff]  ;;  %v10131_v12 = vld [vmem:[%s17130_s13 + $0x990] sm:$0xff] }
0x2a88   : > { %v5912_v51 = vpop.permute.xlu1 %5911 }
0x2a89   : > { %v5910_v22 = vpop.permute.xlu0 %5909  ;;  %v5920_v63 = vsel %vm2014_vm5, %v5918_v19, %v5912_v51  ;;  %v10064_v51 = vld [vmem:[%s17128_s11 + $0x278] sm:$0xff] }
0x2a8a   : > { %v5919_v17 = vsel %vm2014_vm5, %v5917_v57, %v5910_v22  ;;  %v12368_v6 = vpack.c.bf16 %v10064_v51, %v10056_v11  ;;  %v10084_v11 = vld [vmem:[%s17130_s13 + $0x818] sm:$0xff]  ;;  %v12380_v51 = vpack.c.bf16 %v10100_v36, %v10099_v60  ;;  %v12394_v60 = vpack.c.bf16 %v10090_v43, %v10089_v41 }
0x2a8b   : > { %11701 = vmatprep.mubr.msk.f32.mxu0 %vm1104_vm1, %v5919_v17  ;;  %v12426_v36 = vpack.c.bf16 %v10122_v5, %v10121_v47  ;;  %v10146_v47 = vld [vmem:[%s17130_s13 + $0xa08] sm:$0xff] }
0x2a8c   : > { %11702 = vmatmul.mubr.msk.f32.vlgmr.msra.gmra.mrb[62].mxu0 %vm1104_vm1, %v5920_v63 }
0x2a8d   : > { %6248 = vmatprep.mubr.f32.mxu0 %v13334_v44  ;;  %12355 = vmatpush1.bf16.msra.mxu0 %v12354_v52 }
0x2a8e   : > { %12357 = vmatprep.subr.bf16.mxu0 %v12356_v53  ;;  %v10114_v53 = vld [vmem:[%s17130_s13 + $0x908] sm:$0xff] }
0x2a8f   : > { %v12410_v9 = vpack.c.bf16 %v10114_v53, %v10113_v49  ;;  %v10139_v49 = vld [vmem:[%s17130_s13 + $0x9d0] sm:$0xff]  ;;  %v10140_v53 = vld [vmem:[%s17130_s13 + $0x9d8] sm:$0xff] }
0x2a91   : > { %12359 = vmatpush1.bf16.msra.mxu0 %v12358_v59  ;;  %v10132_v59 = vld [vmem:[%s17130_s13 + $0x998] sm:$0xff] }
0x2a92   : > { %12369 = vmatprep.subr.bf16.mxu0 %v12368_v6  ;;  %v12412_v6 = vpack.c.bf16 %v10132_v59, %v10131_v12  ;;  %v10091_v12 = vld [vmem:[%s17130_s13 + $0x850] sm:$0xff]  ;;  %v10092_v59 = vld [vmem:[%s17130_s13 + $0x858] sm:$0xff] }
0x2b5f   : > { %v11703_v14 = vpop.f32.mrb[62].mxu0 }
0x2b60   : > { %v6007_v23 = vadd.f32 %v11703_v14, %v10238_v4  ;;  %v6001_v0 = vpop.f32.mrb[63].mxu0 }
0x2b61   : > { %v6002_v28 = vadd.f32 %v10238_v4, %v6001_v0  ;;  %v10053_v0 = vld [vmem:[%s17128_s11 + $0x220] sm:$0xff] }
0x2b62   : > { %v6011_v2 = vadd.f32 %v6007_v23, %v15082_v61  ;;  %v10243_v23 = vld [vmem:[%s17250_s4 + $0x2] ss:$0 sm:$0xff] }
0x2b63   : > { %v6010_v7 = vadd.f32 %v6002_v28, %v15078_v58 }
0x2b64   : > { %v6019_v39 = vsel %vm1104_vm1, %v6011_v2, 0.0 }
0x2b65   : > { %6020 = vadd.xlane.f32.xlu1 %v6019_v39  ;;  %v6016_v45 = vsel %vm1104_vm1, %v6010_v7, 0.0  ;;  %v10063_v39 = vld [vmem:[%s17128_s11 + $0x270] sm:$0xff] }
0x2b66   : > { %6017 = vadd.xlane.f32.xlu0 %v6016_v45  ;;  %v10244_v45 = vld [vmem:[%s17272_s21 + $0x2] ss:$0 sm:$0xff]  ;;  %s17297_s21 = sld [smem:[#allocation32_spill]] }
0x2bf2   : > { %v6021_v55 = vpop.xlane.xlu1 %6020 }
0x2bf3   : > { %v6023_v21 = vmul.f32 0.03125, %v6021_v55  ;;  %v6018_v27 = vpop.xlane.xlu0 %6017  ;;  %v10070_v55 = vld [vmem:[%s17128_s11 + $0x2a8] sm:$0xff] }
0x2bf4   : > { %v6022_v18 = vmul.f32 0.03125, %v6018_v27  ;;  %v10078_v27 = vld [vmem:[%s17128_s11 + $0x2e8] sm:$0xff] }
0x2bf5   : > { %v15222_v15 = vsub.f32 %v6011_v2, %v6023_v21  ;;  %v10061_v2 = vld [vmem:[%s17128_s11 + $0x260] sm:$0xff]  ;;  %v12364_v35 = vpack.c.bf16 %v10078_v27, %v10070_v55  ;;  %v10103_v55 = vld [vmem:[%s17130_s13 + $0x8b0] sm:$0xff] }
0x2bf6   : > { %v6024_v16 = vsub.f32 %v6010_v7, %v6022_v18  ;;  %v10055_v7 = vld [vmem:[%s17128_s11 + $0x230] sm:$0xff]  ;;  %v10072_v18 = vld [vmem:[%s17128_s11 + $0x2b8] sm:$0xff] }
0x2bf7   : > { %v6027_v61 = vmul.f32 %v15222_v15, %v15222_v15  ;;  %v10135_v27 = vld [vmem:[%s17130_s13 + $0x9b0] sm:$0xff] }
0x2bf8   : > { %v6026_v20 = vmul.f32 %v6024_v16, %v6024_v16 }
0x2bf9   : > { %v6031_v58 = vsel %vm1104_vm1, %v6027_v61, 0.0  ;;  %v12370_v61 = vpack.c.bf16 %v10063_v39, %v10055_v7  ;;  %v10117_v39 = vld [vmem:[%s17130_s13 + $0x920] sm:$0xff] }
0x2bfa   : > { %v6028_v24 = vsel %vm1104_vm1, %v6026_v20, 0.0 }
0x2bfb   : > { %6029 = vadd.xlane.f32.xlu0 %v6028_v24  ;;  %v12362_v24 = vpack.c.bf16 %v10061_v2, %v10053_v0  ;;  %v10085_v0 = vld [vmem:[%s17130_s13 + $0x820] sm:$0xff] }
0x2bff   : > { %6032 = vadd.xlane.f32.xlu0 %v6031_v58  ;;  %v10069_v58 = vld [vmem:[%s17128_s11 + $0x2a0] sm:$0xff] }
0x2c00   : > { %v12366_v52 = vpack.c.bf16 %v10077_v29, %v10069_v58  ;;  %v10119_v29 = vld [vmem:[%s17130_s13 + $0x930] sm:$0xff] }
0x2c88   : > { %v6030_v57 = vpop.xlane.xlu0 %6029 }
0x2c89   : > { %v6034_v22 = vmul.f32 0.03125, %v6030_v57  ;;  %v10115_v57 = vld [vmem:[%s17130_s13 + $0x910] sm:$0xff] }
0x2c8b   : > { %v6036_v19 = vadd.f32 1e-05, %v6034_v22  ;;  %v10116_v22 = vld [vmem:[%s17130_s13 + $0x918] sm:$0xff] }
0x2c8c   : > { %v6033_v17 = vpop.xlane.xlu0 %6032 }
0x2c8d   : > { %13206 = vrsqrt.f32 %v6036_v19  ;;  %v6035_v63 = vmul.f32 0.03125, %v6033_v17  ;;  %v10101_v19 = vld [vmem:[%s17130_s13 + $0x8a0] sm:$0xff]  ;;  %v10102_v17 = vld [vmem:[%s17130_s13 + $0x8a8] sm:$0xff] }
0x2c8e   : > { %v12384_v2 = vpack.c.bf16 %v10102_v17, %v10101_v19  ;;  %v12398_v19 = vpack.c.bf16 %v10092_v59, %v10091_v12 }
0x2c8f   : > { %v6037_v4 = vadd.f32 1e-05, %v6035_v63  ;;  %v10133_v63 = vld [vmem:[%s17130_s13 + $0x9a0] sm:$0xff] }
0x2c91   : > { %13208 = vrsqrt.f32 %v6037_v4  ;;  %v10134_v4 = vld [vmem:[%s17130_s13 + $0x9a8] sm:$0xff] }
0x2c92   : > { %v12416_v7 = vpack.c.bf16 %v10134_v4, %v10133_v63  ;;  %v10093_v63 = vld [vmem:[%s17130_s13 + $0x860] sm:$0xff] }
0x2c97   : > { %v13207_v14 = vpop.eup %13206 }
0x2c98   : > { %v6040_v28 = vmul.f32 %v13207_v14, %v6024_v16  ;;  %v10080_v16 = vld [vmem:[%s17128_s11 + $0x2f8] sm:$0xff]  ;;  %v12382_v14 = vpack.c.bf16 %v10084_v11, %v10083_v56  ;;  %v10123_v56 = vld [vmem:[%s17130_s13 + $0x950] sm:$0xff] }
0x2c99   : > { %v12372_v33 = vpack.c.bf16 %v10080_v16, %v10072_v18  ;;  %v10136_v18 = vld [vmem:[%s17130_s13 + $0x9b8] sm:$0xff] }
0x2c9a   : > { %v6048_v21 = vmul.f32 %v10243_v23, %v6040_v28  ;;  %v10086_v28 = vld [vmem:[%s17130_s13 + $0x828] sm:$0xff]  ;;  %v10124_v11 = vld [vmem:[%s17130_s13 + $0x958] sm:$0xff] }
0x2c9b   : > { %v13209_v20 = vpop.eup %13208  ;;  %v12386_v16 = vpack.c.bf16 %v10086_v28, %v10085_v0  ;;  %v12430_v17 = vpack.c.bf16 %v10124_v11, %v10123_v56  ;;  %v10125_v0 = vld [vmem:[%s17130_s13 + $0x960] sm:$0xff]  ;;  %v10126_v28 = vld [vmem:[%s17130_s13 + $0x968] sm:$0xff]  ;;  %v10196_v56 = vld [vmem:[%s17130_s13 + $0xb98] sm:$0xff] }
0x2c9c   : > { %v6041_v25 = vmul.f32 %v13209_v20, %v15222_v15  ;;  %v15322_v26 = vadd.f32 %v10244_v45, %v6048_v21  ;;  %v10097_v15 = vld [vmem:[%s17130_s13 + $0x880] sm:$0xff]  ;;  %v10104_v21 = vld [vmem:[%s17130_s13 + $0x8b8] sm:$0xff] }
0x2c9d   : > { %v12376_v50 = vpack.c.bf16 %v10098_v54, %v10097_v15  ;;  %v12388_v58 = vpack.c.bf16 %v10104_v21, %v10103_v55  ;;  %v10138_v15 = vld [vmem:[%s17130_s13 + $0x9c8] sm:$0xff]  ;;  %v12422_v54 = vpack.c.bf16 %v10120_v32, %v10119_v29  ;;  %v10143_v55 = vld [vmem:[%s17130_s13 + $0x9f0] sm:$0xff]  ;;  %v10161_v29 = vld [vmem:[%s17130_s13 + $0xa80] sm:$0xff] }
0x2c9e   : > { %10246 = vmatmul.mubr.msk.f32.vlgmr.msra.gmra.mrb[62].mxu1 %vm1104_vm1, %v15322_v26  ;;  %10248 = vmatmul.mubr.msk.f32.vlgmr.msra.gmra.mrb[64].mxu0 %vm1104_vm1, %v15322_v26  ;;  %v6049_v40 = vmul.f32 %v10243_v23, %v6041_v25  ;;  %v12414_v23 = vpack.c.bf16 %v10116_v22, %v10115_v57  ;;  %v12420_v25 = vpack.c.bf16 %v10136_v18, %v10135_v27  ;;  %v10141_v57 = vld [vmem:[%s17130_s13 + $0x9e0] sm:$0xff]  ;;  %v10142_v22 = vld [vmem:[%s17130_s13 + $0x9e8] sm:$0xff]  ;;  %v10144_v27 = vld [vmem:[%s17130_s13 + $0x9f8] sm:$0xff] }
0x2c9f   : > { %12363 = vmatpush1.bf16.msra.mxu1 %v12362_v24  ;;  %12371 = vmatpush1.bf16.msra.mxu0 %v12370_v61  ;;  %v10087_v24 = vld [vmem:[%s17130_s13 + $0x830] sm:$0xff]  ;;  %v10088_v61 = vld [vmem:[%s17130_s13 + $0x838] sm:$0xff]  ;;  %v10162_v32 = vld [vmem:[%s17130_s13 + $0xa88] sm:$0xff] }
0x2ca0   : > { %6177 = vmatprep.mubr.f32.mxu1 %v13334_v44  ;;  %6254 = vmatprep.mubr.f32.mxu0 %v13334_v44  ;;  %v15351_v37 = vadd.f32 %v10244_v45, %v6049_v40  ;;  %v10118_v45 = vld [vmem:[%s17130_s13 + $0x928] sm:$0xff]  ;;  %v12390_v40 = vpack.c.bf16 %v10088_v61, %v10087_v24  ;;  %v10095_v18 = vld [vmem:[%s17130_s13 + $0x870] sm:$0xff] }
0x2ca1   : > { %12365 = vmatprep.subr.bf16.mxu1 %v12364_v35  ;;  %12373 = vmatprep.subr.bf16.mxu0 %v12372_v33  ;;  %v12418_v20 = vpack.c.bf16 %v10118_v45, %v10117_v39  ;;  %v10106_v35 = vld [vmem:[%s17130_s13 + $0x8c8] sm:$0xff]  ;;  %v10137_v33 = vld [vmem:[%s17130_s13 + $0x9c0] sm:$0xff]  ;;  %v10111_v39 = vld [vmem:[%s17130_s13 + $0x8f0] sm:$0xff] }
0x2ca2   : > { %10247 = vmatmul.mubr.msk.f32.gmra.mrb[64].mxu1 %vm1104_vm1, %v15351_v37  ;;  %10249 = vmatmul.mubr.msk.f32.gmra.mrb[66].mxu0 %vm1104_vm1, %v15351_v37  ;;  %v10112_v45 = vld [vmem:[%s17130_s13 + $0x8f8] sm:$0xff]  ;;  %v10127_v61 = vld [vmem:[%s17130_s13 + $0x970] sm:$0xff] }
0x2ca3   : > { %12367 = vmatpush1.bf16.msra.mxu1 %v12366_v52  ;;  %12375 = vmatpush1.bf16.msra.mxu0 %v12374_v42  ;;  %v12392_v52 = vpack.c.bf16 %v10106_v35, %v10105_v34  ;;  %v12424_v42 = vpack.c.bf16 %v10138_v15, %v10137_v33  ;;  %v12404_v21 = vpack.c.bf16 %v10112_v45, %v10111_v39  ;;  %v10193_v34 = vld [vmem:[%s17130_s13 + $0xb80] sm:$0xff]  ;;  %v10194_v33 = vld [vmem:[%s17130_s13 + $0xb88] sm:$0xff] }
0x2ca4   : > { %6325 = vmatprep.mubr.f32.mxu1 %v13334_v44  ;;  %6402 = vmatprep.mubr.f32.mxu0 %v13334_v44  ;;  %v12440_v35 = vpack.c.bf16 %v10162_v32, %v10161_v29  ;;  %v12472_v15 = vpack.c.bf16 %v10194_v33, %v10193_v34  ;;  %v10198_v29 = vld [vmem:[%s17130_s13 + $0xba8] sm:$0xff]  ;;  %v10149_v32 = vld [vmem:[%s17130_s13 + $0xa20] sm:$0xff] }
0x2ca5   : > { %12377 = vmatprep.subr.bf16.mxu1 %v12376_v50  ;;  %12409 = vmatprep.subr.bf16.mxu0 %v12408_v48  ;;  %v10107_v50 = vld [vmem:[%s17130_s13 + $0x8d0] sm:$0xff]  ;;  %v10108_v48 = vld [vmem:[%s17130_s13 + $0x8d8] sm:$0xff] }
0x2ca6   : > { %10250 = vmatmul.mubr.msk.f32.vlgmr.msra.gmra.mrb[66].mxu1 %vm1104_vm1, %v15322_v26  ;;  %10252 = vmatmul.mubr.msk.f32.vlgmr.msra.gmra.mrb[68].mxu0 %vm1104_vm1, %v15322_v26 }
0x2ca7   : > { %6331 = vmatprep.mubr.f32.mxu1 %v13334_v44  ;;  %6408 = vmatprep.mubr.f32.mxu0 %v13334_v44 }
0x2ca8   : > { %12379 = vmatpush3.bf16.msra.mxu1 %v12378_v3  ;;  %12411 = vmatpush3.bf16.msra.mxu0 %v12410_v9  ;;  %v12396_v3 = vpack.c.bf16 %v10108_v48, %v10107_v50  ;;  %v12428_v9 = vpack.c.bf16 %v10140_v53, %v10139_v49  ;;  %v10177_v48 = vld [vmem:[%s17130_s13 + $0xb00] sm:$0xff]  ;;  %v10178_v49 = vld [vmem:[%s17130_s13 + $0xb08] sm:$0xff]  ;;  %v10163_v53 = vld [vmem:[%s17130_s13 + $0xa90] sm:$0xff] }
0x2ca9   : > { %12381 = vmatprep.subr.bf16.mxu1 %v12380_v51  ;;  %12413 = vmatprep.subr.bf16.mxu0 %v12412_v6  ;;  %v10109_v51 = vld [vmem:[%s17130_s13 + $0x8e0] sm:$0xff]  ;;  %v10110_v6 = vld [vmem:[%s17130_s13 + $0x8e8] sm:$0xff] }
0x2caa   : > { %10251 = vmatmul.mubr.msk.f32.gmra.mrb[68].mxu1 %vm1104_vm1, %v15351_v37  ;;  %10253 = vmatmul.mubr.msk.f32.gmra.mrb[70].mxu0 %vm1104_vm1, %v15351_v37  ;;  %v12400_v4 = vpack.c.bf16 %v10110_v6, %v10109_v51 }
0x2cac   : > { %12383 = vmatpush3.bf16.msra.mxu1 %v12382_v14  ;;  %12415 = vmatpush3.bf16.msra.mxu0 %v12414_v23  ;;  %v12432_v14 = vpack.c.bf16 %v10142_v22, %v10141_v57  ;;  %v10094_v23 = vld [vmem:[%s17130_s13 + $0x868] sm:$0xff]  ;;  %v12474_v57 = vpack.c.bf16 %v10178_v49, %v10177_v48 }
0x2cad   : > { %12385 = vmatprep.subr.bf16.mxu1 %v12384_v2  ;;  %12417 = vmatprep.subr.bf16.mxu0 %v12416_v7  ;;  %v12402_v2 = vpack.c.bf16 %v10094_v23, %v10093_v63  ;;  %v12434_v7 = vpack.c.bf16 %v10126_v28, %v10125_v0  ;;  %v10148_v28 = vld [vmem:[%s17130_s13 + $0xa18] sm:$0xff] }
0x2cb0   : > { %12387 = vmatpush3.bf16.msra.mxu1 %v12386_v16  ;;  %12419 = vmatpush3.bf16.msra.mxu0 %v12418_v20  ;;  %v10096_v16 = vld [vmem:[%s17130_s13 + $0x878] sm:$0xff]  ;;  %v12436_v20 = vpack.c.bf16 %v10144_v27, %v10143_v55 }
0x2cb1   : > { %12389 = vmatprep.subr.bf16.mxu1 %v12388_v58  ;;  %12421 = vmatprep.subr.bf16.mxu0 %v12420_v25  ;;  %v12406_v24 = vpack.c.bf16 %v10096_v16, %v10095_v18  ;;  %v10128_v58 = vld [vmem:[%s17130_s13 + $0x978] sm:$0xff]  ;;  %v10165_v16 = vld [vmem:[%s17130_s13 + $0xaa0] sm:$0xff] }
0x2cb2   : > { %v12438_v25 = vpack.c.bf16 %v10128_v58, %v10127_v61  ;;  %v10180_v18 = vld [vmem:[%s17130_s13 + $0xb18] sm:$0xff]  ;;  %v10166_v58 = vld [vmem:[%s17130_s13 + $0xaa8] sm:$0xff] }
0x2cb3   : > { %v12448_v48 = vpack.c.bf16 %v10166_v58, %v10165_v16  ;;  %v10154_v16 = vld [vmem:[%s17130_s13 + $0xa48] sm:$0xff]  ;;  %v10185_v58 = vld [vmem:[%s17130_s13 + $0xb40] sm:$0xff] }
0x2cb4   : > { %12391 = vmatpush3.bf16.msra.mxu1 %v12390_v40  ;;  %12423 = vmatpush3.bf16.msra.mxu0 %v12422_v54  ;;  %v15564_v40 = vld [vmem:[%s17129_s12 + $0x10] sm:$0xff] }
0x2cb5   : > { %12393 = vmatprep.subr.bf16.mxu1 %v12392_v52  ;;  %12425 = vmatprep.subr.bf16.mxu0 %v12424_v42  ;;  %v6064_v54 = vrot.slane %v15564_v40, %v14055_v13  ;;  %v6072_v41 = vrot.slane %v15564_v40, %v14174_v30  ;;  %v6068_v43 = vrot.slane %v15564_v40, %v14063_v62  ;;  %v10145_v42 = vld [vmem:[%s17130_s13 + $0xa00] sm:$0xff] }
0x2cb6   : > { %v6076_v52 = vrot.slane %v15564_v40, %v14070_v1  ;;  %v12442_v6 = vpack.c.bf16 %v10146_v47, %v10145_v42  ;;  %v15600_v22 = vrot.slane %v15564_v40, %v14088_v8  ;;  %v15619_v61 = vrot.slane %v15564_v40, %v14197_v46 }
0x2cb8   : > { %12395 = vmatpush3.bf16.msra.mxu1 %v12394_v60  ;;  %12427 = vmatpush3.bf16.msra.mxu0 %v12426_v36 }
0x2cb9   : > { %12397 = vmatprep.subr.bf16.mxu1 %v12396_v3  ;;  %12429 = vmatprep.subr.bf16.mxu0 %v12428_v9  ;;  %v10164_v3 = vld [vmem:[%s17130_s13 + $0xa98] sm:$0xff]  ;;  %v10195_v9 = vld [vmem:[%s17130_s13 + $0xb90] sm:$0xff] }
0x2cba   : > { %v12444_v23 = vpack.c.bf16 %v10164_v3, %v10163_v53  ;;  %v12476_v0 = vpack.c.bf16 %v10196_v56, %v10195_v9  ;;  %v10182_v53 = vld [vmem:[%s17130_s13 + $0xb28] sm:$0xff]  ;;  %v10199_v3 = vld [vmem:[%s17130_s13 + $0xbb0] sm:$0xff]  ;;  %v10200_v9 = vld [vmem:[%s17130_s13 + $0xbb8] sm:$0xff] }
0x2cbc   : > { %12399 = vmatpush3.bf16.msra.mxu1 %v12398_v19  ;;  %12431 = vmatpush3.bf16.msra.mxu0 %v12430_v17  ;;  %v10147_v19 = vld [vmem:[%s17130_s13 + $0xa10] sm:$0xff] }
0x2cbd   : > { %12401 = vmatprep.subr.bf16.mxu1 %v12400_v4  ;;  %12433 = vmatprep.subr.bf16.mxu0 %v12432_v14 }
0x2cc0   : > { %12403 = vmatpush3.bf16.msra.mxu1 %v12402_v2  ;;  %12435 = vmatpush3.bf16.msra.mxu0 %v12434_v7  ;;  %v10179_v2 = vld [vmem:[%s17130_s13 + $0xb10] sm:$0xff] }
0x2cc1   : > { %12405 = vmatprep.subr.bf16.mxu1 %v12404_v21  ;;  %12437 = vmatprep.subr.bf16.mxu0 %v12436_v20 }
0x2cc4   : > { %12407 = vmatpush3.bf16.msra.mxu1 %v12406_v24  ;;  %12439 = vmatpush3.bf16.msra.mxu0 %v12438_v25  ;;  %v10197_v25 = vld [vmem:[%s17130_s13 + $0xba0] sm:$0xff] }
0x2cc5   : > { %12441 = vmatprep.subr.bf16.mxu1 %v12440_v35  ;;  %12473 = vmatprep.subr.bf16.mxu0 %v12472_v15  ;;  %v12480_v49 = vpack.c.bf16 %v10198_v29, %v10197_v25  ;;  %v10186_v25 = vld [vmem:[%s17130_s13 + $0xb48] sm:$0xff]  ;;  %v10171_v29 = vld [vmem:[%s17130_s13 + $0xad0] sm:$0xff] }
0x2d71   : > { %v6173_v5 = vpop.f32.mrb[62].mxu1  ;;  %v6250_v50 = vpop.f32.mrb[64].mxu0 }
0x2d72   : > { %v6174_v60 = vadd.f32 %v6173_v5, %v6064_v54  ;;  %v6251_v36 = vadd.f32 %v6250_v50, %v6072_v41  ;;  %v6175_v12 = vpop.f32.mrb[63].mxu1  ;;  %v6252_v59 = vpop.f32.mrb[65].mxu0 }
0x2d73   : > { %v6176_v11 = vadd.f32 %v6175_v12, %v6068_v43  ;;  %v6253_v51 = vadd.f32 %v6252_v59, %v6076_v52  ;;  %v10168_v59 = vld [vmem:[%s17130_s13 + $0xab8] sm:$0xff] }
0x2d74   : > { %v6415_v7 = vmax.f32 %v6174_v60, 0.0  ;;  %v6417_v39 = vmax.f32 %v6251_v36, 0.0  ;;  %v10167_v60 = vld [vmem:[%s17130_s13 + $0xab0] sm:$0xff] }
0x2d75   : > { %v6416_v17 = vmax.f32 %v6176_v11, 0.0  ;;  %v6418_v63 = vmax.f32 %v6253_v51, 0.0  ;;  %v6179_v4 = vpop.f32.mrb[64].mxu1  ;;  %v6256_v14 = vpop.f32.mrb[66].mxu0 }
0x2d76   : > { %v6180_v45 = vadd.f32 %v6179_v4, %v6064_v54  ;;  %v6257_v55 = vadd.f32 %v6256_v14, %v6072_v41  ;;  %v6181_v21 = vpop.f32.mrb[65].mxu1  ;;  %v6258_v27 = vpop.f32.mrb[67].mxu0  ;;  %v12446_v54 = vpack.c.bf16 %v10148_v28, %v10147_v19  ;;  %v12478_v41 = vpack.c.bf16 %v10180_v18, %v10179_v2  ;;  %v10183_v28 = vld [vmem:[%s17130_s13 + $0xb30] sm:$0xff]  ;;  %v10184_v2 = vld [vmem:[%s17130_s13 + $0xb38] sm:$0xff]  ;;  %v10153_v18 = vld [vmem:[%s17130_s13 + $0xa40] sm:$0xff] }
0x2d77   : > { %v6182_v20 = vadd.f32 %v6181_v21, %v6068_v43  ;;  %v6259_v24 = vadd.f32 %v6258_v27, %v6076_v52  ;;  %6503 = vmatprep.mubr.f32.mxu1 %v6416_v17  ;;  %6578 = vmatprep.mubr.f32.mxu0 %v6418_v63  ;;  %v10150_v43 = vld [vmem:[%s17130_s13 + $0xa28] sm:$0xff]  ;;  %v10181_v52 = vld [vmem:[%s17130_s13 + $0xb20] sm:$0xff]  ;;  %v10151_v17 = vld [vmem:[%s17130_s13 + $0xa30] sm:$0xff]  ;;  %v12486_v27 = vpack.c.bf16 %v10184_v2, %v10183_v28 }
0x2d78   : > { %6504 = vmatmul.mubr.f32.vlgmr.msra.gmra.mrb[70].mxu1 %v6415_v7  ;;  %6579 = vmatmul.mubr.f32.vlgmr.msra.gmra.mrb[72].mxu0 %v6417_v39  ;;  %v6423_v42 = vmax.f32 %v6180_v45, 0.0  ;;  %v6425_v47 = vmax.f32 %v6257_v55, 0.0  ;;  %v12482_v19 = vpack.c.bf16 %v10182_v53, %v10181_v52  ;;  %v10152_v63 = vld [vmem:[%s17130_s13 + $0xa38] sm:$0xff]  ;;  %v10169_v7 = vld [vmem:[%s17130_s13 + $0xac0] sm:$0xff]  ;;  %v10170_v39 = vld [vmem:[%s17130_s13 + $0xac8] sm:$0xff] }
0x2d79   : > { %v6424_v34 = vmax.f32 %v6182_v20, 0.0  ;;  %v6426_v35 = vmax.f32 %v6259_v24, 0.0  ;;  %12443 = vmatpush3.bf16.msra.mxu1 %v12442_v6  ;;  %12475 = vmatpush3.bf16.msra.mxu0 %v12474_v57  ;;  %v15633_v33 = vpop.f32.mrb[66].mxu1  ;;  %v15635_v15 = vpop.f32.mrb[68].mxu0  ;;  %v12450_v57 = vpack.c.bf16 %v10150_v43, %v10149_v32  ;;  %v10201_v45 = vld [vmem:[%s17130_s13 + $0xbc0] sm:$0xff]  ;;  %v10202_v55 = vld [vmem:[%s17130_s13 + $0xbc8] sm:$0xff]  ;;  %v12454_v21 = vpack.c.bf16 %v10152_v63, %v10151_v17 }
0x2d7a   : > { %v6329_v5 = vpop.f32.mrb[67].mxu1  ;;  %v6406_v50 = vpop.f32.mrb[69].mxu0  ;;  %12445 = vmatprep.subr.bf16.mxu1 %v12444_v23  ;;  %12477 = vmatprep.subr.bf16.mxu0 %v12476_v0  ;;  %v12452_v23 = vpack.c.bf16 %v10168_v59, %v10167_v60  ;;  %v12484_v0 = vpack.c.bf16 %v10200_v9, %v10199_v3  ;;  %v12456_v20 = vpack.c.bf16 %v10170_v39, %v10169_v7  ;;  %v10172_v32 = vld [vmem:[%s17130_s13 + $0xad8] sm:$0xff]  ;;  %v10155_v43 = vld [vmem:[%s17130_s13 + $0xa50] sm:$0xff]  ;;  %v10205_v53 = vld [vmem:[%s17130_s13 + $0xbe0] sm:$0xff] }
0x2d7b   : > { %v6330_v36 = vadd.f32 %v6329_v5, %v15600_v22  ;;  %v6407_v12 = vadd.f32 %v6406_v50, %v15619_v61  ;;  %6508 = vmatprep.mubr.f32.mxu1 %v6424_v34  ;;  %6583 = vmatprep.mubr.f32.mxu0 %v6426_v35  ;;  %v12488_v24 = vpack.c.bf16 %v10202_v55, %v10201_v45  ;;  %v10203_v34 = vld [vmem:[%s17130_s13 + $0xbd0] sm:$0xff]  ;;  %v10204_v35 = vld [vmem:[%s17130_s13 + $0xbd8] sm:$0xff]  ;;  %v10206_v60 = vld [vmem:[%s17130_s13 + $0xbe8] sm:$0xff] }
0x2d7c   : > { %6509 = vmatmul.mubr.f32.gmra.mrb[72].mxu1 %v6423_v42  ;;  %6584 = vmatmul.mubr.f32.gmra.mrb[74].mxu0 %v6425_v47  ;;  %v10156_v52 = vld [vmem:[%s17130_s13 + $0xa58] sm:$0xff]  ;;  %v12460_v42 = vpack.c.bf16 %v10172_v32, %v10171_v29  ;;  %v12492_v47 = vpack.c.bf16 %v10204_v35, %v10203_v34  ;;  %v10187_v5 = vld [vmem:[%s17130_s13 + $0xb50] sm:$0xff]  ;;  %v10157_v59 = vld [vmem:[%s17130_s13 + $0xa60] sm:$0xff]  ;;  %v6088_v39 = vrot.slane %v15564_v40, %v14288_v31 }
0x2d7d   : > { %v6420_v56 = vmax.f32 %v6330_v36, 0.0  ;;  %v6422_v11 = vmax.f32 %v6407_v12, 0.0  ;;  %12447 = vmatpush3.bf16.msra.mxu1 %v12446_v54  ;;  %12479 = vmatpush3.bf16.msra.mxu0 %v12478_v41  ;;  %v15660_v51 = vpop.f32.mrb[68].mxu1  ;;  %v15662_v6 = vpop.f32.mrb[70].mxu0  ;;  %v12458_v54 = vpack.c.bf16 %v10154_v16, %v10153_v18  ;;  %v12490_v41 = vpack.c.bf16 %v10186_v25, %v10185_v58  ;;  %v10188_v50 = vld [vmem:[%s17130_s13 + $0xb58] sm:$0xff]  ;;  %v10158_v3 = vld [vmem:[%s17130_s13 + $0xa68] sm:$0xff] }
0x2d7e   : > { %v15670_v4 = vpop.f32.mrb[69].mxu1  ;;  %v15672_v14 = vpop.f32.mrb[71].mxu0  ;;  %12449 = vmatprep.subr.bf16.mxu1 %v12448_v48  ;;  %12481 = vmatprep.subr.bf16.mxu0 %v12480_v49  ;;  %v10173_v48 = vld [vmem:[%s17130_s13 + $0xae0] sm:$0xff]  ;;  %v10174_v49 = vld [vmem:[%s17130_s13 + $0xae8] sm:$0xff]  ;;  %v12462_v36 = vpack.c.bf16 %v10156_v52, %v10155_v43  ;;  %v12494_v12 = vpack.c.bf16 %v10188_v50, %v10187_v5  ;;  %v10176_v17 = vld [vmem:[%s17130_s13 + $0xaf8] sm:$0xff]  ;;  %v12466_v28 = vpack.c.bf16 %v10158_v3, %v10157_v59 }
0x2d7f   : > { %6653 = vmatprep.mubr.f32.mxu1 %v6420_v56  ;;  %6728 = vmatprep.mubr.f32.mxu0 %v6422_v11  ;;  %v12464_v9 = vpack.c.bf16 %v10174_v49, %v10173_v48  ;;  %v12496_v56 = vpack.c.bf16 %v10206_v60, %v10205_v53  ;;  %v10189_v11 = vld [vmem:[%s17130_s13 + $0xb60] sm:$0xff]  ;;  %v10207_v63 = vld [vmem:[%s17130_s13 + $0xbf0] sm:$0xff]  ;;  %v10192_v18 = vld [vmem:[%s17130_s13 + $0xb78] sm:$0xff]  ;;  %v6336_v58 = vadd.f32 %v15670_v4, %v15600_v22 }
0x2d80   : > { %v10159_v7 = vld [vmem:[%s17130_s13 + $0xa70] sm:$0xff]  ;;  %v6413_v25 = vadd.f32 %v15672_v14, %v15619_v61  ;;  %v6411_v35 = vadd.f32 %v15662_v6, %v6088_v39  ;;  %v10255_v4 = vld [vmem:[%s17131_s14 + $0x2] ss:$0 sm:$0xff] }
0x2d81   : > { %12451 = vmatpush3.bf16.msra.mxu1 %v12450_v57  ;;  %12483 = vmatpush3.bf16.msra.mxu0 %v12482_v19  ;;  %v10190_v57 = vld [vmem:[%s17130_s13 + $0xb68] sm:$0xff]  ;;  %v10175_v19 = vld [vmem:[%s17130_s13 + $0xaf0] sm:$0xff] }
0x2d82   : > { %12453 = vmatprep.subr.bf16.mxu1 %v12452_v23  ;;  %12485 = vmatprep.subr.bf16.mxu0 %v12484_v0  ;;  %v10208_v23 = vld [vmem:[%s17130_s13 + $0xbf8] sm:$0xff]  ;;  %v6080_v0 = vrot.slane %v15564_v40, %v14081_v10  ;;  %v12498_v2 = vpack.c.bf16 %v10190_v57, %v10189_v11  ;;  %v12468_v45 = vpack.c.bf16 %v10176_v17, %v10175_v19 }
0x2d83   : > { %v12500_v55 = vpack.c.bf16 %v10208_v23, %v10207_v63 }
0x2d84   : > { %v6334_v34 = vadd.f32 %v15660_v51, %v6080_v0 }
0x2d85   : > { %12455 = vmatpush3.bf16.msra.mxu1 %v12454_v21  ;;  %12487 = vmatpush3.bf16.msra.mxu0 %v12486_v27  ;;  %v10160_v21 = vld [vmem:[%s17130_s13 + $0xa78] sm:$0xff]  ;;  %v10191_v27 = vld [vmem:[%s17130_s13 + $0xb70] sm:$0xff] }
0x2d86   : > { %12457 = vmatprep.subr.bf16.mxu1 %v12456_v20  ;;  %12489 = vmatprep.subr.bf16.mxu0 %v12488_v24  ;;  %v12470_v16 = vpack.c.bf16 %v10160_v21, %v10159_v7  ;;  %v12502_v40 = vpack.c.bf16 %v10192_v18, %v10191_v27  ;;  %v6328_v20 = vadd.f32 %v15633_v33, %v6080_v0  ;;  %v6430_v33 = vmax.f32 %v6413_v25, 0.0 }
0x2d87   : > { %v6405_v24 = vadd.f32 %v15635_v15, %v6088_v39  ;;  %v6427_v15 = vmax.f32 %v6334_v34, 0.0  ;;  %v10261_v34 = vld [vmem:[%s17241_s30 + $0x68] sm:$0xff] }
0x2d88   : > { %v6419_v29 = vmax.f32 %v6328_v20, 0.0 }
0x2d89   : > { %12459 = vmatpush3.bf16.msra.mxu1 %v12458_v54  ;;  %12491 = vmatpush3.bf16.msra.mxu0 %v12490_v41  ;;  %v6421_v32 = vmax.f32 %v6405_v24, 0.0  ;;  %v6428_v54 = vmax.f32 %v6336_v58, 0.0  ;;  %v6429_v41 = vmax.f32 %v6411_v35, 0.0 }
0x2d8a   : > { %12461 = vmatprep.subr.bf16.mxu1 %v12460_v42  ;;  %12493 = vmatprep.subr.bf16.mxu0 %v12492_v47 }
0x2d8d   : > { %12463 = vmatpush3.bf16.msra.mxu1 %v12462_v36  ;;  %12495 = vmatpush3.bf16.msra.mxu0 %v12494_v12 }
0x2d8e   : > { %12465 = vmatprep.subr.bf16.mxu1 %v12464_v9  ;;  %12497 = vmatprep.subr.bf16.mxu0 %v12496_v56 }
0x2d91   : > { %12467 = vmatpush3.bf16.msra.mxu1 %v12466_v28  ;;  %12499 = vmatpush3.bf16.msra.mxu0 %v12498_v2 }
0x2d92   : > { %12469 = vmatprep.subr.bf16.mxu1 %v12468_v45  ;;  %12501 = vmatprep.subr.bf16.mxu0 %v12500_v55 }
0x2d95   : > { %12471 = vmatpush3.bf16.msra.mxu1 %v12470_v16  ;;  %12503 = vmatpush3.bf16.msra.mxu0 %v12502_v40 }
0x2d98   : > { %6654 = vmatmul.mubr.f32.vlgmr.msra.gmra.mrb[74].mxu1 %v6419_v29  ;;  %6729 = vmatmul.mubr.f32.vlgmr.msra.gmra.mrb[76].mxu0 %v6421_v32 }
0x2d99   : > { %6658 = vmatprep.mubr.f32.mxu1 %v6428_v54  ;;  %6733 = vmatprep.mubr.f32.mxu0 %v6430_v33  ;;  %v10262_v54 = vld [vmem:[%s17241_s30 + $0x70] sm:$0xff]  ;;  %v10263_v33 = vld [vmem:[%s17241_s30 + $0x78] sm:$0xff] }
0x2d9c   : > { %6659 = vmatmul.mubr.f32.gmra.mrb[76].mxu1 %v6427_v15  ;;  %6734 = vmatmul.mubr.f32.gmra.mrb[78].mxu0 %v6429_v41  ;;  %v12508_v15 = vpack.c.bf16 %v10263_v33, %v10262_v54 }
0x2e4b   : > { %v11029_v22 = vpop.f32.mrb[70].mxu1  ;;  %v11067_v61 = vpop.f32.mrb[72].mxu0 }
0x2e4c   : > { %v11030_v14 = vpop.f32.mrb[71].mxu1  ;;  %v11068_v51 = vpop.f32.mrb[73].mxu0 }
0x2e4d   : > { %v11031_v43 = vadd.f32 %v11030_v14, %v11029_v22  ;;  %v11069_v6 = vadd.f32 %v11068_v51, %v11067_v61 }
0x2e4f   : > { %v6506_v52 = vadd.f32 %v11031_v43, %v10255_v4  ;;  %v11032_v42 = vpop.f32.mrb[72].mxu1  ;;  %v11070_v47 = vpop.f32.mrb[74].mxu0 }
0x2e50   : > { %v11033_v5 = vpop.f32.mrb[73].mxu1  ;;  %v11071_v50 = vpop.f32.mrb[75].mxu0 }
0x2e51   : > { %v6581_v48 = vadd.f32 %v11069_v6, %v6506_v52  ;;  %v11034_v49 = vadd.f32 %v11033_v5, %v11032_v42  ;;  %v11072_v53 = vadd.f32 %v11071_v50, %v11070_v47  ;;  %v10258_v6 = vld [vmem:[%s17132_s15 + $0x2] ss:$0 sm:$0xff] }
0x2e52   : > { %v10259_v42 = vld [vmem:[%s17133_s16 + $0x2] ss:$0 sm:$0xff] }
0x2e53   : > { %v6511_v60 = vadd.f32 %v11034_v49, %v10255_v4 }
0x2e55   : > { %v6586_v36 = vadd.f32 %v11072_v53, %v6511_v60  ;;  %v10429_v60 = vld [vmem:[%s17245_s9 + $0x3] ss:$0 sm:$0xff] }
0x2e6b   : > { %v11105_v12 = vpop.f32.mrb[74].mxu1  ;;  %v11143_v59 = vpop.f32.mrb[76].mxu0 }
0x2e6c   : > { %v11106_v3 = vpop.f32.mrb[75].mxu1  ;;  %v11144_v9 = vpop.f32.mrb[77].mxu0 }
0x2e6d   : > { %v11107_v56 = vadd.f32 %v11106_v3, %v11105_v12  ;;  %v11145_v11 = vadd.f32 %v11144_v9, %v11143_v59 }
0x2e6f   : > { %v6656_v57 = vadd.f32 %v11107_v56, %v6581_v48  ;;  %v11108_v19 = vpop.f32.mrb[76].mxu1  ;;  %v11146_v17 = vpop.f32.mrb[78].mxu0 }
0x2e70   : > { %v11109_v63 = vpop.f32.mrb[77].mxu1  ;;  %v11147_v23 = vpop.f32.mrb[79].mxu0 }
0x2e71   : > { %v6731_v0 = vadd.f32 %v11145_v11, %v6656_v57  ;;  %v11110_v28 = vadd.f32 %v11109_v63, %v11108_v19  ;;  %v11148_v2 = vadd.f32 %v11147_v23, %v11146_v17 }
0x2e73   : > { %v6661_v7 = vadd.f32 %v11110_v28, %v6586_v36  ;;  %v6739_v39 = vadd.f32 %v6731_v0, %v15322_v26 }
0x2e75   : > { %v6736_v45 = vadd.f32 %v11148_v2, %v6661_v7  ;;  %v6745_v55 = vsel %vm1104_vm1, %v6739_v39, 0.0 }
0x2e76   : > { %6746 = vadd.xlane.f32.xlu1 %v6745_v55 }
0x2e77   : > { %v6740_v21 = vadd.f32 %v6736_v45, %v15351_v37  ;;  %v10260_v37 = vld [vmem:[%s17241_s30 + $0x60] sm:$0xff] }
0x2e78   : > { %v12504_v35 = vpack.c.bf16 %v10261_v34, %v10260_v37 }
0x2e79   : > { %v6748_v27 = vsel %vm1104_vm1, %v6740_v21, 0.0 }
0x2e7a   : > { %6749 = vadd.xlane.f32.xlu0 %v6748_v27  ;;  %12505 = vmatprep.subr.bf16.mxu1 %v12504_v35 }
0x2e7b   : > { %12507 = vmatpush3.bf16.msra.mxu1 %v12504_v35 }
0x2e7c   : > { %12509 = vmatprep.subr.bf16.mxu1 %v12508_v15 }
0x2e7f   : > { %12511 = vmatpush3.bf16.msra.mxu1 %v12508_v15 }
0x2f03   : > { %v6747_v18 = vpop.xlane.xlu1 %6746 }
0x2f04   : > { %v6751_v16 = vmul.f32 0.03125, %v6747_v18 }
0x2f06   : > { %v6753_v40 = vsub.f32 %v6739_v39, %v6751_v16 }
0x2f07   : > { %v6750_v20 = vpop.xlane.xlu0 %6749 }
0x2f08   : > { %v6752_v24 = vmul.f32 0.03125, %v6750_v20  ;;  %v6755_v58 = vmul.f32 %v6753_v40, %v6753_v40 }
0x2f0a   : > { %v6754_v25 = vsub.f32 %v6740_v21, %v6752_v24  ;;  %v6757_v29 = vsel %vm1104_vm1, %v6755_v58, 0.0 }
0x2f0b   : > { %6758 = vadd.xlane.f32.xlu1 %v6757_v29 }
0x2f0c   : > { %v6756_v26 = vmul.f32 %v6754_v25, %v6754_v25 }
0x2f0e   : > { %v6760_v32 = vsel %vm1104_vm1, %v6756_v26, 0.0 }
0x2f0f   : > { %6761 = vadd.xlane.f32.xlu0 %v6760_v32 }
0x2f98   : > { %v6759_v41 = vpop.xlane.xlu1 %6758 }
0x2f99   : > { %v6763_v22 = vmul.f32 0.03125, %v6759_v41 }
0x2f9b   : > { %v6765_v61 = vadd.f32 1e-05, %v6763_v22 }
0x2f9c   : > { %v6762_v4 = vpop.xlane.xlu0 %6761 }
0x2f9d   : > { %13210 = vrsqrt.f32 %v6765_v61  ;;  %v6764_v14 = vmul.f32 0.03125, %v6762_v4 }
0x2f9f   : > { %v6766_v51 = vadd.f32 1e-05, %v6764_v14 }
0x2fa1   : > { %13212 = vrsqrt.f32 %v6766_v51 }
0x2fa7   : > { %v13211_v43 = vpop.eup %13210 }
0x2fa8   : > { %v6769_v52 = vmul.f32 %v13211_v43, %v6753_v40 }
0x2faa   : > { %v6777_v47 = vmul.f32 %v10258_v6, %v6769_v52 }
0x2fab   : > { %v13213_v5 = vpop.eup %13212 }
0x2fac   : > { %v6770_v50 = vmul.f32 %v13213_v5, %v6754_v25  ;;  %v15815_v48 = vadd.f32 %v10259_v42, %v6777_v47 }
0x2fae   : > { %v6778_v49 = vmul.f32 %v10258_v6, %v6770_v50  ;;  %11712 = vmatprep.mubr.msk.f32.mxu1 %vm1104_vm1, %v15815_v48 }
0x2fb0   : > { %v15819_v53 = vadd.f32 %v10259_v42, %v6778_v49 }
0x2fb2   : > { %11713 = vmatmul.mubr.msk.f32.vlgmr.msra.gmra.mrb[78].mxu1 %vm1104_vm1, %v15819_v53 }
0x3085   : > { %v11714_v36 = vpop.f32.mrb[78].mxu1 }
0x3086   : > { %v15826_v12 = vadd.f32 %v11714_v36, %v10429_v60  ;;  %v7039_v59 = vpop.f32.mrb[79].mxu1 }
0x3087   : > { %v15828_v3 = vadd.f32 %v10429_v60, %v7039_v59 }
0x3089   : > { %11719 = vmatprep.mubr.msk.f32.mxu0 %vm1192_vm2, %v15828_v3  ;;  %v15834_v9 = vpack.i.bf16 %v15826_v12, %v15828_v3 }
0x308b   : > { %13055 = vrot.lane.b32.xlu1 %v15834_v9, %s17252_s7  ;;  %s17273_s7 = smov 40  }
0x308f   : > { %13060 = vrot.lane.b32.xlu1 %v15834_v9, %s17253_s2  ;;  %s17274_s2 = smov 16  }
0x3093   : > { %7246 = vrot.lane.b32.xlu1 %v15828_v3, %s17254_s29 }
0x3097   : > { %7248 = vrot.lane.b32.xlu1 %v15826_v12, %s17254_s29  ;;  %s17280_s29 = sld [smem:[#allocation24_spill]] }
0x30fd   : > { %v13056_v56 = vpop.permute.xlu1 %13055 }
0x30fe   : > { %v13058_v11 = vunpack.i.h.bf16 %v13056_v56  ;;  %v13057_v57 = vunpack.i.l.bf16 %v13056_v56 }
0x3100   : > { %v12512_v19 = vpack.c.bf16 %v13058_v11, %v13057_v57 }
0x3101   : > { %v13061_v17 = vpop.permute.xlu1 %13060 }
0x3102   : > { %v13063_v63 = vunpack.i.h.bf16 %v13061_v17  ;;  %v13062_v23 = vunpack.i.l.bf16 %v13061_v17  ;;  %12514 = vmatprep.subr.msk.bf16.mxu0 %vm13593_vm3, %v12512_v19 }
0x3103   : > { %12517 = vmatpush3.bf16.xpose.msk.msra.mxu0 %vm13593_vm3, %v12512_v19 }
0x3104   : > { %v12518_v0 = vpack.c.bf16 %v13063_v63, %v13062_v23 }
0x3105   : > { %v7247_v41 = vpop.permute.xlu1 %7246 }
0x3106   : > { %12519 = vmatprep.subr.bf16.mxu1 %v12518_v0 }
0x3107   : > { %12521 = vmatpush3.bf16.msra.mxu1 %v12518_v0 }
0x3109   : > { %v7249_v22 = vpop.permute.xlu1 %7248 }
0x310a   : > { %11720 = vmatmul.mubr.msk.f32.vlgmr.msra.gmra.mrb[80].mxu0 %vm1192_vm2, %v15826_v12 }
0x31dd   : > { %v11721_v28 = vpop.f32.mrb[80].mxu0 }
0x31de   : > { %v7128_v2 = vpop.f32.mrb[81].mxu0  ;;  %v7140_v39 = vsel %vm1276_vm4, %v11721_v28, -inf }
0x31df   : > { %v7137_v7 = vsel %vm1276_vm4, %v7128_v2, -inf }
0x31e0   : > { %7138 = vmax.xlane.f32.xlu0 %v7137_v7 }
0x31e4   : > { %7141 = vmax.xlane.f32.xlu0 %v7140_v39 }
0x326d   : > { %v7139_v45 = vpop.xlane.xlu0 %7138 }
0x326e   : > { %v7143_v55 = vsub.f32 %v7128_v2, %v7139_v45 }
0x3270   : > { %v7145_v18 = vmul.f32 1.442695, %v7143_v55 }
0x3271   : > { %v7142_v21 = vpop.xlane.xlu0 %7141 }
0x3272   : > { %v7144_v27 = vsub.f32 %v11721_v28, %v7142_v21 }
0x3274   : > { %v7147_v16 = vmul.f32 1.442695, %v7144_v27 }
0x3276   : > { %13214 = vpow2.f32 %v7147_v16 }
0x3277   : > { %13216 = vpow2.f32 %v7145_v18 }
0x3280   : > { %v13215_v40 = vpop.eup %13214 }
0x3281   : > { %v7152_v20 = vsel %vm1276_vm4, %v13215_v40, 0.0  ;;  %v13217_v24 = vpop.eup %13216 }
0x3282   : > { %7153 = vadd.xlane.f32.xlu0 %v7152_v20  ;;  %v7149_v58 = vsel %vm1276_vm4, %v13217_v24, 0.0 }
0x3286   : > { %7150 = vadd.xlane.f32.xlu0 %v7149_v58 }
0x329c   : > { %13065 = vrot.lane.b32.xlu0 %v15834_v9, %s17255_s1 }
0x330f   : > { %v7154_v25 = vpop.xlane.xlu0 %7153 }
0x3310   : > { %13218 = vrcp.f32 %v7154_v25 }
0x3313   : > { %v7151_v29 = vpop.xlane.xlu0 %7150 }
0x3314   : > { %13220 = vrcp.f32 %v7151_v29 }
0x3317   : > { %v13066_v26 = vpop.permute.xlu0 %13065 }
0x3318   : > { %v13068_v32 = vunpack.i.h.bf16 %v13066_v26  ;;  %v13067_v37 = vunpack.i.l.bf16 %v13066_v26 }
0x331a   : > { %v12522_v34 = vpack.c.bf16 %v13068_v32, %v13067_v37  ;;  %v13219_v35 = vpop.eup %13218 }
0x331b   : > { %v7158_v15 = vmul.f32 %v13219_v35, %v13215_v40 }
0x331c   : > { %12524 = vmatprep.subr.msk.bf16.mxu1 %vm13593_vm3, %v12522_v34 }
0x331e   : > { %v13221_v54 = vpop.eup %13220 }
0x331f   : > { %v7157_v33 = vmul.f32 %v13221_v54, %v13217_v24 }
0x3321   : > { %11726 = vmatprep.mubr.msk.f32.mxu1 %vm1276_vm4, %v7157_v33 }
0x3322   : > { %11727 = vmatmul.mubr.msk.f32.vlgmr.msra.gmra.mrb[80].mxu1 %vm1276_vm4, %v7158_v15 }
0x3323   : > { %12527 = vmatpush3.bf16.xpose.msk.msra.mxu1 %vm13593_vm3, %v12522_v34  ;;  %11733 = vmatprep.mubr.msk.f32.mxu1 %vm1192_vm2, %v7247_v41 }
0x332a   : > { %11734 = vmatmul.mubr.msk.f32.vlgmr.msra.gmra.mrb[82].mxu1 %vm1192_vm2, %v7249_v22 }
0x33f5   : > { %v15864_v61 = vpop.f32.mrb[80].mxu1 }
0x33f6   : > { %v15866_v4 = vpop.f32.mrb[81].mxu1 }
0x33fd   : > { %v11735_v14 = vpop.f32.mrb[82].mxu1 }
0x33fe   : > { %v7328_v51 = vpop.f32.mrb[83].mxu1  ;;  %v7340_v43 = vsel %vm1276_vm4, %v11735_v14, -inf }
0x33ff   : > { %7341 = vmax.xlane.f32.xlu0 %v7340_v43  ;;  %v7337_v6 = vsel %vm1276_vm4, %v7328_v51, -inf }
0x3400   : > { %7338 = vmax.xlane.f32.xlu1 %v7337_v6 }
0x3411   : > { %13075 = vrot.lane.b32.xlu1 %v15834_v9, %s17256_s3  ;;  %s17275_s3 = sld [smem:[#allocation21_spill]] }
0x3415   : > { %13070 = vrot.lane.b32.xlu0 %v15834_v9, %s17257_s6 }
0x3417   : > { %s17276_s6 = smov %s17275_s3 }
0x3419   : > { %7448 = vrot.lane.b32.xlu0 %v15826_v12, %s17258_s22 }
0x348c   : > { %v7342_v52 = vpop.xlane.xlu0 %7341 }
0x348d   : > { %v7344_v42 = vsub.f32 %v11735_v14, %v7342_v52  ;;  %v7339_v47 = vpop.xlane.xlu1 %7338 }
0x348e   : > { %v7343_v5 = vsub.f32 %v7328_v51, %v7339_v47 }
0x348f   : > { %v7347_v50 = vmul.f32 1.442695, %v7344_v42 }
0x3490   : > { %v7345_v49 = vmul.f32 1.442695, %v7343_v5  ;;  %v13071_v60 = vpop.permute.xlu0 %13070 }
0x3491   : > { %13222 = vpow2.f32 %v7347_v50  ;;  %v13073_v36 = vunpack.i.h.bf16 %v13071_v60  ;;  %v13072_v59 = vunpack.i.l.bf16 %v13071_v60  ;;  %v13076_v56 = vpop.permute.xlu1 %13075 }
0x3492   : > { %v13078_v11 = vunpack.i.h.bf16 %v13076_v56  ;;  %v13077_v57 = vunpack.i.l.bf16 %v13076_v56  ;;  %13224 = vpow2.f32 %v7345_v49 }
0x3493   : > { %v12528_v19 = vpack.c.bf16 %v13073_v36, %v13072_v59 }
0x3494   : > { %v12532_v17 = vpack.c.bf16 %v13078_v11, %v13077_v57  ;;  %v7449_v18 = vpop.permute.xlu0 %7448 }
0x3495   : > { %12529 = vmatprep.subr.bf16.mxu0 %v12528_v19 }
0x3496   : > { %12531 = vmatpush3.bf16.msra.mxu0 %v12528_v19 }
0x3497   : > { %12534 = vmatprep.subr.msk.bf16.mxu0 %vm13593_vm3, %v12532_v17 }
0x349b   : > { %v13223_v63 = vpop.eup %13222 }
0x349c   : > { %v7352_v23 = vsel %vm1276_vm4, %v13223_v63, 0.0  ;;  %v13225_v0 = vpop.eup %13224 }
0x349d   : > { %7353 = vadd.xlane.f32.xlu1 %v7352_v23  ;;  %v7349_v28 = vsel %vm1276_vm4, %v13225_v0, 0.0 }
0x34a1   : > { %7350 = vadd.xlane.f32.xlu1 %v7349_v28 }
0x34b2   : > { %7446 = vrot.lane.b32.xlu1 %v15828_v3, %s17258_s22 }
0x352a   : > { %v7354_v2 = vpop.xlane.xlu1 %7353 }
0x352b   : > { %13226 = vrcp.f32 %v7354_v2 }
0x352e   : > { %v7351_v7 = vpop.xlane.xlu1 %7350 }
0x352f   : > { %13228 = vrcp.f32 %v7351_v7 }
0x3532   : > { %v7447_v27 = vpop.permute.xlu1 %7446 }
0x3535   : > { %v13227_v39 = vpop.eup %13226 }
0x3536   : > { %v7358_v21 = vmul.f32 %v13227_v39, %v13223_v63 }
0x3539   : > { %v13229_v45 = vpop.eup %13228 }
0x353a   : > { %v7357_v55 = vmul.f32 %v13229_v45, %v13225_v0 }
0x353c   : > { %11740 = vmatprep.mubr.msk.f32.mxu0 %vm1276_vm4, %v7357_v55 }
0x353d   : > { %11741 = vmatmul.mubr.msk.f32.vlgmr.msra.gmra.mrb[82].mxu0 %vm1276_vm4, %v7358_v21 }
0x353e   : > { %12537 = vmatpush3.bf16.xpose.msk.msra.mxu0 %vm13593_vm3, %v12532_v17  ;;  %11747 = vmatprep.mubr.msk.f32.mxu0 %vm1192_vm2, %v7447_v27 }
0x3545   : > { %11748 = vmatmul.mubr.msk.f32.vlgmr.msra.gmra.mrb[84].mxu0 %vm1192_vm2, %v7449_v18 }
0x3610   : > { %v15888_v16 = vpop.f32.mrb[82].mxu0 }
0x3611   : > { %v15890_v40 = vpop.f32.mrb[83].mxu0 }
0x3618   : > { %v11749_v20 = vpop.f32.mrb[84].mxu0 }
0x3619   : > { %v7528_v24 = vpop.f32.mrb[85].mxu0  ;;  %v7540_v58 = vsel %vm1276_vm4, %v11749_v20, -inf }
0x361a   : > { %7541 = vmax.xlane.f32.xlu0 %v7540_v58  ;;  %v7537_v25 = vsel %vm1276_vm4, %v7528_v24, -inf }
0x361b   : > { %7538 = vmax.xlane.f32.xlu1 %v7537_v25 }
0x36a7   : > { %v7542_v29 = vpop.xlane.xlu0 %7541 }
0x36a8   : > { %v7544_v26 = vsub.f32 %v11749_v20, %v7542_v29  ;;  %v7539_v32 = vpop.xlane.xlu1 %7538 }
0x36a9   : > { %v7543_v37 = vsub.f32 %v7528_v24, %v7539_v32  ;;  %v10265_v32 = vld [vmem:[%s17276_s6 + $0x68] sm:$0xff] }
0x36aa   : > { %v7547_v34 = vmul.f32 1.442695, %v7544_v26 }
0x36ab   : > { %v7545_v35 = vmul.f32 1.442695, %v7543_v37  ;;  %v10266_v37 = vld [vmem:[%s17276_s6 + $0x70] sm:$0xff] }
0x36ac   : > { %13230 = vpow2.f32 %v7547_v34 }
0x36ad   : > { %13232 = vpow2.f32 %v7545_v35  ;;  %v10267_v35 = vld [vmem:[%s17276_s6 + $0x78] sm:$0xff] }
0x36b6   : > { %v13231_v54 = vpop.eup %13230 }
0x36b7   : > { %v13233_v33 = vpop.eup %13232  ;;  %v7552_v15 = vsel %vm1276_vm4, %v13231_v54, 0.0 }
0x36b8   : > { %7553 = vadd.xlane.f32.xlu1 %v7552_v15  ;;  %v7549_v41 = vsel %vm1276_vm4, %v13233_v33, 0.0 }
0x36b9   : > { %7550 = vadd.xlane.f32.xlu0 %v7549_v41 }
0x36c9   : > { %13085 = vrot.lane.b32.xlu1 %v15834_v9, %s17259_s24  ;;  %s9773_s24 = sshll.u32 %s17311_s0, 3 }
0x36cd   : > { %7646 = vrot.lane.b32.xlu1 %v15828_v3, %s17260_s27 }
0x36cf   : > { %13080 = vrot.lane.b32.xlu0 %v15834_v9, %s17261_s28 }
0x36d3   : > { %7648 = vrot.lane.b32.xlu0 %v15826_v12, %s17260_s27  ;;  %s17291_s27 = sld [smem:[#allocation31_spill]] }
0x3745   : > { %v7554_v22 = vpop.xlane.xlu1 %7553 }
0x3746   : > { %13234 = vrcp.f32 %v7554_v22  ;;  %v7551_v14 = vpop.xlane.xlu0 %7550 }
0x3747   : > { %13236 = vrcp.f32 %v7551_v14 }
0x3749   : > { %v13086_v51 = vpop.permute.xlu1 %13085 }
0x374a   : > { %v13081_v43 = vpop.permute.xlu0 %13080  ;;  %v13088_v6 = vunpack.i.h.bf16 %v13086_v51  ;;  %v13087_v52 = vunpack.i.l.bf16 %v13086_v51 }
0x374b   : > { %v13083_v42 = vunpack.i.h.bf16 %v13081_v43  ;;  %v13082_v47 = vunpack.i.l.bf16 %v13081_v43 }
0x374c   : > { %v12542_v50 = vpack.c.bf16 %v13088_v6, %v13087_v52 }
0x374d   : > { %v12538_v5 = vpack.c.bf16 %v13083_v42, %v13082_v47  ;;  %v7647_v36 = vpop.permute.xlu1 %7646 }
0x374e   : > { %v7649_v59 = vpop.permute.xlu0 %7648 }
0x374f   : > { %12539 = vmatprep.subr.bf16.mxu1 %v12538_v5 }
0x3750   : > { %v13235_v3 = vpop.eup %13234  ;;  %12541 = vmatpush3.bf16.msra.mxu1 %v12538_v5 }
0x3751   : > { %v13237_v49 = vpop.eup %13236  ;;  %12544 = vmatprep.subr.msk.bf16.mxu1 %vm13593_vm3, %v12542_v50  ;;  %v7558_v60 = vmul.f32 %v13235_v3, %v13231_v54  ;;  %v12556_v54 = vpack.c.bf16 %v10267_v35, %v10266_v37  ;;  %v10292_v37 = vld [vmem:[%s17128_s11 + $0x3c0] sm:$0xff] }
0x3752   : > { %v7557_v12 = vmul.f32 %v13237_v49, %v13233_v33 }
0x3754   : > { %11754 = vmatprep.mubr.msk.f32.mxu1 %vm1276_vm4, %v7557_v12 }
0x3755   : > { %11755 = vmatmul.mubr.msk.f32.vlgmr.msra.gmra.mrb[84].mxu1 %vm1276_vm4, %v7558_v60 }
0x3756   : > { %11761 = vmatprep.mubr.msk.f32.mxu1 %vm1192_vm2, %v7647_v36 }
0x3759   : > { %12547 = vmatpush3.bf16.xpose.msk.msra.mxu1 %vm13593_vm3, %v12542_v50 }
0x3760   : > { %11762 = vmatmul.mubr.msk.f32.vlgmr.msra.gmra.mrb[86].mxu1 %vm1192_vm2, %v7649_v59 }
0x3761   : > { %8126 = vmatprep.mubr.f32.mxu1 %v13334_v44 }
0x3828   : > { %v11756_v56 = vpop.f32.mrb[84].mxu1 }
0x3829   : > { %v7637_v11 = vpop.f32.mrb[85].mxu1 }
0x3833   : > { %v11763_v57 = vpop.f32.mrb[86].mxu1 }
0x3834   : > { %v7728_v19 = vpop.f32.mrb[87].mxu1  ;;  %v7740_v17 = vsel %vm1276_vm4, %v11763_v57, -inf }
0x3835   : > { %7741 = vmax.xlane.f32.xlu0 %v7740_v17  ;;  %v7737_v63 = vsel %vm1276_vm4, %v7728_v19, -inf }
0x3836   : > { %7738 = vmax.xlane.f32.xlu1 %v7737_v63 }
0x38c2   : > { %v7742_v23 = vpop.xlane.xlu0 %7741 }
0x38c3   : > { %v7744_v0 = vsub.f32 %v11763_v57, %v7742_v23  ;;  %v7739_v28 = vpop.xlane.xlu1 %7738 }
0x38c4   : > { %v7743_v38 = vsub.f32 %v7728_v19, %v7739_v28 }
0x38c5   : > { %v7747_v2 = vmul.f32 1.442695, %v7744_v0 }
0x38c6   : > { %v7745_v7 = vmul.f32 1.442695, %v7743_v38 }
0x38c7   : > { %13238 = vpow2.f32 %v7747_v2  ;;  %v10269_v2 = vld [vmem:[%s17128_s11 + $0x308] sm:$0xff] }
0x38c8   : > { %13240 = vpow2.f32 %v7745_v7  ;;  %v10277_v7 = vld [vmem:[%s17128_s11 + $0x348] sm:$0xff] }
0x38d1   : > { %v13239_v39 = vpop.eup %13238 }
0x38d2   : > { %v13241_v45 = vpop.eup %13240  ;;  %v7752_v55 = vsel %vm1276_vm4, %v13239_v39, 0.0 }
0x38d3   : > { %7753 = vadd.xlane.f32.xlu1 %v7752_v55  ;;  %v7749_v21 = vsel %vm1276_vm4, %v13241_v45, 0.0  ;;  %v10279_v55 = vld [vmem:[%s17128_s11 + $0x358] sm:$0xff] }
0x38d4   : > { %7750 = vadd.xlane.f32.xlu0 %v7749_v21  ;;  %v10268_v21 = vld [vmem:[%s17128_s11 + $0x300] sm:$0xff] }
0x38e4   : > { %7848 = vrot.lane.b32.xlu1 %v15890_v40, %s17266_s10 }
0x38e8   : > { %7850 = vrot.lane.b32.xlu1 %v15888_v16, %s17266_s10  ;;  %s17284_s10 = sld [smem:[#allocation15_spill]] }
0x38ea   : > { %13090 = vrot.lane.b32.xlu0 %v15834_v9, %s17273_s7  ;;  %v10264_v9 = vld [vmem:[%s17275_s3 + $0x60] sm:$0xff]  ;;  %s17288_s7 = sld [smem:[#allocation27_spill]] }
0x38eb   : > { %v12552_v34 = vpack.c.bf16 %v10265_v32, %v10264_v9  ;;  %v10295_v9 = vld [vmem:[%s17128_s11 + $0x3d8] sm:$0xff]  ;;  %v10284_v32 = vld [vmem:[%s17128_s11 + $0x380] sm:$0xff] }
0x38ec   : > { %7858 = vrot.lane.b32.xlu1 %v11756_v56, %s17274_s2  ;;  %v12566_v35 = vpack.c.bf16 %v10292_v37, %v10284_v32  ;;  %v10332_v32 = vld [vmem:[%s17130_s13 + $0xd00] sm:$0xff]  ;;  %v10333_v37 = vld [vmem:[%s17130_s13 + $0xd08] sm:$0xff] }
0x38ee   : > { %7856 = vrot.lane.b32.xlu0 %v7637_v11, %s17274_s2  ;;  %s16547_s25 = scalar_lea.vmem %s17284_s10, %s9773_s24  ;;  %s17290_s24 = sld [smem:[#allocation29_spill]] }
0x38ef   : > { %s17292_s10 = smov %s17291_s27 }
0x38f0   : > { %s17289_s2 = smov %s17288_s7 }
0x3960   : > { %v7754_v27 = vpop.xlane.xlu1 %7753 }
0x3961   : > { %13242 = vrcp.f32 %v7754_v27  ;;  %v7751_v18 = vpop.xlane.xlu0 %7750  ;;  %v10276_v27 = vld [vmem:[%s17128_s11 + $0x340] sm:$0xff] }
0x3962   : > { %13244 = vrcp.f32 %v7751_v18 }
0x3964   : > { %v7849_v41 = vpop.permute.xlu1 %7848 }
0x3965   : > { %v13091_v20 = vpop.permute.xlu0 %13090  ;;  %v7870_v43 = vsel %vm1192_vm2, %v15866_v4, %v7849_v41  ;;  %v10457_v4 = vld [vmem:[%s17278_s20 + $0x3] ss:$0 sm:$0xff]  ;;  %v10273_v41 = vld [vmem:[%s17128_s11 + $0x328] sm:$0xff]  ;;  %s17296_s20 = sld [smem:[#allocation6_spill]] }
0x3966   : > { %v13093_v24 = vunpack.i.h.bf16 %v13091_v20  ;;  %v13092_v58 = vunpack.i.l.bf16 %v13091_v20  ;;  %v12562_v20 = vpack.c.bf16 %v10276_v27, %v10268_v21 }
0x3968   : > { %v12548_v25 = vpack.c.bf16 %v13093_v24, %v13092_v58  ;;  %v7851_v22 = vpop.permute.xlu1 %7850  ;;  %v10270_v24 = vld [vmem:[%s17128_s11 + $0x310] sm:$0xff] }
0x3969   : > { %v7857_v51 = vpop.permute.xlu0 %7856  ;;  %v7871_v52 = vsel %vm1192_vm2, %v15864_v61, %v7851_v22  ;;  %v10278_v58 = vld [vmem:[%s17128_s11 + $0x350] sm:$0xff]  ;;  %v10281_v22 = vld [vmem:[%s17128_s11 + $0x368] sm:$0xff] }
0x396a   : > { %12549 = vmatprep.subr.bf16.mxu0 %v12548_v25  ;;  %v7872_v42 = vsel %vm1276_vm4, %v7870_v43, %v7857_v51  ;;  %v10275_v51 = vld [vmem:[%s17128_s11 + $0x338] sm:$0xff] }
0x396b   : > { %v13243_v40 = vpop.eup %13242  ;;  %12551 = vmatpush3.bf16.msra.mxu0 %v12548_v25  ;;  %v12570_v25 = vpack.c.bf16 %v10278_v58, %v10270_v24  ;;  %v10283_v43 = vld [vmem:[%s17128_s11 + $0x378] sm:$0xff]  ;;  %v10349_v24 = vld [vmem:[%s17130_s13 + $0xd88] sm:$0xff] }
0x396c   : > { %v13245_v29 = vpop.eup %13244  ;;  %v7758_v26 = vmul.f32 %v13243_v40, %v13239_v39  ;;  %12553 = vmatprep.subr.bf16.mxu0 %v12552_v34  ;;  %v7859_v14 = vpop.permute.xlu1 %7858  ;;  %v10271_v39 = vld [vmem:[%s17128_s11 + $0x318] sm:$0xff]  ;;  %v10285_v40 = vld [vmem:[%s17128_s11 + $0x388] sm:$0xff] }
0x396d   : > { %v7757_v16 = vmul.f32 %v13245_v29, %v13241_v45  ;;  %v7873_v5 = vsel %vm1276_vm4, %v7871_v52, %v7859_v14  ;;  %v12560_v45 = vpack.c.bf16 %v10277_v7, %v10269_v2  ;;  %v12568_v18 = vpack.c.bf16 %v10279_v55, %v10271_v39  ;;  %v10293_v29 = vld [vmem:[%s17128_s11 + $0x3c8] sm:$0xff]  ;;  %v10296_v7 = vld [vmem:[%s17128_s11 + $0x3e0] sm:$0xff]  ;;  %v10290_v39 = vld [vmem:[%s17128_s11 + $0x3b0] sm:$0xff] }
0x396e   : > { %v12576_v14 = vpack.c.bf16 %v10281_v22, %v10273_v41  ;;  %v12626_v41 = vpack.c.bf16 %v10333_v37, %v10332_v32  ;;  %v10302_v22 = vld [vmem:[%s17130_s13 + $0xc10] sm:$0xff]  ;;  %v10359_v32 = vld [vmem:[%s17130_s13 + $0xdd8] sm:$0xff] }
0x396f   : > { %11768 = vmatprep.mubr.msk.f32.mxu0 %vm1276_vm4, %v7757_v16  ;;  %12561 = vmatprep.subr.bf16.mxu1 %v12560_v45  ;;  %v10287_v16 = vld [vmem:[%s17128_s11 + $0x398] sm:$0xff]  ;;  %v10298_v45 = vld [vmem:[%s17128_s11 + $0x3f0] sm:$0xff] }
0x3970   : > { %11769 = vmatmul.mubr.msk.f32.vlgmr.msra.gmra.mrb[86].mxu0 %vm1276_vm4, %v7758_v26  ;;  %12563 = vmatpush1.bf16.msra.mxu1 %v12562_v20  ;;  %v12564_v26 = vpack.c.bf16 %v10293_v29, %v10285_v40  ;;  %v10348_v20 = vld [vmem:[%s17130_s13 + $0xd80] sm:$0xff] }
0x3971   : > { %12555 = vmatpush3.bf16.msra.mxu0 %v12552_v34  ;;  %v12572_v34 = vpack.c.bf16 %v10295_v9, %v10287_v16  ;;  %v10300_v29 = vld [vmem:[%s17130_s13 + $0xc00] sm:$0xff]  ;;  %v10301_v16 = vld [vmem:[%s17130_s13 + $0xc08] sm:$0xff]  ;;  %v12624_v9 = vpack.c.bf16 %v10349_v24, %v10348_v20 }
0x3972   : > { %12557 = vmatprep.subr.bf16.mxu0 %v12556_v54  ;;  %12565 = vmatprep.subr.bf16.mxu1 %v12564_v26  ;;  %v10309_v20 = vld [vmem:[%s17130_s13 + $0xc48] sm:$0xff] }
0x3974   : > { %12567 = vmatpush1.bf16.msra.mxu1 %v12566_v35  ;;  %v10319_v35 = vld [vmem:[%s17130_s13 + $0xc98] sm:$0xff] }
0x3975   : > { %12559 = vmatpush3.bf16.msra.mxu0 %v12556_v54  ;;  %v10286_v54 = vld [vmem:[%s17128_s11 + $0x390] sm:$0xff]  ;;  %12577 = vmatprep.subr.bf16.mxu1 %v12576_v14  ;;  %v10303_v14 = vld [vmem:[%s17130_s13 + $0xc18] sm:$0xff] }
0x3976   : > { %12569 = vmatprep.subr.bf16.mxu0 %v12568_v18  ;;  %v10317_v18 = vld [vmem:[%s17130_s13 + $0xc88] sm:$0xff] }
0x3a43   : > { %v11770_v33 = vpop.f32.mrb[86].mxu0 }
0x3a44   : > { %7866 = vrot.lane.b32.xlu1 %v11770_v33, %s17277_s18  ;;  %v7837_v15 = vpop.f32.mrb[87].mxu0  ;;  %v10294_v33 = vld [vmem:[%s17128_s11 + $0x3d0] sm:$0xff] }
0x3a45   : > { %7864 = vrot.lane.b32.xlu0 %v7837_v15, %s17277_s18  ;;  %v12574_v15 = vpack.c.bf16 %v10294_v33, %v10286_v54  ;;  %v10350_v54 = vld [vmem:[%s17130_s13 + $0xd90] sm:$0xff]  ;;  %v10351_v33 = vld [vmem:[%s17130_s13 + $0xd98] sm:$0xff]  ;;  %s17294_s18 = sld [smem:[#allocation28_spill]] }
0x3ab6   : > { %v7867_v6 = vpop.permute.xlu1 %7866 }
0x3ab7   : > { %v7865_v47 = vpop.permute.xlu0 %7864  ;;  %v7875_v3 = vsel %vm2014_vm5, %v7873_v5, %v7867_v6  ;;  %v12584_v6 = vpack.c.bf16 %v10283_v43, %v10275_v51  ;;  %v12628_v43 = vpack.c.bf16 %v10351_v33, %v10350_v54  ;;  %v10311_v54 = vld [vmem:[%s17130_s13 + $0xc58] sm:$0xff] }
0x3ab8   : > { %v7874_v50 = vsel %vm2014_vm5, %v7872_v42, %v7865_v47 }
0x3ab9   : > { %11779 = vmatprep.mubr.msk.f32.mxu0 %vm1104_vm1, %v7874_v50 }
0x3aba   : > { %11780 = vmatmul.mubr.msk.f32.vlgmr.msra.gmra.mrb[88].mxu0 %vm1104_vm1, %v7875_v3 }
0x3abb   : > { %8203 = vmatprep.mubr.f32.mxu0 %v13334_v44  ;;  %12571 = vmatpush1.bf16.msra.mxu0 %v12570_v25  ;;  %v12590_v25 = vpack.c.bf16 %v10298_v45, %v10290_v39  ;;  %v10324_v39 = vld [vmem:[%s17130_s13 + $0xcc0] sm:$0xff]  ;;  %v10325_v45 = vld [vmem:[%s17130_s13 + $0xcc8] sm:$0xff] }
0x3abc   : > { %12573 = vmatprep.subr.bf16.mxu0 %v12572_v34  ;;  %v10318_v34 = vld [vmem:[%s17130_s13 + $0xc90] sm:$0xff]  ;;  %v12608_v24 = vpack.c.bf16 %v10325_v45, %v10324_v39  ;;  %v10413_v45 = vld [vmem:[%s17130_s13 + $0xf88] sm:$0xff] }
0x3abd   : > { %v12596_v51 = vpack.c.bf16 %v10319_v35, %v10318_v34  ;;  %v10310_v35 = vld [vmem:[%s17130_s13 + $0xc50] sm:$0xff] }
0x3abf   : > { %12575 = vmatpush1.bf16.msra.mxu0 %v12574_v15  ;;  %v12594_v15 = vpack.c.bf16 %v10301_v16, %v10300_v29  ;;  %v10341_v29 = vld [vmem:[%s17130_s13 + $0xd48] sm:$0xff]  ;;  %v10326_v16 = vld [vmem:[%s17130_s13 + $0xcd0] sm:$0xff] }
0x3ac0   : > { %12585 = vmatprep.subr.bf16.mxu0 %v12584_v6  ;;  %v10334_v6 = vld [vmem:[%s17130_s13 + $0xd10] sm:$0xff] }
0x3b8d   : > { %v11781_v61 = vpop.f32.mrb[88].mxu0 }
0x3b8e   : > { %v7962_v49 = vadd.f32 %v11781_v61, %v10457_v4  ;;  %v7956_v12 = vpop.f32.mrb[89].mxu0  ;;  %v10462_v61 = vld [vmem:[%s17279_s5 + $0x3] ss:$0 sm:$0xff]  ;;  %s17295_s5 = sld [smem:[#allocation30_spill]] }
0x3b8f   : > { %v7957_v60 = vadd.f32 %v10457_v4, %v7956_v12 }
0x3b90   : > { %v7966_v36 = vadd.f32 %v7962_v49, %v15819_v53  ;;  %v10272_v49 = vld [vmem:[%s17128_s11 + $0x320] sm:$0xff] }
0x3b91   : > { %v7965_v59 = vadd.f32 %v7957_v60, %v15815_v48  ;;  %v10280_v60 = vld [vmem:[%s17128_s11 + $0x360] sm:$0xff] }
0x3b92   : > { %v7974_v56 = vsel %vm1104_vm1, %v7966_v36, 0.0 }
0x3b93   : > { %7975 = vadd.xlane.f32.xlu1 %v7974_v56  ;;  %v7971_v11 = vsel %vm1104_vm1, %v7965_v59, 0.0  ;;  %v10463_v56 = vld [vmem:[%s17280_s29 + $0x3] ss:$0 sm:$0xff]  ;;  %s822_s29 = scalar_select %p821_p12, %s17281_s17, 1 }
0x3b94   : > { %7972 = vadd.xlane.f32.xlu0 %v7971_v11  ;;  %v10289_v11 = vld [vmem:[%s17128_s11 + $0x3a8] sm:$0xff] }
0x3b95   : > { %s10550_s1 = sshll.u32 %s822_s29, 4  ;;  %s10547_s29 = sshll.u32 %s17281_s17, 4 }
0x3b96   : > { %s13335_s17 = smov [#allocation2]  }
0x3c20   : > { %v7976_v57 = vpop.xlane.xlu1 %7975 }
0x3c21   : > { %v7978_v19 = vmul.f32 0.03125, %v7976_v57  ;;  %v7973_v17 = vpop.xlane.xlu0 %7972 }
0x3c22   : > { %v7977_v63 = vmul.f32 0.03125, %v7973_v17  ;;  %v10291_v17 = vld [vmem:[%s17128_s11 + $0x3b8] sm:$0xff] }
0x3c23   : > { %v15959_v23 = vsub.f32 %v7966_v36, %v7978_v19  ;;  %v10274_v36 = vld [vmem:[%s17128_s11 + $0x330] sm:$0xff]  ;;  %v10297_v19 = vld [vmem:[%s17128_s11 + $0x3e8] sm:$0xff] }
0x3c24   : > { %v7979_v0 = vsub.f32 %v7965_v59, %v7977_v63  ;;  %v10282_v59 = vld [vmem:[%s17128_s11 + $0x370] sm:$0xff]  ;;  %v10299_v63 = vld [vmem:[%s17128_s11 + $0x3f8] sm:$0xff]  ;;  %v12580_v55 = vpack.c.bf16 %v10297_v19, %v10289_v11 }
0x3c25   : > { %v7982_v53 = vmul.f32 %v15959_v23, %v15959_v23  ;;  %v12588_v21 = vpack.c.bf16 %v10299_v63, %v10291_v17  ;;  %v10323_v11 = vld [vmem:[%s17130_s13 + $0xcb8] sm:$0xff] }
0x3c26   : > { %v7981_v28 = vmul.f32 %v7979_v0, %v7979_v0  ;;  %v10355_v19 = vld [vmem:[%s17130_s13 + $0xdb8] sm:$0xff] }
0x3c27   : > { %v7986_v48 = vsel %vm1104_vm1, %v7982_v53, 0.0  ;;  %v10288_v53 = vld [vmem:[%s17128_s11 + $0x3a0] sm:$0xff] }
0x3c28   : > { %v7983_v38 = vsel %vm1104_vm1, %v7981_v28, 0.0  ;;  %v12578_v28 = vpack.c.bf16 %v10280_v60, %v10272_v49  ;;  %v12582_v58 = vpack.c.bf16 %v10296_v7, %v10288_v53  ;;  %v10305_v49 = vld [vmem:[%s17130_s13 + $0xc28] sm:$0xff]  ;;  %v10339_v7 = vld [vmem:[%s17130_s13 + $0xd38] sm:$0xff] }
0x3c29   : > { %7984 = vadd.xlane.f32.xlu0 %v7983_v38  ;;  %v12586_v38 = vpack.c.bf16 %v10282_v59, %v10274_v36  ;;  %v10336_v36 = vld [vmem:[%s17130_s13 + $0xd20] sm:$0xff]  ;;  %v10337_v59 = vld [vmem:[%s17130_s13 + $0xd28] sm:$0xff] }
0x3c2a   : > { %v12634_v63 = vpack.c.bf16 %v10337_v59, %v10336_v36  ;;  %v10331_v36 = vld [vmem:[%s17130_s13 + $0xcf8] sm:$0xff]  ;;  %v10362_v59 = vld [vmem:[%s17130_s13 + $0xdf0] sm:$0xff] }
0x3c2d   : > { %7987 = vadd.xlane.f32.xlu0 %v7986_v48 }
0x3cb6   : > { %v7985_v52 = vpop.xlane.xlu0 %7984 }
0x3cb7   : > { %v7989_v42 = vmul.f32 0.03125, %v7985_v52  ;;  %v10335_v52 = vld [vmem:[%s17130_s13 + $0xd18] sm:$0xff] }
0x3cb9   : > { %v7991_v47 = vadd.f32 1e-05, %v7989_v42  ;;  %v10320_v42 = vld [vmem:[%s17130_s13 + $0xca0] sm:$0xff] }
0x3cba   : > { %v7988_v5 = vpop.xlane.xlu0 %7987 }
0x3cbb   : > { %13246 = vrsqrt.f32 %v7991_v47  ;;  %v7990_v50 = vmul.f32 0.03125, %v7988_v5  ;;  %v10321_v47 = vld [vmem:[%s17130_s13 + $0xca8] sm:$0xff]  ;;  %v10352_v5 = vld [vmem:[%s17130_s13 + $0xda0] sm:$0xff] }
0x3cbd   : > { %v7992_v3 = vadd.f32 1e-05, %v7990_v50  ;;  %v10353_v50 = vld [vmem:[%s17130_s13 + $0xda8] sm:$0xff] }
0x3cbe   : > { %v12632_v60 = vpack.c.bf16 %v10353_v50, %v10352_v5 }
0x3cbf   : > { %13248 = vrsqrt.f32 %v7992_v3  ;;  %v12598_v3 = vpack.c.bf16 %v10303_v14, %v10302_v22  ;;  %v10343_v22 = vld [vmem:[%s17130_s13 + $0xd58] sm:$0xff]  ;;  %v10328_v14 = vld [vmem:[%s17130_s13 + $0xce0] sm:$0xff] }
0x3cc5   : > { %v13247_v4 = vpop.eup %13246 }
0x3cc6   : > { %v7995_v12 = vmul.f32 %v13247_v4, %v7979_v0  ;;  %v12630_v4 = vpack.c.bf16 %v10335_v52, %v10334_v6  ;;  %v10361_v6 = vld [vmem:[%s17130_s13 + $0xde8] sm:$0xff]  ;;  %v12614_v52 = vpack.c.bf16 %v10311_v54, %v10310_v35  ;;  %v10414_v35 = vld [vmem:[%s17130_s13 + $0xf90] sm:$0xff]  ;;  %v10415_v54 = vld [vmem:[%s17130_s13 + $0xf98] sm:$0xff] }
0x3cc8   : > { %v8003_v57 = vmul.f32 %v10462_v61, %v7995_v12  ;;  %v12600_v12 = vpack.c.bf16 %v10321_v47, %v10320_v42  ;;  %v10312_v47 = vld [vmem:[%s17130_s13 + $0xc60] sm:$0xff] }
0x3cc9   : > { %v13249_v0 = vpop.eup %13248 }
0x3cca   : > { %v7996_v48 = vmul.f32 %v13249_v0, %v15959_v23  ;;  %v16059_v2 = vadd.f32 %v10463_v56, %v8003_v57  ;;  %v10316_v23 = vld [vmem:[%s17130_s13 + $0xc80] sm:$0xff]  ;;  %v10354_v57 = vld [vmem:[%s17130_s13 + $0xdb0] sm:$0xff] }
0x3ccb   : > { %v12592_v26 = vpack.c.bf16 %v10317_v18, %v10316_v23  ;;  %v10306_v0 = vld [vmem:[%s17130_s13 + $0xc30] sm:$0xff]  ;;  %v12636_v53 = vpack.c.bf16 %v10355_v19, %v10354_v57  ;;  %v10308_v18 = vld [vmem:[%s17130_s13 + $0xc40] sm:$0xff]  ;;  %v10315_v19 = vld [vmem:[%s17130_s13 + $0xc78] sm:$0xff] }
0x3ccc   : > { %10465 = vmatmul.mubr.msk.f32.vlgmr.msra.gmra.mrb[88].mxu1 %vm1104_vm1, %v16059_v2  ;;  %10467 = vmatmul.mubr.msk.f32.vlgmr.msra.gmra.mrb[90].mxu0 %vm1104_vm1, %v16059_v2  ;;  %v8004_v27 = vmul.f32 %v10462_v61, %v7996_v48  ;;  %v10304_v61 = vld [vmem:[%s17130_s13 + $0xc20] sm:$0xff]  ;;  %v10338_v48 = vld [vmem:[%s17130_s13 + $0xd30] sm:$0xff]  ;;  %v12610_v37 = vpack.c.bf16 %v10309_v20, %v10308_v18 }
0x3ccd   : > { %12579 = vmatpush1.bf16.msra.mxu1 %v12578_v28  ;;  %12587 = vmatpush1.bf16.msra.mxu0 %v12586_v38  ;;  %v12602_v17 = vpack.c.bf16 %v10305_v49, %v10304_v61  ;;  %v10307_v28 = vld [vmem:[%s17130_s13 + $0xc38] sm:$0xff]  ;;  %v10345_v61 = vld [vmem:[%s17130_s13 + $0xd68] sm:$0xff]  ;;  %v10314_v57 = vld [vmem:[%s17130_s13 + $0xc70] sm:$0xff] }
0x3cce   : > { %8132 = vmatprep.mubr.f32.mxu1 %v13334_v44  ;;  %8209 = vmatprep.mubr.f32.mxu0 %v13334_v44  ;;  %v16088_v40 = vadd.f32 %v10463_v56, %v8004_v27  ;;  %v10322_v56 = vld [vmem:[%s17130_s13 + $0xcb0] sm:$0xff]  ;;  %v12606_v23 = vpack.c.bf16 %v10307_v28, %v10306_v0  ;;  %v12638_v27 = vpack.c.bf16 %v10339_v7, %v10338_v48  ;;  %v10347_v28 = vld [vmem:[%s17130_s13 + $0xd78] sm:$0xff]  ;;  %v10381_v48 = vld [vmem:[%s17130_s13 + $0xe88] sm:$0xff] }
0x3ccf   : > { %12581 = vmatprep.subr.bf16.mxu1 %v12580_v55  ;;  %12589 = vmatprep.subr.bf16.mxu0 %v12588_v21  ;;  %v12604_v38 = vpack.c.bf16 %v10323_v11, %v10322_v56  ;;  %v10356_v55 = vld [vmem:[%s17130_s13 + $0xdc0] sm:$0xff]  ;;  %v10357_v21 = vld [vmem:[%s17130_s13 + $0xdc8] sm:$0xff]  ;;  %v10363_v11 = vld [vmem:[%s17130_s13 + $0xdf8] sm:$0xff] }
0x3cd0   : > { %10466 = vmatmul.mubr.msk.f32.gmra.mrb[90].mxu1 %vm1104_vm1, %v16088_v40  ;;  %10468 = vmatmul.mubr.msk.f32.gmra.mrb[92].mxu0 %vm1104_vm1, %v16088_v40  ;;  %v10346_v0 = vld [vmem:[%s17130_s13 + $0xd70] sm:$0xff]  ;;  %v10412_v7 = vld [vmem:[%s17130_s13 + $0xf80] sm:$0xff] }
0x3cd1   : > { %12583 = vmatpush1.bf16.msra.mxu1 %v12582_v58  ;;  %12591 = vmatpush1.bf16.msra.mxu0 %v12590_v25  ;;  %v12640_v58 = vpack.c.bf16 %v10357_v21, %v10356_v55  ;;  %v10340_v25 = vld [vmem:[%s17130_s13 + $0xd40] sm:$0xff]  ;;  %v12688_v55 = vpack.c.bf16 %v10413_v45, %v10412_v7  ;;  %v16301_v21 = vld [vmem:[%s17129_s12 + $0x18] sm:$0xff] }
0x3cd2   : > { %8280 = vmatprep.mubr.f32.mxu1 %v13334_v44  ;;  %8357 = vmatprep.mubr.f32.mxu0 %v13334_v44  ;;  %v12642_v34 = vpack.c.bf16 %v10341_v29, %v10340_v25  ;;  %v8023_v18 = vrot.slane %v16301_v21, %v14063_v62  ;;  %v8031_v20 = vrot.slane %v16301_v21, %v14070_v1  ;;  %v10382_v1 = vld [vmem:[%s17130_s13 + $0xe90] sm:$0xff]  ;;  %v10400_v45 = vld [vmem:[%s17130_s13 + $0xf20] sm:$0xff] }
0x3cd3   : > { %12593 = vmatprep.subr.bf16.mxu1 %v12592_v26  ;;  %12625 = vmatprep.subr.bf16.mxu0 %v12624_v9  ;;  %v10327_v26 = vld [vmem:[%s17130_s13 + $0xcd8] sm:$0xff]  ;;  %v10358_v9 = vld [vmem:[%s17130_s13 + $0xdd0] sm:$0xff] }
0x3cd4   : > { %10469 = vmatmul.mubr.msk.f32.vlgmr.msra.gmra.mrb[92].mxu1 %vm1104_vm1, %v16059_v2  ;;  %10471 = vmatmul.mubr.msk.f32.vlgmr.msra.gmra.mrb[94].mxu0 %vm1104_vm1, %v16059_v2  ;;  %v12612_v33 = vpack.c.bf16 %v10327_v26, %v10326_v16  ;;  %v10397_v16 = vld [vmem:[%s17130_s13 + $0xf08] sm:$0xff] }
0x3cd5   : > { %8286 = vmatprep.mubr.f32.mxu1 %v13334_v44  ;;  %8363 = vmatprep.mubr.f32.mxu0 %v13334_v44 }
0x3cd6   : > { %12595 = vmatpush3.bf16.msra.mxu1 %v12594_v15  ;;  %12627 = vmatpush3.bf16.msra.mxu0 %v12626_v41  ;;  %v12644_v15 = vpack.c.bf16 %v10359_v32, %v10358_v9  ;;  %v10342_v41 = vld [vmem:[%s17130_s13 + $0xd50] sm:$0xff] }
0x3cd7   : > { %12597 = vmatprep.subr.bf16.mxu1 %v12596_v51  ;;  %12629 = vmatprep.subr.bf16.mxu0 %v12628_v43  ;;  %v10329_v51 = vld [vmem:[%s17130_s13 + $0xce8] sm:$0xff]  ;;  %v10360_v43 = vld [vmem:[%s17130_s13 + $0xde0] sm:$0xff]  ;;  %v12646_v42 = vpack.c.bf16 %v10343_v22, %v10342_v41 }
0x3cd8   : > { %10470 = vmatmul.mubr.msk.f32.gmra.mrb[94].mxu1 %vm1104_vm1, %v16088_v40  ;;  %10472 = vmatmul.mubr.msk.f32.gmra.mrb[96].mxu0 %vm1104_vm1, %v16088_v40  ;;  %v12616_v5 = vpack.c.bf16 %v10329_v51, %v10328_v14  ;;  %v12648_v50 = vpack.c.bf16 %v10361_v6, %v10360_v43  ;;  %v16337_v14 = vrot.slane %v16301_v21, %v14088_v8  ;;  %v10366_v51 = vld [vmem:[%s17130_s13 + $0xe10] sm:$0xff] }
0x3cda   : > { %12599 = vmatpush3.bf16.msra.mxu1 %v12598_v3  ;;  %12631 = vmatpush3.bf16.msra.mxu0 %v12630_v4  ;;  %v10313_v3 = vld [vmem:[%s17130_s13 + $0xc68] sm:$0xff]  ;;  %v10344_v4 = vld [vmem:[%s17130_s13 + $0xd60] sm:$0xff] }
0x3cdb   : > { %12601 = vmatprep.subr.bf16.mxu1 %v12600_v12  ;;  %12633 = vmatprep.subr.bf16.mxu0 %v12632_v60  ;;  %v12618_v49 = vpack.c.bf16 %v10313_v3, %v10312_v47  ;;  %v12650_v12 = vpack.c.bf16 %v10345_v61, %v10344_v4  ;;  %v10330_v60 = vld [vmem:[%s17130_s13 + $0xcf0] sm:$0xff] }
0x3cdc   : > { %v12620_v56 = vpack.c.bf16 %v10331_v36, %v10330_v60  ;;  %v10398_v3 = vld [vmem:[%s17130_s13 + $0xf10] sm:$0xff]  ;;  %v10399_v36 = vld [vmem:[%s17130_s13 + $0xf18] sm:$0xff] }
0x3cdd   : > { %v12694_v7 = vpack.c.bf16 %v10399_v36, %v10398_v3  ;;  %v10405_v36 = vld [vmem:[%s17130_s13 + $0xf48] sm:$0xff] }
0x3cde   : > { %12603 = vmatpush3.bf16.msra.mxu1 %v12602_v17  ;;  %12635 = vmatpush3.bf16.msra.mxu0 %v12634_v63  ;;  %v12652_v17 = vpack.c.bf16 %v10363_v11, %v10362_v59  ;;  %v12622_v63 = vpack.c.bf16 %v10315_v19, %v10314_v57  ;;  %v10384_v59 = vld [vmem:[%s17130_s13 + $0xea0] sm:$0xff]  ;;  %v16356_v57 = vrot.slane %v16301_v21, %v14197_v46  ;;  %v10385_v19 = vld [vmem:[%s17130_s13 + $0xea8] sm:$0xff] }
0x3cdf   : > { %12605 = vmatprep.subr.bf16.mxu1 %v12604_v38  ;;  %12637 = vmatprep.subr.bf16.mxu0 %v12636_v53  ;;  %v12654_v38 = vpack.c.bf16 %v10347_v28, %v10346_v0  ;;  %v10380_v53 = vld [vmem:[%s17130_s13 + $0xe80] sm:$0xff] }
0x3ce0   : > { %v12656_v39 = vpack.c.bf16 %v10381_v48, %v10380_v53  ;;  %v10368_v0 = vld [vmem:[%s17130_s13 + $0xe20] sm:$0xff] }
0x3ce2   : > { %12607 = vmatpush3.bf16.msra.mxu1 %v12606_v23  ;;  %12639 = vmatpush3.bf16.msra.mxu0 %v12638_v27  ;;  %v8019_v23 = vrot.slane %v16301_v21, %v14055_v13  ;;  %v8027_v27 = vrot.slane %v16301_v21, %v14174_v30  ;;  %v10396_v30 = vld [vmem:[%s17130_s13 + $0xf00] sm:$0xff] }
0x3ce3   : > { %12609 = vmatprep.subr.bf16.mxu1 %v12608_v24  ;;  %12641 = vmatprep.subr.bf16.mxu0 %v12640_v58  ;;  %v10364_v24 = vld [vmem:[%s17130_s13 + $0xe00] sm:$0xff]  ;;  %v10365_v58 = vld [vmem:[%s17130_s13 + $0xe08] sm:$0xff]  ;;  %v12690_v22 = vpack.c.bf16 %v10397_v16, %v10396_v30  ;;  %v10387_v16 = vld [vmem:[%s17130_s13 + $0xeb8] sm:$0xff] }
0x3ce4   : > { %v12658_v41 = vpack.c.bf16 %v10365_v58, %v10364_v24  ;;  %v10401_v58 = vld [vmem:[%s17130_s13 + $0xf28] sm:$0xff] }
0x3ce6   : > { %12611 = vmatpush3.bf16.msra.mxu1 %v12610_v37  ;;  %12643 = vmatpush3.bf16.msra.mxu0 %v12642_v34  ;;  %v10383_v34 = vld [vmem:[%s17130_s13 + $0xe98] sm:$0xff] }
0x3ce7   : > { %12613 = vmatprep.subr.bf16.mxu1 %v12612_v33  ;;  %12645 = vmatprep.subr.bf16.mxu0 %v12644_v15  ;;  %v12660_v47 = vpack.c.bf16 %v10383_v34, %v10382_v1  ;;  %v10418_v1 = vld [vmem:[%s17130_s13 + $0xfb0] sm:$0xff] }
0x3cea   : > { %12615 = vmatpush3.bf16.msra.mxu1 %v12614_v52  ;;  %12647 = vmatpush3.bf16.msra.mxu0 %v12646_v42 }
0x3ceb   : > { %12617 = vmatprep.subr.bf16.mxu1 %v12616_v5  ;;  %12649 = vmatprep.subr.bf16.mxu0 %v12648_v50  ;;  %v12692_v5 = vpack.c.bf16 %v10415_v54, %v10414_v35  ;;  %v10367_v50 = vld [vmem:[%s17130_s13 + $0xe18] sm:$0xff]  ;;  %v12698_v54 = vpack.c.bf16 %v10401_v58, %v10400_v45  ;;  %v10392_v45 = vld [vmem:[%s17130_s13 + $0xee0] sm:$0xff]  ;;  %v10377_v58 = vld [vmem:[%s17130_s13 + $0xe68] sm:$0xff] }
0x3cec   : > { %v12662_v48 = vpack.c.bf16 %v10367_v50, %v10366_v51  ;;  %v10421_v50 = vld [vmem:[%s17130_s13 + $0xfc8] sm:$0xff] }
0x3cee   : > { %12619 = vmatpush3.bf16.msra.mxu1 %v12618_v49  ;;  %12651 = vmatpush3.bf16.msra.mxu0 %v12650_v12 }
0x3cef   : > { %12621 = vmatprep.subr.bf16.mxu1 %v12620_v56  ;;  %12653 = vmatprep.subr.bf16.mxu0 %v12652_v17  ;;  %v10416_v17 = vld [vmem:[%s17130_s13 + $0xfa0] sm:$0xff] }
0x3cf2   : > { %12623 = vmatpush3.bf16.msra.mxu1 %v12622_v63  ;;  %12655 = vmatpush3.bf16.msra.mxu0 %v12654_v38  ;;  %v10417_v63 = vld [vmem:[%s17130_s13 + $0xfa8] sm:$0xff] }
0x3cf3   : > { %12657 = vmatprep.subr.bf16.mxu1 %v12656_v39  ;;  %12689 = vmatprep.subr.bf16.mxu0 %v12688_v55  ;;  %v10369_v39 = vld [vmem:[%s17130_s13 + $0xe28] sm:$0xff]  ;;  %v12696_v24 = vpack.c.bf16 %v10417_v63, %v10416_v17 }
0x3cf4   : > { %v12666_v35 = vpack.c.bf16 %v10369_v39, %v10368_v0  ;;  %v10374_v0 = vld [vmem:[%s17130_s13 + $0xe50] sm:$0xff]  ;;  %v10407_v39 = vld [vmem:[%s17130_s13 + $0xf58] sm:$0xff] }
0x3d9f   : > { %v8128_v25 = vpop.f32.mrb[88].mxu1  ;;  %v8205_v29 = vpop.f32.mrb[90].mxu0 }
0x3da0   : > { %v8129_v26 = vadd.f32 %v8128_v25, %v8019_v23  ;;  %v8206_v9 = vadd.f32 %v8205_v29, %v8027_v27  ;;  %v8130_v32 = vpop.f32.mrb[89].mxu1  ;;  %v8207_v37 = vpop.f32.mrb[91].mxu0  ;;  %v10386_v25 = vld [vmem:[%s17130_s13 + $0xeb0] sm:$0xff] }
0x3da1   : > { %v8131_v33 = vadd.f32 %v8130_v32, %v8023_v18  ;;  %v8208_v15 = vadd.f32 %v8207_v37, %v8031_v20  ;;  %v12668_v51 = vpack.c.bf16 %v10387_v16, %v10386_v25  ;;  %v10409_v16 = vld [vmem:[%s17130_s13 + $0xf68] sm:$0xff] }
0x3da2   : > { %v8370_v8 = vmax.f32 %v8129_v26, 0.0  ;;  %v8372_v4 = vmax.f32 %v8206_v9, 0.0  ;;  %v10419_v26 = vld [vmem:[%s17130_s13 + $0xfb8] sm:$0xff] }
0x3da3   : > { %v8371_v43 = vmax.f32 %v8131_v33, 0.0  ;;  %v8373_v6 = vmax.f32 %v8208_v15, 0.0  ;;  %v8134_v52 = vpop.f32.mrb[90].mxu1  ;;  %v8211_v42 = vpop.f32.mrb[92].mxu0  ;;  %v10370_v33 = vld [vmem:[%s17130_s13 + $0xe30] sm:$0xff]  ;;  %v10371_v15 = vld [vmem:[%s17130_s13 + $0xe38] sm:$0xff] }
0x3da4   : > { %v8135_v61 = vadd.f32 %v8134_v52, %v8019_v23  ;;  %v8212_v49 = vadd.f32 %v8211_v42, %v8027_v27  ;;  %v8136_v12 = vpop.f32.mrb[91].mxu1  ;;  %v8213_v60 = vpop.f32.mrb[93].mxu0  ;;  %v10403_v52 = vld [vmem:[%s17130_s13 + $0xf38] sm:$0xff]  ;;  %v10388_v42 = vld [vmem:[%s17130_s13 + $0xec0] sm:$0xff]  ;;  %v12670_v3 = vpack.c.bf16 %v10371_v15, %v10370_v33  ;;  %v10378_v15 = vld [vmem:[%s17130_s13 + $0xe70] sm:$0xff] }
0x3da5   : > { %v8137_v56 = vadd.f32 %v8136_v12, %v8023_v18  ;;  %v8214_v11 = vadd.f32 %v8213_v60, %v8031_v20  ;;  %8458 = vmatprep.mubr.f32.mxu1 %v8371_v43  ;;  %8533 = vmatprep.mubr.f32.mxu0 %v8373_v6  ;;  %v12664_v20 = vpack.c.bf16 %v10385_v19, %v10384_v59  ;;  %v10402_v6 = vld [vmem:[%s17130_s13 + $0xf30] sm:$0xff]  ;;  %v10404_v60 = vld [vmem:[%s17130_s13 + $0xf40] sm:$0xff]  ;;  %v10423_v19 = vld [vmem:[%s17130_s13 + $0xfd8] sm:$0xff] }
0x3da6   : > { %8459 = vmatmul.mubr.f32.vlgmr.msra.gmra.mrb[96].mxu1 %v8370_v8  ;;  %8534 = vmatmul.mubr.f32.vlgmr.msra.gmra.mrb[98].mxu0 %v8372_v4  ;;  %v8378_v55 = vmax.f32 %v8135_v61, 0.0  ;;  %v8380_v23 = vmax.f32 %v8212_v49, 0.0  ;;  %v12700_v43 = vpack.c.bf16 %v10419_v26, %v10418_v1  ;;  %v12702_v8 = vpack.c.bf16 %v10403_v52, %v10402_v6  ;;  %v10372_v4 = vld [vmem:[%s17130_s13 + $0xe40] sm:$0xff]  ;;  %v10373_v61 = vld [vmem:[%s17130_s13 + $0xe48] sm:$0xff]  ;;  %v10390_v59 = vld [vmem:[%s17130_s13 + $0xed0] sm:$0xff] }
0x3da7   : > { %v8379_v46 = vmax.f32 %v8137_v56, 0.0  ;;  %v8381_v28 = vmax.f32 %v8214_v11, 0.0  ;;  %12659 = vmatpush3.bf16.msra.mxu1 %v12658_v41  ;;  %12691 = vmatpush3.bf16.msra.mxu0 %v12690_v22  ;;  %v16370_v38 = vpop.f32.mrb[92].mxu1  ;;  %v16372_v53 = vpop.f32.mrb[94].mxu0  ;;  %v10391_v56 = vld [vmem:[%s17130_s13 + $0xed8] sm:$0xff]  ;;  %v10422_v11 = vld [vmem:[%s17130_s13 + $0xfd0] sm:$0xff]  ;;  %v12674_v17 = vpack.c.bf16 %v10373_v61, %v10372_v4  ;;  %v12706_v63 = vpack.c.bf16 %v10405_v36, %v10404_v60 }
0x3da8   : > { %v8284_v27 = vpop.f32.mrb[93].mxu1  ;;  %v8361_v18 = vpop.f32.mrb[95].mxu0  ;;  %12661 = vmatprep.subr.bf16.mxu1 %v12660_v47  ;;  %12693 = vmatprep.subr.bf16.mxu0 %v12692_v5  ;;  %v10389_v47 = vld [vmem:[%s17130_s13 + $0xec8] sm:$0xff]  ;;  %v10420_v5 = vld [vmem:[%s17130_s13 + $0xfc0] sm:$0xff]  ;;  %v10394_v1 = vld [vmem:[%s17130_s13 + $0xef0] sm:$0xff] }
0x3da9   : > { %v8285_v29 = vadd.f32 %v8284_v27, %v16337_v14  ;;  %v8362_v30 = vadd.f32 %v8361_v18, %v16356_v57  ;;  %8463 = vmatprep.mubr.f32.mxu1 %v8379_v46  ;;  %8538 = vmatprep.mubr.f32.mxu0 %v8381_v28  ;;  %v12672_v49 = vpack.c.bf16 %v10389_v47, %v10388_v42  ;;  %v10375_v46 = vld [vmem:[%s17130_s13 + $0xe58] sm:$0xff]  ;;  %v10425_v27 = vld [vmem:[%s17130_s13 + $0xfe8] sm:$0xff]  ;;  %v10410_v52 = vld [vmem:[%s17130_s13 + $0xf70] sm:$0xff] }
0x3daa   : > { %8464 = vmatmul.mubr.f32.gmra.mrb[98].mxu1 %v8378_v55  ;;  %8539 = vmatmul.mubr.f32.gmra.mrb[100].mxu0 %v8380_v23  ;;  %v12704_v12 = vpack.c.bf16 %v10421_v50, %v10420_v5  ;;  %v12676_v28 = vpack.c.bf16 %v10391_v56, %v10390_v59  ;;  %v10393_v55 = vld [vmem:[%s17130_s13 + $0xee8] sm:$0xff]  ;;  %v10424_v23 = vld [vmem:[%s17130_s13 + $0xfe0] sm:$0xff]  ;;  %v12678_v18 = vpack.c.bf16 %v10375_v46, %v10374_v0  ;;  %v10395_v26 = vld [vmem:[%s17130_s13 + $0xef8] sm:$0xff] }
0x3dab   : > { %v8375_v9 = vmax.f32 %v8285_v29, 0.0  ;;  %v8377_v32 = vmax.f32 %v8362_v30, 0.0  ;;  %12663 = vmatpush3.bf16.msra.mxu1 %v12662_v48  ;;  %12695 = vmatpush3.bf16.msra.mxu0 %v12694_v7  ;;  %v16397_v37 = vpop.f32.mrb[94].mxu1  ;;  %v16399_v34 = vpop.f32.mrb[96].mxu0  ;;  %v12708_v48 = vpack.c.bf16 %v10423_v19, %v10422_v11  ;;  %v10406_v7 = vld [vmem:[%s17130_s13 + $0xf50] sm:$0xff]  ;;  %v12680_v25 = vpack.c.bf16 %v10393_v55, %v10392_v45  ;;  %v10408_v30 = vld [vmem:[%s17130_s13 + $0xf60] sm:$0xff] }
0x3dac   : > { %v16407_v41 = vpop.f32.mrb[95].mxu1  ;;  %v16409_v22 = vpop.f32.mrb[97].mxu0  ;;  %12665 = vmatprep.subr.bf16.mxu1 %v12664_v20  ;;  %12697 = vmatprep.subr.bf16.mxu0 %v12696_v24  ;;  %v12710_v20 = vpack.c.bf16 %v10407_v39, %v10406_v7  ;;  %v10376_v24 = vld [vmem:[%s17130_s13 + $0xe60] sm:$0xff]  ;;  %v12712_v29 = vpack.c.bf16 %v10425_v27, %v10424_v23  ;;  %v12714_v33 = vpack.c.bf16 %v10409_v16, %v10408_v30  ;;  %v10411_v42 = vld [vmem:[%s17130_s13 + $0xf78] sm:$0xff]  ;;  %v8743_v56 = vld [vmem:[%s16547_s25 + $0x8] sm:$0xff] }
0x3dad   : > { %8608 = vmatprep.mubr.f32.mxu1 %v8375_v9  ;;  %8683 = vmatprep.mubr.f32.mxu0 %v8377_v32  ;;  %v10426_v9 = vld [vmem:[%s17130_s13 + $0xff0] sm:$0xff]  ;;  %v10427_v32 = vld [vmem:[%s17130_s13 + $0xff8] sm:$0xff]  ;;  %v12718_v5 = vpack.c.bf16 %v10411_v42, %v10410_v52  ;;  %v8291_v4 = vadd.f32 %v16407_v41, %v16337_v14  ;;  %v8368_v61 = vadd.f32 %v16409_v22, %v16356_v57  ;;  %v8778_v59 = vld [vmem:[%s17283_s8 + $0x20] sm:$0xf] }
0x3dae   : > { %v12716_v6 = vpack.c.bf16 %v10427_v32, %v10426_v9  ;;  %v8744_v11 = vld [vmem:[%s16547_s25 + $0x10] sm:$0xff]  ;;  %v8745_v19 = vld [vmem:[%s16547_s25 + $0x18] sm:$0xff]  ;;  %v8754_v45 = vld [vmem:[%s16547_s25 + $0x60] sm:$0xff] }
0x3daf   : > { %12667 = vmatpush3.bf16.msra.mxu1 %v12666_v35  ;;  %12699 = vmatpush3.bf16.msra.mxu0 %v12698_v54  ;;  %v8035_v35 = vrot.slane %v16301_v21, %v14081_v10  ;;  %v12682_v54 = vpack.c.bf16 %v10377_v58, %v10376_v24  ;;  %v10379_v10 = vld [vmem:[%s17130_s13 + $0xe78] sm:$0xff]  ;;  %v8383_v41 = vmax.f32 %v8291_v4, 0.0  ;;  %v8385_v57 = vmax.f32 %v8368_v61, 0.0  ;;  %v8748_v0 = vld [vmem:[%s16547_s25 + $0x30] sm:$0xff]  ;;  %v8755_v55 = vld [vmem:[%s16547_s25 + $0x68] sm:$0xff] }
0x3db0   : > { %12669 = vmatprep.subr.bf16.mxu1 %v12668_v51  ;;  %12701 = vmatprep.subr.bf16.mxu0 %v12700_v43  ;;  %v8043_v51 = vrot.slane %v16301_v21, %v14288_v31  ;;  %v12684_v43 = vpack.c.bf16 %v10395_v26, %v10394_v1  ;;  %v8774_v31 = vld [vmem:[%s17283_s8] sm:$0xff]  ;;  %v8775_v21 = vld [vmem:[%s17283_s8 + $0x8] sm:$0xff]  ;;  %v12686_v47 = vpack.c.bf16 %v10379_v10, %v10378_v15  ;;  %v8749_v46 = vld [vmem:[%s16547_s25 + $0x38] sm:$0xff] }
0x3db1   : > { %v8283_v50 = vadd.f32 %v16370_v38, %v8035_v35  ;;  %v8289_v60 = vadd.f32 %v16397_v37, %v8035_v35  ;;  %v8752_v7 = vld [vmem:[%s16547_s25 + $0x50] sm:$0xff]  ;;  %v8753_v39 = vld [vmem:[%s16547_s25 + $0x58] sm:$0xff]  ;;  %v8766_v1 = vld [vmem:[%s16547_s25 + $0xc0] sm:$0xff] }
0x3db2   : > { %v8366_v14 = vadd.f32 %v16399_v34, %v8043_v51  ;;  %v8742_v34 = vld [vmem:[%s16547_s25] sm:$0xff]  ;;  %v8756_v23 = vld [vmem:[%s16547_s25 + $0x70] sm:$0xff]  ;;  %v8757_v27 = vld [vmem:[%s16547_s25 + $0x78] sm:$0xff] }
0x3db3   : > { %12671 = vmatpush3.bf16.msra.mxu1 %v12670_v3  ;;  %12703 = vmatpush3.bf16.msra.mxu0 %v12702_v8  ;;  %v8360_v3 = vadd.f32 %v16372_v53, %v8043_v51  ;;  %v12720_v8 = vpack.c.bf16 %v8775_v21, %v8774_v31  ;;  %v8374_v38 = vmax.f32 %v8283_v50, 0.0  ;;  %v8382_v36 = vmax.f32 %v8289_v60, 0.0  ;;  %v8760_v24 = vld [vmem:[%s16547_s25 + $0x90] sm:$0xff]  ;;  %v8761_v58 = vld [vmem:[%s16547_s25 + $0x98] sm:$0xff]  ;;  %v8767_v26 = vld [vmem:[%s16547_s25 + $0xc8] sm:$0xff] }
0x3db4   : > { %12673 = vmatprep.subr.bf16.mxu1 %v12672_v49  ;;  %12705 = vmatprep.subr.bf16.mxu0 %v12704_v12  ;;  %v8776_v49 = vld [vmem:[%s17283_s8 + $0x10] sm:$0xff]  ;;  %v8777_v12 = vld [vmem:[%s17283_s8 + $0x18] sm:$0xff]  ;;  %v8384_v37 = vmax.f32 %v8366_v14, 0.0  ;;  %v8770_v35 = vld [vmem:[%s16547_s25 + $0xe0] sm:$0xff] }
0x3db5   : > { %v8376_v53 = vmax.f32 %v8360_v3, 0.0  ;;  %v12724_v22 = vpack.c.bf16 %v8777_v12, %v8776_v49  ;;  %v8764_v30 = vld [vmem:[%s16547_s25 + $0xb0] sm:$0xff]  ;;  %v8765_v16 = vld [vmem:[%s16547_s25 + $0xb8] sm:$0xff] }
0x3db6   : > { %v8768_v9 = vld [vmem:[%s16547_s25 + $0xd0] sm:$0xff]  ;;  %v8769_v32 = vld [vmem:[%s16547_s25 + $0xd8] sm:$0xff] }
0x3db7   : > { %12675 = vmatpush3.bf16.msra.mxu1 %v12674_v17  ;;  %12707 = vmatpush3.bf16.msra.mxu0 %v12706_v63  ;;  %v8746_v17 = vld [vmem:[%s16547_s25 + $0x20] sm:$0xff]  ;;  %v8747_v63 = vld [vmem:[%s16547_s25 + $0x28] sm:$0xff]  ;;  %v8773_v15 = vld [vmem:[%s16547_s25 + $0xf8] sm:$0xff] }
0x3db8   : > { %12677 = vmatprep.subr.bf16.mxu1 %v12676_v28  ;;  %12709 = vmatprep.subr.bf16.mxu0 %v12708_v48  ;;  %v8750_v28 = vld [vmem:[%s16547_s25 + $0x40] sm:$0xff]  ;;  %v8751_v48 = vld [vmem:[%s16547_s25 + $0x48] sm:$0xff] }
0x3dbb   : > { %12679 = vmatpush3.bf16.msra.mxu1 %v12678_v18  ;;  %12711 = vmatpush3.bf16.msra.mxu0 %v12710_v20  ;;  %v8758_v18 = vld [vmem:[%s16547_s25 + $0x80] sm:$0xff]  ;;  %v8759_v20 = vld [vmem:[%s16547_s25 + $0x88] sm:$0xff] }
0x3dbc   : > { %12681 = vmatprep.subr.bf16.mxu1 %v12680_v25  ;;  %12713 = vmatprep.subr.bf16.mxu0 %v12712_v29  ;;  %v8762_v25 = vld [vmem:[%s16547_s25 + $0xa0] sm:$0xff]  ;;  %v8763_v29 = vld [vmem:[%s16547_s25 + $0xa8] sm:$0xff] }
0x3dbf   : > { %12683 = vmatpush3.bf16.msra.mxu1 %v12682_v54  ;;  %12715 = vmatpush3.bf16.msra.mxu0 %v12714_v33  ;;  %v8771_v54 = vld [vmem:[%s16547_s25 + $0xe8] sm:$0xff]  ;;  %v8772_v33 = vld [vmem:[%s16547_s25 + $0xf0] sm:$0xff] }
0x3dc0   : > { %12685 = vmatprep.subr.bf16.mxu1 %v12684_v43  ;;  %12717 = vmatprep.subr.bf16.mxu0 %v12716_v6  ;;  %v10474_v6 = vld [vmem:[%s17131_s14 + $0x3] ss:$0 sm:$0xff] }
0x3dc3   : > { %12687 = vmatpush3.bf16.msra.mxu1 %v12686_v47  ;;  %12719 = vmatpush3.bf16.msra.mxu0 %v12718_v5 }
0x3dc4   : > { %12721 = vmatprep.subr.bf16.mxu1 %v12720_v8 }
0x3dc6   : > { %8609 = vmatmul.mubr.f32.vlgmr.msra.gmra.mrb[100].mxu1 %v8374_v38  ;;  %8684 = vmatmul.mubr.f32.vlgmr.msra.gmra.mrb[102].mxu0 %v8376_v53 }
0x3dc7   : > { %8613 = vmatprep.mubr.f32.mxu1 %v8383_v41  ;;  %8688 = vmatprep.mubr.f32.mxu0 %v8385_v57 }
0x3dc8   : > { %12723 = vmatpush3.bf16.msra.mxu1 %v12720_v8 }
0x3dc9   : > { %12725 = vmatprep.subr.bf16.mxu1 %v12724_v22 }
0x3dca   : > { %8614 = vmatmul.mubr.f32.gmra.mrb[102].mxu1 %v8382_v36  ;;  %8689 = vmatmul.mubr.f32.gmra.mrb[104].mxu0 %v8384_v37 }
0x3dcb   : > { %11792 = vmatprep.mubr.msk.f32.mxu1 %vm8786_vm6, %v8742_v34 }
0x3dcc   : > { %12727 = vmatpush3.bf16.msra.mxu1 %v12724_v22 }
0x3dcd   : > { %11790 = vmatprep.subr.msk.mxu1 %vm8883_vm7, %v8778_v59 }
0x3dd0   : > { %11791 = vmatpush3.msk.msra.mxu1 %vm8883_vm7, %v8778_v59 }
0x3dd1   : > { %11793 = vmatmul.mubr.msk.f32.vlgmr.msra.gmra.mrb[104].mxu1 %vm8786_vm6, %v8743_v56 }
0x3dd2   : > { %11795 = vmatprep.mubr.msk.f32.mxu1 %vm8786_vm6, %v8744_v11 }
0x3dd5   : > { %11796 = vmatmul.mubr.msk.f32.gmra.mrb[106].mxu1 %vm8786_vm6, %v8745_v19 }
0x3dd6   : > { %11798 = vmatprep.mubr.msk.f32.mxu1 %vm8786_vm6, %v8746_v17 }
0x3dd9   : > { %11799 = vmatmul.mubr.msk.f32.gmra.mrb[108].mxu1 %vm8786_vm6, %v8747_v63 }
0x3dda   : > { %11801 = vmatprep.mubr.msk.f32.mxu1 %vm8786_vm6, %v8748_v0 }
0x3ddd   : > { %11802 = vmatmul.mubr.msk.f32.gmra.mrb[110].mxu1 %vm8786_vm6, %v8749_v46 }
0x3dde   : > { %11804 = vmatprep.mubr.msk.f32.mxu1 %vm8786_vm6, %v8750_v28 }
0x3de1   : > { %11805 = vmatmul.mubr.msk.f32.gmra.mrb[112].mxu1 %vm8786_vm6, %v8751_v48 }
0x3de2   : > { %11807 = vmatprep.mubr.msk.f32.mxu1 %vm8786_vm6, %v8752_v7 }
0x3de5   : > { %11808 = vmatmul.mubr.msk.f32.gmra.mrb[114].mxu1 %vm8786_vm6, %v8753_v39  ;;  %v16632_v39 = vld [vmem:[%s17285_s23] ss:$0 sm:$0xff] }
0x3de6   : > { %11810 = vmatprep.mubr.msk.f32.mxu1 %vm8786_vm6, %v8754_v45 }
0x3de9   : > { %11811 = vmatmul.mubr.msk.f32.gmra.mrb[116].mxu1 %vm8786_vm6, %v8755_v55 }
0x3dea   : > { %11813 = vmatprep.mubr.msk.f32.mxu1 %vm8786_vm6, %v8756_v23 }
0x3ded   : > { %11814 = vmatmul.mubr.msk.f32.gmra.mrb[118].mxu1 %vm8786_vm6, %v8757_v27 }
0x3dee   : > { %11816 = vmatprep.mubr.msk.f32.mxu1 %vm8786_vm6, %v8758_v18 }
0x3df1   : > { %11817 = vmatmul.mubr.msk.f32.gmra.mrb[120].mxu1 %vm8786_vm6, %v8759_v20 }
0x3df2   : > { %11819 = vmatprep.mubr.msk.f32.mxu1 %vm8786_vm6, %v8760_v24 }
0x3df5   : > { %11820 = vmatmul.mubr.msk.f32.gmra.mrb[122].mxu1 %vm8786_vm6, %v8761_v58 }
0x3df6   : > { %11822 = vmatprep.mubr.msk.f32.mxu1 %vm8786_vm6, %v8762_v25 }
0x3df9   : > { %11823 = vmatmul.mubr.msk.f32.gmra.mrb[124].mxu1 %vm8786_vm6, %v8763_v29 }
0x3dfa   : > { %11825 = vmatprep.mubr.msk.f32.mxu1 %vm8786_vm6, %v8764_v30 }
0x3dfd   : > { %11826 = vmatmul.mubr.msk.f32.gmra.mrb[126].mxu1 %vm8786_vm6, %v8765_v16 }
0x3dfe   : > { %11828 = vmatprep.mubr.msk.f32.mxu1 %vm8786_vm6, %v8766_v1 }
0x3e01   : > { %11829 = vmatmul.mubr.msk.f32.gmra.mrb[128].mxu1 %vm8786_vm6, %v8767_v26 }
0x3e02   : > { %11831 = vmatprep.mubr.msk.f32.mxu1 %vm8786_vm6, %v8768_v9 }
0x3e05   : > { %11832 = vmatmul.mubr.msk.f32.gmra.mrb[130].mxu1 %vm8786_vm6, %v8769_v32 }
0x3e06   : > { %11834 = vmatprep.mubr.msk.f32.mxu1 %vm8786_vm6, %v8770_v35 }
0x3e09   : > { %11835 = vmatmul.mubr.msk.f32.gmra.mrb[132].mxu1 %vm8786_vm6, %v8771_v54 }
0x3e0a   : > { %11837 = vmatprep.mubr.msk.f32.mxu1 %vm8786_vm6, %v8772_v33 }
0x3e0d   : > { %11838 = vmatmul.mubr.msk.f32.gmra.mrb[134].mxu1 %vm8786_vm6, %v8773_v15 }
0x3e79   : > { %v11225_v51 = vpop.f32.mrb[96].mxu1  ;;  %v11263_v43 = vpop.f32.mrb[98].mxu0 }
0x3e7a   : > { %v11226_v10 = vpop.f32.mrb[97].mxu1  ;;  %v11264_v52 = vpop.f32.mrb[99].mxu0 }
0x3e7b   : > { %v11227_v42 = vadd.f32 %v11226_v10, %v11225_v51  ;;  %v11265_v31 = vadd.f32 %v11264_v52, %v11263_v43 }
0x3e7d   : > { %v8461_v21 = vadd.f32 %v11227_v42, %v10474_v6  ;;  %v11228_v47 = vpop.f32.mrb[98].mxu1  ;;  %v11266_v5 = vpop.f32.mrb[100].mxu0 }
0x3e7e   : > { %v11229_v50 = vpop.f32.mrb[99].mxu1  ;;  %v11267_v3 = vpop.f32.mrb[101].mxu0 }
0x3e7f   : > { %v8536_v8 = vadd.f32 %v11265_v31, %v8461_v21  ;;  %v11230_v4 = vadd.f32 %v11229_v50, %v11228_v47  ;;  %v11268_v61 = vadd.f32 %v11267_v3, %v11266_v5 }
0x3e81   : > { %v8466_v49 = vadd.f32 %v11230_v4, %v10474_v6 }
0x3e83   : > { %v8541_v12 = vadd.f32 %v11268_v61, %v8466_v49 }
0x3e99   : > { %v11301_v38 = vpop.f32.mrb[100].mxu1  ;;  %v11339_v53 = vpop.f32.mrb[102].mxu0 }
0x3e9a   : > { %v11302_v60 = vpop.f32.mrb[101].mxu1  ;;  %v11340_v14 = vpop.f32.mrb[103].mxu0 }
0x3e9b   : > { %v11303_v41 = vadd.f32 %v11302_v60, %v11301_v38  ;;  %v11341_v57 = vadd.f32 %v11340_v14, %v11339_v53 }
0x3e9d   : > { %v8611_v22 = vadd.f32 %v11303_v41, %v8536_v8  ;;  %v11304_v36 = vpop.f32.mrb[102].mxu1  ;;  %v11342_v37 = vpop.f32.mrb[104].mxu0  ;;  %v9397_v41 = vld [vmem:[%s17290_s24 + $0x48] sm:$0xff] }
0x3e9e   : > { %v11305_v34 = vpop.f32.mrb[103].mxu1  ;;  %v11343_v59 = vpop.f32.mrb[105].mxu0 }
0x3e9f   : > { %v8686_v56 = vadd.f32 %v11341_v57, %v8611_v22  ;;  %v11306_v11 = vadd.f32 %v11305_v34, %v11304_v36  ;;  %v11344_v19 = vadd.f32 %v11343_v59, %v11342_v37 }
0x3ea1   : > { %v8616_v17 = vadd.f32 %v11306_v11, %v8541_v12  ;;  %v16620_v63 = vadd.f32 %v8686_v56, %v16059_v2 }
0x3ea3   : > { %v8691_v0 = vadd.f32 %v11344_v19, %v8616_v17  ;;  %v8700_v46 = vsel %vm1104_vm1, %v16620_v63, 0.0 }
0x3ea4   : > { %8701 = vadd.xlane.f32.xlu1 %v8700_v46  ;;  %v11794_v7 = vpop.f32.mrb[104].mxu1 }
0x3ea5   : > { %v16625_v28 = vadd.f32 %v8691_v0, %v16088_v40  ;;  %v8959_v2 = vadd.f32 %v11794_v7, %v16632_v39  ;;  %v8953_v45 = vpop.f32.mrb[105].mxu1 }
0x3ea6   : > { %v8954_v55 = vadd.f32 %v16632_v39, %v8953_v45 }
0x3ea7   : > { %v8703_v48 = vsel %vm1104_vm1, %v16625_v28, 0.0 }
0x3ea8   : > { %8704 = vadd.xlane.f32.xlu0 %v8703_v48  ;;  %v11797_v23 = vpop.f32.mrb[106].mxu1  ;;  %v12731_v18 = vpack.c.bf16 %v8959_v2, %v8954_v55 }
0x3ea9   : > { %v8969_v27 = vadd.f32 %v11797_v23, %v16632_v39  ;;  %v8963_v40 = vpop.f32.mrb[107].mxu1 }
0x3eaa   : > { %v8964_v20 = vadd.f32 %v16632_v39, %v8963_v40 }
0x3eac   : > { %v11800_v24 = vpop.f32.mrb[108].mxu1  ;;  %v12737_v29 = vpack.c.bf16 %v8969_v27, %v8964_v20 }
0x3ead   : > { %v8979_v58 = vadd.f32 %v11800_v24, %v16632_v39  ;;  %v8973_v25 = vpop.f32.mrb[109].mxu1 }
0x3eae   : > { %v8974_v30 = vadd.f32 %v16632_v39, %v8973_v25 }
0x3eb0   : > { %v11803_v16 = vpop.f32.mrb[110].mxu1  ;;  %v12743_v9 = vpack.c.bf16 %v8979_v58, %v8974_v30 }
0x3eb1   : > { %v8989_v1 = vadd.f32 %v11803_v16, %v16632_v39  ;;  %v8983_v26 = vpop.f32.mrb[111].mxu1 }
0x3eb2   : > { %v8984_v32 = vadd.f32 %v16632_v39, %v8983_v26 }
0x3eb4   : > { %v12749_v35 = vpack.c.bf16 %v8989_v1, %v8984_v32  ;;  %v11806_v54 = vpop.f32.mrb[112].mxu1 }
0x3eb5   : > { %v8999_v33 = vadd.f32 %v11806_v54, %v16632_v39  ;;  %v8993_v15 = vpop.f32.mrb[113].mxu1 }
0x3eb6   : > { %v8994_v51 = vadd.f32 %v16632_v39, %v8993_v15 }
0x3eb8   : > { %v12755_v43 = vpack.c.bf16 %v8999_v33, %v8994_v51  ;;  %v11809_v6 = vpop.f32.mrb[114].mxu1 }
0x3eb9   : > { %v16645_v10 = vadd.f32 %v11809_v6, %v16632_v39  ;;  %v9003_v52 = vpop.f32.mrb[115].mxu1 }
0x3eba   : > { %v16648_v42 = vadd.f32 %v16632_v39, %v9003_v52 }
0x3ebc   : > { %v12761_v31 = vpack.c.bf16 %v16645_v10, %v16648_v42  ;;  %v11812_v21 = vpop.f32.mrb[116].mxu1 }
0x3ebd   : > { %v16653_v47 = vadd.f32 %v11812_v21, %v16632_v39  ;;  %v9013_v5 = vpop.f32.mrb[117].mxu1 }
0x3ebe   : > { %v9014_v50 = vadd.f32 %v16632_v39, %v9013_v5  ;;  %v9292_v5 = vld [vmem:[%s17289_s2 + $0x18] sm:$0xff] }
0x3ec0   : > { %v12767_v3 = vpack.c.bf16 %v16653_v47, %v9014_v50  ;;  %v11815_v8 = vpop.f32.mrb[118].mxu1 }
0x3ec1   : > { %v9029_v4 = vadd.f32 %v11815_v8, %v16632_v39  ;;  %v9023_v61 = vpop.f32.mrb[119].mxu1  ;;  %v9388_v8 = vld [vmem:[%s17290_s24] sm:$0xff] }
0x3ec2   : > { %v9024_v49 = vadd.f32 %v16632_v39, %v9023_v61  ;;  %v9390_v61 = vld [vmem:[%s17290_s24 + $0x10] sm:$0xff] }
0x3ec4   : > { %v12773_v12 = vpack.c.bf16 %v9029_v4, %v9024_v49  ;;  %v11818_v38 = vpop.f32.mrb[120].mxu1  ;;  %v9393_v49 = vld [vmem:[%s17290_s24 + $0x28] sm:$0xff] }
0x3ec5   : > { %v9039_v53 = vadd.f32 %v11818_v38, %v16632_v39  ;;  %v9033_v60 = vpop.f32.mrb[121].mxu1  ;;  %v12786_v38 = vpack.c.bf16 %v9390_v61, %v9388_v8  ;;  %v9428_v61 = vld [vmem:[%s17290_s24 + $0x140] sm:$0xff] }
0x3ec6   : > { %v9034_v14 = vadd.f32 %v16632_v39, %v9033_v60  ;;  %v9392_v60 = vld [vmem:[%s17290_s24 + $0x20] sm:$0xff] }
0x3ec8   : > { %v12728_v57 = vpack.c.bf16 %v9039_v53, %v9034_v14  ;;  %v11821_v22 = vpop.f32.mrb[122].mxu1  ;;  %v9394_v14 = vld [vmem:[%s17290_s24 + $0x30] sm:$0xff] }
0x3ec9   : > { %v9049_v36 = vadd.f32 %v11821_v22, %v16632_v39  ;;  %v9043_v37 = vpop.f32.mrb[123].mxu1  ;;  %v12790_v22 = vpack.c.bf16 %v9394_v14, %v9392_v60  ;;  %v9432_v14 = vld [vmem:[%s17290_s24 + $0x160] sm:$0xff] }
0x3eca   : > { %12730 = vmatprep.subr.msk.bf16.mxu1 %vm16663_vm8, %v12728_v57  ;;  %v9044_v34 = vadd.f32 %v16632_v39, %v9043_v37  ;;  %v9399_v57 = vld [vmem:[%s17290_s24 + $0x58] sm:$0xff]  ;;  %v9396_v37 = vld [vmem:[%s17290_s24 + $0x40] sm:$0xff] }
0x3ecb   : > { %12733 = vmatpush3.bf16.xpose.msk.msra.mxu1 %vm16663_vm8, %v12731_v18 }
0x3ecc   : > { %v12734_v59 = vpack.c.bf16 %v9049_v36, %v9044_v34  ;;  %v11824_v56 = vpop.f32.mrb[124].mxu1  ;;  %v12792_v36 = vpack.c.bf16 %v9399_v57, %v9397_v41  ;;  %v9398_v34 = vld [vmem:[%s17290_s24 + $0x50] sm:$0xff]  ;;  %v9437_v57 = vld [vmem:[%s17290_s24 + $0x188] sm:$0xff] }
0x3ecd   : > { %v9059_v11 = vadd.f32 %v11824_v56, %v16632_v39  ;;  %v9053_v19 = vpop.f32.mrb[125].mxu1  ;;  %v9403_v56 = vld [vmem:[%s17290_s24 + $0x78] sm:$0xff]  ;;  %v9434_v41 = vld [vmem:[%s17290_s24 + $0x170] sm:$0xff] }
0x3ece   : > { %12736 = vmatprep.subr.msk.bf16.mxu1 %vm16663_vm8, %v12734_v59  ;;  %v9054_v17 = vadd.f32 %v16632_v39, %v9053_v19  ;;  %v9401_v59 = vld [vmem:[%s17290_s24 + $0x68] sm:$0xff] }
0x3ecf   : > { %v12796_v19 = vpack.c.bf16 %v9403_v56, %v9401_v59 }
0x3ed0   : > { %v12740_v0 = vpack.c.bf16 %v9059_v11, %v9054_v17  ;;  %v11827_v46 = vpop.f32.mrb[126].mxu1  ;;  %v12794_v11 = vpack.c.bf16 %v9398_v34, %v9396_v37  ;;  %v9400_v17 = vld [vmem:[%s17290_s24 + $0x60] sm:$0xff] }
0x3ed1   : > { %v9069_v48 = vadd.f32 %v11827_v46, %v16632_v39  ;;  %v9063_v7 = vpop.f32.mrb[127].mxu1  ;;  %v9405_v46 = vld [vmem:[%s17290_s24 + $0x88] sm:$0xff] }
0x3ed2   : > { %v9064_v2 = vadd.f32 %v16632_v39, %v9063_v7 }
0x3ed3   : > { %12739 = vmatpush3.bf16.xpose.msk.msra.mxu1 %vm16663_vm8, %v12737_v29 }
0x3ed4   : > { %12742 = vmatprep.subr.msk.bf16.mxu1 %vm16663_vm8, %v12740_v0  ;;  %v12746_v45 = vpack.c.bf16 %v9069_v48, %v9064_v2  ;;  %v11830_v55 = vpop.f32.mrb[128].mxu1  ;;  %v9402_v0 = vld [vmem:[%s17290_s24 + $0x70] sm:$0xff]  ;;  %v9407_v48 = vld [vmem:[%s17290_s24 + $0x98] sm:$0xff] }
0x3ed5   : > { %v9079_v23 = vadd.f32 %v11830_v55, %v16632_v39  ;;  %v9073_v27 = vpop.f32.mrb[129].mxu1  ;;  %v12798_v7 = vpack.c.bf16 %v9402_v0, %v9400_v17  ;;  %v12800_v2 = vpack.c.bf16 %v9407_v48, %v9405_v46  ;;  %v9406_v55 = vld [vmem:[%s17290_s24 + $0x90] sm:$0xff]  ;;  %v10477_v46 = vld [vmem:[%s17132_s15 + $0x3] ss:$0 sm:$0xff] }
0x3ed6   : > { %v9074_v40 = vadd.f32 %v16632_v39, %v9073_v27  ;;  %v9411_v27 = vld [vmem:[%s17290_s24 + $0xb8] sm:$0xff] }
0x3ed8   : > { %v12752_v18 = vpack.c.bf16 %v9079_v23, %v9074_v40  ;;  %v11833_v20 = vpop.f32.mrb[130].mxu1  ;;  %v9409_v23 = vld [vmem:[%s17290_s24 + $0xa8] sm:$0xff] }
0x3ed9   : > { %v9089_v24 = vadd.f32 %v11833_v20, %v16632_v39  ;;  %v9083_v58 = vpop.f32.mrb[131].mxu1  ;;  %v9408_v20 = vld [vmem:[%s17290_s24 + $0xa0] sm:$0xff] }
0x3eda   : > { %v9084_v25 = vadd.f32 %v16632_v39, %v9083_v58  ;;  %v9413_v58 = vld [vmem:[%s17290_s24 + $0xc8] sm:$0xff] }
0x3edb   : > { %12745 = vmatpush3.bf16.xpose.msk.msra.mxu1 %vm16663_vm8, %v12743_v9 }
0x3edc   : > { %12748 = vmatprep.subr.msk.bf16.mxu1 %vm16663_vm8, %v12746_v45  ;;  %v12758_v29 = vpack.c.bf16 %v9089_v24, %v9084_v25  ;;  %v11836_v30 = vpop.f32.mrb[132].mxu1  ;;  %v9404_v45 = vld [vmem:[%s17290_s24 + $0x80] sm:$0xff]  ;;  %v9410_v24 = vld [vmem:[%s17290_s24 + $0xb0] sm:$0xff]  ;;  %v9415_v25 = vld [vmem:[%s17290_s24 + $0xd8] sm:$0xff] }
0x3edd   : > { %v9099_v16 = vadd.f32 %v11836_v30, %v16632_v39  ;;  %v9093_v1 = vpop.f32.mrb[133].mxu1  ;;  %v12802_v40 = vpack.c.bf16 %v9406_v55, %v9404_v45  ;;  %v12808_v30 = vpack.c.bf16 %v9415_v25, %v9413_v58  ;;  %v10478_v45 = vld [vmem:[%s17133_s16 + $0x3] ss:$0 sm:$0xff] }
0x3ede   : > { %v9094_v26 = vadd.f32 %v16632_v39, %v9093_v1  ;;  %v9414_v1 = vld [vmem:[%s17290_s24 + $0xd0] sm:$0xff] }
0x3ee0   : > { %v12764_v9 = vpack.c.bf16 %v9099_v16, %v9094_v26  ;;  %v11839_v32 = vpop.f32.mrb[134].mxu1  ;;  %v9412_v16 = vld [vmem:[%s17290_s24 + $0xc0] sm:$0xff]  ;;  %v9417_v26 = vld [vmem:[%s17290_s24 + $0xe8] sm:$0xff] }
0x3ee1   : > { %v9103_v54 = vpop.f32.mrb[135].mxu1 }
0x3ee2   : > { %v9104_v33 = vadd.f32 %v16632_v39, %v9103_v54  ;;  %v9416_v54 = vld [vmem:[%s17290_s24 + $0xe0] sm:$0xff] }
0x3ee3   : > { %12751 = vmatpush3.bf16.xpose.msk.msra.mxu1 %vm16663_vm8, %v12749_v35  ;;  %v9109_v35 = vadd.f32 %v11839_v32, %v16632_v39  ;;  %v12810_v32 = vpack.c.bf16 %v9414_v1, %v9412_v16  ;;  %v9293_v16 = vld [vmem:[%s17289_s2 + $0x20] sm:$0xff]  ;;  %v9295_v1 = vld [vmem:[%s17289_s2 + $0x30] sm:$0xff] }
0x3ee4   : > { %12754 = vmatprep.subr.msk.bf16.mxu1 %vm16663_vm8, %v12752_v18  ;;  %v12804_v18 = vpack.c.bf16 %v9411_v27, %v9409_v23 }
0x3ee5   : > { %v12770_v15 = vpack.c.bf16 %v9109_v35, %v9104_v33  ;;  %v9418_v33 = vld [vmem:[%s17290_s24 + $0xf0] sm:$0xff] }
0x3eeb   : > { %12757 = vmatpush3.bf16.xpose.msk.msra.mxu1 %vm16663_vm8, %v12755_v43 }
0x3eec   : > { %12760 = vmatprep.subr.msk.bf16.mxu1 %vm16663_vm8, %v12758_v29  ;;  %v12806_v29 = vpack.c.bf16 %v9410_v24, %v9408_v20  ;;  %v9291_v20 = vld [vmem:[%s17289_s2 + $0x10] sm:$0xff] }
0x3ef3   : > { %12763 = vmatpush3.bf16.xpose.msk.msra.mxu1 %vm16663_vm8, %v12761_v31 }
0x3ef4   : > { %12766 = vmatprep.subr.msk.bf16.mxu1 %vm16663_vm8, %v12764_v9  ;;  %v9419_v9 = vld [vmem:[%s17290_s24 + $0xf8] sm:$0xff] }
0x3ef5   : > { %v12812_v35 = vpack.c.bf16 %v9419_v9, %v9417_v26  ;;  %v12782_v26 = vpack.c.bf16 %v9295_v1, %v9293_v16  ;;  %v9436_v9 = vld [vmem:[%s17290_s24 + $0x180] sm:$0xff] }
0x3ef6   : > { %v9297_v16 = vld [vmem:[%s17294_s18] sm:$0x3] }
0x3ef7   : > { %v9302_v1 = vrot.slane %v9297_v16, %v14055_v13 }
0x3efb   : > { %12769 = vmatpush3.bf16.xpose.msk.msra.mxu1 %vm16663_vm8, %v12767_v3  ;;  %v9391_v3 = vld [vmem:[%s17290_s24 + $0x18] sm:$0xff] }
0x3efc   : > { %12772 = vmatprep.subr.msk.bf16.mxu1 %vm16663_vm8, %v12770_v15  ;;  %v9421_v15 = vld [vmem:[%s17290_s24 + $0x108] sm:$0xff] }
0x3f03   : > { %12775 = vmatpush3.bf16.xpose.msk.msra.mxu1 %vm16663_vm8, %v12773_v12  ;;  %v9395_v12 = vld [vmem:[%s17290_s24 + $0x38] sm:$0xff] }
0x3f04   : > { %v12788_v53 = vpack.c.bf16 %v9395_v12, %v9393_v49  ;;  %v9430_v49 = vld [vmem:[%s17290_s24 + $0x150] sm:$0xff]  ;;  %v9433_v12 = vld [vmem:[%s17290_s24 + $0x168] sm:$0xff] }
0x3f31   : > { %v8702_v39 = vpop.xlane.xlu1 %8701 }
0x3f32   : > { %v8706_v51 = vmul.f32 0.03125, %v8702_v39  ;;  %v9423_v39 = vld [vmem:[%s17290_s24 + $0x118] sm:$0xff] }
0x3f34   : > { %v16717_v43 = vsub.f32 %v16620_v63, %v8706_v51  ;;  %v9290_v63 = vld [vmem:[%s17288_s7 + $0x8] sm:$0xff]  ;;  %v12814_v51 = vpack.c.bf16 %v9418_v33, %v9416_v54  ;;  %s800_s7 = sand.u32 1, %s17296_s20  }
0x3f35   : > { %v8705_v6 = vpop.xlane.xlu0 %8704  ;;  %v12776_v50 = vpack.c.bf16 %v9292_v5, %v9290_v63  ;;  %v9424_v5 = vld [vmem:[%s17290_s24 + $0x120] sm:$0xff]  ;;  %v9441_v54 = vld [vmem:[%s17290_s24 + $0x1a8] sm:$0xff]  ;;  %s9654_s18 = scalar_lea.sflag [#allocation3], %s800_s7 }
0x3f36   : > { %v8707_v10 = vmul.f32 0.03125, %v8705_v6  ;;  %v8710_v52 = vmul.f32 %v16717_v43, %v16717_v43  ;;  %v12816_v6 = vpack.c.bf16 %v9423_v39, %v9421_v15  ;;  %v9440_v15 = vld [vmem:[%s17290_s24 + $0x1a0] sm:$0xff]  ;;  %v9442_v39 = vld [vmem:[%s17290_s24 + $0x1b0] sm:$0xff] }
0x3f37   : > { %12777 = vmatprep.subr.bf16.mxu1 %v12776_v50  ;;  %v9426_v50 = vld [vmem:[%s17290_s24 + $0x130] sm:$0xff] }
0x3f38   : > { %v16722_v42 = vsub.f32 %v16625_v28, %v8707_v10  ;;  %v8712_v31 = vsel %vm1104_vm1, %v8710_v52, 0.0  ;;  %v9389_v28 = vld [vmem:[%s17290_s24 + $0x8] sm:$0xff]  ;;  %v9420_v10 = vld [vmem:[%s17290_s24 + $0x100] sm:$0xff]  ;;  %v9422_v52 = vld [vmem:[%s17290_s24 + $0x110] sm:$0xff]  ;;  %v12822_v8 = vpack.c.bf16 %v9426_v50, %v9424_v5 }
0x3f39   : > { %8713 = vadd.xlane.f32.xlu1 %v8712_v31  ;;  %v12784_v4 = vpack.c.bf16 %v9391_v3, %v9389_v28  ;;  %v9425_v31 = vld [vmem:[%s17290_s24 + $0x128] sm:$0xff]  ;;  %v9431_v3 = vld [vmem:[%s17290_s24 + $0x158] sm:$0xff] }
0x3f3a   : > { %v8711_v21 = vmul.f32 %v16722_v42, %v16722_v42  ;;  %v9429_v28 = vld [vmem:[%s17290_s24 + $0x148] sm:$0xff]  ;;  %v9451_v5 = vld [vmem:[%s17290_s24 + $0x1f8] sm:$0xff] }
0x3f3b   : > { %12785 = vmatprep.subr.bf16.mxu0 %v12784_v4  ;;  %v12824_v4 = vpack.c.bf16 %v9431_v3, %v9429_v28  ;;  %v9448_v28 = vld [vmem:[%s17290_s24 + $0x1e0] sm:$0xff]  ;;  %v9450_v3 = vld [vmem:[%s17290_s24 + $0x1f0] sm:$0xff] }
0x3f3c   : > { %v8715_v47 = vsel %vm1104_vm1, %v8711_v21, 0.0  ;;  %12787 = vmatpush1.bf16.msra.mxu0 %v12786_v38  ;;  %v9427_v21 = vld [vmem:[%s17290_s24 + $0x138] sm:$0xff] }
0x3f3d   : > { %8716 = vadd.xlane.f32.xlu0 %v8715_v47  ;;  %12789 = vmatprep.subr.bf16.mxu0 %v12788_v53  ;;  %v12818_v47 = vpack.c.bf16 %v9422_v52, %v9420_v10  ;;  %v12820_v63 = vpack.c.bf16 %v9427_v21, %v9425_v31  ;;  %v9435_v38 = vld [vmem:[%s17290_s24 + $0x178] sm:$0xff]  ;;  %v12826_v53 = vpack.c.bf16 %v9430_v49, %v9428_v61  ;;  %v9444_v31 = vld [vmem:[%s17290_s24 + $0x1c0] sm:$0xff]  ;;  %v9446_v21 = vld [vmem:[%s17290_s24 + $0x1d0] sm:$0xff] }
0x3f3e   : > { %v12828_v60 = vpack.c.bf16 %v9435_v38, %v9433_v12  ;;  %v9447_v10 = vld [vmem:[%s17290_s24 + $0x1d8] sm:$0xff]  ;;  %v9558_v61 = vld [vmem:[%s17292_s10 + $0x88] sm:$0xff]  ;;  %v9541_v49 = vld [vmem:[%s17292_s10] sm:$0xff] }
0x3f3f   : > { %v9542_v38 = vld [vmem:[%s17292_s10 + $0x8] sm:$0xff] }
0x3f40   : > { %12791 = vmatpush1.bf16.msra.mxu0 %v12790_v22  ;;  %v9439_v22 = vld [vmem:[%s17290_s24 + $0x198] sm:$0xff] }
0x3f41   : > { %12793 = vmatprep.subr.bf16.mxu0 %v12792_v36  ;;  %v12830_v36 = vpack.c.bf16 %v9434_v41, %v9432_v14  ;;  %v12832_v37 = vpack.c.bf16 %v9439_v22, %v9437_v57  ;;  %v12850_v14 = vpack.c.bf16 %v9542_v38, %v9541_v49  ;;  %v9543_v57 = vld [vmem:[%s17292_s10 + $0x10] sm:$0xff]  ;;  %v9544_v22 = vld [vmem:[%s17292_s10 + $0x18] sm:$0xff] }
0x3f44   : > { %12795 = vmatpush1.bf16.msra.mxu0 %v12794_v11 }
0x3f45   : > { %12797 = vmatprep.subr.bf16.mxu0 %v12796_v19 }
0x3f48   : > { %12799 = vmatpush1.bf16.msra.mxu0 %v12798_v7 }
0x3f49   : > { %12801 = vmatprep.subr.bf16.mxu0 %v12800_v2 }
0x3f4c   : > { %12803 = vmatpush1.bf16.msra.mxu0 %v12802_v40 }
0x3f4d   : > { %12805 = vmatprep.subr.bf16.mxu0 %v12804_v18  ;;  %v9289_v18 = vld [vmem:[%s17289_s2] sm:$0xff] }
0x3f4e   : > { %v12778_v25 = vpack.c.bf16 %v9291_v20, %v9289_v18  ;;  %v9567_v18 = vld [vmem:[%s17292_s10 + $0xd0] sm:$0xff]  ;;  %v9568_v20 = vld [vmem:[%s17292_s10 + $0xd8] sm:$0xff] }
0x3f50   : > { %12807 = vmatpush1.bf16.msra.mxu0 %v12806_v29 }
0x3f51   : > { %12809 = vmatprep.subr.bf16.mxu0 %v12808_v30 }
0x3f54   : > { %12811 = vmatpush1.bf16.msra.mxu0 %v12810_v32  ;;  %v9438_v32 = vld [vmem:[%s17290_s24 + $0x190] sm:$0xff] }
0x3f55   : > { %12813 = vmatprep.subr.bf16.mxu0 %v12812_v35  ;;  %v12834_v35 = vpack.c.bf16 %v9438_v32, %v9436_v9 }
0x3f58   : > { %12815 = vmatpush1.bf16.msra.mxu0 %v12814_v51  ;;  %v12838_v51 = vpack.c.bf16 %v9442_v39, %v9440_v15 }
0x3f59   : > { %12817 = vmatprep.subr.bf16.mxu0 %v12816_v6  ;;  %v9445_v6 = vld [vmem:[%s17290_s24 + $0x1c8] sm:$0xff] }
0x3f5a   : > { %v12840_v52 = vpack.c.bf16 %v9447_v10, %v9445_v6  ;;  %v9570_v6 = vld [vmem:[%s17292_s10 + $0xe8] sm:$0xff] }
0x3f5c   : > { %12819 = vmatpush1.bf16.msra.mxu0 %v12818_v47  ;;  %v12842_v47 = vpack.c.bf16 %v9446_v21, %v9444_v31  ;;  %v9554_v31 = vld [vmem:[%s17292_s10 + $0x68] sm:$0xff] }
0x3f5d   : > { %12821 = vmatprep.subr.bf16.mxu0 %v12820_v63  ;;  %v9449_v63 = vld [vmem:[%s17290_s24 + $0x1e8] sm:$0xff] }
0x3f5e   : > { %v12844_v50 = vpack.c.bf16 %v9451_v5, %v9449_v63  ;;  %v9572_v63 = vld [vmem:[%s17292_s10 + $0xf8] sm:$0xff] }
0x3f60   : > { %12823 = vmatpush1.bf16.msra.mxu0 %v12822_v8  ;;  %v12846_v8 = vpack.c.bf16 %v9450_v3, %v9448_v28  ;;  %v9556_v28 = vld [vmem:[%s17292_s10 + $0x78] sm:$0xff] }
0x3f61   : > { %12825 = vmatprep.subr.bf16.mxu0 %v12824_v4  ;;  %v9557_v4 = vld [vmem:[%s17291_s27 + $0x80] sm:$0xff]  ;;  %s17293_s27 = sld [smem:[#allocation34_spill]] }
0x3f62   : > { %v12848_v12 = vpack.c.bf16 %v9558_v61, %v9557_v4 }
0x3f64   : > { %12827 = vmatpush1.bf16.msra.mxu0 %v12826_v53  ;;  %v9559_v53 = vld [vmem:[%s17292_s10 + $0x90] sm:$0xff] }
0x3f65   : > { %12829 = vmatprep.subr.bf16.mxu0 %v12828_v60  ;;  %v9560_v60 = vld [vmem:[%s17292_s10 + $0x98] sm:$0xff] }
0x3f66   : > { %v12852_v41 = vpack.c.bf16 %v9560_v60, %v9559_v53 }
0x3f67   : > { %s825_s28 = scalar_lea.vmem %s17293_s27, %s10550_s1  ;;  %s801_s1 = scalar_lea.vmem [#allocation2], %s800_s7 }
0x3f68   : > { %12831 = vmatpush1.bf16.msra.mxu0 %v12830_v36  ;;  %v9561_v36 = vld [vmem:[%s17292_s10 + $0xa0] sm:$0xff]  ;;  %s9671_s3 = sshll.u32 %s801_s1, 4  ;;  %s17077_s3 = int_to_ptr.vmem [resolvable:$true] %s9671_s3 }
0x3f69   : > { %12833 = vmatprep.subr.bf16.mxu0 %v12832_v37  ;;  %v9562_v37 = vld [vmem:[%s17292_s10 + $0xa8] sm:$0xff]  ;;  %s13256_s4 = scalar_lea.vmem %s17077_s3, 16 }
0x3f6a   : > { %p13257_p13 = scmp.ne.s32.totalorder %s17077_s3, %s13256_s4 }
0x3f6c   : > { %12835 = vmatpush1.bf16.msra.mxu0 %v12834_v35  ;;  %p13258_p0 = pnand %p13257_p13, %p13509_p5 }
0x3f6e   : > { %p13259_p1 = pneg %p13258_p0 }
0x3fc6   : > { %v8714_v34 = vpop.xlane.xlu1 %8713 }
0x3fc7   : > { %v8718_v59 = vmul.f32 0.03125, %v8714_v34  ;;  %v12854_v34 = vpack.c.bf16 %v9544_v22, %v9543_v57 }
0x3fc9   : > { %v8720_v56 = vadd.f32 1e-05, %v8718_v59  ;;  %v12856_v59 = vpack.c.bf16 %v9562_v37, %v9561_v36 }
0x3fca   : > { %v8717_v11 = vpop.xlane.xlu0 %8716 }
0x3fcb   : > { %13250 = vrsqrt.f32 %v8720_v56  ;;  %v8719_v19 = vmul.f32 0.03125, %v8717_v11  ;;  %v9545_v56 = vld [vmem:[%s17292_s10 + $0x20] sm:$0xff]  ;;  %v9546_v11 = vld [vmem:[%s17292_s10 + $0x28] sm:$0xff] }
0x3fcd   : > { %v8721_v17 = vadd.f32 1e-05, %v8719_v19  ;;  %v9563_v19 = vld [vmem:[%s17292_s10 + $0xb0] sm:$0xff] }
0x3fcf   : > { %13252 = vrsqrt.f32 %v8721_v17  ;;  %v9564_v17 = vld [vmem:[%s17292_s10 + $0xb8] sm:$0xff] }
0x3fd5   : > { %v13251_v0 = vpop.eup %13250 }
0x3fd6   : > { %v8724_v48 = vmul.f32 %v13251_v0, %v16717_v43  ;;  %v9294_v43 = vld [vmem:[%s17289_s2 + $0x28] sm:$0xff]  ;;  %v12858_v0 = vpack.c.bf16 %v9546_v11, %v9545_v56 }
0x3fd8   : > { %v8732_v7 = vmul.f32 %v10477_v46, %v8724_v48  ;;  %v9547_v48 = vld [vmem:[%s17292_s10 + $0x30] sm:$0xff] }
0x3fd9   : > { %v13253_v2 = vpop.eup %13252 }
0x3fda   : > { %v8725_v55 = vmul.f32 %v13253_v2, %v16722_v42  ;;  %v8740_v27 = vadd.f32 %v10478_v45, %v8732_v7  ;;  %v9296_v42 = vld [vmem:[%s17289_s2 + $0x38] sm:$0xff]  ;;  %v9565_v2 = vld [vmem:[%s17292_s10 + $0xc0] sm:$0xff] }
0x3fdb   : > { %v12780_v30 = vpack.c.bf16 %v9296_v42, %v9294_v43  ;;  %v9548_v7 = vld [vmem:[%s17292_s10 + $0x38] sm:$0xff]  ;;  %v12868_v42 = vpack.c.bf16 %v9568_v20, %v9567_v18 }
0x3fdc   : > { %v8733_v23 = vmul.f32 %v10477_v46, %v8725_v55  ;;  %v9115_v24 = vrot.slane %v8740_v27, 1  ;;  %v12860_v46 = vpack.c.bf16 %v9564_v17, %v9563_v19  ;;  %v12862_v55 = vpack.c.bf16 %v9548_v7, %v9547_v48 }
0x3fde   : > { %v8741_v40 = vadd.f32 %v10478_v45, %v8733_v23  ;;  %v9566_v45 = vld [vmem:[%s17292_s10 + $0xc8] sm:$0xff] }
0x3fdf   : > { %v12864_v23 = vpack.c.bf16 %v9566_v45, %v9565_v2 }
0x3fe0   : > { %v9116_v58 = vrot.slane %v8741_v40, 1  ;;  %v9550_v40 = vld [vmem:[%s17292_s10 + $0x48] sm:$0xff] }
0x3fe2   : > { %v9117_v29 = vsel %vm9114_vm9, %v9115_v24, %v9116_v58  ;;  %v9551_v24 = vld [vmem:[%s17292_s10 + $0x50] sm:$0xff]  ;;  %v9552_v58 = vld [vmem:[%s17292_s10 + $0x58] sm:$0xff] }
0x3fe3   : > { %11414 = vmatprep.mubr.msk.f32.mxu1 %vm1104_vm1, %v9117_v29 }
0x3fe4   : > { %11415 = vmatmul.mubr.msk.f32.vlgmr.msra.gmra.mrb[136].mxu1 %vm1104_vm1, %v9117_v29 }
0x3fe5   : > { %12779 = vmatpush1.bf16.msra.mxu1 %v12778_v25  ;;  %9375 = vmatprep.mubr.f32.mxu1 %v13334_v44  ;;  %v9443_v44 = vld [vmem:[%s17290_s24 + $0x1b8] sm:$0xff]  ;;  %v12870_v25 = vpack.c.bf16 %v9552_v58, %v9551_v24 }
0x3fe6   : > { %12781 = vmatprep.subr.bf16.mxu1 %v12780_v30  ;;  %v12836_v33 = vpack.c.bf16 %v9443_v44, %v9441_v54 }
0x3fe8   : > { %12837 = vmatprep.subr.bf16.mxu0 %v12836_v33 }
0x3fe9   : > { %12783 = vmatpush1.bf16.msra.mxu1 %v12782_v26  ;;  %12839 = vmatpush1.bf16.msra.mxu0 %v12838_v51  ;;  %v9306_v26 = vrot.slane %v9297_v16, %v14063_v62  ;;  %v9569_v51 = vld [vmem:[%s17292_s10 + $0xe0] sm:$0xff] }
0x3fea   : > { %12841 = vmatprep.subr.bf16.mxu0 %v12840_v52  ;;  %12849 = vmatprep.subr.bf16.mxu1 %v12848_v12  ;;  %v12872_v10 = vpack.c.bf16 %v9570_v6, %v9569_v51  ;;  %v9553_v52 = vld [vmem:[%s17292_s10 + $0x60] sm:$0xff] }
0x3feb   : > { %v12874_v21 = vpack.c.bf16 %v9554_v31, %v9553_v52 }
0x3fec   : > { %10546 = vmatmul.mubr.msk.f32.vlgmr.msra.gmra.mrb[138].mxu1 %vm1104_vm1, %v8740_v27  ;;  %v9549_v27 = vld [vmem:[%s17292_s10 + $0x40] sm:$0xff] }
0x3fed   : > { %12843 = vmatpush1.bf16.msra.mxu0 %v12842_v47  ;;  %12851 = vmatpush3.bf16.msra.mxu1 %v12850_v14  ;;  %v12866_v43 = vpack.c.bf16 %v9550_v40, %v9549_v27  ;;  %v9571_v47 = vld [vmem:[%s17292_s10 + $0xf0] sm:$0xff] }
0x3fee   : > { %12845 = vmatprep.subr.bf16.mxu0 %v12844_v50  ;;  %12853 = vmatprep.subr.bf16.mxu1 %v12852_v41  ;;  %v12876_v5 = vpack.c.bf16 %v9572_v63, %v9571_v47  ;;  %v9555_v50 = vld [vmem:[%s17292_s10 + $0x70] sm:$0xff] }
0x3fef   : > { %v12878_v3 = vpack.c.bf16 %v9556_v28, %v9555_v50 }
0x3ff1   : > { %12847 = vmatpush1.bf16.msra.mxu0 %v12846_v8  ;;  %12855 = vmatpush3.bf16.msra.mxu1 %v12854_v34  ;;  %v9452_v8 = vld [vmem:[%s17295_s5] sm:$0x3]  ;;  %s13260_s5 = sshll.u32 %s13335_s17, 4  ;;  %s13261_s5 = int_to_ptr.vmem [resolvable:$false] %s13260_s5 }
0x3ff2   : > { %12857 = vmatprep.subr.bf16.mxu1 %v12856_v59  ;;  %v9457_v4 = vrot.slane %v9452_v8, %v14055_v13  ;;  %v9461_v61 = vrot.slane %v9452_v8, %v14063_v62  ;;  %v9573_v13 = vld [vmem:[%s17297_s21] sm:$0x1]  ;;  %s13262_s20 = scalar_lea.vmem %s13261_s5, 32  ;;  %p13263_p2 = scmp.lt.s32.totalorder %s17077_s3, %s13261_s5 }
0x3ff3   : > { %p13264_p3 = scmp.lt.s32.totalorder %s13262_s20, %s13256_s4 }
0x3ff5   : > { %12859 = vmatpush3.bf16.msra.mxu1 %v12858_v0  ;;  %p13265_p4 = por %p13264_p3, %p13263_p2 }
0x3ff6   : > { %12861 = vmatprep.subr.bf16.mxu1 %v12860_v46 }
0x3ff7   : > { %p13266_p7 = pnand %p13265_p4, %p13259_p1 }
0x3ff9   : > { %12863 = vmatpush3.bf16.msra.mxu1 %v12862_v55 }
0x3ffa   : > { %12865 = vmatprep.subr.bf16.mxu1 %v12864_v23 }
0x3ffd   : > { %12867 = vmatpush3.bf16.msra.mxu1 %v12866_v43 }
0x3ffe   : > { %12869 = vmatprep.subr.bf16.mxu1 %v12868_v42 }
0x4001   : > { %12871 = vmatpush3.bf16.msra.mxu1 %v12870_v25 }
0x4002   : > { %12873 = vmatprep.subr.bf16.mxu1 %v12872_v10 }
0x4005   : > { %12875 = vmatpush3.bf16.msra.mxu1 %v12874_v21 }
0x4006   : > { %12877 = vmatprep.subr.bf16.mxu1 %v12876_v5 }
0x4009   : > { %12879 = vmatpush3.bf16.msra.mxu1 %v12878_v3 }
0x40b7   : > { %v9282_v29 = vpop.f32.mrb[136].mxu1 }
0x40b8   : > { %9287 = vst [vmem:[%s825_s28] sm:$0xff] %v9282_v29  ;;  %v9284_v30 = vpop.f32.mrb[137].mxu1 }
0x40b9   : > { %9288 = vst [vmem:[%s825_s28 + $0x8] sm:$0xff] %v9284_v30  ;;  %s17299_s28 = sld [smem:[#allocation33_spill]] }
0x40bf   : > { %v9377_v9 = vpop.f32.mrb[138].mxu1  ;;  %s17300_s25 = smov %s17299_s28  ;;  %s17075_s0 = scalar_lea.hbm %s17299_s28, %s10547_s29 }
0x40c0   : > { %v9378_v32 = vadd.f32 %v9377_v9, %v9302_v1  ;;  %v9379_v35 = vpop.f32.mrb[139].mxu1 }
0x40c1   : > { %v9380_v54 = vadd.f32 %v9379_v35, %v9306_v26 }
0x40c2   : > { %v9384_v44 = vmul.f32 0.01, %v9378_v32  ;;  %vm9382_vm10 = vcmp.ge.f32.partialorder %v9378_v32, 0.0 }
0x40c3   : > { %v9385_v33 = vmul.f32 0.01, %v9380_v54  ;;  %vm9383_vm11 = vcmp.ge.f32.partialorder %v9380_v54, 0.0 }
0x40c4   : > { %v9386_v39 = vsel %vm9382_vm10, %v9378_v32, %v9384_v44 }
0x40c5   : > { %v9387_v15 = vsel %vm9383_vm11, %v9380_v54, %v9385_v33 }
0x40c6   : > { %9528 = vmatprep.mubr.f32.mxu0 %v9387_v15 }
0x40c7   : > { %9529 = vmatmul.mubr.f32.vlgmr.msra.gmra.mrb[106].mxu0 %v9386_v39 }
0x419a   : > { %v9530_v49 = vpop.f32.mrb[106].mxu0 }
0x419b   : > { %v9531_v12 = vadd.f32 %v9530_v49, %v9457_v4  ;;  %v9532_v38 = vpop.f32.mrb[107].mxu0 }
0x419c   : > { %v9533_v53 = vadd.f32 %v9532_v38, %v9461_v61 }
0x419d   : > { %v9537_v60 = vmul.f32 0.01, %v9531_v12  ;;  %vm9535_vm12 = vcmp.ge.f32.partialorder %v9531_v12, 0.0 }
0x419e   : > { %v9538_v14 = vmul.f32 0.01, %v9533_v53  ;;  %vm9536_vm13 = vcmp.ge.f32.partialorder %v9533_v53, 0.0 }
0x419f   : > { %v9539_v57 = vsel %vm9535_vm12, %v9531_v12, %v9537_v60 }
0x41a0   : > { %v9540_v41 = vsel %vm9536_vm13, %v9533_v53, %v9538_v14 }
0x41a1   : > { %9638 = vmatprep.mubr.f32.mxu1 %v9540_v41 }
0x41a2   : > { %9639 = vmatmul.mubr.f32.vlgmr.msra.gmra.mrb[140].mxu1 %v9539_v57 }
0x4275   : > { %v11448_v22 = vpop.f32.mrb[140].mxu1 }
0x4276   : > { %v11449_v62 = vpop.f32.mrb[141].mxu1 }
0x4277   : > { %v11450_v36 = vadd.f32 %v11449_v62, %v11448_v22 }
0x4279   : > { %v9641_v37 = vadd.f32 %v11450_v36, %v9573_v13 }
0x427b   : > { %v9644_v34 = vmax.f32 %v9641_v37, 0.0 }
0x427d   : > { %v9645_v59 = vadd.f32 0.1, %v9644_v34 }
0x427f   : > { %v9647_v56 = vsel %vm9646_vm14, %v9645_v59, 0.0 }
0x4280   : > { %9648 = vadd.xlane.f32.xlu1 %v9647_v56 }
0x430d   : > { %v9649_v11 = vpop.xlane.xlu1 %9648 }
0x430e   : > { %13254 = vrcp.f32 %v9649_v11 }
0x4318   : > { %v13255_v19 = vpop.eup %13254 }
0x4319   : > { %v9651_v17 = vmul.f32 %v13255_v19, %v9645_v59 }
0x431b   : > { %9652 = vst.msk [vmem:[%s801_s1] sm:$0x1] %vm9646_vm14, %v9651_v17 }
0x431c   : > { %13269 = shalt.err (!%p13266_p7)
}
0x431d   : > { %s13270_s19 = scalar_lea.hbm %s17075_s0, 16  ;;  %s13274_s7 = scalar_lea.hbm %s17300_s25, 32 }
0x431e   : > { %p13271_p8 = scmp.ne.s32.totalorder %s17075_s0, %s13270_s19  ;;  %p13275_p11 = scmp.lt.u32.totalorder %s17075_s0, %s17300_s25 }
0x431f   : > { %p13276_p12 = scmp.lt.u32.totalorder %s13274_s7, %s13270_s19  ;;  %p13278_p0 = scmp.lt.u32.totalorder %s13270_s19, %s17075_s0 }
0x4320   : > { %p13272_p9 = pnand %p13271_p8, %p13509_p5 }
0x4321   : > { %p13277_p13 = por %p13276_p12, %p13275_p11 }
0x4322   : > { %p13273_p10 = pneg %p13272_p9 }
0x4323   : > { %p13279_p1 = por %p13278_p0, %p13277_p13 }
0x4325   : > { %p13280_p2 = pnand %p13279_p1, %p13273_p10 }
0x4327   : > { %13283 = shalt.err (!%p13280_p2)
}
0x4328   : > { %12880 = dma.vmem_to_hbm [thread:$0]  (%p13509_p5), %s17077_s3, 16, %s17075_s0, %s9654_s18  }
0x4329 PF: > { %s17301_s22 = sld [smem:[#allocation8_spill]]  ;;  %s17302_s27 = sld [smem:[#allocation5_spill]] }
0x432f   : > { %p12886_p3 = scmp.ge.s32.totalorder %s17301_s22, 2  ;;  %s9686_s4 = sand.u32 1, %s17302_s27  }
0x4330   : > { %s9687_s17 = scalar_lea.sflag [#allocation3], %s9686_s4 }
0x4331   : > { %p12883_p4 = pnand %p12886_p3, %p13513_p6 }
0x4333   : > { %13301 = dma.done.wait (!%p12883_p4), %s9687_s17, 16  }
0x4334   : > { %13303 = vsyncadd (!%p12883_p4), %s9687_s17, 4294967280  ;;  %s17304_s28 = sld [smem:[#allocation10_spill]]  ;;  %s17305_s27 = sld [smem:[#allocation6_spill]] }
0x4335   : > { %s17306_s3 = sld [smem:[#allocation7_spill]]  ;;  %s17307_s7 = sld [smem:[#allocation11_spill]] }
0x433a   : > { %p37_p7 = scmp.ge.s32.totalorder %s17304_s28, 4  }
0x433c   :  { %39 = sbr.rel (!%p37_p7) target bundleno = 25 (0x19), region = 206 }
0x4343   :  { %9699 = vsyncpa [#allocation3], 1 }
0x4344   :  { %9701 = vsyncpa [#allocation3 + $0x1], 1 }

</bundles_post_ra>
